<compile_context>
chip_gen: v6e
topology: v6e:2x2x1
jax: 0.10.0
libtpu: 0.0.40
codegen_flags: <defaults>
</compile_context>

<pallas_src>
import jax
import jax.numpy as jnp
from jax.experimental import pallas as pl
from jax.experimental.pallas import tpu as pltpu

EPS = 1e-5  # BatchNorm eps
_N_W = 28   # number of weight arrays fed to the fused kernel


# ------------------------------ fused kernel -------------------------------

def _fused_kernel(*refs):
    sig = refs[0]                       # (1, 263, 8) padded signal, phases on lanes
    w = refs[1:1 + _N_W]                # weights (VMEM resident)
    out_ref = refs[1 + _N_W]            # (1, 1, n_classes)
    hs16, hs32, hs64, p4 = refs[2 + _N_W:]
    f32 = jnp.float32

    def pool_win(v, lo, shift=0):
        # rows i of the result = max(v[2*(i+shift)], v[2*(i+shift)+1]).
        # Stride-2 deinterleave as a 0/1 selection matmul on the idle MXU.
        L, C = v.shape
        r = jax.lax.broadcasted_iota(jnp.int32, (lo, L), 0)
        c = jax.lax.broadcasted_iota(jnp.int32, (lo, L), 1)
        sel_e = jnp.where(c == 2 * (r + shift), 1.0, 0.0).astype(f32)
        sel_o = jnp.where(c == 2 * (r + shift) + 1, 1.0, 0.0).astype(f32)
        return jnp.maximum(
            jnp.dot(sel_e, v, preferred_element_type=f32),
            jnp.dot(sel_o, v, preferred_element_type=f32))

    def cba(h, hs, dw_w, dw_b, pw_w, pw_b):
        # depthwise Conv1d(k=3, pad=1, groups=C)+BN+ReLU, then 1x1 Conv+BN+ReLU
        # (torch block: dwconv -> BN -> ReLU -> pwconv -> BN -> ReLU).
        L, C = h.shape
        hs[pl.ds(0, 1), :] = jnp.zeros((1, C), f32)       # zero halo rows
        hs[pl.ds(L + 1, 1), :] = jnp.zeros((1, C), f32)
        hs[pl.ds(1, L), :] = h
        left = hs[pl.ds(0, L), :]                          # h[i-1] (0 at edge)
        right = hs[pl.ds(2, L), :]                         # h[i+1] (0 at edge)
        y = left * dw_w[0] + h * dw_w[1] + right * dw_w[2] + dw_b[...]
        y = jnp.maximum(y, 0.0)
        z = jnp.dot(y, pw_w[...], preferred_element_type=f32) + pw_b[...]
        return jnp.maximum(z, 0.0)

    def resblock(h, pw, hs_a, hs_b):
        y = cba(h, hs_a, pw[0], pw[1], pw[2], pw[3])
        y = cba(y, hs_b, pw[4], pw[5], pw[6], pw[7])
        skip = jnp.dot(h, pw[8][...], preferred_element_type=f32) + pw[9][...]
        return y + skip

    # ---- first_conv: Conv1d(1,16,64,stride=8,pad=28) + BN + ReLU ----------
    acc = jnp.zeros((256, 16), f32)
    for q in range(8):                  # stride-8 windows built in-kernel
        acc = acc + jnp.dot(sig[0, q:q + 256, :], w[0][q],
                            preferred_element_type=f32)
    h = jnp.maximum(acc + w[1][...], 0.0)                  # (256, 16)

    # ---- MaxPool(2,2) + ResBlock(16,32,64) --------------------------------
    h = pool_win(h, 128)                                   # (128, 16)
    h = resblock(h, w[2:12], hs16, hs32)                   # (128, 64)

    # ---- MaxPool(2,2) + ResBlock(64,64,64) --------------------------------
    h = pool_win(h, 64)                                    # (64, 64)
    h = resblock(h, w[12:22], hs64, hs64)                  # (64, 64)

    # ---- MaxPool(2,2) + Conv1d(64,64,3,valid) + BN + ReLU ------------------
    # pool fused into the k-tap window selection (3 accumulating dots, K=64)
    acc = jnp.zeros((30, 64), f32)
    for k in range(3):
        acc = acc + jnp.dot(pool_win(h, 30, shift=k), w[22][k],
                            preferred_element_type=f32)
    p4[...] = jnp.maximum(acc + w[23][...], 0.0)           # (30, 64)

    # ---- MaxPool(2,2) + Flatten(torch order folded into lin1_w) +
    #      Linear(960,100) + BN + ReLU --------------------------------------
    acc = jnp.zeros((1, 100), f32)
    for l in range(15):
        row = jnp.maximum(p4[pl.ds(2 * l, 1), :], p4[pl.ds(2 * l + 1, 1), :])
        acc = acc + jnp.dot(row, w[24][l], preferred_element_type=f32)
    h1 = jnp.maximum(acc + w[25][...], 0.0)                # (1, 100)

    # ---- Linear(100, n_classes) --------------------------------------------
    out_ref[0] = (jnp.dot(h1, w[26][...], preferred_element_type=f32)
                  + w[27][...])


# --------------------------- parameter building ----------------------------

def _bn_init(key, c):
    k1, k2, k3, k4 = jax.random.split(key, 4)
    gamma = 1.0 + 0.1 * jax.random.normal(k1, (c,), jnp.float32)
    beta = 0.1 * jax.random.normal(k2, (c,), jnp.float32)
    mean = 0.1 * jax.random.normal(k3, (c,), jnp.float32)
    var = 1.0 + 0.1 * jax.random.uniform(k4, (c,), jnp.float32)
    return gamma, beta, mean, var


def _fold_bn_mat(w_mat, b, bn):
    gamma, beta, mean, var = bn
    s = gamma * jax.lax.rsqrt(var + EPS)
    return w_mat * s[None, :], (b - mean) * s + beta


def _conv_w(key, cout, cin, k):
    std = 1.0 / jnp.sqrt(jnp.float32(cin * k))
    kw, kb = jax.random.split(key)
    w = std * jax.random.normal(kw, (cout, cin, k), jnp.float32)
    b = std * jax.random.normal(kb, (cout,), jnp.float32)
    return w, b


def _init_cba(key, cin, cout, k=3):
    k1, k2, k3, k4 = jax.random.split(key, 4)
    dw_w, dw_b = _conv_w(k1, cin, 1, k)                       # depthwise
    g, be, mu, va = _bn_init(k2, cin)                         # inner BN folded
    s = g * jax.lax.rsqrt(va + EPS)
    dw_w3 = jnp.transpose(dw_w[:, 0, :], (1, 0)) * s[None, :]  # (k, cin)
    dw_bf = (dw_b - mu) * s + be
    pw_w, pw_b = _conv_w(k3, cout, cin, 1)                    # pointwise
    pw_mat, pw_bf = _fold_bn_mat(pw_w[:, :, 0].T, pw_b, _bn_init(k4, cout))
    return dict(dw_w=dw_w3.reshape(k, 1, cin), dw_b=dw_bf.reshape(1, cin),
                pw_w=pw_mat, pw_b=pw_bf.reshape(1, cout))


def _init_resblock(key, cin, cmid, cout, k=3):
    k1, k2, k3 = jax.random.split(key, 3)
    l1 = _init_cba(k1, cin, cmid, k)
    l2 = _init_cba(k2, cmid, cout, k)
    sk_w, sk_b = _conv_w(k3, cout, cin, 1)
    return dict(l1=l1, l2=l2, skip_w=sk_w[:, :, 0].T,
                skip_b=sk_b.reshape(1, cout))


def init_params(key, n_classes=10):
    ks = jax.random.split(key, 9)
    # first_conv Conv1d(1,16,64,stride=8,pad=28) + BN(16), folded
    fw, fb = _conv_w(ks[0], 16, 1, 64)
    fmat, fbias = _fold_bn_mat(fw[:, 0, :].T, fb, _bn_init(ks[1], 16))
    rb1 = _init_resblock(ks[2], 16, 32, 64)
    rb2 = _init_resblock(ks[3], 64, 64, 64)
    # Conv1d(64,64,3,pad=0) + BN(64), folded; weight -> (k, cin, cout)
    cw, cb = _conv_w(ks[4], 64, 64, 3)
    cmat = jnp.transpose(cw, (2, 1, 0)).reshape(3 * 64, 64)
    cmat, cbias = _fold_bn_mat(cmat, cb, _bn_init(ks[5], 64))
    # linear layers (lin_input = 64*15 = 960 for L_in = 2048) + BN(100) folded
    lin_in = 64 * 15
    std1 = 1.0 / jnp.sqrt(jnp.float32(lin_in))
    k6a, k6b = jax.random.split(ks[6])
    w1 = std1 * jax.random.normal(k6a, (lin_in, 100), jnp.float32)
    b1 = std1 * jax.random.normal(k6b, (100,), jnp.float32)
    w1, b1 = _fold_bn_mat(w1, b1, _bn_init(ks[7], 100))
    k8a, k8b = jax.random.split(ks[8])
    w2 = 0.1 * jax.random.normal(k8a, (100, n_classes), jnp.float32)
    b2 = 0.1 * jax.random.normal(k8b, (n_classes,), jnp.float32)
    return dict(
        first_w=fmat.reshape(8, 8, 16),        # [phase q, tap r, cout]
        first_b=fbias.reshape(1, 16),
        rb1=rb1, rb2=rb2,
        conv_w=cmat.reshape(3, 64, 64),        # [k, cin, cout]
        conv_b=cbias.reshape(1, 64),
        # fold torch flatten order (index c*15 + l) into the weight -> [l,c,j]
        lin1_w=w1.reshape(64, 15, 100).transpose(1, 0, 2),
        lin1_b=b1.reshape(1, 100),
        lin2_w=w2, lin2_b=b2.reshape(1, n_classes))


def _flatten_params(p):
    def cba_list(d):
        return [d['dw_w'], d['dw_b'], d['pw_w'], d['pw_b']]

    def rb_list(d):
        return cba_list(d['l1']) + cba_list(d['l2']) + [d['skip_w'], d['skip_b']]

    return ([p['first_w'], p['first_b']] + rb_list(p['rb1']) + rb_list(p['rb2'])
            + [p['conv_w'], p['conv_b'], p['lin1_w'], p['lin1_b'],
               p['lin2_w'], p['lin2_b']])


def _const_zero_index(ndim):
    return lambda b: (0,) * ndim


# -------------------------------- forward ----------------------------------

def forward(params, x):
    """x: (B, 1, 2048) float32 (PyTorch NCL). Returns (B, n_classes)."""
    B = x.shape[0]
    n_classes = params['lin2_w'].shape[1]
    # only wrapper-side prep: pad the raw 2048-sample signal and view the
    # stride-8 phases on the lane axis (no im2col blow-up in HBM).
    sig = jnp.pad(x[:, 0, :], ((0, 0), (28, 28))).reshape(B, 263, 8)
    weights = _flatten_params(params)

    in_specs = [pl.BlockSpec((1, 263, 8), lambda b: (b, 0, 0))]
    for wa in weights:
        in_specs.append(pl.BlockSpec(wa.shape, _const_zero_index(wa.ndim)))

    grid_spec = pltpu.PrefetchScalarGridSpec(
        num_scalar_prefetch=0,
        grid=(B,),
        in_specs=in_specs,
        out_specs=pl.BlockSpec((1, 1, n_classes), lambda b: (b, 0, 0)),
        scratch_shapes=[
            pltpu.VMEM((130, 16), jnp.float32),   # halo buf (rb1.layer1)
            pltpu.VMEM((130, 32), jnp.float32),   # halo buf (rb1.layer2)
            pltpu.VMEM((66, 64), jnp.float32),    # halo buf (rb2 layers)
            pltpu.VMEM((30, 64), jnp.float32),    # final conv output
        ],
    )
    out = pl.pallas_call(
        _fused_kernel,
        grid_spec=grid_spec,
        out_shape=jax.ShapeDtypeStruct((B, 1, n_classes), jnp.float32),
        compiler_params=pltpu.CompilerParams(
            dimension_semantics=("parallel",),    # v7x: one batch elem per TC
            vmem_limit_bytes=32 * 1024 * 1024),
    )(sig, *weights)
    return out.reshape(B, n_classes)


# --------------------------- pure-JAX reference ----------------------------

_PH = jax.lax.Precision.HIGHEST


def _reference_forward(params, x):
    B = x.shape[0]
    sig = jnp.pad(x[:, 0, :], ((0, 0), (28, 28)))
    idx = (jnp.arange(256) * 8)[:, None] + jnp.arange(64)[None, :]
    patches = sig[:, idx]                                     # (B, 256, 64)
    fw = params['first_w'].reshape(64, 16)
    h = jax.nn.relu(jnp.matmul(patches, fw, precision=_PH) + params['first_b'])

    def pool(v):
        b, L, C = v.shape
        return jnp.max(v.reshape(b, L // 2, 2, C), axis=2)

    def cba(p, v):
        dw = p['dw_w'][:, 0, :]
        L = v.shape[1]
        vp = jnp.pad(v, ((0, 0), (1, 1), (0, 0)))
        y = (vp[:, 0:L] * dw[0] + vp[:, 1:L + 1] * dw[1]
             + vp[:, 2:L + 2] * dw[2] + p['dw_b'])
        y = jax.nn.relu(y)
        return jax.nn.relu(jnp.matmul(y, p['pw_w'], precision=_PH) + p['pw_b'])

    def rb(p, v):
        y = cba(p['l2'], cba(p['l1'], v))
        return y + jnp.matmul(v, p['skip_w'], precision=_PH) + p['skip_b']

    h = pool(h)
    h = rb(params['rb1'], h)
    h = pool(h)
    h = rb(params['rb2'], h)
    h = pool(h)                                               # (B, 32, 64)
    L = h.shape[1] - 2
    cw = params['conv_w']
    y = sum(jnp.matmul(h[:, k:k + L], cw[k], precision=_PH) for k in range(3))
    h = pool(jax.nn.relu(y + params['conv_b']))               # (B, 15, 64)
    h1 = jnp.einsum('blc,lcj->bj', h, params['lin1_w'], precision=_PH)
    h1 = jax.nn.relu(h1 + params['lin1_b'])
    return jnp.matmul(h1, params['lin2_w'], precision=_PH) + params['lin2_b']


if __name__ == "__main__":
    key = jax.random.PRNGKey(0)
    pkey, xkey = jax.random.split(key)
    params = init_params(pkey, n_classes=10)
    x = jax.random.normal(xkey, (2, 1, 2048), jnp.float32)

    out = jax.block_until_ready(jax.jit(forward)(params, x))
    assert out.shape == (2, 10) and out.dtype == jnp.float32

    ref = jax.block_until_ready(jax.jit(_reference_forward)(params, x))
    err = float(jnp.max(jnp.abs(out - ref)))
    assert err < 1e-2, f"kernel/reference mismatch: {err}"
    print("KERNEL_OK")
</pallas_src>

<mosaic_0001>
module attributes {stable_mosaic.version = 11 : i64} {
  func.func @_fused_kernel(%arg0: i32, %arg1: memref<1x263x8xf32, #tpu.memory_space<vmem>>, %arg2: memref<8x8x16xf32, #tpu.memory_space<vmem>>, %arg3: memref<1x16xf32, #tpu.memory_space<vmem>>, %arg4: memref<3x1x16xf32, #tpu.memory_space<vmem>>, %arg5: memref<1x16xf32, #tpu.memory_space<vmem>>, %arg6: memref<16x32xf32, #tpu.memory_space<vmem>>, %arg7: memref<1x32xf32, #tpu.memory_space<vmem>>, %arg8: memref<3x1x32xf32, #tpu.memory_space<vmem>>, %arg9: memref<1x32xf32, #tpu.memory_space<vmem>>, %arg10: memref<32x64xf32, #tpu.memory_space<vmem>>, %arg11: memref<1x64xf32, #tpu.memory_space<vmem>>, %arg12: memref<16x64xf32, #tpu.memory_space<vmem>>, %arg13: memref<1x64xf32, #tpu.memory_space<vmem>>, %arg14: memref<3x1x64xf32, #tpu.memory_space<vmem>>, %arg15: memref<1x64xf32, #tpu.memory_space<vmem>>, %arg16: memref<64x64xf32, #tpu.memory_space<vmem>>, %arg17: memref<1x64xf32, #tpu.memory_space<vmem>>, %arg18: memref<3x1x64xf32, #tpu.memory_space<vmem>>, %arg19: memref<1x64xf32, #tpu.memory_space<vmem>>, %arg20: memref<64x64xf32, #tpu.memory_space<vmem>>, %arg21: memref<1x64xf32, #tpu.memory_space<vmem>>, %arg22: memref<64x64xf32, #tpu.memory_space<vmem>>, %arg23: memref<1x64xf32, #tpu.memory_space<vmem>>, %arg24: memref<3x64x64xf32, #tpu.memory_space<vmem>>, %arg25: memref<1x64xf32, #tpu.memory_space<vmem>>, %arg26: memref<15x64x100xf32, #tpu.memory_space<vmem>>, %arg27: memref<1x100xf32, #tpu.memory_space<vmem>>, %arg28: memref<100x10xf32, #tpu.memory_space<vmem>>, %arg29: memref<1x10xf32, #tpu.memory_space<vmem>>, %arg30: memref<1x1x10xf32, #tpu.memory_space<vmem>>, %arg31: memref<130x16xf32, #tpu.memory_space<vmem>>, %arg32: memref<130x32xf32, #tpu.memory_space<vmem>>, %arg33: memref<66x64xf32, #tpu.memory_space<vmem>>, %arg34: memref<30x64xf32, #tpu.memory_space<vmem>>) attributes {dimension_semantics = [#tpu.dimension_semantics<parallel>], iteration_bounds = array<i64: 2>, scalar_prefetch = 0 : i64, scratch_operands = 4 : i64, tpu.core_type = #tpu.core_type<tc>, window_params = [{transform_indices = @transform_0, window_bounds = array<i64: 1, 263, 8>}, {pipeline_mode = #tpu.pipeline_mode<synchronous>, transform_indices = @transform_1, window_bounds = array<i64: 8, 8, 16>}, {pipeline_mode = #tpu.pipeline_mode<synchronous>, transform_indices = @transform_2, window_bounds = array<i64: 1, 16>}, {pipeline_mode = #tpu.pipeline_mode<synchronous>, transform_indices = @transform_3, window_bounds = array<i64: 3, 1, 16>}, {pipeline_mode = #tpu.pipeline_mode<synchronous>, transform_indices = @transform_4, window_bounds = array<i64: 1, 16>}, {pipeline_mode = #tpu.pipeline_mode<synchronous>, transform_indices = @transform_5, window_bounds = array<i64: 16, 32>}, {pipeline_mode = #tpu.pipeline_mode<synchronous>, transform_indices = @transform_6, window_bounds = array<i64: 1, 32>}, {pipeline_mode = #tpu.pipeline_mode<synchronous>, transform_indices = @transform_7, window_bounds = array<i64: 3, 1, 32>}, {pipeline_mode = #tpu.pipeline_mode<synchronous>, transform_indices = @transform_8, window_bounds = array<i64: 1, 32>}, {pipeline_mode = #tpu.pipeline_mode<synchronous>, transform_indices = @transform_9, window_bounds = array<i64: 32, 64>}, {pipeline_mode = #tpu.pipeline_mode<synchronous>, transform_indices = @transform_10, window_bounds = array<i64: 1, 64>}, {pipeline_mode = #tpu.pipeline_mode<synchronous>, transform_indices = @transform_11, window_bounds = array<i64: 16, 64>}, {pipeline_mode = #tpu.pipeline_mode<synchronous>, transform_indices = @transform_12, window_bounds = array<i64: 1, 64>}, {pipeline_mode = #tpu.pipeline_mode<synchronous>, transform_indices = @transform_13, window_bounds = array<i64: 3, 1, 64>}, {pipeline_mode = #tpu.pipeline_mode<synchronous>, transform_indices = @transform_14, window_bounds = array<i64: 1, 64>}, {pipeline_mode = #tpu.pipeline_mode<synchronous>, transform_indices = @transform_15, window_bounds = array<i64: 64, 64>}, {pipeline_mode = #tpu.pipeline_mode<synchronous>, transform_indices = @transform_16, window_bounds = array<i64: 1, 64>}, {pipeline_mode = #tpu.pipeline_mode<synchronous>, transform_indices = @transform_17, window_bounds = array<i64: 3, 1, 64>}, {pipeline_mode = #tpu.pipeline_mode<synchronous>, transform_indices = @transform_18, window_bounds = array<i64: 1, 64>}, {pipeline_mode = #tpu.pipeline_mode<synchronous>, transform_indices = @transform_19, window_bounds = array<i64: 64, 64>}, {pipeline_mode = #tpu.pipeline_mode<synchronous>, transform_indices = @transform_20, window_bounds = array<i64: 1, 64>}, {pipeline_mode = #tpu.pipeline_mode<synchronous>, transform_indices = @transform_21, window_bounds = array<i64: 64, 64>}, {pipeline_mode = #tpu.pipeline_mode<synchronous>, transform_indices = @transform_22, window_bounds = array<i64: 1, 64>}, {pipeline_mode = #tpu.pipeline_mode<synchronous>, transform_indices = @transform_23, window_bounds = array<i64: 3, 64, 64>}, {pipeline_mode = #tpu.pipeline_mode<synchronous>, transform_indices = @transform_24, window_bounds = array<i64: 1, 64>}, {pipeline_mode = #tpu.pipeline_mode<synchronous>, transform_indices = @transform_25, window_bounds = array<i64: 15, 64, 100>}, {pipeline_mode = #tpu.pipeline_mode<synchronous>, transform_indices = @transform_26, window_bounds = array<i64: 1, 100>}, {pipeline_mode = #tpu.pipeline_mode<synchronous>, transform_indices = @transform_27, window_bounds = array<i64: 100, 10>}, {pipeline_mode = #tpu.pipeline_mode<synchronous>, transform_indices = @transform_28, window_bounds = array<i64: 1, 10>}, {transform_indices = @transform_29, window_bounds = array<i64: 1, 1, 10>}]} {
    %cst = arith.constant 0.000000e+00 : f32
    %0 = vector.broadcast %cst : f32 to vector<256x16xf32>
    %c0 = arith.constant 0 : index
    %c0_0 = arith.constant 0 : index
    %c0_1 = arith.constant 0 : index
    %1 = vector.load %arg1[%c0, %c0_0, %c0_1] : memref<1x263x8xf32, #tpu.memory_space<vmem>>, vector<1x256x8xf32>
    %2 = vector.shape_cast %1 : vector<1x256x8xf32> to vector<256x8xf32>
    %c0_2 = arith.constant 0 : index
    %c0_3 = arith.constant 0 : index
    %c0_4 = arith.constant 0 : index
    %3 = vector.load %arg2[%c0_2, %c0_3, %c0_4] : memref<8x8x16xf32, #tpu.memory_space<vmem>>, vector<1x8x16xf32>
    %4 = vector.shape_cast %3 : vector<1x8x16xf32> to vector<8x16xf32>
    %cst_5 = arith.constant dense<0.000000e+00> : vector<256x16xf32>
    %5 = tpu.matmul %2, %4, %cst_5 {dimension_numbers = #tpu.dot_dimension_numbers<[1], [0], [0], [1], [0, 0, 1, 1], [], []>} : vector<256x8xf32>, vector<8x16xf32>, vector<256x16xf32> -> vector<256x16xf32>
    %6 = arith.addf %0, %5 : vector<256x16xf32>
    %c0_6 = arith.constant 0 : index
    %c1 = arith.constant 1 : index
    %c0_7 = arith.constant 0 : index
    %7 = vector.load %arg1[%c0_6, %c1, %c0_7] : memref<1x263x8xf32, #tpu.memory_space<vmem>>, vector<1x256x8xf32>
    %8 = vector.shape_cast %7 : vector<1x256x8xf32> to vector<256x8xf32>
    %c1_8 = arith.constant 1 : index
    %c0_9 = arith.constant 0 : index
    %c0_10 = arith.constant 0 : index
    %9 = vector.load %arg2[%c1_8, %c0_9, %c0_10] : memref<8x8x16xf32, #tpu.memory_space<vmem>>, vector<1x8x16xf32>
    %10 = vector.shape_cast %9 : vector<1x8x16xf32> to vector<8x16xf32>
    %cst_11 = arith.constant dense<0.000000e+00> : vector<256x16xf32>
    %11 = tpu.matmul %8, %10, %cst_11 {dimension_numbers = #tpu.dot_dimension_numbers<[1], [0], [0], [1], [0, 0, 1, 1], [], []>} : vector<256x8xf32>, vector<8x16xf32>, vector<256x16xf32> -> vector<256x16xf32>
    %12 = arith.addf %6, %11 : vector<256x16xf32>
    %c0_12 = arith.constant 0 : index
    %c2 = arith.constant 2 : index
    %c0_13 = arith.constant 0 : index
    %13 = vector.load %arg1[%c0_12, %c2, %c0_13] : memref<1x263x8xf32, #tpu.memory_space<vmem>>, vector<1x256x8xf32>
    %14 = vector.shape_cast %13 : vector<1x256x8xf32> to vector<256x8xf32>
    %c2_14 = arith.constant 2 : index
    %c0_15 = arith.constant 0 : index
    %c0_16 = arith.constant 0 : index
    %15 = vector.load %arg2[%c2_14, %c0_15, %c0_16] : memref<8x8x16xf32, #tpu.memory_space<vmem>>, vector<1x8x16xf32>
    %16 = vector.shape_cast %15 : vector<1x8x16xf32> to vector<8x16xf32>
    %cst_17 = arith.constant dense<0.000000e+00> : vector<256x16xf32>
    %17 = tpu.matmul %14, %16, %cst_17 {dimension_numbers = #tpu.dot_dimension_numbers<[1], [0], [0], [1], [0, 0, 1, 1], [], []>} : vector<256x8xf32>, vector<8x16xf32>, vector<256x16xf32> -> vector<256x16xf32>
    %18 = arith.addf %12, %17 : vector<256x16xf32>
    %c0_18 = arith.constant 0 : index
    %c3 = arith.constant 3 : index
    %c0_19 = arith.constant 0 : index
    %19 = vector.load %arg1[%c0_18, %c3, %c0_19] : memref<1x263x8xf32, #tpu.memory_space<vmem>>, vector<1x256x8xf32>
    %20 = vector.shape_cast %19 : vector<1x256x8xf32> to vector<256x8xf32>
    %c3_20 = arith.constant 3 : index
    %c0_21 = arith.constant 0 : index
    %c0_22 = arith.constant 0 : index
    %21 = vector.load %arg2[%c3_20, %c0_21, %c0_22] : memref<8x8x16xf32, #tpu.memory_space<vmem>>, vector<1x8x16xf32>
    %22 = vector.shape_cast %21 : vector<1x8x16xf32> to vector<8x16xf32>
    %cst_23 = arith.constant dense<0.000000e+00> : vector<256x16xf32>
    %23 = tpu.matmul %20, %22, %cst_23 {dimension_numbers = #tpu.dot_dimension_numbers<[1], [0], [0], [1], [0, 0, 1, 1], [], []>} : vector<256x8xf32>, vector<8x16xf32>, vector<256x16xf32> -> vector<256x16xf32>
    %24 = arith.addf %18, %23 : vector<256x16xf32>
    %c0_24 = arith.constant 0 : index
    %c4 = arith.constant 4 : index
    %c0_25 = arith.constant 0 : index
    %25 = vector.load %arg1[%c0_24, %c4, %c0_25] : memref<1x263x8xf32, #tpu.memory_space<vmem>>, vector<1x256x8xf32>
    %26 = vector.shape_cast %25 : vector<1x256x8xf32> to vector<256x8xf32>
    %c4_26 = arith.constant 4 : index
    %c0_27 = arith.constant 0 : index
    %c0_28 = arith.constant 0 : index
    %27 = vector.load %arg2[%c4_26, %c0_27, %c0_28] : memref<8x8x16xf32, #tpu.memory_space<vmem>>, vector<1x8x16xf32>
    %28 = vector.shape_cast %27 : vector<1x8x16xf32> to vector<8x16xf32>
    %cst_29 = arith.constant dense<0.000000e+00> : vector<256x16xf32>
    %29 = tpu.matmul %26, %28, %cst_29 {dimension_numbers = #tpu.dot_dimension_numbers<[1], [0], [0], [1], [0, 0, 1, 1], [], []>} : vector<256x8xf32>, vector<8x16xf32>, vector<256x16xf32> -> vector<256x16xf32>
    %30 = arith.addf %24, %29 : vector<256x16xf32>
    %c0_30 = arith.constant 0 : index
    %c5 = arith.constant 5 : index
    %c0_31 = arith.constant 0 : index
    %31 = vector.load %arg1[%c0_30, %c5, %c0_31] : memref<1x263x8xf32, #tpu.memory_space<vmem>>, vector<1x256x8xf32>
    %32 = vector.shape_cast %31 : vector<1x256x8xf32> to vector<256x8xf32>
    %c5_32 = arith.constant 5 : index
    %c0_33 = arith.constant 0 : index
    %c0_34 = arith.constant 0 : index
    %33 = vector.load %arg2[%c5_32, %c0_33, %c0_34] : memref<8x8x16xf32, #tpu.memory_space<vmem>>, vector<1x8x16xf32>
    %34 = vector.shape_cast %33 : vector<1x8x16xf32> to vector<8x16xf32>
    %cst_35 = arith.constant dense<0.000000e+00> : vector<256x16xf32>
    %35 = tpu.matmul %32, %34, %cst_35 {dimension_numbers = #tpu.dot_dimension_numbers<[1], [0], [0], [1], [0, 0, 1, 1], [], []>} : vector<256x8xf32>, vector<8x16xf32>, vector<256x16xf32> -> vector<256x16xf32>
    %36 = arith.addf %30, %35 : vector<256x16xf32>
    %c0_36 = arith.constant 0 : index
    %c6 = arith.constant 6 : index
    %c0_37 = arith.constant 0 : index
    %37 = vector.load %arg1[%c0_36, %c6, %c0_37] : memref<1x263x8xf32, #tpu.memory_space<vmem>>, vector<1x256x8xf32>
    %38 = vector.shape_cast %37 : vector<1x256x8xf32> to vector<256x8xf32>
    %c6_38 = arith.constant 6 : index
    %c0_39 = arith.constant 0 : index
    %c0_40 = arith.constant 0 : index
    %39 = vector.load %arg2[%c6_38, %c0_39, %c0_40] : memref<8x8x16xf32, #tpu.memory_space<vmem>>, vector<1x8x16xf32>
    %40 = vector.shape_cast %39 : vector<1x8x16xf32> to vector<8x16xf32>
    %cst_41 = arith.constant dense<0.000000e+00> : vector<256x16xf32>
    %41 = tpu.matmul %38, %40, %cst_41 {dimension_numbers = #tpu.dot_dimension_numbers<[1], [0], [0], [1], [0, 0, 1, 1], [], []>} : vector<256x8xf32>, vector<8x16xf32>, vector<256x16xf32> -> vector<256x16xf32>
    %42 = arith.addf %36, %41 : vector<256x16xf32>
    %c0_42 = arith.constant 0 : index
    %c7 = arith.constant 7 : index
    %c0_43 = arith.constant 0 : index
    %43 = vector.load %arg1[%c0_42, %c7, %c0_43] : memref<1x263x8xf32, #tpu.memory_space<vmem>>, vector<1x256x8xf32>
    %44 = vector.shape_cast %43 : vector<1x256x8xf32> to vector<256x8xf32>
    %c7_44 = arith.constant 7 : index
    %c0_45 = arith.constant 0 : index
    %c0_46 = arith.constant 0 : index
    %45 = vector.load %arg2[%c7_44, %c0_45, %c0_46] : memref<8x8x16xf32, #tpu.memory_space<vmem>>, vector<1x8x16xf32>
    %46 = vector.shape_cast %45 : vector<1x8x16xf32> to vector<8x16xf32>
    %cst_47 = arith.constant dense<0.000000e+00> : vector<256x16xf32>
    %47 = tpu.matmul %44, %46, %cst_47 {dimension_numbers = #tpu.dot_dimension_numbers<[1], [0], [0], [1], [0, 0, 1, 1], [], []>} : vector<256x8xf32>, vector<8x16xf32>, vector<256x16xf32> -> vector<256x16xf32>
    %48 = arith.addf %42, %47 : vector<256x16xf32>
    %c0_48 = arith.constant 0 : index
    %c0_49 = arith.constant 0 : index
    %49 = vector.load %arg3[%c0_48, %c0_49] : memref<1x16xf32, #tpu.memory_space<vmem>>, vector<1x16xf32>
    %50 = vector.broadcast %49 : vector<1x16xf32> to vector<256x16xf32>
    %51 = arith.addf %48, %50 : vector<256x16xf32>
    %cst_50 = arith.constant 0.000000e+00 : f32
    %52 = vector.broadcast %cst_50 : f32 to vector<256x16xf32>
    %53 = arith.maximumf %51, %52 : vector<256x16xf32>
    %54 = tpu.iota {dimensions = array<i32: 0>} : vector<128x256xi32>
    %55 = tpu.iota {dimensions = array<i32: 1>} : vector<128x256xi32>
    %c0_i32 = arith.constant 0 : i32
    %56 = vector.broadcast %c0_i32 : i32 to vector<128x256xi32>
    %57 = arith.addi %54, %56 : vector<128x256xi32>
    %c2_i32 = arith.constant 2 : i32
    %58 = vector.broadcast %c2_i32 : i32 to vector<128x256xi32>
    %59 = arith.muli %58, %57 : vector<128x256xi32>
    %60 = arith.cmpi eq, %55, %59 : vector<128x256xi32>
    %cst_51 = arith.constant 1.000000e+00 : f32
    %cst_52 = arith.constant 0.000000e+00 : f32
    %61 = vector.broadcast %cst_51 : f32 to vector<128x256xf32>
    %62 = vector.broadcast %cst_52 : f32 to vector<128x256xf32>
    %63 = arith.select %60, %61, %62 : vector<128x256xi1>, vector<128x256xf32>
    %c0_i32_53 = arith.constant 0 : i32
    %64 = vector.broadcast %c0_i32_53 : i32 to vector<128x256xi32>
    %65 = arith.addi %54, %64 : vector<128x256xi32>
    %c2_i32_54 = arith.constant 2 : i32
    %66 = vector.broadcast %c2_i32_54 : i32 to vector<128x256xi32>
    %67 = arith.muli %66, %65 : vector<128x256xi32>
    %c1_i32 = arith.constant 1 : i32
    %68 = vector.broadcast %c1_i32 : i32 to vector<128x256xi32>
    %69 = arith.addi %67, %68 : vector<128x256xi32>
    %70 = arith.cmpi eq, %55, %69 : vector<128x256xi32>
    %cst_55 = arith.constant 1.000000e+00 : f32
    %cst_56 = arith.constant 0.000000e+00 : f32
    %71 = vector.broadcast %cst_55 : f32 to vector<128x256xf32>
    %72 = vector.broadcast %cst_56 : f32 to vector<128x256xf32>
    %73 = arith.select %70, %71, %72 : vector<128x256xi1>, vector<128x256xf32>
    %cst_57 = arith.constant dense<0.000000e+00> : vector<128x16xf32>
    %74 = tpu.matmul %63, %53, %cst_57 {dimension_numbers = #tpu.dot_dimension_numbers<[1], [0], [0], [1], [0, 0, 1, 1], [], []>} : vector<128x256xf32>, vector<256x16xf32>, vector<128x16xf32> -> vector<128x16xf32>
    %cst_58 = arith.constant dense<0.000000e+00> : vector<128x16xf32>
    %75 = tpu.matmul %73, %53, %cst_58 {dimension_numbers = #tpu.dot_dimension_numbers<[1], [0], [0], [1], [0, 0, 1, 1], [], []>} : vector<128x256xf32>, vector<256x16xf32>, vector<128x16xf32> -> vector<128x16xf32>
    %76 = arith.maximumf %74, %75 : vector<128x16xf32>
    %cst_59 = arith.constant 0.000000e+00 : f32
    %77 = vector.broadcast %cst_59 : f32 to vector<1x16xf32>
    %c0_60 = arith.constant 0 : index
    %c0_61 = arith.constant 0 : index
    %78 = vector.load %arg31[%c0_60, %c0_61] : memref<130x16xf32, #tpu.memory_space<vmem>>, vector<1x16xf32>
    tpu.vector_store %arg31[%c0_60, %c0_61], %77 {strides = array<i32>} : memref<130x16xf32, #tpu.memory_space<vmem>>, vector<1x16xf32>,
    %cst_62 = arith.constant 0.000000e+00 : f32
    %79 = vector.broadcast %cst_62 : f32 to vector<1x16xf32>
    %c129 = arith.constant 129 : index
    %c0_63 = arith.constant 0 : index
    %80 = vector.load %arg31[%c129, %c0_63] : memref<130x16xf32, #tpu.memory_space<vmem>>, vector<1x16xf32>
    tpu.vector_store %arg31[%c129, %c0_63], %79 {strides = array<i32>} : memref<130x16xf32, #tpu.memory_space<vmem>>, vector<1x16xf32>,
    %c1_64 = arith.constant 1 : index
    %c0_65 = arith.constant 0 : index
    %81 = vector.load %arg31[%c1_64, %c0_65] : memref<130x16xf32, #tpu.memory_space<vmem>>, vector<128x16xf32>
    tpu.vector_store %arg31[%c1_64, %c0_65], %76 {strides = array<i32>} : memref<130x16xf32, #tpu.memory_space<vmem>>, vector<128x16xf32>,
    %c0_66 = arith.constant 0 : index
    %c0_67 = arith.constant 0 : index
    %82 = vector.load %arg31[%c0_66, %c0_67] : memref<130x16xf32, #tpu.memory_space<vmem>>, vector<128x16xf32>
    %c2_68 = arith.constant 2 : index
    %c0_69 = arith.constant 0 : index
    %83 = vector.load %arg31[%c2_68, %c0_69] : memref<130x16xf32, #tpu.memory_space<vmem>>, vector<128x16xf32>
    %c0_70 = arith.constant 0 : index
    %c0_71 = arith.constant 0 : index
    %c0_72 = arith.constant 0 : index
    %84 = vector.load %arg4[%c0_70, %c0_71, %c0_72] : memref<3x1x16xf32, #tpu.memory_space<vmem>>, vector<1x1x16xf32>
    %85 = vector.shape_cast %84 : vector<1x1x16xf32> to vector<1x16xf32>
    %86 = vector.broadcast %85 : vector<1x16xf32> to vector<128x16xf32>
    %87 = arith.mulf %82, %86 : vector<128x16xf32>
    %c1_73 = arith.constant 1 : index
    %c0_74 = arith.constant 0 : index
    %c0_75 = arith.constant 0 : index
    %88 = vector.load %arg4[%c1_73, %c0_74, %c0_75] : memref<3x1x16xf32, #tpu.memory_space<vmem>>, vector<1x1x16xf32>
    %89 = vector.shape_cast %88 : vector<1x1x16xf32> to vector<1x16xf32>
    %90 = vector.broadcast %89 : vector<1x16xf32> to vector<128x16xf32>
    %91 = arith.mulf %76, %90 : vector<128x16xf32>
    %92 = arith.addf %87, %91 : vector<128x16xf32>
    %c2_76 = arith.constant 2 : index
    %c0_77 = arith.constant 0 : index
    %c0_78 = arith.constant 0 : index
    %93 = vector.load %arg4[%c2_76, %c0_77, %c0_78] : memref<3x1x16xf32, #tpu.memory_space<vmem>>, vector<1x1x16xf32>
    %94 = vector.shape_cast %93 : vector<1x1x16xf32> to vector<1x16xf32>
    %95 = vector.broadcast %94 : vector<1x16xf32> to vector<128x16xf32>
    %96 = arith.mulf %83, %95 : vector<128x16xf32>
    %97 = arith.addf %92, %96 : vector<128x16xf32>
    %c0_79 = arith.constant 0 : index
    %c0_80 = arith.constant 0 : index
    %98 = vector.load %arg5[%c0_79, %c0_80] : memref<1x16xf32, #tpu.memory_space<vmem>>, vector<1x16xf32>
    %99 = vector.broadcast %98 : vector<1x16xf32> to vector<128x16xf32>
    %100 = arith.addf %97, %99 : vector<128x16xf32>
    %cst_81 = arith.constant 0.000000e+00 : f32
    %101 = vector.broadcast %cst_81 : f32 to vector<128x16xf32>
    %102 = arith.maximumf %100, %101 : vector<128x16xf32>
    %c0_82 = arith.constant 0 : index
    %c0_83 = arith.constant 0 : index
    %103 = vector.load %arg6[%c0_82, %c0_83] : memref<16x32xf32, #tpu.memory_space<vmem>>, vector<16x32xf32>
    %cst_84 = arith.constant dense<0.000000e+00> : vector<128x32xf32>
    %104 = tpu.matmul %102, %103, %cst_84 {dimension_numbers = #tpu.dot_dimension_numbers<[1], [0], [0], [1], [0, 0, 1, 1], [], []>} : vector<128x16xf32>, vector<16x32xf32>, vector<128x32xf32> -> vector<128x32xf32>
    %c0_85 = arith.constant 0 : index
    %c0_86 = arith.constant 0 : index
    %105 = vector.load %arg7[%c0_85, %c0_86] : memref<1x32xf32, #tpu.memory_space<vmem>>, vector<1x32xf32>
    %106 = vector.broadcast %105 : vector<1x32xf32> to vector<128x32xf32>
    %107 = arith.addf %104, %106 : vector<128x32xf32>
    %cst_87 = arith.constant 0.000000e+00 : f32
    %108 = vector.broadcast %cst_87 : f32 to vector<128x32xf32>
    %109 = arith.maximumf %107, %108 : vector<128x32xf32>
    %cst_88 = arith.constant 0.000000e+00 : f32
    %110 = vector.broadcast %cst_88 : f32 to vector<1x32xf32>
    %c0_89 = arith.constant 0 : index
    %c0_90 = arith.constant 0 : index
    %111 = vector.load %arg32[%c0_89, %c0_90] : memref<130x32xf32, #tpu.memory_space<vmem>>, vector<1x32xf32>
    tpu.vector_store %arg32[%c0_89, %c0_90], %110 {strides = array<i32>} : memref<130x32xf32, #tpu.memory_space<vmem>>, vector<1x32xf32>,
    %cst_91 = arith.constant 0.000000e+00 : f32
    %112 = vector.broadcast %cst_91 : f32 to vector<1x32xf32>
    %c129_92 = arith.constant 129 : index
    %c0_93 = arith.constant 0 : index
    %113 = vector.load %arg32[%c129_92, %c0_93] : memref<130x32xf32, #tpu.memory_space<vmem>>, vector<1x32xf32>
    tpu.vector_store %arg32[%c129_92, %c0_93], %112 {strides = array<i32>} : memref<130x32xf32, #tpu.memory_space<vmem>>, vector<1x32xf32>,
    %c1_94 = arith.constant 1 : index
    %c0_95 = arith.constant 0 : index
    %114 = vector.load %arg32[%c1_94, %c0_95] : memref<130x32xf32, #tpu.memory_space<vmem>>, vector<128x32xf32>
    tpu.vector_store %arg32[%c1_94, %c0_95], %109 {strides = array<i32>} : memref<130x32xf32, #tpu.memory_space<vmem>>, vector<128x32xf32>,
    %c0_96 = arith.constant 0 : index
    %c0_97 = arith.constant 0 : index
    %115 = vector.load %arg32[%c0_96, %c0_97] : memref<130x32xf32, #tpu.memory_space<vmem>>, vector<128x32xf32>
    %c2_98 = arith.constant 2 : index
    %c0_99 = arith.constant 0 : index
    %116 = vector.load %arg32[%c2_98, %c0_99] : memref<130x32xf32, #tpu.memory_space<vmem>>, vector<128x32xf32>
    %c0_100 = arith.constant 0 : index
    %c0_101 = arith.constant 0 : index
    %c0_102 = arith.constant 0 : index
    %117 = vector.load %arg8[%c0_100, %c0_101, %c0_102] : memref<3x1x32xf32, #tpu.memory_space<vmem>>, vector<1x1x32xf32>
    %118 = vector.shape_cast %117 : vector<1x1x32xf32> to vector<1x32xf32>
    %119 = vector.broadcast %118 : vector<1x32xf32> to vector<128x32xf32>
    %120 = arith.mulf %115, %119 : vector<128x32xf32>
    %c1_103 = arith.constant 1 : index
    %c0_104 = arith.constant 0 : index
    %c0_105 = arith.constant 0 : index
    %121 = vector.load %arg8[%c1_103, %c0_104, %c0_105] : memref<3x1x32xf32, #tpu.memory_space<vmem>>, vector<1x1x32xf32>
    %122 = vector.shape_cast %121 : vector<1x1x32xf32> to vector<1x32xf32>
    %123 = vector.broadcast %122 : vector<1x32xf32> to vector<128x32xf32>
    %124 = arith.mulf %109, %123 : vector<128x32xf32>
    %125 = arith.addf %120, %124 : vector<128x32xf32>
    %c2_106 = arith.constant 2 : index
    %c0_107 = arith.constant 0 : index
    %c0_108 = arith.constant 0 : index
    %126 = vector.load %arg8[%c2_106, %c0_107, %c0_108] : memref<3x1x32xf32, #tpu.memory_space<vmem>>, vector<1x1x32xf32>
    %127 = vector.shape_cast %126 : vector<1x1x32xf32> to vector<1x32xf32>
    %128 = vector.broadcast %127 : vector<1x32xf32> to vector<128x32xf32>
    %129 = arith.mulf %116, %128 : vector<128x32xf32>
    %130 = arith.addf %125, %129 : vector<128x32xf32>
    %c0_109 = arith.constant 0 : index
    %c0_110 = arith.constant 0 : index
    %131 = vector.load %arg9[%c0_109, %c0_110] : memref<1x32xf32, #tpu.memory_space<vmem>>, vector<1x32xf32>
    %132 = vector.broadcast %131 : vector<1x32xf32> to vector<128x32xf32>
    %133 = arith.addf %130, %132 : vector<128x32xf32>
    %cst_111 = arith.constant 0.000000e+00 : f32
    %134 = vector.broadcast %cst_111 : f32 to vector<128x32xf32>
    %135 = arith.maximumf %133, %134 : vector<128x32xf32>
    %c0_112 = arith.constant 0 : index
    %c0_113 = arith.constant 0 : index
    %136 = vector.load %arg10[%c0_112, %c0_113] : memref<32x64xf32, #tpu.memory_space<vmem>>, vector<32x64xf32>
    %cst_114 = arith.constant dense<0.000000e+00> : vector<128x64xf32>
    %137 = tpu.matmul %135, %136, %cst_114 {dimension_numbers = #tpu.dot_dimension_numbers<[1], [0], [0], [1], [0, 0, 1, 1], [], []>} : vector<128x32xf32>, vector<32x64xf32>, vector<128x64xf32> -> vector<128x64xf32>
    %c0_115 = arith.constant 0 : index
    %c0_116 = arith.constant 0 : index
    %138 = vector.load %arg11[%c0_115, %c0_116] : memref<1x64xf32, #tpu.memory_space<vmem>>, vector<1x64xf32>
    %139 = vector.broadcast %138 : vector<1x64xf32> to vector<128x64xf32>
    %140 = arith.addf %137, %139 : vector<128x64xf32>
    %cst_117 = arith.constant 0.000000e+00 : f32
    %141 = vector.broadcast %cst_117 : f32 to vector<128x64xf32>
    %142 = arith.maximumf %140, %141 : vector<128x64xf32>
    %c0_118 = arith.constant 0 : index
    %c0_119 = arith.constant 0 : index
    %143 = vector.load %arg12[%c0_118, %c0_119] : memref<16x64xf32, #tpu.memory_space<vmem>>, vector<16x64xf32>
    %cst_120 = arith.constant dense<0.000000e+00> : vector<128x64xf32>
    %144 = tpu.matmul %76, %143, %cst_120 {dimension_numbers = #tpu.dot_dimension_numbers<[1], [0], [0], [1], [0, 0, 1, 1], [], []>} : vector<128x16xf32>, vector<16x64xf32>, vector<128x64xf32> -> vector<128x64xf32>
    %c0_121 = arith.constant 0 : index
    %c0_122 = arith.constant 0 : index
    %145 = vector.load %arg13[%c0_121, %c0_122] : memref<1x64xf32, #tpu.memory_space<vmem>>, vector<1x64xf32>
    %146 = vector.broadcast %145 : vector<1x64xf32> to vector<128x64xf32>
    %147 = arith.addf %144, %146 : vector<128x64xf32>
    %148 = arith.addf %142, %147 : vector<128x64xf32>
    %149 = tpu.iota {dimensions = array<i32: 0>} : vector<64x128xi32>
    %150 = tpu.iota {dimensions = array<i32: 1>} : vector<64x128xi32>
    %c0_i32_123 = arith.constant 0 : i32
    %151 = vector.broadcast %c0_i32_123 : i32 to vector<64x128xi32>
    %152 = arith.addi %149, %151 : vector<64x128xi32>
    %c2_i32_124 = arith.constant 2 : i32
    %153 = vector.broadcast %c2_i32_124 : i32 to vector<64x128xi32>
    %154 = arith.muli %153, %152 : vector<64x128xi32>
    %155 = arith.cmpi eq, %150, %154 : vector<64x128xi32>
    %cst_125 = arith.constant 1.000000e+00 : f32
    %cst_126 = arith.constant 0.000000e+00 : f32
    %156 = vector.broadcast %cst_125 : f32 to vector<64x128xf32>
    %157 = vector.broadcast %cst_126 : f32 to vector<64x128xf32>
    %158 = arith.select %155, %156, %157 : vector<64x128xi1>, vector<64x128xf32>
    %c0_i32_127 = arith.constant 0 : i32
    %159 = vector.broadcast %c0_i32_127 : i32 to vector<64x128xi32>
    %160 = arith.addi %149, %159 : vector<64x128xi32>
    %c2_i32_128 = arith.constant 2 : i32
    %161 = vector.broadcast %c2_i32_128 : i32 to vector<64x128xi32>
    %162 = arith.muli %161, %160 : vector<64x128xi32>
    %c1_i32_129 = arith.constant 1 : i32
    %163 = vector.broadcast %c1_i32_129 : i32 to vector<64x128xi32>
    %164 = arith.addi %162, %163 : vector<64x128xi32>
    %165 = arith.cmpi eq, %150, %164 : vector<64x128xi32>
    %cst_130 = arith.constant 1.000000e+00 : f32
    %cst_131 = arith.constant 0.000000e+00 : f32
    %166 = vector.broadcast %cst_130 : f32 to vector<64x128xf32>
    %167 = vector.broadcast %cst_131 : f32 to vector<64x128xf32>
    %168 = arith.select %165, %166, %167 : vector<64x128xi1>, vector<64x128xf32>
    %cst_132 = arith.constant dense<0.000000e+00> : vector<64x64xf32>
    %169 = tpu.matmul %158, %148, %cst_132 {dimension_numbers = #tpu.dot_dimension_numbers<[1], [0], [0], [1], [0, 0, 1, 1], [], []>} : vector<64x128xf32>, vector<128x64xf32>, vector<64x64xf32> -> vector<64x64xf32>
    %cst_133 = arith.constant dense<0.000000e+00> : vector<64x64xf32>
    %170 = tpu.matmul %168, %148, %cst_133 {dimension_numbers = #tpu.dot_dimension_numbers<[1], [0], [0], [1], [0, 0, 1, 1], [], []>} : vector<64x128xf32>, vector<128x64xf32>, vector<64x64xf32> -> vector<64x64xf32>
    %171 = arith.maximumf %169, %170 : vector<64x64xf32>
    %cst_134 = arith.constant 0.000000e+00 : f32
    %172 = vector.broadcast %cst_134 : f32 to vector<1x64xf32>
    %c0_135 = arith.constant 0 : index
    %c0_136 = arith.constant 0 : index
    %173 = vector.load %arg33[%c0_135, %c0_136] : memref<66x64xf32, #tpu.memory_space<vmem>>, vector<1x64xf32>
    tpu.vector_store %arg33[%c0_135, %c0_136], %172 {strides = array<i32>} : memref<66x64xf32, #tpu.memory_space<vmem>>, vector<1x64xf32>,
    %cst_137 = arith.constant 0.000000e+00 : f32
    %174 = vector.broadcast %cst_137 : f32 to vector<1x64xf32>
    %c65 = arith.constant 65 : index
    %c0_138 = arith.constant 0 : index
    %175 = vector.load %arg33[%c65, %c0_138] : memref<66x64xf32, #tpu.memory_space<vmem>>, vector<1x64xf32>
    tpu.vector_store %arg33[%c65, %c0_138], %174 {strides = array<i32>} : memref<66x64xf32, #tpu.memory_space<vmem>>, vector<1x64xf32>,
    %c1_139 = arith.constant 1 : index
    %c0_140 = arith.constant 0 : index
    %176 = vector.load %arg33[%c1_139, %c0_140] : memref<66x64xf32, #tpu.memory_space<vmem>>, vector<64x64xf32>
    tpu.vector_store %arg33[%c1_139, %c0_140], %171 {strides = array<i32>} : memref<66x64xf32, #tpu.memory_space<vmem>>, vector<64x64xf32>,
    %c0_141 = arith.constant 0 : index
    %c0_142 = arith.constant 0 : index
    %177 = vector.load %arg33[%c0_141, %c0_142] : memref<66x64xf32, #tpu.memory_space<vmem>>, vector<64x64xf32>
    %c2_143 = arith.constant 2 : index
    %c0_144 = arith.constant 0 : index
    %178 = vector.load %arg33[%c2_143, %c0_144] : memref<66x64xf32, #tpu.memory_space<vmem>>, vector<64x64xf32>
    %c0_145 = arith.constant 0 : index
    %c0_146 = arith.constant 0 : index
    %c0_147 = arith.constant 0 : index
    %179 = vector.load %arg14[%c0_145, %c0_146, %c0_147] : memref<3x1x64xf32, #tpu.memory_space<vmem>>, vector<1x1x64xf32>
    %180 = vector.shape_cast %179 : vector<1x1x64xf32> to vector<1x64xf32>
    %181 = vector.broadcast %180 : vector<1x64xf32> to vector<64x64xf32>
    %182 = arith.mulf %177, %181 : vector<64x64xf32>
    %c1_148 = arith.constant 1 : index
    %c0_149 = arith.constant 0 : index
    %c0_150 = arith.constant 0 : index
    %183 = vector.load %arg14[%c1_148, %c0_149, %c0_150] : memref<3x1x64xf32, #tpu.memory_space<vmem>>, vector<1x1x64xf32>
    %184 = vector.shape_cast %183 : vector<1x1x64xf32> to vector<1x64xf32>
    %185 = vector.broadcast %184 : vector<1x64xf32> to vector<64x64xf32>
    %186 = arith.mulf %171, %185 : vector<64x64xf32>
    %187 = arith.addf %182, %186 : vector<64x64xf32>
    %c2_151 = arith.constant 2 : index
    %c0_152 = arith.constant 0 : index
    %c0_153 = arith.constant 0 : index
    %188 = vector.load %arg14[%c2_151, %c0_152, %c0_153] : memref<3x1x64xf32, #tpu.memory_space<vmem>>, vector<1x1x64xf32>
    %189 = vector.shape_cast %188 : vector<1x1x64xf32> to vector<1x64xf32>
    %190 = vector.broadcast %189 : vector<1x64xf32> to vector<64x64xf32>
    %191 = arith.mulf %178, %190 : vector<64x64xf32>
    %192 = arith.addf %187, %191 : vector<64x64xf32>
    %c0_154 = arith.constant 0 : index
    %c0_155 = arith.constant 0 : index
    %193 = vector.load %arg15[%c0_154, %c0_155] : memref<1x64xf32, #tpu.memory_space<vmem>>, vector<1x64xf32>
    %194 = vector.broadcast %193 : vector<1x64xf32> to vector<64x64xf32>
    %195 = arith.addf %192, %194 : vector<64x64xf32>
    %cst_156 = arith.constant 0.000000e+00 : f32
    %196 = vector.broadcast %cst_156 : f32 to vector<64x64xf32>
    %197 = arith.maximumf %195, %196 : vector<64x64xf32>
    %c0_157 = arith.constant 0 : index
    %c0_158 = arith.constant 0 : index
    %198 = vector.load %arg16[%c0_157, %c0_158] : memref<64x64xf32, #tpu.memory_space<vmem>>, vector<64x64xf32>
    %cst_159 = arith.constant dense<0.000000e+00> : vector<64x64xf32>
    %199 = tpu.matmul %197, %198, %cst_159 {dimension_numbers = #tpu.dot_dimension_numbers<[1], [0], [0], [1], [0, 0, 1, 1], [], []>} : vector<64x64xf32>, vector<64x64xf32>, vector<64x64xf32> -> vector<64x64xf32>
    %c0_160 = arith.constant 0 : index
    %c0_161 = arith.constant 0 : index
    %200 = vector.load %arg17[%c0_160, %c0_161] : memref<1x64xf32, #tpu.memory_space<vmem>>, vector<1x64xf32>
    %201 = vector.broadcast %200 : vector<1x64xf32> to vector<64x64xf32>
    %202 = arith.addf %199, %201 : vector<64x64xf32>
    %cst_162 = arith.constant 0.000000e+00 : f32
    %203 = vector.broadcast %cst_162 : f32 to vector<64x64xf32>
    %204 = arith.maximumf %202, %203 : vector<64x64xf32>
    %cst_163 = arith.constant 0.000000e+00 : f32
    %205 = vector.broadcast %cst_163 : f32 to vector<1x64xf32>
    %c0_164 = arith.constant 0 : index
    %c0_165 = arith.constant 0 : index
    %206 = vector.load %arg33[%c0_164, %c0_165] : memref<66x64xf32, #tpu.memory_space<vmem>>, vector<1x64xf32>
    tpu.vector_store %arg33[%c0_164, %c0_165], %205 {strides = array<i32>} : memref<66x64xf32, #tpu.memory_space<vmem>>, vector<1x64xf32>,
    %cst_166 = arith.constant 0.000000e+00 : f32
    %207 = vector.broadcast %cst_166 : f32 to vector<1x64xf32>
    %c65_167 = arith.constant 65 : index
    %c0_168 = arith.constant 0 : index
    %208 = vector.load %arg33[%c65_167, %c0_168] : memref<66x64xf32, #tpu.memory_space<vmem>>, vector<1x64xf32>
    tpu.vector_store %arg33[%c65_167, %c0_168], %207 {strides = array<i32>} : memref<66x64xf32, #tpu.memory_space<vmem>>, vector<1x64xf32>,
    %c1_169 = arith.constant 1 : index
    %c0_170 = arith.constant 0 : index
    %209 = vector.load %arg33[%c1_169, %c0_170] : memref<66x64xf32, #tpu.memory_space<vmem>>, vector<64x64xf32>
    tpu.vector_store %arg33[%c1_169, %c0_170], %204 {strides = array<i32>} : memref<66x64xf32, #tpu.memory_space<vmem>>, vector<64x64xf32>,
    %c0_171 = arith.constant 0 : index
    %c0_172 = arith.constant 0 : index
    %210 = vector.load %arg33[%c0_171, %c0_172] : memref<66x64xf32, #tpu.memory_space<vmem>>, vector<64x64xf32>
    %c2_173 = arith.constant 2 : index
    %c0_174 = arith.constant 0 : index
    %211 = vector.load %arg33[%c2_173, %c0_174] : memref<66x64xf32, #tpu.memory_space<vmem>>, vector<64x64xf32>
    %c0_175 = arith.constant 0 : index
    %c0_176 = arith.constant 0 : index
    %c0_177 = arith.constant 0 : index
    %212 = vector.load %arg18[%c0_175, %c0_176, %c0_177] : memref<3x1x64xf32, #tpu.memory_space<vmem>>, vector<1x1x64xf32>
    %213 = vector.shape_cast %212 : vector<1x1x64xf32> to vector<1x64xf32>
    %214 = vector.broadcast %213 : vector<1x64xf32> to vector<64x64xf32>
    %215 = arith.mulf %210, %214 : vector<64x64xf32>
    %c1_178 = arith.constant 1 : index
    %c0_179 = arith.constant 0 : index
    %c0_180 = arith.constant 0 : index
    %216 = vector.load %arg18[%c1_178, %c0_179, %c0_180] : memref<3x1x64xf32, #tpu.memory_space<vmem>>, vector<1x1x64xf32>
    %217 = vector.shape_cast %216 : vector<1x1x64xf32> to vector<1x64xf32>
    %218 = vector.broadcast %217 : vector<1x64xf32> to vector<64x64xf32>
    %219 = arith.mulf %204, %218 : vector<64x64xf32>
    %220 = arith.addf %215, %219 : vector<64x64xf32>
    %c2_181 = arith.constant 2 : index
    %c0_182 = arith.constant 0 : index
    %c0_183 = arith.constant 0 : index
    %221 = vector.load %arg18[%c2_181, %c0_182, %c0_183] : memref<3x1x64xf32, #tpu.memory_space<vmem>>, vector<1x1x64xf32>
    %222 = vector.shape_cast %221 : vector<1x1x64xf32> to vector<1x64xf32>
    %223 = vector.broadcast %222 : vector<1x64xf32> to vector<64x64xf32>
    %224 = arith.mulf %211, %223 : vector<64x64xf32>
    %225 = arith.addf %220, %224 : vector<64x64xf32>
    %c0_184 = arith.constant 0 : index
    %c0_185 = arith.constant 0 : index
    %226 = vector.load %arg19[%c0_184, %c0_185] : memref<1x64xf32, #tpu.memory_space<vmem>>, vector<1x64xf32>
    %227 = vector.broadcast %226 : vector<1x64xf32> to vector<64x64xf32>
    %228 = arith.addf %225, %227 : vector<64x64xf32>
    %cst_186 = arith.constant 0.000000e+00 : f32
    %229 = vector.broadcast %cst_186 : f32 to vector<64x64xf32>
    %230 = arith.maximumf %228, %229 : vector<64x64xf32>
    %c0_187 = arith.constant 0 : index
    %c0_188 = arith.constant 0 : index
    %231 = vector.load %arg20[%c0_187, %c0_188] : memref<64x64xf32, #tpu.memory_space<vmem>>, vector<64x64xf32>
    %cst_189 = arith.constant dense<0.000000e+00> : vector<64x64xf32>
    %232 = tpu.matmul %230, %231, %cst_189 {dimension_numbers = #tpu.dot_dimension_numbers<[1], [0], [0], [1], [0, 0, 1, 1], [], []>} : vector<64x64xf32>, vector<64x64xf32>, vector<64x64xf32> -> vector<64x64xf32>
    %c0_190 = arith.constant 0 : index
    %c0_191 = arith.constant 0 : index
    %233 = vector.load %arg21[%c0_190, %c0_191] : memref<1x64xf32, #tpu.memory_space<vmem>>, vector<1x64xf32>
    %234 = vector.broadcast %233 : vector<1x64xf32> to vector<64x64xf32>
    %235 = arith.addf %232, %234 : vector<64x64xf32>
    %cst_192 = arith.constant 0.000000e+00 : f32
    %236 = vector.broadcast %cst_192 : f32 to vector<64x64xf32>
    %237 = arith.maximumf %235, %236 : vector<64x64xf32>
    %c0_193 = arith.constant 0 : index
    %c0_194 = arith.constant 0 : index
    %238 = vector.load %arg22[%c0_193, %c0_194] : memref<64x64xf32, #tpu.memory_space<vmem>>, vector<64x64xf32>
    %cst_195 = arith.constant dense<0.000000e+00> : vector<64x64xf32>
    %239 = tpu.matmul %171, %238, %cst_195 {dimension_numbers = #tpu.dot_dimension_numbers<[1], [0], [0], [1], [0, 0, 1, 1], [], []>} : vector<64x64xf32>, vector<64x64xf32>, vector<64x64xf32> -> vector<64x64xf32>
    %c0_196 = arith.constant 0 : index
    %c0_197 = arith.constant 0 : index
    %240 = vector.load %arg23[%c0_196, %c0_197] : memref<1x64xf32, #tpu.memory_space<vmem>>, vector<1x64xf32>
    %241 = vector.broadcast %240 : vector<1x64xf32> to vector<64x64xf32>
    %242 = arith.addf %239, %241 : vector<64x64xf32>
    %243 = arith.addf %237, %242 : vector<64x64xf32>
    %cst_198 = arith.constant 0.000000e+00 : f32
    %244 = vector.broadcast %cst_198 : f32 to vector<30x64xf32>
    %245 = tpu.iota {dimensions = array<i32: 0>} : vector<30x64xi32>
    %246 = tpu.iota {dimensions = array<i32: 1>} : vector<30x64xi32>
    %c0_i32_199 = arith.constant 0 : i32
    %247 = vector.broadcast %c0_i32_199 : i32 to vector<30x64xi32>
    %248 = arith.addi %245, %247 : vector<30x64xi32>
    %c2_i32_200 = arith.constant 2 : i32
    %249 = vector.broadcast %c2_i32_200 : i32 to vector<30x64xi32>
    %250 = arith.muli %249, %248 : vector<30x64xi32>
    %251 = arith.cmpi eq, %246, %250 : vector<30x64xi32>
    %cst_201 = arith.constant 1.000000e+00 : f32
    %cst_202 = arith.constant 0.000000e+00 : f32
    %252 = vector.broadcast %cst_201 : f32 to vector<30x64xf32>
    %253 = vector.broadcast %cst_202 : f32 to vector<30x64xf32>
    %254 = arith.select %251, %252, %253 : vector<30x64xi1>, vector<30x64xf32>
    %c0_i32_203 = arith.constant 0 : i32
    %255 = vector.broadcast %c0_i32_203 : i32 to vector<30x64xi32>
    %256 = arith.addi %245, %255 : vector<30x64xi32>
    %c2_i32_204 = arith.constant 2 : i32
    %257 = vector.broadcast %c2_i32_204 : i32 to vector<30x64xi32>
    %258 = arith.muli %257, %256 : vector<30x64xi32>
    %c1_i32_205 = arith.constant 1 : i32
    %259 = vector.broadcast %c1_i32_205 : i32 to vector<30x64xi32>
    %260 = arith.addi %258, %259 : vector<30x64xi32>
    %261 = arith.cmpi eq, %246, %260 : vector<30x64xi32>
    %cst_206 = arith.constant 1.000000e+00 : f32
    %cst_207 = arith.constant 0.000000e+00 : f32
    %262 = vector.broadcast %cst_206 : f32 to vector<30x64xf32>
    %263 = vector.broadcast %cst_207 : f32 to vector<30x64xf32>
    %264 = arith.select %261, %262, %263 : vector<30x64xi1>, vector<30x64xf32>
    %cst_208 = arith.constant dense<0.000000e+00> : vector<30x64xf32>
    %265 = tpu.matmul %254, %243, %cst_208 {dimension_numbers = #tpu.dot_dimension_numbers<[1], [0], [0], [1], [0, 0, 1, 1], [], []>} : vector<30x64xf32>, vector<64x64xf32>, vector<30x64xf32> -> vector<30x64xf32>
    %cst_209 = arith.constant dense<0.000000e+00> : vector<30x64xf32>
    %266 = tpu.matmul %264, %243, %cst_209 {dimension_numbers = #tpu.dot_dimension_numbers<[1], [0], [0], [1], [0, 0, 1, 1], [], []>} : vector<30x64xf32>, vector<64x64xf32>, vector<30x64xf32> -> vector<30x64xf32>
    %267 = arith.maximumf %265, %266 : vector<30x64xf32>
    %c0_210 = arith.constant 0 : index
    %c0_211 = arith.constant 0 : index
    %c0_212 = arith.constant 0 : index
    %268 = vector.load %arg24[%c0_210, %c0_211, %c0_212] : memref<3x64x64xf32, #tpu.memory_space<vmem>>, vector<1x64x64xf32>
    %269 = vector.shape_cast %268 : vector<1x64x64xf32> to vector<64x64xf32>
    %cst_213 = arith.constant dense<0.000000e+00> : vector<30x64xf32>
    %270 = tpu.matmul %267, %269, %cst_213 {dimension_numbers = #tpu.dot_dimension_numbers<[1], [0], [0], [1], [0, 0, 1, 1], [], []>} : vector<30x64xf32>, vector<64x64xf32>, vector<30x64xf32> -> vector<30x64xf32>
    %271 = arith.addf %244, %270 : vector<30x64xf32>
    %272 = tpu.iota {dimensions = array<i32: 0>} : vector<30x64xi32>
    %273 = tpu.iota {dimensions = array<i32: 1>} : vector<30x64xi32>
    %c1_i32_214 = arith.constant 1 : i32
    %274 = vector.broadcast %c1_i32_214 : i32 to vector<30x64xi32>
    %275 = arith.addi %272, %274 : vector<30x64xi32>
    %c2_i32_215 = arith.constant 2 : i32
    %276 = vector.broadcast %c2_i32_215 : i32 to vector<30x64xi32>
    %277 = arith.muli %276, %275 : vector<30x64xi32>
    %278 = arith.cmpi eq, %273, %277 : vector<30x64xi32>
    %cst_216 = arith.constant 1.000000e+00 : f32
    %cst_217 = arith.constant 0.000000e+00 : f32
    %279 = vector.broadcast %cst_216 : f32 to vector<30x64xf32>
    %280 = vector.broadcast %cst_217 : f32 to vector<30x64xf32>
    %281 = arith.select %278, %279, %280 : vector<30x64xi1>, vector<30x64xf32>
    %c1_i32_218 = arith.constant 1 : i32
    %282 = vector.broadcast %c1_i32_218 : i32 to vector<30x64xi32>
    %283 = arith.addi %272, %282 : vector<30x64xi32>
    %c2_i32_219 = arith.constant 2 : i32
    %284 = vector.broadcast %c2_i32_219 : i32 to vector<30x64xi32>
    %285 = arith.muli %284, %283 : vector<30x64xi32>
    %c1_i32_220 = arith.constant 1 : i32
    %286 = vector.broadcast %c1_i32_220 : i32 to vector<30x64xi32>
    %287 = arith.addi %285, %286 : vector<30x64xi32>
    %288 = arith.cmpi eq, %273, %287 : vector<30x64xi32>
    %cst_221 = arith.constant 1.000000e+00 : f32
    %cst_222 = arith.constant 0.000000e+00 : f32
    %289 = vector.broadcast %cst_221 : f32 to vector<30x64xf32>
    %290 = vector.broadcast %cst_222 : f32 to vector<30x64xf32>
    %291 = arith.select %288, %289, %290 : vector<30x64xi1>, vector<30x64xf32>
    %cst_223 = arith.constant dense<0.000000e+00> : vector<30x64xf32>
    %292 = tpu.matmul %281, %243, %cst_223 {dimension_numbers = #tpu.dot_dimension_numbers<[1], [0], [0], [1], [0, 0, 1, 1], [], []>} : vector<30x64xf32>, vector<64x64xf32>, vector<30x64xf32> -> vector<30x64xf32>
    %cst_224 = arith.constant dense<0.000000e+00> : vector<30x64xf32>
    %293 = tpu.matmul %291, %243, %cst_224 {dimension_numbers = #tpu.dot_dimension_numbers<[1], [0], [0], [1], [0, 0, 1, 1], [], []>} : vector<30x64xf32>, vector<64x64xf32>, vector<30x64xf32> -> vector<30x64xf32>
    %294 = arith.maximumf %292, %293 : vector<30x64xf32>
    %c1_225 = arith.constant 1 : index
    %c0_226 = arith.constant 0 : index
    %c0_227 = arith.constant 0 : index
    %295 = vector.load %arg24[%c1_225, %c0_226, %c0_227] : memref<3x64x64xf32, #tpu.memory_space<vmem>>, vector<1x64x64xf32>
    %296 = vector.shape_cast %295 : vector<1x64x64xf32> to vector<64x64xf32>
    %cst_228 = arith.constant dense<0.000000e+00> : vector<30x64xf32>
    %297 = tpu.matmul %294, %296, %cst_228 {dimension_numbers = #tpu.dot_dimension_numbers<[1], [0], [0], [1], [0, 0, 1, 1], [], []>} : vector<30x64xf32>, vector<64x64xf32>, vector<30x64xf32> -> vector<30x64xf32>
    %298 = arith.addf %271, %297 : vector<30x64xf32>
    %299 = tpu.iota {dimensions = array<i32: 0>} : vector<30x64xi32>
    %300 = tpu.iota {dimensions = array<i32: 1>} : vector<30x64xi32>
    %c2_i32_229 = arith.constant 2 : i32
    %301 = vector.broadcast %c2_i32_229 : i32 to vector<30x64xi32>
    %302 = arith.addi %299, %301 : vector<30x64xi32>
    %c2_i32_230 = arith.constant 2 : i32
    %303 = vector.broadcast %c2_i32_230 : i32 to vector<30x64xi32>
    %304 = arith.muli %303, %302 : vector<30x64xi32>
    %305 = arith.cmpi eq, %300, %304 : vector<30x64xi32>
    %cst_231 = arith.constant 1.000000e+00 : f32
    %cst_232 = arith.constant 0.000000e+00 : f32
    %306 = vector.broadcast %cst_231 : f32 to vector<30x64xf32>
    %307 = vector.broadcast %cst_232 : f32 to vector<30x64xf32>
    %308 = arith.select %305, %306, %307 : vector<30x64xi1>, vector<30x64xf32>
    %c2_i32_233 = arith.constant 2 : i32
    %309 = vector.broadcast %c2_i32_233 : i32 to vector<30x64xi32>
    %310 = arith.addi %299, %309 : vector<30x64xi32>
    %c2_i32_234 = arith.constant 2 : i32
    %311 = vector.broadcast %c2_i32_234 : i32 to vector<30x64xi32>
    %312 = arith.muli %311, %310 : vector<30x64xi32>
    %c1_i32_235 = arith.constant 1 : i32
    %313 = vector.broadcast %c1_i32_235 : i32 to vector<30x64xi32>
    %314 = arith.addi %312, %313 : vector<30x64xi32>
    %315 = arith.cmpi eq, %300, %314 : vector<30x64xi32>
    %cst_236 = arith.constant 1.000000e+00 : f32
    %cst_237 = arith.constant 0.000000e+00 : f32
    %316 = vector.broadcast %cst_236 : f32 to vector<30x64xf32>
    %317 = vector.broadcast %cst_237 : f32 to vector<30x64xf32>
    %318 = arith.select %315, %316, %317 : vector<30x64xi1>, vector<30x64xf32>
    %cst_238 = arith.constant dense<0.000000e+00> : vector<30x64xf32>
    %319 = tpu.matmul %308, %243, %cst_238 {dimension_numbers = #tpu.dot_dimension_numbers<[1], [0], [0], [1], [0, 0, 1, 1], [], []>} : vector<30x64xf32>, vector<64x64xf32>, vector<30x64xf32> -> vector<30x64xf32>
    %cst_239 = arith.constant dense<0.000000e+00> : vector<30x64xf32>
    %320 = tpu.matmul %318, %243, %cst_239 {dimension_numbers = #tpu.dot_dimension_numbers<[1], [0], [0], [1], [0, 0, 1, 1], [], []>} : vector<30x64xf32>, vector<64x64xf32>, vector<30x64xf32> -> vector<30x64xf32>
    %321 = arith.maximumf %319, %320 : vector<30x64xf32>
    %c2_240 = arith.constant 2 : index
    %c0_241 = arith.constant 0 : index
    %c0_242 = arith.constant 0 : index
    %322 = vector.load %arg24[%c2_240, %c0_241, %c0_242] : memref<3x64x64xf32, #tpu.memory_space<vmem>>, vector<1x64x64xf32>
    %323 = vector.shape_cast %322 : vector<1x64x64xf32> to vector<64x64xf32>
    %cst_243 = arith.constant dense<0.000000e+00> : vector<30x64xf32>
    %324 = tpu.matmul %321, %323, %cst_243 {dimension_numbers = #tpu.dot_dimension_numbers<[1], [0], [0], [1], [0, 0, 1, 1], [], []>} : vector<30x64xf32>, vector<64x64xf32>, vector<30x64xf32> -> vector<30x64xf32>
    %325 = arith.addf %298, %324 : vector<30x64xf32>
    %c0_244 = arith.constant 0 : index
    %c0_245 = arith.constant 0 : index
    %326 = vector.load %arg25[%c0_244, %c0_245] : memref<1x64xf32, #tpu.memory_space<vmem>>, vector<1x64xf32>
    %327 = vector.broadcast %326 : vector<1x64xf32> to vector<30x64xf32>
    %328 = arith.addf %325, %327 : vector<30x64xf32>
    %cst_246 = arith.constant 0.000000e+00 : f32
    %329 = vector.broadcast %cst_246 : f32 to vector<30x64xf32>
    %330 = arith.maximumf %328, %329 : vector<30x64xf32>
    %c0_247 = arith.constant 0 : index
    %c0_248 = arith.constant 0 : index
    %331 = vector.load %arg34[%c0_247, %c0_248] : memref<30x64xf32, #tpu.memory_space<vmem>>, vector<30x64xf32>
    tpu.vector_store %arg34[%c0_247, %c0_248], %330 {strides = array<i32>} : memref<30x64xf32, #tpu.memory_space<vmem>>, vector<30x64xf32>,
    %cst_249 = arith.constant 0.000000e+00 : f32
    %332 = vector.broadcast %cst_249 : f32 to vector<1x100xf32>
    %c0_250 = arith.constant 0 : index
    %c0_251 = arith.constant 0 : index
    %333 = vector.load %arg34[%c0_250, %c0_251] : memref<30x64xf32, #tpu.memory_space<vmem>>, vector<1x64xf32>
    %c1_252 = arith.constant 1 : index
    %c0_253 = arith.constant 0 : index
    %334 = vector.load %arg34[%c1_252, %c0_253] : memref<30x64xf32, #tpu.memory_space<vmem>>, vector<1x64xf32>
    %335 = arith.maximumf %333, %334 : vector<1x64xf32>
    %c0_254 = arith.constant 0 : index
    %c0_255 = arith.constant 0 : index
    %c0_256 = arith.constant 0 : index
    %336 = vector.load %arg26[%c0_254, %c0_255, %c0_256] : memref<15x64x100xf32, #tpu.memory_space<vmem>>, vector<1x64x100xf32>
    %337 = vector.shape_cast %336 : vector<1x64x100xf32> to vector<64x100xf32>
    %cst_257 = arith.constant dense<0.000000e+00> : vector<1x100xf32>
    %338 = tpu.matmul %335, %337, %cst_257 {dimension_numbers = #tpu.dot_dimension_numbers<[1], [0], [0], [1], [0, 0, 1, 1], [], []>} : vector<1x64xf32>, vector<64x100xf32>, vector<1x100xf32> -> vector<1x100xf32>
    %339 = arith.addf %332, %338 : vector<1x100xf32>
    %c2_258 = arith.constant 2 : index
    %c0_259 = arith.constant 0 : index
    %340 = vector.load %arg34[%c2_258, %c0_259] : memref<30x64xf32, #tpu.memory_space<vmem>>, vector<1x64xf32>
    %c3_260 = arith.constant 3 : index
    %c0_261 = arith.constant 0 : index
    %341 = vector.load %arg34[%c3_260, %c0_261] : memref<30x64xf32, #tpu.memory_space<vmem>>, vector<1x64xf32>
    %342 = arith.maximumf %340, %341 : vector<1x64xf32>
    %c1_262 = arith.constant 1 : index
    %c0_263 = arith.constant 0 : index
    %c0_264 = arith.constant 0 : index
    %343 = vector.load %arg26[%c1_262, %c0_263, %c0_264] : memref<15x64x100xf32, #tpu.memory_space<vmem>>, vector<1x64x100xf32>
    %344 = vector.shape_cast %343 : vector<1x64x100xf32> to vector<64x100xf32>
    %cst_265 = arith.constant dense<0.000000e+00> : vector<1x100xf32>
    %345 = tpu.matmul %342, %344, %cst_265 {dimension_numbers = #tpu.dot_dimension_numbers<[1], [0], [0], [1], [0, 0, 1, 1], [], []>} : vector<1x64xf32>, vector<64x100xf32>, vector<1x100xf32> -> vector<1x100xf32>
    %346 = arith.addf %339, %345 : vector<1x100xf32>
    %c4_266 = arith.constant 4 : index
    %c0_267 = arith.constant 0 : index
    %347 = vector.load %arg34[%c4_266, %c0_267] : memref<30x64xf32, #tpu.memory_space<vmem>>, vector<1x64xf32>
    %c5_268 = arith.constant 5 : index
    %c0_269 = arith.constant 0 : index
    %348 = vector.load %arg34[%c5_268, %c0_269] : memref<30x64xf32, #tpu.memory_space<vmem>>, vector<1x64xf32>
    %349 = arith.maximumf %347, %348 : vector<1x64xf32>
    %c2_270 = arith.constant 2 : index
    %c0_271 = arith.constant 0 : index
    %c0_272 = arith.constant 0 : index
    %350 = vector.load %arg26[%c2_270, %c0_271, %c0_272] : memref<15x64x100xf32, #tpu.memory_space<vmem>>, vector<1x64x100xf32>
    %351 = vector.shape_cast %350 : vector<1x64x100xf32> to vector<64x100xf32>
    %cst_273 = arith.constant dense<0.000000e+00> : vector<1x100xf32>
    %352 = tpu.matmul %349, %351, %cst_273 {dimension_numbers = #tpu.dot_dimension_numbers<[1], [0], [0], [1], [0, 0, 1, 1], [], []>} : vector<1x64xf32>, vector<64x100xf32>, vector<1x100xf32> -> vector<1x100xf32>
    %353 = arith.addf %346, %352 : vector<1x100xf32>
    %c6_274 = arith.constant 6 : index
    %c0_275 = arith.constant 0 : index
    %354 = vector.load %arg34[%c6_274, %c0_275] : memref<30x64xf32, #tpu.memory_space<vmem>>, vector<1x64xf32>
    %c7_276 = arith.constant 7 : index
    %c0_277 = arith.constant 0 : index
    %355 = vector.load %arg34[%c7_276, %c0_277] : memref<30x64xf32, #tpu.memory_space<vmem>>, vector<1x64xf32>
    %356 = arith.maximumf %354, %355 : vector<1x64xf32>
    %c3_278 = arith.constant 3 : index
    %c0_279 = arith.constant 0 : index
    %c0_280 = arith.constant 0 : index
    %357 = vector.load %arg26[%c3_278, %c0_279, %c0_280] : memref<15x64x100xf32, #tpu.memory_space<vmem>>, vector<1x64x100xf32>
    %358 = vector.shape_cast %357 : vector<1x64x100xf32> to vector<64x100xf32>
    %cst_281 = arith.constant dense<0.000000e+00> : vector<1x100xf32>
    %359 = tpu.matmul %356, %358, %cst_281 {dimension_numbers = #tpu.dot_dimension_numbers<[1], [0], [0], [1], [0, 0, 1, 1], [], []>} : vector<1x64xf32>, vector<64x100xf32>, vector<1x100xf32> -> vector<1x100xf32>
    %360 = arith.addf %353, %359 : vector<1x100xf32>
    %c8 = arith.constant 8 : index
    %c0_282 = arith.constant 0 : index
    %361 = vector.load %arg34[%c8, %c0_282] : memref<30x64xf32, #tpu.memory_space<vmem>>, vector<1x64xf32>
    %c9 = arith.constant 9 : index
    %c0_283 = arith.constant 0 : index
    %362 = vector.load %arg34[%c9, %c0_283] : memref<30x64xf32, #tpu.memory_space<vmem>>, vector<1x64xf32>
    %363 = arith.maximumf %361, %362 : vector<1x64xf32>
    %c4_284 = arith.constant 4 : index
    %c0_285 = arith.constant 0 : index
    %c0_286 = arith.constant 0 : index
    %364 = vector.load %arg26[%c4_284, %c0_285, %c0_286] : memref<15x64x100xf32, #tpu.memory_space<vmem>>, vector<1x64x100xf32>
    %365 = vector.shape_cast %364 : vector<1x64x100xf32> to vector<64x100xf32>
    %cst_287 = arith.constant dense<0.000000e+00> : vector<1x100xf32>
    %366 = tpu.matmul %363, %365, %cst_287 {dimension_numbers = #tpu.dot_dimension_numbers<[1], [0], [0], [1], [0, 0, 1, 1], [], []>} : vector<1x64xf32>, vector<64x100xf32>, vector<1x100xf32> -> vector<1x100xf32>
    %367 = arith.addf %360, %366 : vector<1x100xf32>
    %c10 = arith.constant 10 : index
    %c0_288 = arith.constant 0 : index
    %368 = vector.load %arg34[%c10, %c0_288] : memref<30x64xf32, #tpu.memory_space<vmem>>, vector<1x64xf32>
    %c11 = arith.constant 11 : index
    %c0_289 = arith.constant 0 : index
    %369 = vector.load %arg34[%c11, %c0_289] : memref<30x64xf32, #tpu.memory_space<vmem>>, vector<1x64xf32>
    %370 = arith.maximumf %368, %369 : vector<1x64xf32>
    %c5_290 = arith.constant 5 : index
    %c0_291 = arith.constant 0 : index
    %c0_292 = arith.constant 0 : index
    %371 = vector.load %arg26[%c5_290, %c0_291, %c0_292] : memref<15x64x100xf32, #tpu.memory_space<vmem>>, vector<1x64x100xf32>
    %372 = vector.shape_cast %371 : vector<1x64x100xf32> to vector<64x100xf32>
    %cst_293 = arith.constant dense<0.000000e+00> : vector<1x100xf32>
    %373 = tpu.matmul %370, %372, %cst_293 {dimension_numbers = #tpu.dot_dimension_numbers<[1], [0], [0], [1], [0, 0, 1, 1], [], []>} : vector<1x64xf32>, vector<64x100xf32>, vector<1x100xf32> -> vector<1x100xf32>
    %374 = arith.addf %367, %373 : vector<1x100xf32>
    %c12 = arith.constant 12 : index
    %c0_294 = arith.constant 0 : index
    %375 = vector.load %arg34[%c12, %c0_294] : memref<30x64xf32, #tpu.memory_space<vmem>>, vector<1x64xf32>
    %c13 = arith.constant 13 : index
    %c0_295 = arith.constant 0 : index
    %376 = vector.load %arg34[%c13, %c0_295] : memref<30x64xf32, #tpu.memory_space<vmem>>, vector<1x64xf32>
    %377 = arith.maximumf %375, %376 : vector<1x64xf32>
    %c6_296 = arith.constant 6 : index
    %c0_297 = arith.constant 0 : index
    %c0_298 = arith.constant 0 : index
    %378 = vector.load %arg26[%c6_296, %c0_297, %c0_298] : memref<15x64x100xf32, #tpu.memory_space<vmem>>, vector<1x64x100xf32>
    %379 = vector.shape_cast %378 : vector<1x64x100xf32> to vector<64x100xf32>
    %cst_299 = arith.constant dense<0.000000e+00> : vector<1x100xf32>
    %380 = tpu.matmul %377, %379, %cst_299 {dimension_numbers = #tpu.dot_dimension_numbers<[1], [0], [0], [1], [0, 0, 1, 1], [], []>} : vector<1x64xf32>, vector<64x100xf32>, vector<1x100xf32> -> vector<1x100xf32>
    %381 = arith.addf %374, %380 : vector<1x100xf32>
    %c14 = arith.constant 14 : index
    %c0_300 = arith.constant 0 : index
    %382 = vector.load %arg34[%c14, %c0_300] : memref<30x64xf32, #tpu.memory_space<vmem>>, vector<1x64xf32>
    %c15 = arith.constant 15 : index
    %c0_301 = arith.constant 0 : index
    %383 = vector.load %arg34[%c15, %c0_301] : memref<30x64xf32, #tpu.memory_space<vmem>>, vector<1x64xf32>
    %384 = arith.maximumf %382, %383 : vector<1x64xf32>
    %c7_302 = arith.constant 7 : index
    %c0_303 = arith.constant 0 : index
    %c0_304 = arith.constant 0 : index
    %385 = vector.load %arg26[%c7_302, %c0_303, %c0_304] : memref<15x64x100xf32, #tpu.memory_space<vmem>>, vector<1x64x100xf32>
    %386 = vector.shape_cast %385 : vector<1x64x100xf32> to vector<64x100xf32>
    %cst_305 = arith.constant dense<0.000000e+00> : vector<1x100xf32>
    %387 = tpu.matmul %384, %386, %cst_305 {dimension_numbers = #tpu.dot_dimension_numbers<[1], [0], [0], [1], [0, 0, 1, 1], [], []>} : vector<1x64xf32>, vector<64x100xf32>, vector<1x100xf32> -> vector<1x100xf32>
    %388 = arith.addf %381, %387 : vector<1x100xf32>
    %c16 = arith.constant 16 : index
    %c0_306 = arith.constant 0 : index
    %389 = vector.load %arg34[%c16, %c0_306] : memref<30x64xf32, #tpu.memory_space<vmem>>, vector<1x64xf32>
    %c17 = arith.constant 17 : index
    %c0_307 = arith.constant 0 : index
    %390 = vector.load %arg34[%c17, %c0_307] : memref<30x64xf32, #tpu.memory_space<vmem>>, vector<1x64xf32>
    %391 = arith.maximumf %389, %390 : vector<1x64xf32>
    %c8_308 = arith.constant 8 : index
    %c0_309 = arith.constant 0 : index
    %c0_310 = arith.constant 0 : index
    %392 = vector.load %arg26[%c8_308, %c0_309, %c0_310] : memref<15x64x100xf32, #tpu.memory_space<vmem>>, vector<1x64x100xf32>
    %393 = vector.shape_cast %392 : vector<1x64x100xf32> to vector<64x100xf32>
    %cst_311 = arith.constant dense<0.000000e+00> : vector<1x100xf32>
    %394 = tpu.matmul %391, %393, %cst_311 {dimension_numbers = #tpu.dot_dimension_numbers<[1], [0], [0], [1], [0, 0, 1, 1], [], []>} : vector<1x64xf32>, vector<64x100xf32>, vector<1x100xf32> -> vector<1x100xf32>
    %395 = arith.addf %388, %394 : vector<1x100xf32>
    %c18 = arith.constant 18 : index
    %c0_312 = arith.constant 0 : index
    %396 = vector.load %arg34[%c18, %c0_312] : memref<30x64xf32, #tpu.memory_space<vmem>>, vector<1x64xf32>
    %c19 = arith.constant 19 : index
    %c0_313 = arith.constant 0 : index
    %397 = vector.load %arg34[%c19, %c0_313] : memref<30x64xf32, #tpu.memory_space<vmem>>, vector<1x64xf32>
    %398 = arith.maximumf %396, %397 : vector<1x64xf32>
    %c9_314 = arith.constant 9 : index
    %c0_315 = arith.constant 0 : index
    %c0_316 = arith.constant 0 : index
    %399 = vector.load %arg26[%c9_314, %c0_315, %c0_316] : memref<15x64x100xf32, #tpu.memory_space<vmem>>, vector<1x64x100xf32>
    %400 = vector.shape_cast %399 : vector<1x64x100xf32> to vector<64x100xf32>
    %cst_317 = arith.constant dense<0.000000e+00> : vector<1x100xf32>
    %401 = tpu.matmul %398, %400, %cst_317 {dimension_numbers = #tpu.dot_dimension_numbers<[1], [0], [0], [1], [0, 0, 1, 1], [], []>} : vector<1x64xf32>, vector<64x100xf32>, vector<1x100xf32> -> vector<1x100xf32>
    %402 = arith.addf %395, %401 : vector<1x100xf32>
    %c20 = arith.constant 20 : index
    %c0_318 = arith.constant 0 : index
    %403 = vector.load %arg34[%c20, %c0_318] : memref<30x64xf32, #tpu.memory_space<vmem>>, vector<1x64xf32>
    %c21 = arith.constant 21 : index
    %c0_319 = arith.constant 0 : index
    %404 = vector.load %arg34[%c21, %c0_319] : memref<30x64xf32, #tpu.memory_space<vmem>>, vector<1x64xf32>
    %405 = arith.maximumf %403, %404 : vector<1x64xf32>
    %c10_320 = arith.constant 10 : index
    %c0_321 = arith.constant 0 : index
    %c0_322 = arith.constant 0 : index
    %406 = vector.load %arg26[%c10_320, %c0_321, %c0_322] : memref<15x64x100xf32, #tpu.memory_space<vmem>>, vector<1x64x100xf32>
    %407 = vector.shape_cast %406 : vector<1x64x100xf32> to vector<64x100xf32>
    %cst_323 = arith.constant dense<0.000000e+00> : vector<1x100xf32>
    %408 = tpu.matmul %405, %407, %cst_323 {dimension_numbers = #tpu.dot_dimension_numbers<[1], [0], [0], [1], [0, 0, 1, 1], [], []>} : vector<1x64xf32>, vector<64x100xf32>, vector<1x100xf32> -> vector<1x100xf32>
    %409 = arith.addf %402, %408 : vector<1x100xf32>
    %c22 = arith.constant 22 : index
    %c0_324 = arith.constant 0 : index
    %410 = vector.load %arg34[%c22, %c0_324] : memref<30x64xf32, #tpu.memory_space<vmem>>, vector<1x64xf32>
    %c23 = arith.constant 23 : index
    %c0_325 = arith.constant 0 : index
    %411 = vector.load %arg34[%c23, %c0_325] : memref<30x64xf32, #tpu.memory_space<vmem>>, vector<1x64xf32>
    %412 = arith.maximumf %410, %411 : vector<1x64xf32>
    %c11_326 = arith.constant 11 : index
    %c0_327 = arith.constant 0 : index
    %c0_328 = arith.constant 0 : index
    %413 = vector.load %arg26[%c11_326, %c0_327, %c0_328] : memref<15x64x100xf32, #tpu.memory_space<vmem>>, vector<1x64x100xf32>
    %414 = vector.shape_cast %413 : vector<1x64x100xf32> to vector<64x100xf32>
    %cst_329 = arith.constant dense<0.000000e+00> : vector<1x100xf32>
    %415 = tpu.matmul %412, %414, %cst_329 {dimension_numbers = #tpu.dot_dimension_numbers<[1], [0], [0], [1], [0, 0, 1, 1], [], []>} : vector<1x64xf32>, vector<64x100xf32>, vector<1x100xf32> -> vector<1x100xf32>
    %416 = arith.addf %409, %415 : vector<1x100xf32>
    %c24 = arith.constant 24 : index
    %c0_330 = arith.constant 0 : index
    %417 = vector.load %arg34[%c24, %c0_330] : memref<30x64xf32, #tpu.memory_space<vmem>>, vector<1x64xf32>
    %c25 = arith.constant 25 : index
    %c0_331 = arith.constant 0 : index
    %418 = vector.load %arg34[%c25, %c0_331] : memref<30x64xf32, #tpu.memory_space<vmem>>, vector<1x64xf32>
    %419 = arith.maximumf %417, %418 : vector<1x64xf32>
    %c12_332 = arith.constant 12 : index
    %c0_333 = arith.constant 0 : index
    %c0_334 = arith.constant 0 : index
    %420 = vector.load %arg26[%c12_332, %c0_333, %c0_334] : memref<15x64x100xf32, #tpu.memory_space<vmem>>, vector<1x64x100xf32>
    %421 = vector.shape_cast %420 : vector<1x64x100xf32> to vector<64x100xf32>
    %cst_335 = arith.constant dense<0.000000e+00> : vector<1x100xf32>
    %422 = tpu.matmul %419, %421, %cst_335 {dimension_numbers = #tpu.dot_dimension_numbers<[1], [0], [0], [1], [0, 0, 1, 1], [], []>} : vector<1x64xf32>, vector<64x100xf32>, vector<1x100xf32> -> vector<1x100xf32>
    %423 = arith.addf %416, %422 : vector<1x100xf32>
    %c26 = arith.constant 26 : index
    %c0_336 = arith.constant 0 : index
    %424 = vector.load %arg34[%c26, %c0_336] : memref<30x64xf32, #tpu.memory_space<vmem>>, vector<1x64xf32>
    %c27 = arith.constant 27 : index
    %c0_337 = arith.constant 0 : index
    %425 = vector.load %arg34[%c27, %c0_337] : memref<30x64xf32, #tpu.memory_space<vmem>>, vector<1x64xf32>
    %426 = arith.maximumf %424, %425 : vector<1x64xf32>
    %c13_338 = arith.constant 13 : index
    %c0_339 = arith.constant 0 : index
    %c0_340 = arith.constant 0 : index
    %427 = vector.load %arg26[%c13_338, %c0_339, %c0_340] : memref<15x64x100xf32, #tpu.memory_space<vmem>>, vector<1x64x100xf32>
    %428 = vector.shape_cast %427 : vector<1x64x100xf32> to vector<64x100xf32>
    %cst_341 = arith.constant dense<0.000000e+00> : vector<1x100xf32>
    %429 = tpu.matmul %426, %428, %cst_341 {dimension_numbers = #tpu.dot_dimension_numbers<[1], [0], [0], [1], [0, 0, 1, 1], [], []>} : vector<1x64xf32>, vector<64x100xf32>, vector<1x100xf32> -> vector<1x100xf32>
    %430 = arith.addf %423, %429 : vector<1x100xf32>
    %c28 = arith.constant 28 : index
    %c0_342 = arith.constant 0 : index
    %431 = vector.load %arg34[%c28, %c0_342] : memref<30x64xf32, #tpu.memory_space<vmem>>, vector<1x64xf32>
    %c29 = arith.constant 29 : index
    %c0_343 = arith.constant 0 : index
    %432 = vector.load %arg34[%c29, %c0_343] : memref<30x64xf32, #tpu.memory_space<vmem>>, vector<1x64xf32>
    %433 = arith.maximumf %431, %432 : vector<1x64xf32>
    %c14_344 = arith.constant 14 : index
    %c0_345 = arith.constant 0 : index
    %c0_346 = arith.constant 0 : index
    %434 = vector.load %arg26[%c14_344, %c0_345, %c0_346] : memref<15x64x100xf32, #tpu.memory_space<vmem>>, vector<1x64x100xf32>
    %435 = vector.shape_cast %434 : vector<1x64x100xf32> to vector<64x100xf32>
    %cst_347 = arith.constant dense<0.000000e+00> : vector<1x100xf32>
    %436 = tpu.matmul %433, %435, %cst_347 {dimension_numbers = #tpu.dot_dimension_numbers<[1], [0], [0], [1], [0, 0, 1, 1], [], []>} : vector<1x64xf32>, vector<64x100xf32>, vector<1x100xf32> -> vector<1x100xf32>
    %437 = arith.addf %430, %436 : vector<1x100xf32>
    %c0_348 = arith.constant 0 : index
    %c0_349 = arith.constant 0 : index
    %438 = vector.load %arg27[%c0_348, %c0_349] : memref<1x100xf32, #tpu.memory_space<vmem>>, vector<1x100xf32>
    %439 = arith.addf %437, %438 : vector<1x100xf32>
    %cst_350 = arith.constant 0.000000e+00 : f32
    %440 = vector.broadcast %cst_350 : f32 to vector<1x100xf32>
    %441 = arith.maximumf %439, %440 : vector<1x100xf32>
    %c0_351 = arith.constant 0 : index
    %c0_352 = arith.constant 0 : index
    %442 = vector.load %arg28[%c0_351, %c0_352] : memref<100x10xf32, #tpu.memory_space<vmem>>, vector<100x10xf32>
    %cst_353 = arith.constant dense<0.000000e+00> : vector<1x10xf32>
    %443 = tpu.matmul %441, %442, %cst_353 {dimension_numbers = #tpu.dot_dimension_numbers<[1], [0], [0], [1], [0, 0, 1, 1], [], []>} : vector<1x100xf32>, vector<100x10xf32>, vector<1x10xf32> -> vector<1x10xf32>
    %c0_354 = arith.constant 0 : index
    %c0_355 = arith.constant 0 : index
    %444 = vector.load %arg29[%c0_354, %c0_355] : memref<1x10xf32, #tpu.memory_space<vmem>>, vector<1x10xf32>
    %445 = arith.addf %443, %444 : vector<1x10xf32>
    %c0_356 = arith.constant 0 : index
    %c0_357 = arith.constant 0 : index
    %c0_358 = arith.constant 0 : index
    %446 = vector.load %arg30[%c0_356, %c0_357, %c0_358] : memref<1x1x10xf32, #tpu.memory_space<vmem>>, vector<1x1x10xf32>
    %447 = vector.shape_cast %446 : vector<1x1x10xf32> to vector<1x10xf32>
    %448 = vector.shape_cast %445 : vector<1x10xf32> to vector<1x1x10xf32>
    tpu.vector_store %arg30[%c0_356, %c0_357, %c0_358], %448 {strides = array<i32>} : memref<1x1x10xf32, #tpu.memory_space<vmem>>, vector<1x1x10xf32>,
    return
  }
  func.func @transform_0(%arg0: i32) -> (i32, i32, i32) {
    %c0_i32 = arith.constant 0 : i32
    %c0_i32_0 = arith.constant 0 : i32
    %c0_i32_1 = arith.constant 0 : i32
    return %arg0, %c0_i32, %c0_i32_0 : i32, i32, i32
  }
  func.func @transform_1(%arg0: i32) -> (i32, i32, i32) {
    %c0_i32 = arith.constant 0 : i32
    %c0_i32_0 = arith.constant 0 : i32
    %c0_i32_1 = arith.constant 0 : i32
    %c0_i32_2 = arith.constant 0 : i32
    return %c0_i32, %c0_i32_0, %c0_i32_1 : i32, i32, i32
  }
  func.func @transform_2(%arg0: i32) -> (i32, i32) {
    %c0_i32 = arith.constant 0 : i32
    %c0_i32_0 = arith.constant 0 : i32
    %c0_i32_1 = arith.constant 0 : i32
    return %c0_i32, %c0_i32_0 : i32, i32
  }
  func.func @transform_3(%arg0: i32) -> (i32, i32, i32) {
    %c0_i32 = arith.constant 0 : i32
    %c0_i32_0 = arith.constant 0 : i32
    %c0_i32_1 = arith.constant 0 : i32
    %c0_i32_2 = arith.constant 0 : i32
    return %c0_i32, %c0_i32_0, %c0_i32_1 : i32, i32, i32
  }
  func.func @transform_4(%arg0: i32) -> (i32, i32) {
    %c0_i32 = arith.constant 0 : i32
    %c0_i32_0 = arith.constant 0 : i32
    %c0_i32_1 = arith.constant 0 : i32
    return %c0_i32, %c0_i32_0 : i32, i32
  }
  func.func @transform_5(%arg0: i32) -> (i32, i32) {
    %c0_i32 = arith.constant 0 : i32
    %c0_i32_0 = arith.constant 0 : i32
    %c0_i32_1 = arith.constant 0 : i32
    return %c0_i32, %c0_i32_0 : i32, i32
  }
  func.func @transform_6(%arg0: i32) -> (i32, i32) {
    %c0_i32 = arith.constant 0 : i32
    %c0_i32_0 = arith.constant 0 : i32
    %c0_i32_1 = arith.constant 0 : i32
    return %c0_i32, %c0_i32_0 : i32, i32
  }
  func.func @transform_7(%arg0: i32) -> (i32, i32, i32) {
    %c0_i32 = arith.constant 0 : i32
    %c0_i32_0 = arith.constant 0 : i32
    %c0_i32_1 = arith.constant 0 : i32
    %c0_i32_2 = arith.constant 0 : i32
    return %c0_i32, %c0_i32_0, %c0_i32_1 : i32, i32, i32
  }
  func.func @transform_8(%arg0: i32) -> (i32, i32) {
    %c0_i32 = arith.constant 0 : i32
    %c0_i32_0 = arith.constant 0 : i32
    %c0_i32_1 = arith.constant 0 : i32
    return %c0_i32, %c0_i32_0 : i32, i32
  }
  func.func @transform_9(%arg0: i32) -> (i32, i32) {
    %c0_i32 = arith.constant 0 : i32
    %c0_i32_0 = arith.constant 0 : i32
    %c0_i32_1 = arith.constant 0 : i32
    return %c0_i32, %c0_i32_0 : i32, i32
  }
  func.func @transform_10(%arg0: i32) -> (i32, i32) {
    %c0_i32 = arith.constant 0 : i32
    %c0_i32_0 = arith.constant 0 : i32
    %c0_i32_1 = arith.constant 0 : i32
    return %c0_i32, %c0_i32_0 : i32, i32
  }
  func.func @transform_11(%arg0: i32) -> (i32, i32) {
    %c0_i32 = arith.constant 0 : i32
    %c0_i32_0 = arith.constant 0 : i32
    %c0_i32_1 = arith.constant 0 : i32
    return %c0_i32, %c0_i32_0 : i32, i32
  }
  func.func @transform_12(%arg0: i32) -> (i32, i32) {
    %c0_i32 = arith.constant 0 : i32
    %c0_i32_0 = arith.constant 0 : i32
    %c0_i32_1 = arith.constant 0 : i32
    return %c0_i32, %c0_i32_0 : i32, i32
  }
  func.func @transform_13(%arg0: i32) -> (i32, i32, i32) {
    %c0_i32 = arith.constant 0 : i32
    %c0_i32_0 = arith.constant 0 : i32
    %c0_i32_1 = arith.constant 0 : i32
    %c0_i32_2 = arith.constant 0 : i32
    return %c0_i32, %c0_i32_0, %c0_i32_1 : i32, i32, i32
  }
  func.func @transform_14(%arg0: i32) -> (i32, i32) {
    %c0_i32 = arith.constant 0 : i32
    %c0_i32_0 = arith.constant 0 : i32
    %c0_i32_1 = arith.constant 0 : i32
    return %c0_i32, %c0_i32_0 : i32, i32
  }
  func.func @transform_15(%arg0: i32) -> (i32, i32) {
    %c0_i32 = arith.constant 0 : i32
    %c0_i32_0 = arith.constant 0 : i32
    %c0_i32_1 = arith.constant 0 : i32
    return %c0_i32, %c0_i32_0 : i32, i32
  }
  func.func @transform_16(%arg0: i32) -> (i32, i32) {
    %c0_i32 = arith.constant 0 : i32
    %c0_i32_0 = arith.constant 0 : i32
    %c0_i32_1 = arith.constant 0 : i32
    return %c0_i32, %c0_i32_0 : i32, i32
  }
  func.func @transform_17(%arg0: i32) -> (i32, i32, i32) {
    %c0_i32 = arith.constant 0 : i32
    %c0_i32_0 = arith.constant 0 : i32
    %c0_i32_1 = arith.constant 0 : i32
    %c0_i32_2 = arith.constant 0 : i32
    return %c0_i32, %c0_i32_0, %c0_i32_1 : i32, i32, i32
  }
  func.func @transform_18(%arg0: i32) -> (i32, i32) {
    %c0_i32 = arith.constant 0 : i32
    %c0_i32_0 = arith.constant 0 : i32
    %c0_i32_1 = arith.constant 0 : i32
    return %c0_i32, %c0_i32_0 : i32, i32
  }
  func.func @transform_19(%arg0: i32) -> (i32, i32) {
    %c0_i32 = arith.constant 0 : i32
    %c0_i32_0 = arith.constant 0 : i32
    %c0_i32_1 = arith.constant 0 : i32
    return %c0_i32, %c0_i32_0 : i32, i32
  }
  func.func @transform_20(%arg0: i32) -> (i32, i32) {
    %c0_i32 = arith.constant 0 : i32
    %c0_i32_0 = arith.constant 0 : i32
    %c0_i32_1 = arith.constant 0 : i32
    return %c0_i32, %c0_i32_0 : i32, i32
  }
  func.func @transform_21(%arg0: i32) -> (i32, i32) {
    %c0_i32 = arith.constant 0 : i32
    %c0_i32_0 = arith.constant 0 : i32
    %c0_i32_1 = arith.constant 0 : i32
    return %c0_i32, %c0_i32_0 : i32, i32
  }
  func.func @transform_22(%arg0: i32) -> (i32, i32) {
    %c0_i32 = arith.constant 0 : i32
    %c0_i32_0 = arith.constant 0 : i32
    %c0_i32_1 = arith.constant 0 : i32
    return %c0_i32, %c0_i32_0 : i32, i32
  }
  func.func @transform_23(%arg0: i32) -> (i32, i32, i32) {
    %c0_i32 = arith.constant 0 : i32
    %c0_i32_0 = arith.constant 0 : i32
    %c0_i32_1 = arith.constant 0 : i32
    %c0_i32_2 = arith.constant 0 : i32
    return %c0_i32, %c0_i32_0, %c0_i32_1 : i32, i32, i32
  }
  func.func @transform_24(%arg0: i32) -> (i32, i32) {
    %c0_i32 = arith.constant 0 : i32
    %c0_i32_0 = arith.constant 0 : i32
    %c0_i32_1 = arith.constant 0 : i32
    return %c0_i32, %c0_i32_0 : i32, i32
  }
  func.func @transform_25(%arg0: i32) -> (i32, i32, i32) {
    %c0_i32 = arith.constant 0 : i32
    %c0_i32_0 = arith.constant 0 : i32
    %c0_i32_1 = arith.constant 0 : i32
    %c0_i32_2 = arith.constant 0 : i32
    return %c0_i32, %c0_i32_0, %c0_i32_1 : i32, i32, i32
  }
  func.func @transform_26(%arg0: i32) -> (i32, i32) {
    %c0_i32 = arith.constant 0 : i32
    %c0_i32_0 = arith.constant 0 : i32
    %c0_i32_1 = arith.constant 0 : i32
    return %c0_i32, %c0_i32_0 : i32, i32
  }
  func.func @transform_27(%arg0: i32) -> (i32, i32) {
    %c0_i32 = arith.constant 0 : i32
    %c0_i32_0 = arith.constant 0 : i32
    %c0_i32_1 = arith.constant 0 : i32
    return %c0_i32, %c0_i32_0 : i32, i32
  }
  func.func @transform_28(%arg0: i32) -> (i32, i32) {
    %c0_i32 = arith.constant 0 : i32
    %c0_i32_0 = arith.constant 0 : i32
    %c0_i32_1 = arith.constant 0 : i32
    return %c0_i32, %c0_i32_0 : i32, i32
  }
  func.func @transform_29(%arg0: i32) -> (i32, i32, i32) {
    %c0_i32 = arith.constant 0 : i32
    %c0_i32_0 = arith.constant 0 : i32
    %c0_i32_1 = arith.constant 0 : i32
    return %arg0, %c0_i32, %c0_i32_0 : i32, i32, i32
  }
}

</mosaic_0001>

<bundles_post_ra>
// kernel: forward.1
= control target key start
LH: loop header
LB: loop body
LE: loop exit
PB: predicated region body
PF: predicated region fallthrough
CT: control target
= control target key end

     0   :  { %s11642_s6 = smov 1   ;;  %s11643_s10 = smov 2   ;;  %s14542_s0 = inlined_call_operand.smem [shape: u32[30], index: -1, kind: input, shape index: {}] }
   0x1   :  { %s11686_s5 = sld [smem:[%s14542_s0]]   ;;  %s11644_s14 = smov 3  }
   0x2   :  { %s11691_s9 = sld [smem:[%s14542_s0 + %s11642_s6]]   ;;  %s11645_s18 = smov 4  }
   0x3   :  { %s11696_s13 = sld [smem:[%s14542_s0 + %s11643_s10]]   ;;  %s11646_s22 = smov 5  }
   0x4   :  { %s11701_s17 = sld [smem:[%s14542_s0 + %s11644_s14]]   ;;  %s11647_s26 = smov 6  }
   0x5   :  { %s11706_s21 = sld [smem:[%s14542_s0 + %s11645_s18]]   ;;  %s11648_s30 = smov 7  }
   0x6   :  { %s11711_s25 = sld [smem:[%s14542_s0 + %s11646_s22]]   ;;  %s11649_s4 = smov 8  }
   0x7   :  { %14586 = sst [smem:[#allocation12_spill]] %s11686_s5  ;;  %s11650_s10 = smov 9  }
   0x8   :  { %14587 = sst [smem:[#allocation13_spill]] %s11691_s9  ;;  %s11651_s15 = smov 10  }
   0x9   :  { %14588 = sst [smem:[#allocation14_spill]] %s11696_s13  ;;  %s11652_s20 = smov 11  }
   0xa   :  { %s11716_s29 = sld [smem:[%s14542_s0 + %s11647_s26]]   ;;  %s11653_s26 = smov 12  }
   0xb   :  { %s11721_s3 = sld [smem:[%s14542_s0 + %s11648_s30]]   ;;  %s11654_s1 = smov 13  }
   0xc   :  { %s11726_s8 = sld [smem:[%s14542_s0 + %s11649_s4]]   ;;  %s11655_s7 = smov 14  }
   0xd   :  { %s11731_s14 = sld [smem:[%s14542_s0 + %s11650_s10]]   ;;  %s11657_s22 = smov 16  }
   0xe   :  { %s11736_s19 = sld [smem:[%s14542_s0 + %s11651_s15]]   ;;  %s11656_s15 = smov 15  }
   0xf   :  { %s11741_s24 = sld [smem:[%s14542_s0 + %s11652_s20]]   ;;  %s11658_s28 = smov 17  }
  0x10   :  { %s11746_s30 = sld [smem:[%s14542_s0 + %s11653_s26]]  }
  0x11   :  { %14589 = sst [smem:[#allocation15_spill]] %s11721_s3 }
  0x12   :  { %14590 = sst [smem:[#allocation16_spill]] %s11726_s8 }
  0x13   :  { %s11751_s6 = sld [smem:[%s14542_s0 + %s11654_s1]]  }
  0x14   :  { %s11756_s12 = sld [smem:[%s14542_s0 + %s11655_s7]]   ;;  %s11659_s7 = smov 18  }
  0x15   :  { %s11761_s20 = sld [smem:[%s14542_s0 + %s11656_s15]]   ;;  %s11660_s15 = smov 19  }
  0x16   :  { %s11766_s27 = sld [smem:[%s14542_s0 + %s11657_s22]]   ;;  %s11661_s22 = smov 20  }
  0x17   :  { %s11771_s4 = sld [smem:[%s14542_s0 + %s11658_s28]]   ;;  %s11662_s28 = smov 21  }
  0x19   :  { %14591 = sst [smem:[#allocation17_spill]] %s11751_s6 }
  0x1a   :  { %14592 = sst [smem:[#allocation18_spill]] %s11756_s12 }
  0x1b   :  { %14593 = sst [smem:[#allocation19_spill]] %s11761_s20 }
  0x1c   :  { %14594 = sst [smem:[#allocation20_spill]] %s11766_s27 }
  0x1d   :  { %14595 = sst [smem:[#allocation21_spill]] %s11771_s4 }
  0x1e   :  { %s11776_s12 = sld [smem:[%s14542_s0 + %s11659_s7]]   ;;  %s11663_s7 = smov 22  }
  0x1f   :  { %s11781_s6 = sld [smem:[%s14542_s0 + %s11660_s15]]   ;;  %s11664_s15 = smov 23  }
  0x20   :  { %s11786_s27 = sld [smem:[%s14542_s0 + %s11661_s22]]   ;;  %s11665_s22 = smov 24  }
  0x21   :  { %s11791_s4 = sld [smem:[%s14542_s0 + %s11662_s28]]   ;;  %s11666_s28 = smov 25  }
  0x22   :  { %s11811_s20 = sld [smem:[%s14542_s0 + %s11666_s28]]   ;;  %s11670_s28 = smov 29  }
  0x24   :  { %14596 = sst [smem:[#allocation22_spill]] %s11776_s12 }
  0x25   :  { %14597 = sst [smem:[#allocation23_spill]] %s11781_s6 }
  0x26   :  { %14598 = sst [smem:[#allocation24_spill]] %s11786_s27 }
  0x27   :  { %14599 = sst [smem:[#allocation25_spill]] %s11791_s4 }
  0x28   :  { %s11796_s12 = sld [smem:[%s14542_s0 + %s11663_s7]]   ;;  %s11667_s7 = smov 26  }
  0x29   :  { %s11801_s6 = sld [smem:[%s14542_s0 + %s11664_s15]]   ;;  %s11668_s15 = smov 27  }
  0x2a   :  { %s11806_s27 = sld [smem:[%s14542_s0 + %s11665_s22]]   ;;  %s11669_s22 = smov 28  }
  0x2b   :  { %s11831_s4 = sld [smem:[%s14542_s0 + %s11670_s28]]  }
  0x2e   :  { %14600 = sst [smem:[#allocation26_spill]] %s11796_s12 }
  0x2f   :  { %14601 = sst [smem:[#allocation27_spill]] %s11801_s6 }
  0x30   :  { %14602 = sst [smem:[#allocation28_spill]] %s11806_s27 }
  0x31   :  { %s11816_s12 = sld [smem:[%s14542_s0 + %s11667_s7]]  }
  0x32   :  { %s11821_s6 = sld [smem:[%s14542_s0 + %s11668_s15]]  }
  0x33   :  { %s11826_s27 = sld [smem:[%s14542_s0 + %s11669_s22]]  }
  0x37   :  { %14603 = sst [smem:[#allocation29_spill]] %s11816_s12 }
  0x38   :  { %14604 = sst [smem:[#allocation30_spill]] %s11821_s6 }
  0x39   :  { %64 = vsyncpa [#allocation7], 0 }
  0x3a   :  { %65 = vsyncpa [#allocation8], 0 }
  0x3b   :  { %67 = vsyncpa [#allocation8 + $0x1], 0  ;;  %s11833_s7 = smov 0   ;;  %s11835_s10 = smov 0  }
  0x3c   :  { %s11837_s11 = smov 0   ;;  %s11839_s15 = smov 0  }
  0x3d LB: > { %s14605_s9 = sld [smem:[#allocation13_spill]]  ;;  %s11854_s0 = sadd.s32 4294967295, %s11640_s15   ;;  %s11636_s11 = sphi %s11837_s11, %s14848_s11   ;;  %s11632_s10 = sphi %s11835_s10, %s14850_s10   ;;  %s11628_s7 = sphi %s11833_s7, %s14849_s7   ;;  %s11640_s15 = sphi %s11839_s15, %s14846_s15  }
  0x3e   : > { %s14606_s6 = sld [smem:[#allocation30_spill]]  ;;  %s8932_s16 = sadd.s32 4294967294, %s11640_s15  }
  0x3f   : > { %s14607_s3 = sld [smem:[#allocation15_spill]]  ;;  %s11858_s18 = sadd.s32 1, %s11640_s15  }
  0x40   : > { %14608 = sst [smem:[#allocation31_spill]] %s11636_s11  ;;  %s694_s22 = sadd.s32 1, %s11636_s11 }
  0x41   : > { %14609 = sst [smem:[#allocation32_spill]] %s11858_s18  ;;  %s691_s23 = ssub.s32 %s11640_s15, %s11858_s18 }
  0x42   : > { %p704_p0 = scmp.ne.s32.totalorder %s11636_s11, %s11632_s10  ;;  %p692_p1 = scmp.eq.s32.totalorder %s691_s23, 0 }
  0x43   : > { %p705_p2 = scmp.eq.s32.totalorder %s11854_s0, 1  ;;  %p710_p3 = scmp.ne.s32.totalorder %s11632_s10, %s11628_s7 }
  0x44   : > { %p711_p4 = scmp.eq.s32.totalorder %s8932_s16, 1  ;;  %p8933_p7 = scmp.ge.s32.totalorder %s11640_s15, 1 }
  0x45   : > { %s11869_s26 = scalar_select %p692_p1, %s11636_s11, %s694_s22  }
  0x46   : > { %p11871_p5 = por %p705_p2, %p704_p0  ;;  %p11875_p6 = por %p711_p4, %p710_p3 }
  0x47   : > { %14610 = sst [smem:[#allocation33_spill]] %s11869_s26  ;;  %p718_p8 = scmp.lt.s32.totalorder %s11640_s15, 3 }
  0x48   : > { %s14612_s1 = scalar_select %p11875_p6, 1, 0 }
  0x49   : > { %p11480_p9 = scmp.eq.s32.totalorder %s11854_s0, 0  ;;  %p11882_p10 = pnand %p8933_p7, %p718_p8 }
  0x4a   : > { %s11671_s23 = smov [#allocation6]  }
  0x4b   : > { %s802_s16 = sshll.u32 %s11671_s23, 4  ;;  %p11472_p11 = pneg %p11882_p10  ;;  %s803_s16 = int_to_ptr.vmem [resolvable:$true] %s802_s16 }
  0x4c   : > { %s11561_s22 = scalar_lea.vmem %s803_s16, 15360  ;;  %p11569_p3 = scmp.lt.s32.totalorder %s803_s16, %s803_s16 }
  0x4d   : > { %p11473_p12 = pnand %p11480_p9, %p11472_p11  ;;  %p11562_p0 = scmp.ne.s32.totalorder %s803_s16, %s11561_s22 }
  0x4e   : > { %p11570_p4 = scmp.lt.s32.totalorder %s11561_s22, %s11561_s22 }
  0x4f   : > { %p11552_p13 = pneg %p11473_p12 }
  0x50   : > { %p11571_p6 = por %p11570_p4, %p11569_p3 }
  0x51   : > { %p11564_p1 = pnand %p11562_p0, %p11552_p13 }
  0x53   : > { %p11565_p2 = pneg %p11564_p1 }
  0x55   : > { %p11572_p7 = pnand %p11571_p6, %p11565_p2 }
  0x57   : > { %11575 = shalt.err (!%p11572_p7)
}
  0x58   : > { %s11672_s26 = smov 128   ;;  %s11673_s11 = smov 8  }
  0x59   : > { %11475 = dma.hbm_to_vmem [thread:$0]  (!%p11473_p12), %s11811_s20, 15360, %s803_s16, [#allocation7], %s11672_s26, %s11672_s26, %s11673_s11  }
  0x5a   : > { %835 = sbr.rel (%p11882_p10) target bundleno = 3163 (0xc5b), region = 136 }
  0x5f   : > { %11619 = dma.done.wait (%p11480_p9), [#allocation7], 15360  }
  0x60   : > { %11621 = vsyncadd (%p11480_p9), [#allocation7], 4294951936  ;;  %s14614_s5 = sld [smem:[#allocation12_spill]]  ;;  %p910_p6 = scmp.lt.s32.totalorder %s11854_s0, 1  ;;  %vm982_vm0 = vcmask 64512   ;;  %v8939_v0 = vld [vmem:[%s14605_s9 + $0x8] sm:$0xff] }
  0x61   : > { %10291 = vmatprep.subr.mxu0 %v8939_v0  ;;  %v947_v3 = vld [vmem:[%s14605_s9] sm:$0xff]  ;;  %v9037_v19 = vld [vmem:[%s14605_s9 + $0x18] sm:$0xff]  ;;  %v11953_v28 = vld [vmem:[%s14605_s9 + $0x10] sm:$0xff]  ;;  %s14750_s13 = sld [smem:[#allocation14_spill]] }
  0x62   : > { %s911_s23 = scalar_select %p910_p6, %s11854_s0, 1  ;;  %10292 = vmatpush3.msra.mxu0 %v8939_v0  ;;  %11463 = vmatprep.subr.mxu1 %v947_v3  ;;  %v11983_v42 = vld [vmem:[%s14605_s9 + $0x28] sm:$0xff] }
  0x63   : > { %11464 = vmatpush3.msra.mxu1 %v947_v3  ;;  %10341 = vmatprep.subr.mxu0 %v947_v3  ;;  %s14814_s8 = sld [smem:[#allocation16_spill]] }
  0x64   : > { %s11465_s22 = smul.u32 264, %s911_s23  ;;  %10441 = vmatprep.subr.mxu1 %v9037_v19  ;;  %s14815_s11 = sld [smem:[#allocation25_spill]] }
  0x65   : > { %s14825_s26 = sld [smem:[#allocation19_spill]] }
  0x66   : > { %s11900_s18 = scalar_lea.vmem %s14614_s5, %s11465_s22  ;;  %s14827_s2 = sld [smem:[#allocation17_spill]] }
  0x67   : > { %v948_v1 = vld [vmem:[%s11900_s18 + $0x1] sm:$0xff]  ;;  %v949_v2 = vld [vmem:[%s11900_s18 + $0x9] sm:$0xff]  ;;  %v950_v4 = vld [vmem:[%s11900_s18 + $0x11] sm:$0xff]  ;;  %s14828_s16 = sld [smem:[#allocation18_spill]] }
  0x68   : > { %10293 = vmatprep.mubr.msk.f32.mxu0 %vm982_vm0, %v948_v1  ;;  %v917_v5 = vld [vmem:[%s11900_s18 + $0x10] sm:$0xff]  ;;  %v918_v6 = vld [vmem:[%s11900_s18 + $0x18] sm:$0xff]  ;;  %v919_v7 = vld [vmem:[%s11900_s18 + $0x20] sm:$0xff]  ;;  %s14829_s23 = sld [smem:[#allocation23_spill]] }
  0x69   : > { %10294 = vmatmul.mubr.msk.f32.vlgmr.msra.gmra.mxu0 %vm982_vm0, %v949_v2  ;;  %10346 = vmatprep.mubr.msk.f32.mxu1 %vm982_vm0, %v917_v5  ;;  %v951_v8 = vld [vmem:[%s11900_s18 + $0x19] sm:$0xff]  ;;  %v952_v9 = vld [vmem:[%s11900_s18 + $0x21] sm:$0xff]  ;;  %v921_v11 = vld [vmem:[%s11900_s18 + $0x30] sm:$0xff]  ;;  %s14830_s22 = sld [smem:[#allocation20_spill]] }
  0x6a   : > { %10296 = vmatprep.mubr.msk.f32.mxu0 %vm982_vm0, %v950_v4  ;;  %10347 = vmatmul.mubr.msk.f32.vlgmr.msra.gmra.mxu1 %vm982_vm0, %v918_v6  ;;  %v920_v10 = vld [vmem:[%s11900_s18 + $0x28] sm:$0xff]  ;;  %v954_v13 = vld [vmem:[%s11900_s18 + $0x31] sm:$0xff]  ;;  %v923_v15 = vld [vmem:[%s11900_s18 + $0x40] sm:$0xff]  ;;  %s14844_s12 = sld [smem:[#allocation29_spill]] }
  0x6b   : > { %10349 = vmatprep.mubr.msk.f32.mxu1 %vm982_vm0, %v919_v7  ;;  %10342 = vmatpush3.msra.mxu0 %v947_v3  ;;  %v953_v12 = vld [vmem:[%s11900_s18 + $0x29] sm:$0xff]  ;;  %v922_v14 = vld [vmem:[%s11900_s18 + $0x38] sm:$0xff]  ;;  %v956_v17 = vld [vmem:[%s11900_s18 + $0x41] sm:$0xff] }
  0x6c   : > { %v955_v16 = vld [vmem:[%s11900_s18 + $0x39] sm:$0xff]  ;;  %v924_v18 = vld [vmem:[%s11900_s18 + $0x48] sm:$0xff]  ;;  %v925_v20 = vld [vmem:[%s11900_s18 + $0x50] sm:$0xff]  ;;  %10442 = vmatpush3.msra.mxu1 %v9037_v19  ;;  %10391 = vmatprep.subr.mxu0 %v11953_v28 }
  0x6d   : > { %10297 = vmatmul.mubr.msk.f32.gmra.mxu0 %vm982_vm0, %v951_v8  ;;  %v957_v21 = vld [vmem:[%s11900_s18 + $0x49] sm:$0xff]  ;;  %v958_v22 = vld [vmem:[%s11900_s18 + $0x51] sm:$0xff]  ;;  %v927_v24 = vld [vmem:[%s11900_s18 + $0x60] sm:$0xff]  ;;  %10541 = vmatprep.subr.mxu1 %v11983_v42 }
  0x6e   : > { %10299 = vmatprep.mubr.msk.f32.mxu0 %vm982_vm0, %v952_v9  ;;  %10350 = vmatmul.mubr.msk.f32.gmra.mxu1 %vm982_vm0, %v920_v10  ;;  %v926_v23 = vld [vmem:[%s11900_s18 + $0x58] sm:$0xff]  ;;  %v960_v26 = vld [vmem:[%s11900_s18 + $0x61] sm:$0xff]  ;;  %v929_v29 = vld [vmem:[%s11900_s18 + $0x70] sm:$0xff] }
  0x6f   : > { %10352 = vmatprep.mubr.msk.f32.mxu1 %vm982_vm0, %v921_v11  ;;  %v959_v25 = vld [vmem:[%s11900_s18 + $0x59] sm:$0xff]  ;;  %v928_v27 = vld [vmem:[%s11900_s18 + $0x68] sm:$0xff]  ;;  %v962_v31 = vld [vmem:[%s11900_s18 + $0x71] sm:$0xff] }
  0x70   : > { %v961_v30 = vld [vmem:[%s11900_s18 + $0x69] sm:$0xff]  ;;  %v930_v32 = vld [vmem:[%s11900_s18 + $0x78] sm:$0xff]  ;;  %v931_v33 = vld [vmem:[%s11900_s18 + $0x80] sm:$0xff] }
  0x71   : > { %10300 = vmatmul.mubr.msk.f32.gmra.mxu0 %vm982_vm0, %v953_v12  ;;  %v963_v34 = vld [vmem:[%s11900_s18 + $0x79] sm:$0xff]  ;;  %v964_v35 = vld [vmem:[%s11900_s18 + $0x81] sm:$0xff]  ;;  %v933_v37 = vld [vmem:[%s11900_s18 + $0x90] sm:$0xff] }
  0x72   : > { %10302 = vmatprep.mubr.msk.f32.mxu0 %vm982_vm0, %v954_v13  ;;  %10353 = vmatmul.mubr.msk.f32.gmra.mxu1 %vm982_vm0, %v922_v14  ;;  %v932_v36 = vld [vmem:[%s11900_s18 + $0x88] sm:$0xff]  ;;  %v966_v39 = vld [vmem:[%s11900_s18 + $0x91] sm:$0xff]  ;;  %v935_v41 = vld [vmem:[%s11900_s18 + $0xa0] sm:$0xff] }
  0x73   : > { %10355 = vmatprep.mubr.msk.f32.mxu1 %vm982_vm0, %v923_v15  ;;  %v965_v38 = vld [vmem:[%s11900_s18 + $0x89] sm:$0xff]  ;;  %v934_v40 = vld [vmem:[%s11900_s18 + $0x98] sm:$0xff]  ;;  %v968_v44 = vld [vmem:[%s11900_s18 + $0xa1] sm:$0xff] }
  0x74   : > { %v967_v43 = vld [vmem:[%s11900_s18 + $0x99] sm:$0xff]  ;;  %v936_v45 = vld [vmem:[%s11900_s18 + $0xa8] sm:$0xff]  ;;  %v937_v46 = vld [vmem:[%s11900_s18 + $0xb0] sm:$0xff] }
  0x75   : > { %10303 = vmatmul.mubr.msk.f32.gmra.mxu0 %vm982_vm0, %v955_v16  ;;  %v969_v47 = vld [vmem:[%s11900_s18 + $0xa9] sm:$0xff]  ;;  %v970_v48 = vld [vmem:[%s11900_s18 + $0xb1] sm:$0xff]  ;;  %v939_v50 = vld [vmem:[%s11900_s18 + $0xc0] sm:$0xff] }
  0x76   : > { %10305 = vmatprep.mubr.msk.f32.mxu0 %vm982_vm0, %v956_v17  ;;  %10356 = vmatmul.mubr.msk.f32.gmra.mxu1 %vm982_vm0, %v924_v18  ;;  %v938_v49 = vld [vmem:[%s11900_s18 + $0xb8] sm:$0xff]  ;;  %v972_v52 = vld [vmem:[%s11900_s18 + $0xc1] sm:$0xff]  ;;  %v941_v54 = vld [vmem:[%s11900_s18 + $0xd0] sm:$0xff] }
  0x77   : > { %10358 = vmatprep.mubr.msk.f32.mxu1 %vm982_vm0, %v925_v20  ;;  %v971_v51 = vld [vmem:[%s11900_s18 + $0xb9] sm:$0xff]  ;;  %v940_v53 = vld [vmem:[%s11900_s18 + $0xc8] sm:$0xff]  ;;  %v974_v56 = vld [vmem:[%s11900_s18 + $0xd1] sm:$0xff] }
  0x78   : > { %v973_v55 = vld [vmem:[%s11900_s18 + $0xc9] sm:$0xff]  ;;  %v942_v57 = vld [vmem:[%s11900_s18 + $0xd8] sm:$0xff]  ;;  %v943_v58 = vld [vmem:[%s11900_s18 + $0xe0] sm:$0xff] }
  0x79   : > { %10306 = vmatmul.mubr.msk.f32.gmra.mxu0 %vm982_vm0, %v957_v21  ;;  %v975_v59 = vld [vmem:[%s11900_s18 + $0xd9] sm:$0xff]  ;;  %v976_v60 = vld [vmem:[%s11900_s18 + $0xe1] sm:$0xff]  ;;  %v945_v62 = vld [vmem:[%s11900_s18 + $0xf0] sm:$0xff] }
  0x7a   : > { %10308 = vmatprep.mubr.msk.f32.mxu0 %vm982_vm0, %v958_v22  ;;  %10359 = vmatmul.mubr.msk.f32.gmra.mxu1 %vm982_vm0, %v926_v23  ;;  %v944_v61 = vld [vmem:[%s11900_s18 + $0xe8] sm:$0xff]  ;;  %v978_v0 = vld [vmem:[%s11900_s18 + $0xf1] sm:$0xff]  ;;  %v979_v3 = vld [vmem:[%s11900_s18 + $0xf9] sm:$0xff] }
  0x7b   : > { %10361 = vmatprep.mubr.msk.f32.mxu1 %vm982_vm0, %v927_v24  ;;  %v977_v63 = vld [vmem:[%s11900_s18 + $0xe9] sm:$0xff]  ;;  %v946_v1 = vld [vmem:[%s11900_s18 + $0xf8] sm:$0xff]  ;;  %v915_v4 = vld [vmem:[%s11900_s18] sm:$0xff] }
  0x7c   : > { %v2012_v2 = vld [vmem:[%s11900_s18 + $0x3] sm:$0xff]  ;;  %v2013_v5 = vld [vmem:[%s11900_s18 + $0xb] sm:$0xff]  ;;  %v2014_v6 = vld [vmem:[%s11900_s18 + $0x13] sm:$0xff] }
  0x7d   : > { %10309 = vmatmul.mubr.msk.f32.gmra.mxu0 %vm982_vm0, %v959_v25  ;;  %v916_v7 = vld [vmem:[%s11900_s18 + $0x8] sm:$0xff]  ;;  %v12045_v8 = vld [vmem:[%s14605_s9 + $0x38] sm:$0xff]  ;;  %v9070_v11 = vld [vmem:[%s14605_s9 + $0x20] sm:$0xff] }
  0x7e   : > { %10311 = vmatprep.mubr.msk.f32.mxu0 %vm982_vm0, %v960_v26  ;;  %10362 = vmatmul.mubr.msk.f32.gmra.mxu1 %vm982_vm0, %v928_v27  ;;  %v1625_v9 = vld [vmem:[%s11900_s18 + $0x2] sm:$0xff]  ;;  %v1626_v13 = vld [vmem:[%s11900_s18 + $0xa] sm:$0xff]  ;;  %v1627_v14 = vld [vmem:[%s11900_s18 + $0x12] sm:$0xff] }
  0x7f   : > { %10364 = vmatprep.mubr.msk.f32.mxu1 %vm982_vm0, %v929_v29  ;;  %v2015_v10 = vld [vmem:[%s11900_s18 + $0x1b] sm:$0xff]  ;;  %v2016_v12 = vld [vmem:[%s11900_s18 + $0x23] sm:$0xff]  ;;  %v2017_v15 = vld [vmem:[%s11900_s18 + $0x2b] sm:$0xff] }
  0x80   : > { %v12064_v16 = vld [vmem:[%s14605_s9 + $0x30] sm:$0xff]  ;;  %v1628_v18 = vld [vmem:[%s11900_s18 + $0x1a] sm:$0xff]  ;;  %v1629_v19 = vld [vmem:[%s11900_s18 + $0x22] sm:$0xff] }
  0x81   : > { %10312 = vmatmul.mubr.msk.f32.gmra.mxu0 %vm982_vm0, %v961_v30  ;;  %v2018_v17 = vld [vmem:[%s11900_s18 + $0x33] sm:$0xff]  ;;  %v2019_v20 = vld [vmem:[%s11900_s18 + $0x3b] sm:$0xff]  ;;  %v2020_v21 = vld [vmem:[%s11900_s18 + $0x43] sm:$0xff] }
  0x82   : > { %10314 = vmatprep.mubr.msk.f32.mxu0 %vm982_vm0, %v962_v31  ;;  %10365 = vmatmul.mubr.msk.f32.gmra.mxu1 %vm982_vm0, %v930_v32  ;;  %v1630_v22 = vld [vmem:[%s11900_s18 + $0x2a] sm:$0xff]  ;;  %v1631_v23 = vld [vmem:[%s11900_s18 + $0x32] sm:$0xff]  ;;  %v1632_v26 = vld [vmem:[%s11900_s18 + $0x3a] sm:$0xff] }
  0x83   : > { %10367 = vmatprep.mubr.msk.f32.mxu1 %vm982_vm0, %v931_v33  ;;  %v2021_v24 = vld [vmem:[%s11900_s18 + $0x4b] sm:$0xff]  ;;  %v2022_v25 = vld [vmem:[%s11900_s18 + $0x53] sm:$0xff]  ;;  %v1633_v27 = vld [vmem:[%s11900_s18 + $0x42] sm:$0xff] }
  0x84   : > { %v2024_v29 = vld [vmem:[%s11900_s18 + $0x63] sm:$0xff]  ;;  %v1635_v31 = vld [vmem:[%s11900_s18 + $0x52] sm:$0xff] }
  0x85   : > { %10315 = vmatmul.mubr.msk.f32.gmra.mxu0 %vm982_vm0, %v963_v34  ;;  %v1634_v30 = vld [vmem:[%s11900_s18 + $0x4a] sm:$0xff]  ;;  %v2026_v33 = vld [vmem:[%s11900_s18 + $0x73] sm:$0xff] }
  0x86   : > { %10317 = vmatprep.mubr.msk.f32.mxu0 %vm982_vm0, %v964_v35  ;;  %10368 = vmatmul.mubr.msk.f32.gmra.mxu1 %vm982_vm0, %v932_v36  ;;  %v2025_v32 = vld [vmem:[%s11900_s18 + $0x6b] sm:$0xff]  ;;  %v1636_v34 = vld [vmem:[%s11900_s18 + $0x5a] sm:$0xff]  ;;  %v1637_v35 = vld [vmem:[%s11900_s18 + $0x62] sm:$0xff] }
  0x87   : > { %10370 = vmatprep.mubr.msk.f32.mxu1 %vm982_vm0, %v933_v37  ;;  %v2027_v36 = vld [vmem:[%s11900_s18 + $0x7b] sm:$0xff]  ;;  %v2028_v37 = vld [vmem:[%s11900_s18 + $0x83] sm:$0xff] }
  0x89   : > { %10318 = vmatmul.mubr.msk.f32.gmra.mxu0 %vm982_vm0, %v965_v38  ;;  %v1638_v38 = vld [vmem:[%s11900_s18 + $0x6a] sm:$0xff] }
  0x8a   : > { %10320 = vmatprep.mubr.msk.f32.mxu0 %vm982_vm0, %v966_v39  ;;  %10371 = vmatmul.mubr.msk.f32.gmra.mxu1 %vm982_vm0, %v934_v40  ;;  %v1639_v39 = vld [vmem:[%s11900_s18 + $0x72] sm:$0xff] }
  0x8b   : > { %10373 = vmatprep.mubr.msk.f32.mxu1 %vm982_vm0, %v935_v41  ;;  %v2029_v40 = vld [vmem:[%s11900_s18 + $0x8b] sm:$0xff]  ;;  %v2030_v41 = vld [vmem:[%s11900_s18 + $0x93] sm:$0xff] }
  0x8d   : > { %10321 = vmatmul.mubr.msk.f32.gmra.mxu0 %vm982_vm0, %v967_v43  ;;  %v1641_v43 = vld [vmem:[%s11900_s18 + $0x82] sm:$0xff] }
  0x8e   : > { %10323 = vmatprep.mubr.msk.f32.mxu0 %vm982_vm0, %v968_v44  ;;  %10374 = vmatmul.mubr.msk.f32.gmra.mxu1 %vm982_vm0, %v936_v45  ;;  %v2031_v44 = vld [vmem:[%s11900_s18 + $0x9b] sm:$0xff]  ;;  %v2032_v45 = vld [vmem:[%s11900_s18 + $0xa3] sm:$0xff] }
  0x8f   : > { %10376 = vmatprep.mubr.msk.f32.mxu1 %vm982_vm0, %v937_v46  ;;  %v1642_v46 = vld [vmem:[%s11900_s18 + $0x8a] sm:$0xff] }
  0x91   : > { %10324 = vmatmul.mubr.msk.f32.gmra.mxu0 %vm982_vm0, %v969_v47  ;;  %v1643_v47 = vld [vmem:[%s11900_s18 + $0x92] sm:$0xff] }
  0x92   : > { %10326 = vmatprep.mubr.msk.f32.mxu0 %vm982_vm0, %v970_v48  ;;  %10377 = vmatmul.mubr.msk.f32.gmra.mxu1 %vm982_vm0, %v938_v49  ;;  %v2033_v48 = vld [vmem:[%s11900_s18 + $0xab] sm:$0xff]  ;;  %v2034_v49 = vld [vmem:[%s11900_s18 + $0xb3] sm:$0xff] }
  0x93   : > { %10379 = vmatprep.mubr.msk.f32.mxu1 %vm982_vm0, %v939_v50  ;;  %v1644_v50 = vld [vmem:[%s11900_s18 + $0x9a] sm:$0xff] }
  0x95   : > { %10327 = vmatmul.mubr.msk.f32.gmra.mxu0 %vm982_vm0, %v971_v51  ;;  %v1645_v51 = vld [vmem:[%s11900_s18 + $0xa2] sm:$0xff] }
  0x96   : > { %10329 = vmatprep.mubr.msk.f32.mxu0 %vm982_vm0, %v972_v52  ;;  %10380 = vmatmul.mubr.msk.f32.gmra.mxu1 %vm982_vm0, %v940_v53  ;;  %v2035_v52 = vld [vmem:[%s11900_s18 + $0xbb] sm:$0xff]  ;;  %v2036_v53 = vld [vmem:[%s11900_s18 + $0xc3] sm:$0xff] }
  0x97   : > { %10382 = vmatprep.mubr.msk.f32.mxu1 %vm982_vm0, %v941_v54  ;;  %v1646_v54 = vld [vmem:[%s11900_s18 + $0xaa] sm:$0xff] }
  0x99   : > { %10330 = vmatmul.mubr.msk.f32.gmra.mxu0 %vm982_vm0, %v973_v55  ;;  %v1647_v55 = vld [vmem:[%s11900_s18 + $0xb2] sm:$0xff] }
  0x9a   : > { %10332 = vmatprep.mubr.msk.f32.mxu0 %vm982_vm0, %v974_v56  ;;  %10383 = vmatmul.mubr.msk.f32.gmra.mxu1 %vm982_vm0, %v942_v57  ;;  %v2037_v56 = vld [vmem:[%s11900_s18 + $0xcb] sm:$0xff]  ;;  %v2038_v57 = vld [vmem:[%s11900_s18 + $0xd3] sm:$0xff] }
  0x9b   : > { %10385 = vmatprep.mubr.msk.f32.mxu1 %vm982_vm0, %v943_v58  ;;  %v1648_v58 = vld [vmem:[%s11900_s18 + $0xba] sm:$0xff] }
  0x9d   : > { %10333 = vmatmul.mubr.msk.f32.gmra.mxu0 %vm982_vm0, %v975_v59  ;;  %v1649_v59 = vld [vmem:[%s11900_s18 + $0xc2] sm:$0xff] }
  0x9e   : > { %10335 = vmatprep.mubr.msk.f32.mxu0 %vm982_vm0, %v976_v60  ;;  %10386 = vmatmul.mubr.msk.f32.gmra.mxu1 %vm982_vm0, %v944_v61  ;;  %v2039_v60 = vld [vmem:[%s11900_s18 + $0xdb] sm:$0xff]  ;;  %v2040_v61 = vld [vmem:[%s11900_s18 + $0xe3] sm:$0xff] }
  0x9f   : > { %10388 = vmatprep.mubr.msk.f32.mxu1 %vm982_vm0, %v945_v62  ;;  %v1650_v62 = vld [vmem:[%s11900_s18 + $0xca] sm:$0xff] }
  0xa1   : > { %10336 = vmatmul.mubr.msk.f32.gmra.mxu0 %vm982_vm0, %v977_v63  ;;  %v1651_v63 = vld [vmem:[%s11900_s18 + $0xd2] sm:$0xff] }
  0xa2   : > { %10338 = vmatprep.mubr.msk.f32.mxu0 %vm982_vm0, %v978_v0  ;;  %10389 = vmatmul.mubr.msk.f32.gmra.mxu1 %vm982_vm0, %v946_v1  ;;  %v2041_v0 = vld [vmem:[%s11900_s18 + $0xeb] sm:$0xff]  ;;  %v2042_v1 = vld [vmem:[%s11900_s18 + $0xf3] sm:$0xff] }
  0xa3   : > { %10443 = vmatprep.mubr.msk.f32.mxu1 %vm982_vm0, %v2012_v2  ;;  %v1652_v2 = vld [vmem:[%s11900_s18 + $0xda] sm:$0xff] }
  0xa5   : > { %10339 = vmatmul.mubr.msk.f32.gmra.mxu0 %vm982_vm0, %v979_v3  ;;  %v1653_v3 = vld [vmem:[%s11900_s18 + $0xe2] sm:$0xff] }
  0xa6   : > { %10343 = vmatprep.mubr.msk.f32.mxu0 %vm982_vm0, %v915_v4  ;;  %10444 = vmatmul.mubr.msk.f32.vlgmr.msra.gmra.mxu1 %vm982_vm0, %v2013_v5  ;;  %v2043_v4 = vld [vmem:[%s11900_s18 + $0xfb] sm:$0xff]  ;;  %v2786_v5 = vld [vmem:[%s11900_s18 + $0x5] sm:$0xff] }
  0xa7   : > { %10446 = vmatprep.mubr.msk.f32.mxu1 %vm982_vm0, %v2014_v6  ;;  %10542 = vmatpush3.msra.mxu1 %v11983_v42  ;;  %v1640_v42 = vld [vmem:[%s11900_s18 + $0x7a] sm:$0xff]  ;;  %v1654_v6 = vld [vmem:[%s11900_s18 + $0xea] sm:$0xff] }
  0xa8   : > { %10641 = vmatprep.subr.mxu1 %v12045_v8 }
  0xa9   : > { %10344 = vmatmul.mubr.msk.f32.vlgmr.msra.gmra.mxu0 %vm982_vm0, %v916_v7  ;;  %v1655_v7 = vld [vmem:[%s11900_s18 + $0xf2] sm:$0xff] }
  0xaa   : > { %10392 = vmatpush3.msra.mxu0 %v11953_v28  ;;  %10393 = vmatprep.mubr.msk.f32.mxu0 %vm982_vm0, %v1625_v9  ;;  %v2023_v28 = vld [vmem:[%s11900_s18 + $0x5b] sm:$0xff]  ;;  %v2787_v9 = vld [vmem:[%s11900_s18 + $0xd] sm:$0xff] }
  0xab   : > { %10447 = vmatmul.mubr.msk.f32.gmra.mxu1 %vm982_vm0, %v2015_v10  ;;  %10491 = vmatprep.subr.mxu0 %v9070_v11  ;;  %v2788_v10 = vld [vmem:[%s11900_s18 + $0x15] sm:$0xff] }
  0xac   : > { %10449 = vmatprep.mubr.msk.f32.mxu1 %vm982_vm0, %v2016_v12  ;;  %v2399_v12 = vld [vmem:[%s11900_s18 + $0x4] sm:$0xff] }
  0xad   : > { %10394 = vmatmul.mubr.msk.f32.vlgmr.msra.gmra.mxu0 %vm982_vm0, %v1626_v13  ;;  %v2789_v13 = vld [vmem:[%s11900_s18 + $0x1d] sm:$0xff] }
  0xae   : > { %10396 = vmatprep.mubr.msk.f32.mxu0 %vm982_vm0, %v1627_v14  ;;  %10492 = vmatpush3.msra.mxu0 %v9070_v11  ;;  %v1656_v11 = vld [vmem:[%s11900_s18 + $0xfa] sm:$0xff]  ;;  %v2790_v14 = vld [vmem:[%s11900_s18 + $0x25] sm:$0xff] }
  0xaf   : > { %10450 = vmatmul.mubr.msk.f32.gmra.mxu1 %vm982_vm0, %v2017_v15  ;;  %10591 = vmatprep.subr.mxu0 %v12064_v16  ;;  %v2400_v15 = vld [vmem:[%s11900_s18 + $0xc] sm:$0xff] }
  0xb0   : > { %10452 = vmatprep.mubr.msk.f32.mxu1 %vm982_vm0, %v2018_v17  ;;  %v2401_v17 = vld [vmem:[%s11900_s18 + $0x14] sm:$0xff] }
  0xb1   : > { %10397 = vmatmul.mubr.msk.f32.gmra.mxu0 %vm982_vm0, %v1628_v18  ;;  %v2791_v18 = vld [vmem:[%s11900_s18 + $0x2d] sm:$0xff] }
  0xb2   : > { %10399 = vmatprep.mubr.msk.f32.mxu0 %vm982_vm0, %v1629_v19  ;;  %v2402_v19 = vld [vmem:[%s11900_s18 + $0x1c] sm:$0xff] }
  0xb3   : > { %10453 = vmatmul.mubr.msk.f32.gmra.mxu1 %vm982_vm0, %v2019_v20  ;;  %v2403_v20 = vld [vmem:[%s11900_s18 + $0x24] sm:$0xff] }
  0xb4   : > { %10455 = vmatprep.mubr.msk.f32.mxu1 %vm982_vm0, %v2020_v21  ;;  %v2793_v21 = vld [vmem:[%s11900_s18 + $0x3d] sm:$0xff] }
  0xb5   : > { %10400 = vmatmul.mubr.msk.f32.gmra.mxu0 %vm982_vm0, %v1630_v22  ;;  %v2794_v22 = vld [vmem:[%s11900_s18 + $0x45] sm:$0xff] }
  0xb6   : > { %10402 = vmatprep.mubr.msk.f32.mxu0 %vm982_vm0, %v1631_v23  ;;  %v2404_v23 = vld [vmem:[%s11900_s18 + $0x2c] sm:$0xff] }
  0xb7   : > { %10456 = vmatmul.mubr.msk.f32.gmra.mxu1 %vm982_vm0, %v2021_v24  ;;  %v2405_v24 = vld [vmem:[%s11900_s18 + $0x34] sm:$0xff] }
  0xb8   : > { %10458 = vmatprep.mubr.msk.f32.mxu1 %vm982_vm0, %v2022_v25  ;;  %v2796_v25 = vld [vmem:[%s11900_s18 + $0x55] sm:$0xff] }
  0xb9   : > { %10403 = vmatmul.mubr.msk.f32.gmra.mxu0 %vm982_vm0, %v1632_v26  ;;  %v2406_v26 = vld [vmem:[%s11900_s18 + $0x3c] sm:$0xff] }
  0xba   : > { %10405 = vmatprep.mubr.msk.f32.mxu0 %vm982_vm0, %v1633_v27  ;;  %v2407_v27 = vld [vmem:[%s11900_s18 + $0x44] sm:$0xff] }
  0xbb   : > { %10459 = vmatmul.mubr.msk.f32.gmra.mxu1 %vm982_vm0, %v2023_v28  ;;  %v2797_v28 = vld [vmem:[%s11900_s18 + $0x5d] sm:$0xff] }
  0xbc   : > { %10461 = vmatprep.mubr.msk.f32.mxu1 %vm982_vm0, %v2024_v29  ;;  %v2798_v29 = vld [vmem:[%s11900_s18 + $0x65] sm:$0xff] }
  0xbd   : > { %10406 = vmatmul.mubr.msk.f32.gmra.mxu0 %vm982_vm0, %v1634_v30  ;;  %v2408_v30 = vld [vmem:[%s11900_s18 + $0x4c] sm:$0xff] }
  0xbe   : > { %10408 = vmatprep.mubr.msk.f32.mxu0 %vm982_vm0, %v1635_v31  ;;  %v2409_v31 = vld [vmem:[%s11900_s18 + $0x54] sm:$0xff] }
  0xbf   : > { %10462 = vmatmul.mubr.msk.f32.gmra.mxu1 %vm982_vm0, %v2025_v32  ;;  %v2799_v32 = vld [vmem:[%s11900_s18 + $0x6d] sm:$0xff] }
  0xc0   : > { %10464 = vmatprep.mubr.msk.f32.mxu1 %vm982_vm0, %v2026_v33  ;;  %v2800_v33 = vld [vmem:[%s11900_s18 + $0x75] sm:$0xff] }
  0xc1   : > { %10409 = vmatmul.mubr.msk.f32.gmra.mxu0 %vm982_vm0, %v1636_v34  ;;  %v2410_v34 = vld [vmem:[%s11900_s18 + $0x5c] sm:$0xff] }
  0xc2   : > { %10411 = vmatprep.mubr.msk.f32.mxu0 %vm982_vm0, %v1637_v35  ;;  %v2411_v35 = vld [vmem:[%s11900_s18 + $0x64] sm:$0xff] }
  0xc3   : > { %10465 = vmatmul.mubr.msk.f32.gmra.mxu1 %vm982_vm0, %v2027_v36  ;;  %v2801_v36 = vld [vmem:[%s11900_s18 + $0x7d] sm:$0xff] }
  0xc4   : > { %10467 = vmatprep.mubr.msk.f32.mxu1 %vm982_vm0, %v2028_v37  ;;  %v2802_v37 = vld [vmem:[%s11900_s18 + $0x85] sm:$0xff] }
  0xc5   : > { %10412 = vmatmul.mubr.msk.f32.gmra.mxu0 %vm982_vm0, %v1638_v38  ;;  %v2412_v38 = vld [vmem:[%s11900_s18 + $0x6c] sm:$0xff] }
  0xc6   : > { %10414 = vmatprep.mubr.msk.f32.mxu0 %vm982_vm0, %v1639_v39  ;;  %v2413_v39 = vld [vmem:[%s11900_s18 + $0x74] sm:$0xff] }
  0xc7   : > { %10468 = vmatmul.mubr.msk.f32.gmra.mxu1 %vm982_vm0, %v2029_v40  ;;  %v2803_v40 = vld [vmem:[%s11900_s18 + $0x8d] sm:$0xff] }
  0xc8   : > { %10470 = vmatprep.mubr.msk.f32.mxu1 %vm982_vm0, %v2030_v41  ;;  %v2804_v41 = vld [vmem:[%s11900_s18 + $0x95] sm:$0xff] }
  0xc9   : > { %10415 = vmatmul.mubr.msk.f32.gmra.mxu0 %vm982_vm0, %v1640_v42  ;;  %v2414_v42 = vld [vmem:[%s11900_s18 + $0x7c] sm:$0xff] }
  0xca   : > { %10417 = vmatprep.mubr.msk.f32.mxu0 %vm982_vm0, %v1641_v43  ;;  %v2415_v43 = vld [vmem:[%s11900_s18 + $0x84] sm:$0xff] }
  0xcb   : > { %10471 = vmatmul.mubr.msk.f32.gmra.mxu1 %vm982_vm0, %v2031_v44  ;;  %v2805_v44 = vld [vmem:[%s11900_s18 + $0x9d] sm:$0xff] }
  0xcc   : > { %10473 = vmatprep.mubr.msk.f32.mxu1 %vm982_vm0, %v2032_v45  ;;  %v2806_v45 = vld [vmem:[%s11900_s18 + $0xa5] sm:$0xff] }
  0xcd   : > { %10418 = vmatmul.mubr.msk.f32.gmra.mxu0 %vm982_vm0, %v1642_v46  ;;  %v2416_v46 = vld [vmem:[%s11900_s18 + $0x8c] sm:$0xff] }
  0xce   : > { %10420 = vmatprep.mubr.msk.f32.mxu0 %vm982_vm0, %v1643_v47  ;;  %v2417_v47 = vld [vmem:[%s11900_s18 + $0x94] sm:$0xff] }
  0xcf   : > { %10474 = vmatmul.mubr.msk.f32.gmra.mxu1 %vm982_vm0, %v2033_v48  ;;  %v2807_v48 = vld [vmem:[%s11900_s18 + $0xad] sm:$0xff] }
  0xd0   : > { %10476 = vmatprep.mubr.msk.f32.mxu1 %vm982_vm0, %v2034_v49  ;;  %v2808_v49 = vld [vmem:[%s11900_s18 + $0xb5] sm:$0xff] }
  0xd1   : > { %10421 = vmatmul.mubr.msk.f32.gmra.mxu0 %vm982_vm0, %v1644_v50  ;;  %v2418_v50 = vld [vmem:[%s11900_s18 + $0x9c] sm:$0xff] }
  0xd2   : > { %10423 = vmatprep.mubr.msk.f32.mxu0 %vm982_vm0, %v1645_v51  ;;  %v2419_v51 = vld [vmem:[%s11900_s18 + $0xa4] sm:$0xff] }
  0xd3   : > { %10477 = vmatmul.mubr.msk.f32.gmra.mxu1 %vm982_vm0, %v2035_v52  ;;  %v2809_v52 = vld [vmem:[%s11900_s18 + $0xbd] sm:$0xff] }
  0xd4   : > { %10479 = vmatprep.mubr.msk.f32.mxu1 %vm982_vm0, %v2036_v53  ;;  %v2810_v53 = vld [vmem:[%s11900_s18 + $0xc5] sm:$0xff] }
  0xd5   : > { %10424 = vmatmul.mubr.msk.f32.gmra.mxu0 %vm982_vm0, %v1646_v54  ;;  %v2420_v54 = vld [vmem:[%s11900_s18 + $0xac] sm:$0xff] }
  0xd6   : > { %10426 = vmatprep.mubr.msk.f32.mxu0 %vm982_vm0, %v1647_v55  ;;  %v2421_v55 = vld [vmem:[%s11900_s18 + $0xb4] sm:$0xff] }
  0xd7   : > { %10480 = vmatmul.mubr.msk.f32.gmra.mxu1 %vm982_vm0, %v2037_v56  ;;  %v2811_v56 = vld [vmem:[%s11900_s18 + $0xcd] sm:$0xff] }
  0xd8   : > { %10482 = vmatprep.mubr.msk.f32.mxu1 %vm982_vm0, %v2038_v57  ;;  %v2812_v57 = vld [vmem:[%s11900_s18 + $0xd5] sm:$0xff] }
  0xd9   : > { %10427 = vmatmul.mubr.msk.f32.gmra.mxu0 %vm982_vm0, %v1648_v58  ;;  %v2422_v58 = vld [vmem:[%s11900_s18 + $0xbc] sm:$0xff] }
  0xda   : > { %10429 = vmatprep.mubr.msk.f32.mxu0 %vm982_vm0, %v1649_v59  ;;  %v2423_v59 = vld [vmem:[%s11900_s18 + $0xc4] sm:$0xff] }
  0xdb   : > { %10483 = vmatmul.mubr.msk.f32.gmra.mxu1 %vm982_vm0, %v2039_v60  ;;  %v2813_v60 = vld [vmem:[%s11900_s18 + $0xdd] sm:$0xff] }
  0xdc   : > { %10485 = vmatprep.mubr.msk.f32.mxu1 %vm982_vm0, %v2040_v61  ;;  %v2814_v61 = vld [vmem:[%s11900_s18 + $0xe5] sm:$0xff] }
  0xdd   : > { %10430 = vmatmul.mubr.msk.f32.gmra.mxu0 %vm982_vm0, %v1650_v62  ;;  %v2424_v62 = vld [vmem:[%s11900_s18 + $0xcc] sm:$0xff] }
  0xde   : > { %10432 = vmatprep.mubr.msk.f32.mxu0 %vm982_vm0, %v1651_v63  ;;  %v2425_v63 = vld [vmem:[%s11900_s18 + $0xd4] sm:$0xff] }
  0xdf   : > { %10486 = vmatmul.mubr.msk.f32.gmra.mxu1 %vm982_vm0, %v2041_v0  ;;  %v2815_v0 = vld [vmem:[%s11900_s18 + $0xed] sm:$0xff] }
  0xe0   : > { %10488 = vmatprep.mubr.msk.f32.mxu1 %vm982_vm0, %v2042_v1  ;;  %v2816_v1 = vld [vmem:[%s11900_s18 + $0xf5] sm:$0xff] }
  0xe1   : > { %10433 = vmatmul.mubr.msk.f32.gmra.mxu0 %vm982_vm0, %v1652_v2  ;;  %v2426_v2 = vld [vmem:[%s11900_s18 + $0xdc] sm:$0xff] }
  0xe2   : > { %10435 = vmatprep.mubr.msk.f32.mxu0 %vm982_vm0, %v1653_v3  ;;  %v2427_v3 = vld [vmem:[%s11900_s18 + $0xe4] sm:$0xff] }
  0xe3   : > { %10489 = vmatmul.mubr.msk.f32.gmra.mxu1 %vm982_vm0, %v2043_v4  ;;  %v2817_v4 = vld [vmem:[%s11900_s18 + $0xfd] sm:$0xff] }
  0xe4   : > { %10543 = vmatprep.mubr.msk.f32.mxu1 %vm982_vm0, %v2786_v5  ;;  %v3560_v5 = vld [vmem:[%s11900_s18 + $0x7] sm:$0xff] }
  0xe5   : > { %10436 = vmatmul.mubr.msk.f32.gmra.mxu0 %vm982_vm0, %v1654_v6  ;;  %v2428_v6 = vld [vmem:[%s11900_s18 + $0xec] sm:$0xff] }
  0xe6   : > { %10438 = vmatprep.mubr.msk.f32.mxu0 %vm982_vm0, %v1655_v7  ;;  %v2429_v7 = vld [vmem:[%s11900_s18 + $0xf4] sm:$0xff] }
  0xe7   : > { %10544 = vmatmul.mubr.msk.f32.vlgmr.msra.gmra.mxu1 %vm982_vm0, %v2787_v9  ;;  %v3561_v9 = vld [vmem:[%s11900_s18 + $0xf] sm:$0xff] }
  0xe8   : > { %10546 = vmatprep.mubr.msk.f32.mxu1 %vm982_vm0, %v2788_v10  ;;  %10642 = vmatpush3.msra.mxu1 %v12045_v8  ;;  %v2792_v8 = vld [vmem:[%s11900_s18 + $0x35] sm:$0xff] }
  0xe9   : > { %10439 = vmatmul.mubr.msk.f32.gmra.mxu0 %vm982_vm0, %v1656_v11  ;;  %v3562_v10 = vld [vmem:[%s11900_s18 + $0x17] sm:$0xff] }
  0xea   : > { %10493 = vmatprep.mubr.msk.f32.mxu0 %vm982_vm0, %v2399_v12  ;;  %v2430_v11 = vld [vmem:[%s11900_s18 + $0xfc] sm:$0xff]  ;;  %v3173_v12 = vld [vmem:[%s11900_s18 + $0x6] sm:$0xff] }
  0xeb   : > { %10547 = vmatmul.mubr.msk.f32.gmra.mxu1 %vm982_vm0, %v2789_v13  ;;  %v3563_v13 = vld [vmem:[%s11900_s18 + $0x1f] sm:$0xff] }
  0xec   : > { %10549 = vmatprep.mubr.msk.f32.mxu1 %vm982_vm0, %v2790_v14 }
  0xed   : > { %10494 = vmatmul.mubr.msk.f32.vlgmr.msra.gmra.mxu0 %vm982_vm0, %v2400_v15  ;;  %v3564_v15 = vld [vmem:[%s11900_s18 + $0x27] sm:$0xff] }
  0xee   : > { %10496 = vmatprep.mubr.msk.f32.mxu0 %vm982_vm0, %v2401_v17  ;;  %10592 = vmatpush3.msra.mxu0 %v12064_v16  ;;  %v2795_v16 = vld [vmem:[%s11900_s18 + $0x4d] sm:$0xff] }
  0xef   : > { %10550 = vmatmul.mubr.msk.f32.gmra.mxu1 %vm982_vm0, %v2791_v18  ;;  %v3174_v17 = vld [vmem:[%s11900_s18 + $0xe] sm:$0xff] }
  0xf0   : > { %10552 = vmatprep.mubr.msk.f32.mxu1 %vm982_vm0, %v2792_v8 }
  0xf1   : > { %10497 = vmatmul.mubr.msk.f32.gmra.mxu0 %vm982_vm0, %v2402_v19  ;;  %v3175_v19 = vld [vmem:[%s11900_s18 + $0x16] sm:$0xff] }
  0xf2   : > { %10499 = vmatprep.mubr.msk.f32.mxu0 %vm982_vm0, %v2403_v20  ;;  %v3565_v20 = vld [vmem:[%s11900_s18 + $0x2f] sm:$0xff] }
  0xf3   : > { %10553 = vmatmul.mubr.msk.f32.gmra.mxu1 %vm982_vm0, %v2793_v21 }
  0xf4   : > { %10555 = vmatprep.mubr.msk.f32.mxu1 %vm982_vm0, %v2794_v22 }
  0xf5   : > { %10500 = vmatmul.mubr.msk.f32.gmra.mxu0 %vm982_vm0, %v2404_v23  ;;  %v3566_v23 = vld [vmem:[%s11900_s18 + $0x37] sm:$0xff] }
  0xf6   : > { %10502 = vmatprep.mubr.msk.f32.mxu0 %vm982_vm0, %v2405_v24 }
  0xf7   : > { %10556 = vmatmul.mubr.msk.f32.gmra.mxu1 %vm982_vm0, %v2795_v16  ;;  %v3176_v16 = vld [vmem:[%s11900_s18 + $0x1e] sm:$0xff] }
  0xf8   : > { %10558 = vmatprep.mubr.msk.f32.mxu1 %vm982_vm0, %v2796_v25 }
  0xf9   : > { %10503 = vmatmul.mubr.msk.f32.gmra.mxu0 %vm982_vm0, %v2406_v26 }
  0xfa   : > { %10505 = vmatprep.mubr.msk.f32.mxu0 %vm982_vm0, %v2407_v27  ;;  %v3177_v27 = vld [vmem:[%s11900_s18 + $0x26] sm:$0xff] }
  0xfb   : > { %10559 = vmatmul.mubr.msk.f32.gmra.mxu1 %vm982_vm0, %v2797_v28 }
  0xfc   : > { %10561 = vmatprep.mubr.msk.f32.mxu1 %vm982_vm0, %v2798_v29  ;;  %v3567_v29 = vld [vmem:[%s11900_s18 + $0x3f] sm:$0xff] }
  0xfd   : > { %10506 = vmatmul.mubr.msk.f32.gmra.mxu0 %vm982_vm0, %v2408_v30 }
  0xfe   : > { %10508 = vmatprep.mubr.msk.f32.mxu0 %vm982_vm0, %v2409_v31 }
  0xff   : > { %10562 = vmatmul.mubr.msk.f32.gmra.mxu1 %vm982_vm0, %v2799_v32  ;;  %v3568_v32 = vld [vmem:[%s11900_s18 + $0x47] sm:$0xff] }
 0x100   : > { %10564 = vmatprep.mubr.msk.f32.mxu1 %vm982_vm0, %v2800_v33 }
 0x101   : > { %10509 = vmatmul.mubr.msk.f32.gmra.mxu0 %vm982_vm0, %v2410_v34  ;;  %v3178_v34 = vld [vmem:[%s11900_s18 + $0x2e] sm:$0xff] }
 0x102   : > { %10511 = vmatprep.mubr.msk.f32.mxu0 %vm982_vm0, %v2411_v35 }
 0x103   : > { %10565 = vmatmul.mubr.msk.f32.gmra.mxu1 %vm982_vm0, %v2801_v36 }
 0x104   : > { %10567 = vmatprep.mubr.msk.f32.mxu1 %vm982_vm0, %v2802_v37  ;;  %v3179_v37 = vld [vmem:[%s11900_s18 + $0x36] sm:$0xff] }
 0x105   : > { %10512 = vmatmul.mubr.msk.f32.gmra.mxu0 %vm982_vm0, %v2412_v38 }
 0x106   : > { %10514 = vmatprep.mubr.msk.f32.mxu0 %vm982_vm0, %v2413_v39  ;;  %v3569_v39 = vld [vmem:[%s11900_s18 + $0x4f] sm:$0xff] }
 0x107   : > { %10568 = vmatmul.mubr.msk.f32.gmra.mxu1 %vm982_vm0, %v2803_v40 }
 0x108   : > { %10570 = vmatprep.mubr.msk.f32.mxu1 %vm982_vm0, %v2804_v41 }
 0x109   : > { %10515 = vmatmul.mubr.msk.f32.gmra.mxu0 %vm982_vm0, %v2414_v42  ;;  %v3570_v42 = vld [vmem:[%s11900_s18 + $0x57] sm:$0xff] }
 0x10a   : > { %10517 = vmatprep.mubr.msk.f32.mxu0 %vm982_vm0, %v2415_v43 }
 0x10b   : > { %10571 = vmatmul.mubr.msk.f32.gmra.mxu1 %vm982_vm0, %v2805_v44  ;;  %v3180_v44 = vld [vmem:[%s11900_s18 + $0x3e] sm:$0xff] }
 0x10c   : > { %10573 = vmatprep.mubr.msk.f32.mxu1 %vm982_vm0, %v2806_v45 }
 0x10d   : > { %10518 = vmatmul.mubr.msk.f32.gmra.mxu0 %vm982_vm0, %v2416_v46 }
 0x10e   : > { %10520 = vmatprep.mubr.msk.f32.mxu0 %vm982_vm0, %v2417_v47  ;;  %v3181_v47 = vld [vmem:[%s11900_s18 + $0x46] sm:$0xff] }
 0x10f   : > { %10574 = vmatmul.mubr.msk.f32.gmra.mxu1 %vm982_vm0, %v2807_v48 }
 0x110   : > { %10576 = vmatprep.mubr.msk.f32.mxu1 %vm982_vm0, %v2808_v49  ;;  %v3571_v49 = vld [vmem:[%s11900_s18 + $0x5f] sm:$0xff] }
 0x111   : > { %10521 = vmatmul.mubr.msk.f32.gmra.mxu0 %vm982_vm0, %v2418_v50 }
 0x112   : > { %10523 = vmatprep.mubr.msk.f32.mxu0 %vm982_vm0, %v2419_v51 }
 0x113   : > { %10577 = vmatmul.mubr.msk.f32.gmra.mxu1 %vm982_vm0, %v2809_v52  ;;  %v3572_v52 = vld [vmem:[%s11900_s18 + $0x67] sm:$0xff] }
 0x114   : > { %10579 = vmatprep.mubr.msk.f32.mxu1 %vm982_vm0, %v2810_v53 }
 0x115   : > { %10524 = vmatmul.mubr.msk.f32.gmra.mxu0 %vm982_vm0, %v2420_v54  ;;  %v3182_v54 = vld [vmem:[%s11900_s18 + $0x4e] sm:$0xff] }
 0x116   : > { %10526 = vmatprep.mubr.msk.f32.mxu0 %vm982_vm0, %v2421_v55 }
 0x117   : > { %10580 = vmatmul.mubr.msk.f32.gmra.mxu1 %vm982_vm0, %v2811_v56 }
 0x118   : > { %10582 = vmatprep.mubr.msk.f32.mxu1 %vm982_vm0, %v2812_v57  ;;  %v3183_v57 = vld [vmem:[%s11900_s18 + $0x56] sm:$0xff] }
 0x119   : > { %10527 = vmatmul.mubr.msk.f32.gmra.mxu0 %vm982_vm0, %v2422_v58 }
 0x11a   : > { %10529 = vmatprep.mubr.msk.f32.mxu0 %vm982_vm0, %v2423_v59  ;;  %v3573_v59 = vld [vmem:[%s11900_s18 + $0x6f] sm:$0xff] }
 0x11b   : > { %10583 = vmatmul.mubr.msk.f32.gmra.mxu1 %vm982_vm0, %v2813_v60 }
 0x11c   : > { %10585 = vmatprep.mubr.msk.f32.mxu1 %vm982_vm0, %v2814_v61 }
 0x11d   : > { %10530 = vmatmul.mubr.msk.f32.gmra.mxu0 %vm982_vm0, %v2424_v62  ;;  %v3574_v62 = vld [vmem:[%s11900_s18 + $0x77] sm:$0xff] }
 0x11e   : > { %10532 = vmatprep.mubr.msk.f32.mxu0 %vm982_vm0, %v2425_v63 }
 0x11f   : > { %10586 = vmatmul.mubr.msk.f32.gmra.mxu1 %vm982_vm0, %v2815_v0  ;;  %v3184_v0 = vld [vmem:[%s11900_s18 + $0x5e] sm:$0xff] }
 0x120   : > { %10588 = vmatprep.mubr.msk.f32.mxu1 %vm982_vm0, %v2816_v1 }
 0x121   : > { %10533 = vmatmul.mubr.msk.f32.gmra.mxu0 %vm982_vm0, %v2426_v2 }
 0x122   : > { %10535 = vmatprep.mubr.msk.f32.mxu0 %vm982_vm0, %v2427_v3  ;;  %v3185_v3 = vld [vmem:[%s11900_s18 + $0x66] sm:$0xff] }
 0x123   : > { %10589 = vmatmul.mubr.msk.f32.gmra.mxu1 %vm982_vm0, %v2817_v4 }
 0x124   : > { %10643 = vmatprep.mubr.msk.f32.mxu1 %vm982_vm0, %v3560_v5  ;;  %v3575_v5 = vld [vmem:[%s11900_s18 + $0x7f] sm:$0xff] }
 0x125   : > { %10536 = vmatmul.mubr.msk.f32.gmra.mxu0 %vm982_vm0, %v2428_v6 }
 0x126   : > { %10538 = vmatprep.mubr.msk.f32.mxu0 %vm982_vm0, %v2429_v7 }
 0x127   : > { %10644 = vmatmul.mubr.msk.f32.vlgmr.msra.gmra.mxu1 %vm982_vm0, %v3561_v9  ;;  %v3576_v9 = vld [vmem:[%s11900_s18 + $0x87] sm:$0xff] }
 0x128   : > { %10646 = vmatprep.mubr.msk.f32.mxu1 %vm982_vm0, %v3562_v10 }
 0x129   : > { %v12317_v14 = vpop.f32.mrf.mxu0  ;;  %10539 = vmatmul.mubr.msk.f32.gmra.mxu0 %vm982_vm0, %v2430_v11  ;;  %v3186_v11 = vld [vmem:[%s11900_s18 + $0x6e] sm:$0xff] }
 0x12a   : > { %10593 = vmatprep.mubr.msk.f32.mxu0 %vm982_vm0, %v3173_v12  ;;  %v10348_v8 = vpop.f32.mrf.mxu1 }
 0x12b   : > { %v12323_v18 = vpop.f32.mrf.mxu0  ;;  %10647 = vmatmul.mubr.msk.f32.gmra.mxu1 %vm982_vm0, %v3563_v13 }
 0x12c   : > { %10649 = vmatprep.mubr.msk.f32.mxu1 %vm982_vm0, %v3564_v15  ;;  %v1476_v22 = vpop.f32.mrf.mxu1  ;;  %v3187_v15 = vld [vmem:[%s11900_s18 + $0x76] sm:$0xff] }
 0x12d   : > { %v10298_v21 = vpop.f32.mrf.mxu0  ;;  %10594 = vmatmul.mubr.msk.f32.vlgmr.msra.gmra.mxu0 %vm982_vm0, %v3174_v17 }
 0x12e   : > { %v12331_v24 = vadd.f32 %v10348_v8, %v10298_v21  ;;  %10596 = vmatprep.mubr.msk.f32.mxu0 %vm982_vm0, %v3175_v19  ;;  %v10351_v26 = vpop.f32.mrf.mxu1  ;;  %v3577_v8 = vld [vmem:[%s11900_s18 + $0x8f] sm:$0xff]  ;;  %v3578_v21 = vld [vmem:[%s11900_s18 + $0x97] sm:$0xff] }
 0x12f   : > { %v1155_v25 = vpop.f32.mrf.mxu0  ;;  %10650 = vmatmul.mubr.msk.f32.gmra.mxu1 %vm982_vm0, %v3565_v20 }
 0x130   : > { %v12337_v28 = vadd.f32 %v1476_v22, %v1155_v25  ;;  %10652 = vmatprep.mubr.msk.f32.mxu1 %vm982_vm0, %v3566_v23  ;;  %v1486_v31 = vpop.f32.mrf.mxu1  ;;  %v3188_v23 = vld [vmem:[%s11900_s18 + $0x7e] sm:$0xff] }
 0x131   : > { %v10301_v30 = vpop.f32.mrf.mxu0  ;;  %10597 = vmatmul.mubr.msk.f32.gmra.mxu0 %vm982_vm0, %v3176_v16 }
 0x132   : > { %v12343_v33 = vadd.f32 %v10351_v26, %v10301_v30  ;;  %10599 = vmatprep.mubr.msk.f32.mxu0 %vm982_vm0, %v3177_v27  ;;  %v10354_v36 = vpop.f32.mrf.mxu1  ;;  %v3189_v26 = vld [vmem:[%s11900_s18 + $0x86] sm:$0xff] }
 0x133   : > { %v1165_v35 = vpop.f32.mrf.mxu0  ;;  %10653 = vmatmul.mubr.msk.f32.gmra.mxu1 %vm982_vm0, %v3567_v29  ;;  %v3579_v29 = vld [vmem:[%s11900_s18 + $0x9f] sm:$0xff] }
 0x134   : > { %v12349_v38 = vadd.f32 %v1486_v31, %v1165_v35  ;;  %10655 = vmatprep.mubr.msk.f32.mxu1 %vm982_vm0, %v3568_v32  ;;  %v1496_v41 = vpop.f32.mrf.mxu1  ;;  %v3580_v32 = vld [vmem:[%s11900_s18 + $0xa7] sm:$0xff] }
 0x135   : > { %v10304_v40 = vpop.f32.mrf.mxu0  ;;  %10600 = vmatmul.mubr.msk.f32.gmra.mxu0 %vm982_vm0, %v3178_v34  ;;  %v3190_v35 = vld [vmem:[%s11900_s18 + $0x8e] sm:$0xff] }
 0x136   : > { %v12355_v43 = vadd.f32 %v10354_v36, %v10304_v40  ;;  %10602 = vmatprep.mubr.msk.f32.mxu0 %vm982_vm0, %v3179_v37  ;;  %v10357_v46 = vpop.f32.mrf.mxu1  ;;  %v3581_v40 = vld [vmem:[%s11900_s18 + $0xaf] sm:$0xff] }
 0x137   : > { %v1175_v45 = vpop.f32.mrf.mxu0  ;;  %10656 = vmatmul.mubr.msk.f32.gmra.mxu1 %vm982_vm0, %v3569_v39  ;;  %v3191_v39 = vld [vmem:[%s11900_s18 + $0x96] sm:$0xff] }
 0x138   : > { %v12361_v48 = vadd.f32 %v1496_v41, %v1175_v45  ;;  %10658 = vmatprep.mubr.msk.f32.mxu1 %vm982_vm0, %v3570_v42  ;;  %v1506_v51 = vpop.f32.mrf.mxu1 }
 0x139   : > { %v10307_v50 = vpop.f32.mrf.mxu0  ;;  %10603 = vmatmul.mubr.msk.f32.gmra.mxu0 %vm982_vm0, %v3180_v44  ;;  %v3582_v44 = vld [vmem:[%s11900_s18 + $0xb7] sm:$0xff] }
 0x13a   : > { %v12367_v53 = vadd.f32 %v10357_v46, %v10307_v50  ;;  %10605 = vmatprep.mubr.msk.f32.mxu0 %vm982_vm0, %v3181_v47  ;;  %v10360_v56 = vpop.f32.mrf.mxu1  ;;  %v3192_v46 = vld [vmem:[%s11900_s18 + $0x9e] sm:$0xff]  ;;  %v3193_v50 = vld [vmem:[%s11900_s18 + $0xa6] sm:$0xff] }
 0x13b   : > { %v1185_v55 = vpop.f32.mrf.mxu0  ;;  %10659 = vmatmul.mubr.msk.f32.gmra.mxu1 %vm982_vm0, %v3571_v49 }
 0x13c   : > { %v12373_v58 = vadd.f32 %v1506_v51, %v1185_v55  ;;  %10661 = vmatprep.mubr.msk.f32.mxu1 %vm982_vm0, %v3572_v52  ;;  %v1516_v61 = vpop.f32.mrf.mxu1  ;;  %v3583_v51 = vld [vmem:[%s11900_s18 + $0xbf] sm:$0xff]  ;;  %v3584_v55 = vld [vmem:[%s11900_s18 + $0xc7] sm:$0xff] }
 0x13d   : > { %v10310_v60 = vpop.f32.mrf.mxu0  ;;  %10606 = vmatmul.mubr.msk.f32.gmra.mxu0 %vm982_vm0, %v3182_v54 }
 0x13e   : > { %v12379_v63 = vadd.f32 %v10360_v56, %v10310_v60  ;;  %10608 = vmatprep.mubr.msk.f32.mxu0 %vm982_vm0, %v3183_v57  ;;  %v10363_v2 = vpop.f32.mrf.mxu1  ;;  %v3194_v57 = vld [vmem:[%s11900_s18 + $0xae] sm:$0xff] }
 0x13f   : > { %v1195_v1 = vpop.f32.mrf.mxu0  ;;  %10662 = vmatmul.mubr.msk.f32.gmra.mxu1 %vm982_vm0, %v3573_v59 }
 0x140   : > { %v12385_v4 = vadd.f32 %v1516_v61, %v1195_v1  ;;  %10664 = vmatprep.mubr.msk.f32.mxu1 %vm982_vm0, %v3574_v62  ;;  %v1526_v7 = vpop.f32.mrf.mxu1  ;;  %v3195_v61 = vld [vmem:[%s11900_s18 + $0xb6] sm:$0xff] }
 0x141   : > { %v10313_v6 = vpop.f32.mrf.mxu0  ;;  %10609 = vmatmul.mubr.msk.f32.gmra.mxu0 %vm982_vm0, %v3184_v0  ;;  %v3585_v62 = vld [vmem:[%s11900_s18 + $0xcf] sm:$0xff] }
 0x142   : > { %v12391_v10 = vadd.f32 %v10363_v2, %v10313_v6  ;;  %10611 = vmatprep.mubr.msk.f32.mxu0 %vm982_vm0, %v3185_v3  ;;  %v10366_v13 = vpop.f32.mrf.mxu1  ;;  %v3586_v2 = vld [vmem:[%s11900_s18 + $0xd7] sm:$0xff] }
 0x143   : > { %v1205_v12 = vpop.f32.mrf.mxu0  ;;  %10665 = vmatmul.mubr.msk.f32.gmra.mxu1 %vm982_vm0, %v3575_v5  ;;  %v3196_v5 = vld [vmem:[%s11900_s18 + $0xbe] sm:$0xff] }
 0x144   : > { %v12397_v17 = vadd.f32 %v1526_v7, %v1205_v12  ;;  %10667 = vmatprep.mubr.msk.f32.mxu1 %vm982_vm0, %v3576_v9  ;;  %v1536_v20 = vpop.f32.mrf.mxu1  ;;  %v3197_v9 = vld [vmem:[%s11900_s18 + $0xc6] sm:$0xff] }
 0x145   : > { %v10316_v19 = vpop.f32.mrf.mxu0  ;;  %10612 = vmatmul.mubr.msk.f32.gmra.mxu0 %vm982_vm0, %v3186_v11  ;;  %v3587_v11 = vld [vmem:[%s11900_s18 + $0xdf] sm:$0xff] }
 0x146   : > { %v12403_v22 = vadd.f32 %v10366_v13, %v10316_v19  ;;  %10614 = vmatprep.mubr.msk.f32.mxu0 %vm982_vm0, %v3187_v15  ;;  %v10369_v25 = vpop.f32.mrf.mxu1  ;;  %v3588_v15 = vld [vmem:[%s11900_s18 + $0xe7] sm:$0xff] }
 0x147   : > { %v1215_v16 = vpop.f32.mrf.mxu0  ;;  %10668 = vmatmul.mubr.msk.f32.gmra.mxu1 %vm982_vm0, %v3577_v8  ;;  %v3198_v19 = vld [vmem:[%s11900_s18 + $0xce] sm:$0xff] }
 0x148   : > { %v12409_v27 = vadd.f32 %v1536_v20, %v1215_v16  ;;  %10670 = vmatprep.mubr.msk.f32.mxu1 %vm982_vm0, %v3578_v21  ;;  %v12414_v31 = vpop.f32.mrf.mxu1  ;;  %v3589_v16 = vld [vmem:[%s11900_s18 + $0xef] sm:$0xff] }
 0x149   : > { %v10319_v30 = vpop.f32.mrf.mxu0  ;;  %10615 = vmatmul.mubr.msk.f32.gmra.mxu0 %vm982_vm0, %v3188_v23  ;;  %v3199_v23 = vld [vmem:[%s11900_s18 + $0xd6] sm:$0xff] }
 0x14a   : > { %v12417_v34 = vadd.f32 %v10369_v25, %v10319_v30  ;;  %10617 = vmatprep.mubr.msk.f32.mxu0 %vm982_vm0, %v3189_v26  ;;  %v10372_v37 = vpop.f32.mrf.mxu1 }
 0x14b   : > { %v12421_v36 = vpop.f32.mrf.mxu0  ;;  %10671 = vmatmul.mubr.msk.f32.gmra.mxu1 %vm982_vm0, %v3579_v29  ;;  %v3590_v29 = vld [vmem:[%s11900_s18 + $0xf7] sm:$0xff] }
 0x14c   : > { %10673 = vmatprep.mubr.msk.f32.mxu1 %vm982_vm0, %v3580_v32  ;;  %v12428_v42 = vpop.f32.mrf.mxu1  ;;  %v3200_v32 = vld [vmem:[%s11900_s18 + $0xde] sm:$0xff] }
 0x14d   : > { %v10322_v41 = vpop.f32.mrf.mxu0  ;;  %10618 = vmatmul.mubr.msk.f32.gmra.mxu0 %vm982_vm0, %v3190_v35 }
 0x14e   : > { %v12431_v45 = vadd.f32 %v10372_v37, %v10322_v41  ;;  %10620 = vmatprep.mubr.msk.f32.mxu0 %vm982_vm0, %v3191_v39  ;;  %v10375_v49 = vpop.f32.mrf.mxu1  ;;  %v3201_v39 = vld [vmem:[%s11900_s18 + $0xe6] sm:$0xff] }
 0x14f   : > { %v12435_v47 = vpop.f32.mrf.mxu0  ;;  %10674 = vmatmul.mubr.msk.f32.gmra.mxu1 %vm982_vm0, %v3581_v40  ;;  %v3591_v40 = vld [vmem:[%s11900_s18 + $0xff] sm:$0xff] }
 0x150   : > { %10676 = vmatprep.mubr.msk.f32.mxu1 %vm982_vm0, %v3582_v44  ;;  %v12442_v54 = vpop.f32.mrf.mxu1 }
 0x151   : > { %v10325_v52 = vpop.f32.mrf.mxu0  ;;  %10621 = vmatmul.mubr.msk.f32.gmra.mxu0 %vm982_vm0, %v3192_v46 }
 0x152   : > { %v12445_v56 = vadd.f32 %v10375_v49, %v10325_v52  ;;  %10623 = vmatprep.mubr.msk.f32.mxu0 %vm982_vm0, %v3193_v50  ;;  %v10378_v60 = vpop.f32.mrf.mxu1  ;;  %v3202_v49 = vld [vmem:[%s11900_s18 + $0xee] sm:$0xff]  ;;  %v3203_v52 = vld [vmem:[%s11900_s18 + $0xf6] sm:$0xff] }
 0x153   : > { %v12449_v59 = vpop.f32.mrf.mxu0  ;;  %10677 = vmatmul.mubr.msk.f32.gmra.mxu1 %vm982_vm0, %v3583_v51 }
 0x154   : > { %10679 = vmatprep.mubr.msk.f32.mxu1 %vm982_vm0, %v3584_v55  ;;  %v12456_v1 = vpop.f32.mrf.mxu1 }
 0x155   : > { %v10328_v0 = vpop.f32.mrf.mxu0  ;;  %10624 = vmatmul.mubr.msk.f32.gmra.mxu0 %vm982_vm0, %v3194_v57 }
 0x156   : > { %v12459_v3 = vadd.f32 %v10378_v60, %v10328_v0  ;;  %10626 = vmatprep.mubr.msk.f32.mxu0 %vm982_vm0, %v3195_v61  ;;  %v10381_v7 = vpop.f32.mrf.mxu1  ;;  %v3204_v61 = vld [vmem:[%s11900_s18 + $0xfe] sm:$0xff]  ;;  %s14816_s18 = smov %s14815_s11 }
 0x157   : > { %v12463_v6 = vpop.f32.mrf.mxu0  ;;  %10680 = vmatmul.mubr.msk.f32.gmra.mxu1 %vm982_vm0, %v3585_v62 }
 0x158   : > { %10682 = vmatprep.mubr.msk.f32.mxu1 %vm982_vm0, %v3586_v2  ;;  %v12470_v13 = vpop.f32.mrf.mxu1 }
 0x159   : > { %v10331_v12 = vpop.f32.mrf.mxu0  ;;  %10627 = vmatmul.mubr.msk.f32.gmra.mxu0 %vm982_vm0, %v3196_v5 }
 0x15a   : > { %v12473_v8 = vadd.f32 %v10381_v7, %v10331_v12  ;;  %10629 = vmatprep.mubr.msk.f32.mxu0 %vm982_vm0, %v3197_v9  ;;  %v10384_v21 = vpop.f32.mrf.mxu1 }
 0x15b   : > { %v12477_v20 = vpop.f32.mrf.mxu0  ;;  %10683 = vmatmul.mubr.msk.f32.gmra.mxu1 %vm982_vm0, %v3587_v11 }
 0x15c   : > { %10685 = vmatprep.mubr.msk.f32.mxu1 %vm982_vm0, %v3588_v15  ;;  %v12484_v26 = vpop.f32.mrf.mxu1 }
 0x15d   : > { %v10334_v25 = vpop.f32.mrf.mxu0  ;;  %10630 = vmatmul.mubr.msk.f32.gmra.mxu0 %vm982_vm0, %v3198_v19 }
 0x15e   : > { %v12487_v30 = vadd.f32 %v10384_v21, %v10334_v25  ;;  %10632 = vmatprep.mubr.msk.f32.mxu0 %vm982_vm0, %v3199_v23  ;;  %v10387_v37 = vpop.f32.mrf.mxu1 }
 0x15f   : > { %v12491_v35 = vpop.f32.mrf.mxu0  ;;  %10686 = vmatmul.mubr.msk.f32.gmra.mxu1 %vm982_vm0, %v3589_v16 }
 0x160   : > { %10688 = vmatprep.mubr.msk.f32.mxu1 %vm982_vm0, %v3590_v29  ;;  %v12498_v44 = vpop.f32.mrf.mxu1 }
 0x161   : > { %v10337_v41 = vpop.f32.mrf.mxu0  ;;  %10633 = vmatmul.mubr.msk.f32.gmra.mxu0 %vm982_vm0, %v3200_v32 }
 0x162   : > { %v12500_v46 = vadd.f32 %v10387_v37, %v10337_v41  ;;  %10635 = vmatprep.mubr.msk.f32.mxu0 %vm982_vm0, %v3201_v39  ;;  %v10390_v51 = vpop.f32.mrf.mxu1 }
 0x163   : > { %v12504_v50 = vpop.f32.mrf.mxu0  ;;  %10689 = vmatmul.mubr.msk.f32.gmra.mxu1 %vm982_vm0, %v3591_v40 }
 0x164   : > { %v12509_v57 = vpop.f32.mrf.mxu1 }
 0x165   : > { %v10340_v55 = vpop.f32.mrf.mxu0  ;;  %10636 = vmatmul.mubr.msk.f32.gmra.mxu0 %vm982_vm0, %v3202_v49 }
 0x166   : > { %v12511_v60 = vadd.f32 %v10390_v51, %v10340_v55  ;;  %10638 = vmatprep.mubr.msk.f32.mxu0 %vm982_vm0, %v3203_v52  ;;  %v10445_v0 = vpop.f32.mrf.mxu1 }
 0x167   : > { %v12515_v62 = vpop.f32.mrf.mxu0 }
 0x168   : > { %v12518_v5 = vpop.f32.mrf.mxu1 }
 0x169   : > { %v10345_v2 = vpop.f32.mrf.mxu0  ;;  %10639 = vmatmul.mubr.msk.f32.gmra.mxu0 %vm982_vm0, %v3204_v61  ;;  %14615 = vst [vmem:[#allocation34_spill] sm:$0xff] %v12518_v5 }
 0x16a   : > { %v1472_v7 = vadd.f32 %v10345_v2, %v12317_v14 }
 0x16b   : > { %v12521_v9 = vpop.f32.mrf.mxu0  ;;  %v10448_v11 = vpop.f32.mrf.mxu1 }
 0x16d   : > { %v10395_v12 = vpop.f32.mrf.mxu0  ;;  %v12523_v15 = vpop.f32.mrf.mxu1 }
 0x16e   : > { %14616 = vst [vmem:[#allocation35_spill] sm:$0xff] %v12523_v15  ;;  %v1981_v19 = vadd.f32 %v10395_v12, %v1472_v7 }
 0x16f   : > { %v12525_v21 = vpop.f32.mrf.mxu0  ;;  %v10451_v23 = vpop.f32.mrf.mxu1 }
 0x170   : > { %v12527_v16 = vadd.f32 %v10445_v0, %v1981_v19 }
 0x171   : > { %v10398_v25 = vpop.f32.mrf.mxu0  ;;  %v12529_v29 = vpop.f32.mrf.mxu1 }
 0x172   : > { %14617 = vst [vmem:[#allocation36_spill] sm:$0xff] %v12529_v29  ;;  %v1983_v32 = vadd.f32 %v10398_v25, %v12331_v24 }
 0x173   : > { %v12532_v37 = vpop.f32.mrf.mxu0  ;;  %v10454_v14 = vpop.f32.mrf.mxu1 }
 0x174   : > { %v12534_v39 = vadd.f32 %v10448_v11, %v1983_v32 }
 0x175   : > { %v10401_v40 = vpop.f32.mrf.mxu0  ;;  %v12536_v41 = vpop.f32.mrf.mxu1 }
 0x176   : > { %14618 = vst [vmem:[#allocation37_spill] sm:$0xff] %v12536_v41  ;;  %v1985_v49 = vadd.f32 %v10401_v40, %v12343_v33 }
 0x177   : > { %v12539_v51 = vpop.f32.mrf.mxu0  ;;  %v10457_v52 = vpop.f32.mrf.mxu1 }
 0x178   : > { %v12541_v55 = vadd.f32 %v10451_v23, %v1985_v49 }
 0x179   : > { %v10404_v61 = vpop.f32.mrf.mxu0  ;;  %v12543_v0 = vpop.f32.mrf.mxu1 }
 0x17a   : > { %14619 = vst [vmem:[#allocation38_spill] sm:$0xff] %v12543_v0  ;;  %v1987_v24 = vadd.f32 %v10404_v61, %v12355_v43 }
 0x17b   : > { %v12546_v2 = vpop.f32.mrf.mxu0  ;;  %v10460_v7 = vpop.f32.mrf.mxu1 }
 0x17c   : > { %v12548_v11 = vadd.f32 %v10454_v14, %v1987_v24 }
 0x17d   : > { %v10407_v12 = vpop.f32.mrf.mxu0  ;;  %v12550_v19 = vpop.f32.mrf.mxu1 }
 0x17e   : > { %14620 = vst [vmem:[#allocation39_spill] sm:$0xff] %v12550_v19  ;;  %v1989_v33 = vadd.f32 %v10407_v12, %v12367_v53 }
 0x17f   : > { %v12553_v25 = vpop.f32.mrf.mxu0  ;;  %v10463_v32 = vpop.f32.mrf.mxu1 }
 0x180   : > { %v12555_v23 = vadd.f32 %v10457_v52, %v1989_v33 }
 0x181   : > { %v10410_v40 = vpop.f32.mrf.mxu0  ;;  %v12557_v49 = vpop.f32.mrf.mxu1 }
 0x182   : > { %14621 = vst [vmem:[#allocation40_spill] sm:$0xff] %v12557_v49  ;;  %v1991_v43 = vadd.f32 %v10410_v40, %v12379_v63 }
 0x183   : > { %v12560_v61 = vpop.f32.mrf.mxu0  ;;  %v10466_v0 = vpop.f32.mrf.mxu1 }
 0x184   : > { %v12562_v14 = vadd.f32 %v10460_v7, %v1991_v43 }
 0x185   : > { %v10413_v24 = vpop.f32.mrf.mxu0  ;;  %v12564_v41 = vpop.f32.mrf.mxu1 }
 0x186   : > { %14622 = vst [vmem:[#allocation41_spill] sm:$0xff] %v12564_v41  ;;  %v1993_v53 = vadd.f32 %v10413_v24, %v12391_v10 }
 0x187   : > { %v12567_v12 = vpop.f32.mrf.mxu0  ;;  %v10469_v19 = vpop.f32.mrf.mxu1 }
 0x188   : > { %14623 = vst [vmem:[#allocation42_spill] sm:$0xff] %v12567_v12  ;;  %v12569_v52 = vadd.f32 %v10463_v32, %v1993_v53 }
 0x189   : > { %v10416_v33 = vpop.f32.mrf.mxu0  ;;  %v12571_v29 = vpop.f32.mrf.mxu1 }
 0x18a   : > { %14624 = vst [vmem:[#allocation43_spill] sm:$0xff] %v12571_v29  ;;  %v1995_v63 = vadd.f32 %v10416_v33, %v12403_v22 }
 0x18b   : > { %v12574_v40 = vpop.f32.mrf.mxu0  ;;  %v10472_v49 = vpop.f32.mrf.mxu1 }
 0x18c   : > { %v12576_v7 = vadd.f32 %v10466_v0, %v1995_v63 }
 0x18d   : > { %v10419_v43 = vpop.f32.mrf.mxu0  ;;  %v12578_v15 = vpop.f32.mrf.mxu1 }
 0x18e   : > { %14625 = vst [vmem:[#allocation44_spill] sm:$0xff] %v12578_v15  ;;  %v1997_v10 = vadd.f32 %v10419_v43, %v12417_v34 }
 0x18f   : > { %v12581_v24 = vpop.f32.mrf.mxu0  ;;  %v10475_v41 = vpop.f32.mrf.mxu1 }
 0x190   : > { %14626 = vst [vmem:[#allocation45_spill] sm:$0xff] %v12581_v24  ;;  %v12583_v32 = vadd.f32 %v10469_v19, %v1997_v10 }
 0x191   : > { %v10422_v53 = vpop.f32.mrf.mxu0  ;;  %v12585_v5 = vpop.f32.mrf.mxu1 }
 0x192   : > { %14627 = vst [vmem:[#allocation46_spill] sm:$0xff] %v12585_v5  ;;  %v1999_v22 = vadd.f32 %v10422_v53, %v12431_v45 }
 0x193   : > { %v12588_v33 = vpop.f32.mrf.mxu0  ;;  %v10478_v29 = vpop.f32.mrf.mxu1 }
 0x194   : > { %14628 = vst [vmem:[#allocation47_spill] sm:$0xff] %v12588_v33  ;;  %v12590_v0 = vadd.f32 %v10472_v49, %v1999_v22 }
 0x195   : > { %v10425_v63 = vpop.f32.mrf.mxu0  ;;  %v12592_v12 = vpop.f32.mrf.mxu1 }
 0x196   : > { %14629 = vst [vmem:[#allocation48_spill] sm:$0xff] %v12592_v12  ;;  %v2001_v34 = vadd.f32 %v10425_v63, %v12445_v56 }
 0x197   : > { %v12595_v43 = vpop.f32.mrf.mxu0  ;;  %v10481_v15 = vpop.f32.mrf.mxu1 }
 0x198   : > { %14630 = vst [vmem:[#allocation49_spill] sm:$0xff] %v12595_v43  ;;  %v12597_v19 = vadd.f32 %v10475_v41, %v2001_v34 }
 0x199   : > { %v10428_v10 = vpop.f32.mrf.mxu0  ;;  %v12599_v24 = vpop.f32.mrf.mxu1 }
 0x19a   : > { %14631 = vst [vmem:[#allocation50_spill] sm:$0xff] %v12599_v24  ;;  %v2003_v45 = vadd.f32 %v10428_v10, %v12459_v3 }
 0x19b   : > { %v12602_v53 = vpop.f32.mrf.mxu0  ;;  %v10484_v5 = vpop.f32.mrf.mxu1 }
 0x19c   : > { %14632 = vst [vmem:[#allocation51_spill] sm:$0xff] %v12602_v53  ;;  %v12604_v49 = vadd.f32 %v10478_v29, %v2003_v45 }
 0x19d   : > { %v10431_v22 = vpop.f32.mrf.mxu0  ;;  %v12606_v33 = vpop.f32.mrf.mxu1 }
 0x19e   : > { %14633 = vst [vmem:[#allocation52_spill] sm:$0xff] %v12606_v33  ;;  %v2005_v56 = vadd.f32 %v10431_v22, %v12473_v8 }
 0x19f   : > { %v12609_v63 = vpop.f32.mrf.mxu0  ;;  %v10487_v12 = vpop.f32.mrf.mxu1 }
 0x1a0   : > { %14634 = vst [vmem:[#allocation53_spill] sm:$0xff] %v12609_v63  ;;  %v12611_v41 = vadd.f32 %v10481_v15, %v2005_v56 }
 0x1a1   : > { %v10434_v34 = vpop.f32.mrf.mxu0  ;;  %v12613_v43 = vpop.f32.mrf.mxu1 }
 0x1a2   : > { %14635 = vst [vmem:[#allocation54_spill] sm:$0xff] %v12613_v43  ;;  %v2007_v3 = vadd.f32 %v10434_v34, %v12487_v30 }
 0x1a3   : > { %v12616_v10 = vpop.f32.mrf.mxu0  ;;  %v10490_v24 = vpop.f32.mrf.mxu1 }
 0x1a4   : > { %14636 = vst [vmem:[#allocation55_spill] sm:$0xff] %v12616_v10  ;;  %v12618_v29 = vadd.f32 %v10484_v5, %v2007_v3 }
 0x1a5   : > { %v10437_v45 = vpop.f32.mrf.mxu0  ;;  %v12620_v53 = vpop.f32.mrf.mxu1 }
 0x1a6   : > { %14637 = vst [vmem:[#allocation56_spill] sm:$0xff] %v12620_v53  ;;  %v2009_v8 = vadd.f32 %v10437_v45, %v12500_v46 }
 0x1a7   : > { %v12623_v22 = vpop.f32.mrf.mxu0  ;;  %v10545_v33 = vpop.f32.mrf.mxu1 }
 0x1a8   : > { %14638 = vst [vmem:[#allocation57_spill] sm:$0xff] %v12623_v22  ;;  %v12625_v15 = vadd.f32 %v10487_v12, %v2009_v8 }
 0x1a9   : > { %v10440_v56 = vpop.f32.mrf.mxu0  ;;  %v12627_v63 = vpop.f32.mrf.mxu1 }
 0x1aa   : > { %14639 = vst [vmem:[#allocation58_spill] sm:$0xff] %v12627_v63  ;;  %v2011_v30 = vadd.f32 %v10440_v56, %v12511_v60 }
 0x1ab   : > { %v12630_v34 = vpop.f32.mrf.mxu0  ;;  %v10548_v43 = vpop.f32.mrf.mxu1 }
 0x1ac   : > { %v12632_v5 = vadd.f32 %v10490_v24, %v2011_v30 }
 0x1ad   : > { %v10495_v3 = vpop.f32.mrf.mxu0  ;;  %v12634_v10 = vpop.f32.mrf.mxu1 }
 0x1ae   : > { %14640 = vst [vmem:[#allocation59_spill] sm:$0xff] %v12632_v5  ;;  %14641 = vst [vmem:[#allocation60_spill] sm:$0xff] %v12634_v10  ;;  %v2755_v46 = vadd.f32 %v10495_v3, %v12527_v16 }
 0x1af   : > { %v12637_v45 = vpop.f32.mrf.mxu0  ;;  %v10551_v53 = vpop.f32.mrf.mxu1 }
 0x1b0   : > { %14642 = vst [vmem:[#allocation61_spill] sm:$0xff] %v12637_v45  ;;  %v12639_v12 = vadd.f32 %v10545_v33, %v2755_v46 }
 0x1b1   : > { %v10498_v8 = vpop.f32.mrf.mxu0  ;;  %v12641_v22 = vpop.f32.mrf.mxu1 }
 0x1b2   : > { %14643 = vst [vmem:[#allocation62_spill] sm:$0xff] %v12641_v22  ;;  %v2757_v60 = vadd.f32 %v10498_v8, %v12534_v39 }
 0x1b3   : > { %v12644_v56 = vpop.f32.mrf.mxu0  ;;  %v10554_v63 = vpop.f32.mrf.mxu1 }
 0x1b4   : > { %14644 = vst [vmem:[#allocation63_spill] sm:$0xff] %v12644_v56  ;;  %v12646_v24 = vadd.f32 %v10548_v43, %v2757_v60 }
 0x1b5   : > { %v10501_v30 = vpop.f32.mrf.mxu0  ;;  %v12648_v5 = vpop.f32.mrf.mxu1 }
 0x1b6   : > { %14645 = vst [vmem:[#allocation64_spill] sm:$0xff] %v12648_v5  ;;  %v2759_v16 = vadd.f32 %v10501_v30, %v12541_v55 }
 0x1b7   : > { %v12651_v3 = vpop.f32.mrf.mxu0  ;;  %v10557_v10 = vpop.f32.mrf.mxu1 }
 0x1b8   : > { %14646 = vst [vmem:[#allocation65_spill] sm:$0xff] %v12651_v3  ;;  %v12653_v33 = vadd.f32 %v10551_v53, %v2759_v16 }
 0x1b9   : > { %v10504_v46 = vpop.f32.mrf.mxu0  ;;  %v12655_v45 = vpop.f32.mrf.mxu1 }
 0x1ba   : > { %14647 = vst [vmem:[#allocation66_spill] sm:$0xff] %v12655_v45  ;;  %v2761_v39 = vadd.f32 %v10504_v46, %v12548_v11 }
 0x1bb   : > { %v12658_v8 = vpop.f32.mrf.mxu0  ;;  %v10560_v22 = vpop.f32.mrf.mxu1 }
 0x1bc   : > { %14648 = vst [vmem:[#allocation67_spill] sm:$0xff] %v12658_v8  ;;  %v12660_v43 = vadd.f32 %v10554_v63, %v2761_v39 }
 0x1bd   : > { %v10507_v60 = vpop.f32.mrf.mxu0  ;;  %v12662_v56 = vpop.f32.mrf.mxu1 }
 0x1be   : > { %14649 = vst [vmem:[#allocation68_spill] sm:$0xff] %v12662_v56  ;;  %v2763_v55 = vadd.f32 %v10507_v60, %v12555_v23 }
 0x1bf   : > { %v12665_v30 = vpop.f32.mrf.mxu0  ;;  %v10563_v5 = vpop.f32.mrf.mxu1 }
 0x1c0   : > { %v12667_v53 = vadd.f32 %v10557_v10, %v2763_v55  ;;  %v4018_v55 = vlaneseq }
 0x1c1   : > { %v10510_v16 = vpop.f32.mrf.mxu0  ;;  %v12669_v3 = vpop.f32.mrf.mxu1 }
 0x1c2   : > { %14650 = vst [vmem:[#allocation69_spill] sm:$0xff] %v12667_v53  ;;  %14651 = vst [vmem:[#allocation70_spill] sm:$0xff] %v12669_v3  ;;  %v2765_v11 = vadd.f32 %v10510_v16, %v12562_v14  ;;  %v12686_v16 = vshrl.u32 %v4018_v55, 7 }
 0x1c3   : > { %v12672_v46 = vpop.f32.mrf.mxu0  ;;  %v10566_v45 = vpop.f32.mrf.mxu1 }
 0x1c4   : > { %v12674_v63 = vadd.f32 %v10560_v22, %v2765_v11  ;;  %14656 = vst [vmem:[#allocation75_spill] sm:$0xff] %v12686_v16 }
 0x1c5   : > { %v10513_v39 = vpop.f32.mrf.mxu0  ;;  %v12676_v8 = vpop.f32.mrf.mxu1 }
 0x1c6   : > { %14652 = vst [vmem:[#allocation71_spill] sm:$0xff] %v12674_v63  ;;  %14653 = vst [vmem:[#allocation72_spill] sm:$0xff] %v12676_v8  ;;  %v2767_v23 = vadd.f32 %v10513_v39, %v12569_v52  ;;  %v12692_v8 = vand.u32 127, %v4018_v55  ;;  %v12695_v52 = vmul.u32 2, %v12686_v16 }
 0x1c7   : > { %v12679_v60 = vpop.f32.mrf.mxu0  ;;  %v10569_v56 = vpop.f32.mrf.mxu1 }
 0x1c8   : > { %v12681_v10 = vadd.f32 %v10563_v5, %v2767_v23  ;;  %14657 = vst [vmem:[#allocation76_spill] sm:$0xff] %v12692_v8  ;;  %14658 = vst [vmem:[#allocation77_spill] sm:$0xff] %v12695_v52 }
 0x1c9   : > { %v10516_v53 = vpop.f32.mrf.mxu0  ;;  %v12683_v3 = vpop.f32.mrf.mxu1 }
 0x1ca   : > { %14654 = vst [vmem:[#allocation73_spill] sm:$0xff] %v12681_v10  ;;  %14655 = vst [vmem:[#allocation74_spill] sm:$0xff] %v12683_v3  ;;  %v2769_v14 = vadd.f32 %v10516_v53, %v12576_v7  ;;  %v12701_v3 = vadd.s32 128, %v12692_v8  ;;  %v12704_v7 = vadd.s32 1, %v12695_v52 }
 0x1cb   : > { %v12688_v22 = vpop.f32.mrf.mxu0  ;;  %v10572_v11 = vpop.f32.mrf.mxu1 }
 0x1cc   : > { %v12690_v63 = vadd.f32 %v10566_v45, %v2769_v14  ;;  %14660 = vst [vmem:[#allocation79_spill] sm:$0xff] %v12701_v3  ;;  %14661 = vst [vmem:[#allocation80_spill] sm:$0xff] %v12704_v7  ;;  %vm4055_vm1 = vcmp.eq.s32.totalorder %v12701_v3, %v12695_v52  ;;  %vm4135_vm2 = vcmp.eq.s32.totalorder %v12701_v3, %v12704_v7 }
 0x1cd   : > { %v10519_v5 = vpop.f32.mrf.mxu0  ;;  %v12697_v39 = vpop.f32.mrf.mxu1 }
 0x1ce   : > { %14659 = vst [vmem:[#allocation78_spill] sm:$0xff] %v12697_v39  ;;  %v2771_v23 = vadd.f32 %v10519_v5, %v12583_v32  ;;  %v14562_v39 = vmov 1.0  }
 0x1cf   : > { %v12706_v53 = vpop.f32.mrf.mxu0  ;;  %v10575_v45 = vpop.f32.mrf.mxu1  ;;  %9203 = vmatprep.mubr.msk.f32.mxu0 %vm4055_vm1, %v14562_v39  ;;  %9235 = vmatprep.mubr.msk.f32.mxu1 %vm4135_vm2, %v14562_v39 }
 0x1d0   : > { %14662 = vst [vmem:[#allocation81_spill] sm:$0xff] %v12706_v53  ;;  %v12708_v14 = vadd.f32 %v10569_v56, %v2771_v23 }
 0x1d1   : > { %v10522_v55 = vpop.f32.mrf.mxu0  ;;  %v12712_v16 = vpop.f32.mrf.mxu1 }
 0x1d2   : > { %14663 = vst [vmem:[#allocation82_spill] sm:$0xff] %v12708_v14  ;;  %14664 = vst [vmem:[#allocation83_spill] sm:$0xff] %v12712_v16  ;;  %v2773_v32 = vadd.f32 %v10522_v55, %v12590_v0 }
 0x1d3   : > { %v12719_v5 = vpop.f32.mrf.mxu0  ;;  %v10578_v56 = vpop.f32.mrf.mxu1 }
 0x1d4   : > { %14665 = vst [vmem:[#allocation84_spill] sm:$0xff] %v12719_v5  ;;  %v12721_v23 = vadd.f32 %v10572_v11, %v2773_v32 }
 0x1d5   : > { %v10525_v8 = vpop.f32.mrf.mxu0  ;;  %v12723_v52 = vpop.f32.mrf.mxu1 }
 0x1d6   : > { %14666 = vst [vmem:[#allocation85_spill] sm:$0xff] %v12721_v23  ;;  %14667 = vst [vmem:[#allocation86_spill] sm:$0xff] %v12723_v52  ;;  %v2775_v14 = vadd.f32 %v10525_v8, %v12597_v19 }
 0x1d7   : > { %v12726_v53 = vpop.f32.mrf.mxu0  ;;  %v10581_v16 = vpop.f32.mrf.mxu1 }
 0x1d8   : > { %14668 = vst [vmem:[#allocation87_spill] sm:$0xff] %v12726_v53  ;;  %v12728_v10 = vadd.f32 %v10575_v45, %v2775_v14 }
 0x1d9   : > { %v10528_v3 = vpop.f32.mrf.mxu0  ;;  %v12730_v7 = vpop.f32.mrf.mxu1 }
 0x1da   : > { %14669 = vst [vmem:[#allocation88_spill] sm:$0xff] %v12728_v10  ;;  %14670 = vst [vmem:[#allocation89_spill] sm:$0xff] %v12730_v7  ;;  %v2777_v0 = vadd.f32 %v10528_v3, %v12604_v49 }
 0x1db   : > { %v12733_v55 = vpop.f32.mrf.mxu0  ;;  %v10584_v39 = vpop.f32.mrf.mxu1 }
 0x1dc   : > { %v12735_v11 = vadd.f32 %v10578_v56, %v2777_v0 }
 0x1dd   : > { %v10531_v32 = vpop.f32.mrf.mxu0  ;;  %v12737_v23 = vpop.f32.mrf.mxu1 }
 0x1de   : > { %14671 = vst [vmem:[#allocation90_spill] sm:$0xff] %v12735_v11  ;;  %14672 = vst [vmem:[#allocation91_spill] sm:$0xff] %v12737_v23  ;;  %v2779_v19 = vadd.f32 %v10531_v32, %v12611_v41 }
 0x1df   : > { %v12740_v8 = vpop.f32.mrf.mxu0  ;;  %v10587_v52 = vpop.f32.mrf.mxu1 }
 0x1e0   : > { %14673 = vst [vmem:[#allocation92_spill] sm:$0xff] %v12740_v8  ;;  %v12742_v45 = vadd.f32 %v10581_v16, %v2779_v19 }
 0x1e1   : > { %v10534_v14 = vpop.f32.mrf.mxu0  ;;  %v12744_v10 = vpop.f32.mrf.mxu1 }
 0x1e2   : > { %14674 = vst [vmem:[#allocation93_spill] sm:$0xff] %v12742_v45  ;;  %v2781_v49 = vadd.f32 %v10534_v14, %v12618_v29 }
 0x1e3   : > { %v12747_v3 = vpop.f32.mrf.mxu0  ;;  %v12749_v7 = vpop.f32.mrf.mxu1 }
 0x1e4   : > { %14675 = vst [vmem:[#allocation94_spill] sm:$0xff] %v12749_v7  ;;  %v12751_v56 = vadd.f32 %v10584_v39, %v2781_v49 }
 0x1e5   : > { %v10537_v0 = vpop.f32.mrf.mxu0  ;;  %v12753_v11 = vpop.f32.mrf.mxu1 }
 0x1e6   : > { %14676 = vst [vmem:[#allocation95_spill] sm:$0xff] %v12751_v56  ;;  %14677 = vst [vmem:[#allocation96_spill] sm:$0xff] %v12753_v11  ;;  %v2783_v41 = vadd.f32 %v10537_v0, %v12625_v15 }
 0x1e7   : > { %v12756_v32 = vpop.f32.mrf.mxu0  ;;  %v10645_v16 = vpop.f32.mrf.mxu1 }
 0x1e8   : > { %v12758_v19 = vadd.f32 %v10587_v52, %v2783_v41 }
 0x1e9   : > { %v12760_v45 = vpop.f32.mrf.mxu0  ;;  %v12762_v23 = vpop.f32.mrf.mxu1 }
 0x1ea   : > { %14678 = vst [vmem:[#allocation97_spill] sm:$0xff] %v12758_v19  ;;  %14679 = vst [vmem:[#allocation98_spill] sm:$0xff] %v12762_v23 }
 0x1eb   : > { %v12764_v29 = vpop.f32.mrf.mxu0  ;;  %v10648_v14 = vpop.f32.mrf.mxu1 }
 0x1ed   : > { %v10595_v53 = vpop.f32.mrf.mxu0  ;;  %v12766_v39 = vpop.f32.mrf.mxu1 }
 0x1ee   : > { %14680 = vst [vmem:[#allocation99_spill] sm:$0xff] %v12766_v39  ;;  %v3529_v49 = vadd.f32 %v10595_v53, %v12639_v12 }
 0x1ef   : > { %v12769_v56 = vpop.f32.mrf.mxu0  ;;  %v10651_v15 = vpop.f32.mrf.mxu1 }
 0x1f0   : > { %14681 = vst [vmem:[#allocation100_spill] sm:$0xff] %v12769_v56  ;;  %v12771_v0 = vadd.f32 %v10645_v16, %v3529_v49 }
 0x1f1   : > { %v10598_v11 = vpop.f32.mrf.mxu0  ;;  %v12773_v52 = vpop.f32.mrf.mxu1 }
 0x1f2   : > { %14682 = vst [vmem:[#allocation101_spill] sm:$0xff] %v12771_v0  ;;  %14683 = vst [vmem:[#allocation102_spill] sm:$0xff] %v12773_v52  ;;  %v3531_v41 = vadd.f32 %v10598_v11, %v12646_v24 }
 0x1f3   : > { %v12776_v8 = vpop.f32.mrf.mxu0  ;;  %v10654_v23 = vpop.f32.mrf.mxu1 }
 0x1f4   : > { %14684 = vst [vmem:[#allocation103_spill] sm:$0xff] %v12776_v8  ;;  %v12778_v5 = vadd.f32 %v10648_v14, %v3531_v41 }
 0x1f5   : > { %v10601_v19 = vpop.f32.mrf.mxu0  ;;  %v12780_v7 = vpop.f32.mrf.mxu1 }
 0x1f6   : > { %14685 = vst [vmem:[#allocation104_spill] sm:$0xff] %v12778_v5  ;;  %14686 = vst [vmem:[#allocation105_spill] sm:$0xff] %v12780_v7  ;;  %v3533_v12 = vadd.f32 %v10601_v19, %v12653_v33 }
 0x1f7   : > { %v12783_v53 = vpop.f32.mrf.mxu0  ;;  %v12785_v39 = vpop.f32.mrf.mxu1 }
 0x1f8   : > { %14687 = vst [vmem:[#allocation106_spill] sm:$0xff] %v12783_v53  ;;  %14688 = vst [vmem:[#allocation107_spill] sm:$0xff] %v12785_v39  ;;  %v12787_v16 = vadd.f32 %v10651_v15, %v3533_v12 }
 0x1f9   : > { %v10604_v49 = vpop.f32.mrf.mxu0  ;;  %v12789_v0 = vpop.f32.mrf.mxu1 }
 0x1fa   : > { %14689 = vst [vmem:[#allocation108_spill] sm:$0xff] %v12787_v16  ;;  %14690 = vst [vmem:[#allocation109_spill] sm:$0xff] %v12789_v0  ;;  %v3535_v24 = vadd.f32 %v10604_v49, %v12660_v43 }
 0x1fb   : > { %v12792_v11 = vpop.f32.mrf.mxu0  ;;  %v12794_v14 = vpop.f32.mrf.mxu1 }
 0x1fc   : > { %14691 = vst [vmem:[#allocation110_spill] sm:$0xff] %v12792_v11  ;;  %14692 = vst [vmem:[#allocation111_spill] sm:$0xff] %v12794_v14  ;;  %v12796_v41 = vadd.f32 %v10654_v23, %v3535_v24 }
 0x1fd   : > { %v12798_v5 = vpop.f32.mrf.mxu0  ;;  %v12800_v33 = vpop.f32.mrf.mxu1 }
 0x1fe   : > { %14693 = vst [vmem:[#allocation112_spill] sm:$0xff] %v12796_v41  ;;  %14694 = vst [vmem:[#allocation113_spill] sm:$0xff] %v12798_v5 }
 0x1ff   : > { %14695 = vst [vmem:[#allocation114_spill] sm:$0xff] %v12800_v33  ;;  %v12802_v19 = vpop.f32.mrf.mxu0  ;;  %v12804_v56 = vpop.f32.mrf.mxu1 }
 0x200   : > { %14696 = vst [vmem:[#allocation115_spill] sm:$0xff] %v12802_v19 }
 0x201   : > { %v12806_v15 = vpop.f32.mrf.mxu0  ;;  %v12808_v12 = vpop.f32.mrf.mxu1 }
 0x202   : > { %14697 = vst [vmem:[#allocation116_spill] sm:$0xff] %v12808_v12 }
 0x203   : > { %v12810_v16 = vpop.f32.mrf.mxu0  ;;  %v12812_v43 = vpop.f32.mrf.mxu1 }
 0x205   : > { %v12814_v49 = vpop.f32.mrf.mxu0  ;;  %v12816_v23 = vpop.f32.mrf.mxu1 }
 0x207   : > { %v12818_v24 = vpop.f32.mrf.mxu0  ;;  %v12820_v52 = vpop.f32.mrf.mxu1 }
 0x208   : > { %14698 = vst [vmem:[#allocation117_spill] sm:$0xff] %v12820_v52 }
 0x209   : > { %v12822_v8 = vpop.f32.mrf.mxu0  ;;  %v12824_v41 = vpop.f32.mrf.mxu1 }
 0x20a   : > { %14699 = vst [vmem:[#allocation118_spill] sm:$0xff] %v12824_v41 }
 0x20b   : > { %v12826_v7 = vpop.f32.mrf.mxu0  ;;  %v12828_v53 = vpop.f32.mrf.mxu1 }
 0x20c   : > { %14700 = vst [vmem:[#allocation119_spill] sm:$0xff] %v12828_v53  ;;  %v1467_v53 = vadd.f32 %v12521_v9, %v12323_v18  ;;  %v1577_v18 = vadd.f32 %v12456_v1, %v12463_v6  ;;  %v1982_v9 = vadd.f32 %v12532_v37, %v12337_v28  ;;  %v1990_v6 = vadd.f32 %v12560_v61, %v12385_v4  ;;  %v14716_v37 = vld [vmem:[#allocation49_spill] sm:$0xff] }
 0x20d   : > { %v12830_v0 = vpop.f32.mrf.mxu0  ;;  %v12832_v11 = vpop.f32.mrf.mxu1  ;;  %v14719_v4 = vld [vmem:[#allocation37_spill] sm:$0xff] }
 0x20e   : > { %14701 = vst [vmem:[#allocation120_spill] sm:$0xff] %v12830_v0  ;;  %14702 = vst [vmem:[#allocation121_spill] sm:$0xff] %v12832_v11  ;;  %v1547_v0 = vadd.f32 %v12414_v31, %v12421_v36  ;;  %v1984_v31 = vadd.f32 %v12539_v51, %v12349_v38  ;;  %v1986_v36 = vadd.f32 %v12546_v2, %v12361_v48 }
 0x20f   : > { %v12834_v39 = vpop.f32.mrf.mxu0  ;;  %v12836_v33 = vpop.f32.mrf.mxu1  ;;  %v1617_v38 = vadd.f32 %v12509_v57, %v12515_v62  ;;  %v1988_v48 = vadd.f32 %v12553_v25, %v12373_v58  ;;  %v14717_v62 = vld [vmem:[#allocation35_spill] sm:$0xff]  ;;  %v14718_v25 = vld [vmem:[#allocation36_spill] sm:$0xff] }
 0x210   : > { %14703 = vst [vmem:[#allocation122_spill] sm:$0xff] %v12834_v39  ;;  %14704 = vst [vmem:[#allocation123_spill] sm:$0xff] %v12836_v33  ;;  %v1980_v33 = vadd.f32 %v12525_v21, %v1467_v53  ;;  %v2369_v58 = vadd.f32 %v14717_v62, %v1982_v9  ;;  %v2373_v61 = vadd.f32 %v14719_v4, %v1986_v36  ;;  %v14720_v53 = vld [vmem:[#allocation57_spill] sm:$0xff]  ;;  %v14727_v62 = vld [vmem:[#allocation40_spill] sm:$0xff] }
 0x211   : > { %v12838_v19 = vpop.f32.mrf.mxu0  ;;  %v12840_v14 = vpop.f32.mrf.mxu1  ;;  %v2010_v36 = vadd.f32 %v12630_v34, %v1617_v38  ;;  %v14734_v34 = vld [vmem:[#allocation48_spill] sm:$0xff] }
 0x212   : > { %14705 = vst [vmem:[#allocation124_spill] sm:$0xff] %v12838_v19  ;;  %14706 = vst [vmem:[#allocation125_spill] sm:$0xff] %v12840_v14  ;;  %v1557_v14 = vadd.f32 %v12428_v42, %v12435_v47  ;;  %v1587_v42 = vadd.f32 %v12470_v13, %v12477_v20  ;;  %v1597_v47 = vadd.f32 %v12484_v26, %v12491_v35  ;;  %v14712_v13 = vld [vmem:[#allocation42_spill] sm:$0xff] }
 0x213   : > { %v12842_v52 = vpop.f32.mrf.mxu0  ;;  %v12844_v5 = vpop.f32.mrf.mxu1  ;;  %v1992_v20 = vadd.f32 %v14712_v13, %v12397_v17  ;;  %v14713_v26 = vld [vmem:[#allocation34_spill] sm:$0xff]  ;;  %v14721_v13 = vld [vmem:[#allocation41_spill] sm:$0xff] }
 0x214   : > { %14707 = vst [vmem:[#allocation126_spill] sm:$0xff] %v12842_v52  ;;  %14708 = vst [vmem:[#allocation127_spill] sm:$0xff] %v12844_v5  ;;  %v1567_v52 = vadd.f32 %v12442_v54, %v12449_v59  ;;  %v1607_v54 = vadd.f32 %v12498_v44, %v12504_v50  ;;  %v1994_v59 = vadd.f32 %v12574_v40, %v12409_v27  ;;  %v14714_v44 = vld [vmem:[#allocation45_spill] sm:$0xff]  ;;  %v14715_v50 = vld [vmem:[#allocation47_spill] sm:$0xff] }
 0x215   : > { %v12846_v41 = vpop.f32.mrf.mxu0  ;;  %v12848_v12 = vpop.f32.mrf.mxu1  ;;  %v2367_v35 = vadd.f32 %v14713_v26, %v1980_v33  ;;  %v1996_v27 = vadd.f32 %v14714_v44, %v1547_v0  ;;  %v1998_v21 = vadd.f32 %v14715_v50, %v1557_v14  ;;  %v2371_v40 = vadd.f32 %v14718_v25, %v1984_v31  ;;  %v14722_v26 = vld [vmem:[#allocation51_spill] sm:$0xff]  ;;  %v14723_v44 = vld [vmem:[#allocation53_spill] sm:$0xff] }
 0x216   : > { %14709 = vst [vmem:[#allocation128_spill] sm:$0xff] %v12846_v41  ;;  %14710 = vst [vmem:[#allocation129_spill] sm:$0xff] %v12848_v12  ;;  %v2000_v51 = vadd.f32 %v14716_v37, %v1567_v52  ;;  %v2008_v17 = vadd.f32 %v14720_v53, %v1607_v54  ;;  %v2381_v33 = vadd.f32 %v14721_v13, %v1994_v59  ;;  %v14724_v50 = vld [vmem:[#allocation55_spill] sm:$0xff]  ;;  %v14729_v59 = vld [vmem:[#allocation44_spill] sm:$0xff] }
 0x217   : > { %v12852_v11 = vpop.f32.mrf.mxu0  ;;  %v12854_v39 = vpop.f32.mrf.mxu1  ;;  %v2002_v0 = vadd.f32 %v14722_v26, %v1577_v18  ;;  %v2004_v14 = vadd.f32 %v14723_v44, %v1587_v42  ;;  %v2006_v52 = vadd.f32 %v14724_v50, %v1597_v47  ;;  %v14726_v41 = vld [vmem:[#allocation39_spill] sm:$0xff]  ;;  %v2379_v31 = vadd.f32 %v14727_v62, %v1992_v20  ;;  %v14730_v18 = vld [vmem:[#allocation46_spill] sm:$0xff]  ;;  %v14736_v62 = vld [vmem:[#allocation52_spill] sm:$0xff] }
 0x218   : > { %14711 = vst [vmem:[#allocation130_spill] sm:$0xff] %v12852_v11  ;;  %v14725_v11 = vld [vmem:[#allocation38_spill] sm:$0xff]  ;;  %v2377_v9 = vadd.f32 %v14726_v41, %v1990_v6  ;;  %v14728_v25 = vld [vmem:[#allocation43_spill] sm:$0xff]  ;;  %v2385_v4 = vadd.f32 %v14729_v59, %v1998_v21  ;;  %v2387_v53 = vadd.f32 %v14730_v18, %v2000_v51  ;;  %v2768_v42 = vadd.f32 %v12688_v22, %v2381_v33  ;;  %v14737_v22 = vld [vmem:[#allocation56_spill] sm:$0xff] }
 0x219   : > { %v12863_v19 = vpop.f32.mrf.mxu0  ;;  %v12865_v12 = vpop.f32.mrf.mxu1  ;;  %v2375_v5 = vadd.f32 %v14725_v11, %v1988_v48  ;;  %v12918_v54 = vadd.f32 %v14728_v25, %v1996_v27  ;;  %v14731_v26 = vld [vmem:[#allocation54_spill] sm:$0xff]  ;;  %v14732_v11 = vld [vmem:[#allocation65_spill] sm:$0xff]  ;;  %v14733_v41 = vld [vmem:[#allocation67_spill] sm:$0xff]  ;;  %v2389_v38 = vadd.f32 %v14734_v34, %v2002_v0  ;;  %v2393_v21 = vadd.f32 %v14736_v62, %v2006_v52 }
 0x21a   : > { %v2395_v44 = vadd.f32 %v14731_v26, %v2008_v17  ;;  %v2758_v48 = vadd.f32 %v14732_v11, %v2371_v40  ;;  %v2760_v6 = vadd.f32 %v14733_v41, %v2373_v61  ;;  %v14735_v27 = vld [vmem:[#allocation50_spill] sm:$0xff]  ;;  %v2764_v51 = vadd.f32 %v12672_v46, %v2377_v9  ;;  %v14738_v40 = vld [vmem:[#allocation59_spill] sm:$0xff]  ;;  %v14739_v18 = vld [vmem:[#allocation61_spill] sm:$0xff] }
 0x21b   : > { %v12883_v1 = vpop.f32.mrf.mxu0  ;;  %v12885_v28 = vpop.f32.mrf.mxu1  ;;  %v2762_v20 = vadd.f32 %v12665_v30, %v2375_v5  ;;  %v2391_v50 = vadd.f32 %v14735_v27, %v2004_v14  ;;  %v2397_v33 = vadd.f32 %v14737_v22, %v2010_v36  ;;  %v2766_v59 = vadd.f32 %v12679_v60, %v2379_v31  ;;  %v14740_v5 = vld [vmem:[#allocation63_spill] sm:$0xff]  ;;  %v14741_v14 = vld [vmem:[#allocation72_spill] sm:$0xff]  ;;  %v14742_v26 = vld [vmem:[#allocation62_spill] sm:$0xff] }
 0x21c   : > { %v2782_v17 = vadd.f32 %v12756_v32, %v2395_v44  ;;  %v2785_v61 = vadd.f32 %v12760_v45, %v14738_v40  ;;  %v12937_v30 = vadd.f32 %v14739_v18, %v2367_v35  ;;  %v12940_v0 = vadd.f32 %v14740_v5, %v2369_v58  ;;  %v14743_v32 = vld [vmem:[#allocation64_spill] sm:$0xff]  ;;  %v14744_v45 = vld [vmem:[#allocation66_spill] sm:$0xff]  ;;  %v14748_v22 = vld [vmem:[#allocation97_spill] sm:$0xff] }
 0x21d   : > { %v12899_v2 = vpop.f32.mrf.mxu0  ;;  %v12901_v57 = vpop.f32.mrf.mxu1  ;;  %v3155_v52 = vadd.f32 %v14741_v14, %v2768_v42  ;;  %v3543_v46 = vadd.f32 %v12822_v8, %v12690_v63  ;;  %v12946_v60 = vadd.f32 %v14742_v26, %v2758_v48  ;;  %v12949_v31 = vadd.f32 %v14743_v32, %v2760_v6  ;;  %v14745_v11 = vld [vmem:[#allocation68_spill] sm:$0xff]  ;;  %v14746_v34 = vld [vmem:[#allocation70_spill] sm:$0xff] }
 0x21e   : > { %v3149_v44 = vadd.f32 %v14744_v45, %v2762_v20  ;;  %v2784_v35 = vadd.f32 %v12764_v29, %v2397_v33  ;;  %v3151_v58 = vadd.f32 %v14745_v11, %v2764_v51  ;;  %v2776_v41 = vadd.f32 %v12733_v55, %v2389_v38  ;;  %v14747_v62 = vld [vmem:[#allocation94_spill] sm:$0xff]  ;;  %v14749_v20 = vld [vmem:[#allocation84_spill] sm:$0xff]  ;;  %v14752_v55 = vld [vmem:[#allocation73_spill] sm:$0xff] }
 0x21f   : > { %v12911_v37 = vpop.f32.mrf.mxu0  ;;  %v10687_v13 = vpop.f32.mrf.mxu1  ;;  %v2780_v42 = vadd.f32 %v12747_v3, %v2393_v21  ;;  %v3542_v63 = vadd.f32 %v12826_v7, %v3155_v52  ;;  %v3153_v27 = vadd.f32 %v14746_v34, %v2766_v59  ;;  %v3169_v48 = vadd.f32 %v12744_v10, %v2782_v17  ;;  %v14751_v51 = vld [vmem:[#allocation92_spill] sm:$0xff]  ;;  %v14753_v59 = vld [vmem:[#allocation87_spill] sm:$0xff]  ;;  %v14755_v14 = vld [vmem:[#allocation86_spill] sm:$0xff] }
 0x220   : > { %v3172_v6 = vadd.f32 %v14747_v62, %v2785_v61  ;;  %v12962_v29 = vadd.f32 %v14749_v20, %v2385_v4  ;;  %v2778_v33 = vadd.f32 %v14751_v51, %v2391_v50  ;;  %v3541_v3 = vadd.f32 %v12814_v49, %v14752_v55  ;;  %v14754_v10 = vld [vmem:[#allocation96_spill] sm:$0xff]  ;;  %v12975_v49 = vld [vmem:[%s14750_s13] ss:$0 sm:$0xff]  ;;  %v14758_v34 = vld [vmem:[#allocation89_spill] sm:$0xff] }
 0x221   : > { %v10634_v47 = vpop.f32.mrf.mxu0  ;;  %v3896_v36 = vpop.f32.mrf.mxu1  ;;  %v3930_v7 = vadd.f32 %v12812_v43, %v3543_v46  ;;  %v2774_v18 = vadd.f32 %v14753_v59, %v2387_v53  ;;  %v3171_v17 = vadd.f32 %v14754_v10, %v2784_v35  ;;  %v3163_v52 = vadd.f32 %v14755_v14, %v2776_v41  ;;  %v14757_v43 = vld [vmem:[#allocation95_spill] sm:$0xff] }
 0x222   : > { %v3540_v26 = vadd.f32 %v12818_v24, %v3153_v27  ;;  %v3929_v50 = vadd.f32 %v12816_v23, %v3542_v63  ;;  %v3555_v46 = vadd.f32 %v10634_v47, %v14757_v43  ;;  %v3165_v35 = vadd.f32 %v14758_v34, %v2778_v33  ;;  %v14763_v33 = vld [vmem:[#allocation113_spill] sm:$0xff]  ;;  %v14765_v59 = vld [vmem:[#allocation115_spill] sm:$0xff]  ;;  %v14770_v34 = vld [vmem:[#allocation110_spill] sm:$0xff] }
 0x223   : > { %v3499_v25 = vpop.f32.mrf.mxu0  ;;  %v10690_v21 = vpop.f32.mrf.mxu1  ;;  %v3928_v41 = vadd.f32 %v12804_v56, %v3541_v3  ;;  %v3538_v47 = vadd.f32 %v12810_v16, %v3151_v58  ;;  %v14764_v3 = vld [vmem:[#allocation111_spill] sm:$0xff]  ;;  %v3536_v10 = vadd.f32 %v14765_v59, %v3149_v44  ;;  %v14785_v59 = vld [vmem:[#allocation74_spill] sm:$0xff] }
 0x224   : > { %v14769_v44 = vld [vmem:[#allocation107_spill] sm:$0xff] }
 0x225   : > { %v10637_v9 = vpop.f32.mrf.mxu0  ;;  %v3906_v24 = vpop.f32.mrf.mxu1  ;;  %v3967_v16 = vadd.f32 %v12975_v49, %v3928_v41 }
 0x226   : > { %v3557_v40 = vadd.f32 %v10637_v9, %v14748_v22  ;;  %v14756_v9 = vld [vmem:[#allocation91_spill] sm:$0xff]  ;;  %v3968_v22 = vadd.f32 %v12975_v49, %v3929_v50 }
 0x227   : > { %v3509_v8 = vpop.f32.mrf.mxu0  ;;  %v3167_v4 = vadd.f32 %v14756_v9, %v2780_v42  ;;  %v3969_v42 = vadd.f32 %v12975_v49, %v3930_v7  ;;  %v14767_v9 = vld [vmem:[#allocation90_spill] sm:$0xff]  ;;  %v14768_v50 = vld [vmem:[#allocation83_spill] sm:$0xff] }
 0x228   : > { %v3556_v61 = vadd.f32 %v3509_v8, %v3169_v48  ;;  %v3944_v45 = vadd.f32 %v10687_v13, %v3557_v40  ;;  %v14759_v8 = vld [vmem:[#allocation71_spill] sm:$0xff]  ;;  %v14760_v13 = vld [vmem:[#allocation116_spill] sm:$0xff]  ;;  %v14761_v40 = vld [vmem:[#allocation93_spill] sm:$0xff]  ;;  %v4000_v14 = vmax.f32 %v3968_v22, 0.0 }
 0x229   : > { %v10640_v38 = vpop.f32.mrf.mxu0  ;;  %v3539_v48 = vadd.f32 %v12806_v15, %v14759_v8  ;;  %v3554_v27 = vadd.f32 %v3499_v25, %v3167_v4  ;;  %v3553_v20 = vadd.f32 %v12899_v2, %v14761_v40  ;;  %v3942_v15 = vadd.f32 %v12885_v28, %v3555_v46  ;;  %v14777_v22 = vld [vmem:[#allocation130_spill] sm:$0xff] }
 0x22a   : > { %v3559_v5 = vadd.f32 %v10640_v38, %v3172_v6  ;;  %v3943_v23 = vadd.f32 %v3896_v36, %v3556_v61  ;;  %v3927_v6 = vadd.f32 %v14760_v13, %v3540_v26  ;;  %v3983_v56 = vadd.f32 %v12975_v49, %v3944_v45  ;;  %v14762_v36 = vld [vmem:[#allocation69_spill] sm:$0xff] }
 0x22b   : > { %v3519_v32 = vpop.f32.mrf.mxu0  ;;  %v3537_v55 = vadd.f32 %v14763_v33, %v14762_v36  ;;  %v3926_v7 = vadd.f32 %v14764_v3, %v3539_v48  ;;  %v4001_v58 = vmax.f32 %v3969_v42, 0.0  ;;  %v3552_v38 = vadd.f32 %v12911_v37, %v3165_v35  ;;  %v14772_v42 = vld [vmem:[#allocation88_spill] sm:$0xff]  ;;  %v14780_v36 = vld [vmem:[#allocation105_spill] sm:$0xff] }
 0x22c   : > { %v3946_v11 = vadd.f32 %v10690_v21, %v3559_v5  ;;  %v3558_v53 = vadd.f32 %v3519_v32, %v3171_v17  ;;  %v3941_v21 = vadd.f32 %v12901_v57, %v3554_v27  ;;  %v3982_v2 = vadd.f32 %v12975_v49, %v3943_v23  ;;  %v14766_v17 = vld [vmem:[#allocation114_spill] sm:$0xff]  ;;  %v14781_v3 = vld [vmem:[#allocation85_spill] sm:$0xff] }
 0x22d   : > { %v3925_v61 = vadd.f32 %v14766_v17, %v3538_v47  ;;  %v3966_v5 = vadd.f32 %v12975_v49, %v3927_v6  ;;  %v3551_v4 = vadd.f32 %v12863_v19, %v14767_v9  ;;  %v3940_v37 = vadd.f32 %v12854_v39, %v3553_v20  ;;  %v14778_v20 = vld [vmem:[#allocation129_spill] sm:$0xff]  ;;  %v14786_v17 = vld [vmem:[#allocation112_spill] sm:$0xff] }
 0x22e   : > { %v3985_v63 = vadd.f32 %v12975_v49, %v3946_v11  ;;  %v3945_v62 = vadd.f32 %v3906_v24, %v3558_v53  ;;  %v3981_v57 = vadd.f32 %v12975_v49, %v3942_v15  ;;  %v4015_v26 = vmax.f32 %v3983_v56, 0.0  ;;  %v14773_v24 = vld [vmem:[#allocation128_spill] sm:$0xff] }
 0x22f   : > { %v3161_v32 = vadd.f32 %v14768_v50, %v2774_v18  ;;  %v3924_v43 = vadd.f32 %v14769_v44, %v3537_v55  ;;  %v3965_v46 = vadd.f32 %v12975_v49, %v3926_v7  ;;  %v3999_v45 = vmax.f32 %v3967_v16, 0.0  ;;  %v14771_v18 = vld [vmem:[#allocation109_spill] sm:$0xff]  ;;  %v14782_v7 = vld [vmem:[#allocation124_spill] sm:$0xff]  ;;  %v14789_v50 = vld [vmem:[#allocation103_spill] sm:$0xff] }
 0x230   : > { %v4017_v51 = vmax.f32 %v3985_v63, 0.0  ;;  %v3984_v25 = vadd.f32 %v12975_v49, %v3945_v62  ;;  %v3550_v11 = vadd.f32 %v12883_v1, %v3163_v52  ;;  %v3939_v19 = vadd.f32 %v12865_v12, %v3552_v38  ;;  %v14774_v52 = vld [vmem:[#allocation127_spill] sm:$0xff]  ;;  %v14775_v63 = vld [vmem:[#allocation81_spill] sm:$0xff]  ;;  %v14776_v62 = vld [vmem:[#allocation78_spill] sm:$0xff] }
 0x231   : > { %v3980_v39 = vadd.f32 %v12975_v49, %v3941_v21  ;;  %v4014_v53 = vmax.f32 %v3982_v2, 0.0  ;;  %v3534_v35 = vadd.f32 %v14770_v34, %v12949_v31  ;;  %v3923_v8 = vadd.f32 %v14771_v18, %v3536_v10  ;;  %v14794_v18 = vld [vmem:[#allocation58_spill] sm:$0xff] }
 0x232   : > { %v4016_v28 = vmax.f32 %v3984_v25, 0.0  ;;  %9722 = vmatprep.subr.mxu0 %v4017_v51  ;;  %9802 = vmatprep.subr.mxu1 %v4017_v51  ;;  %v3964_v48 = vadd.f32 %v12975_v49, %v3925_v61  ;;  %v3998_v41 = vmax.f32 %v3966_v5, 0.0  ;;  %v3549_v1 = vadd.f32 %v14773_v24, %v14772_v42  ;;  %v14779_v25 = vld [vmem:[#allocation106_spill] sm:$0xff] }
 0x233   : > { %9723 = vmatpush3.msra.mxu0 %v4001_v58  ;;  %9803 = vmatpush3.msra.mxu1 %v4001_v58  ;;  %v3938_v12 = vadd.f32 %v14774_v52, %v3551_v4  ;;  %v3979_v27 = vadd.f32 %v12975_v49, %v3940_v37  ;;  %v4013_v23 = vmax.f32 %v3981_v57, 0.0  ;;  %v2770_v31 = vadd.f32 %v14775_v63, %v12918_v54  ;;  %v14783_v58 = vld [vmem:[#allocation123_spill] sm:$0xff]  ;;  %v14788_v4 = vld [vmem:[#allocation125_spill] sm:$0xff]  ;;  %v14796_v24 = vld [vmem:[#allocation122_spill] sm:$0xff] }
 0x234   : > { %9724 = vmatprep.subr.mxu0 %v4016_v28  ;;  %9804 = vmatprep.subr.mxu1 %v4016_v28  ;;  %v3159_v47 = vadd.f32 %v14776_v62, %v12962_v29  ;;  %v3963_v13 = vadd.f32 %v12975_v49, %v3924_v43  ;;  %v3997_v6 = vmax.f32 %v3965_v46, 0.0  ;;  %v3548_v40 = vadd.f32 %v14777_v22, %v3161_v32  ;;  %v14784_v28 = vld [vmem:[#allocation60_spill] sm:$0xff]  ;;  %v14797_v52 = vld [vmem:[#allocation121_spill] sm:$0xff]  ;;  %v14799_v62 = vld [vmem:[#allocation99_spill] sm:$0xff] }
 0x235   : > { %9725 = vmatpush3.msra.mxu0 %v4000_v14  ;;  %9805 = vmatpush3.msra.mxu1 %v4000_v14  ;;  %v3937_v15 = vadd.f32 %v14778_v20, %v3550_v11  ;;  %v3978_v56 = vadd.f32 %v12975_v49, %v3939_v19  ;;  %v4012_v51 = vmax.f32 %v3980_v39, 0.0  ;;  %v3532_v54 = vadd.f32 %v14779_v25, %v12946_v60  ;;  %v14787_v14 = vld [vmem:[#allocation126_spill] sm:$0xff]  ;;  %v14792_v11 = vld [vmem:[#allocation120_spill] sm:$0xff]  ;;  %v14793_v39 = vld [vmem:[#allocation119_spill] sm:$0xff] }
 0x236   : > { %9726 = vmatprep.subr.mxu0 %v4015_v26  ;;  %9806 = vmatprep.subr.mxu1 %v4015_v26  ;;  %v3921_v33 = vadd.f32 %v14780_v36, %v3534_v35  ;;  %v3962_v29 = vadd.f32 %v12975_v49, %v3923_v8  ;;  %v3996_v55 = vmax.f32 %v3964_v48, 0.0  ;;  %v3547_v16 = vadd.f32 %v14782_v7, %v14781_v3  ;;  %v14795_v48 = vld [vmem:[#allocation108_spill] sm:$0xff]  ;;  %v14804_v36 = vld [vmem:[#allocation118_spill] sm:$0xff] }
 0x237   : > { %9727 = vmatpush3.msra.mxu0 %v3999_v45  ;;  %9807 = vmatpush3.msra.mxu1 %v3999_v45  ;;  %v3936_v38 = vadd.f32 %v14783_v58, %v3549_v1  ;;  %v3977_v21 = vadd.f32 %v12975_v49, %v3938_v12  ;;  %v4011_v2 = vmax.f32 %v3979_v27, 0.0  ;;  %v3143_v60 = vadd.f32 %v14784_v28, %v12940_v0  ;;  %v14790_v0 = vld [vmem:[#allocation102_spill] sm:$0xff]  ;;  %v14798_v63 = vld [vmem:[#allocation100_spill] sm:$0xff] }
 0x238   : > { %9728 = vmatprep.subr.mxu0 %v4014_v53  ;;  %9808 = vmatprep.subr.mxu1 %v4014_v53  ;;  %v3157_v10 = vadd.f32 %v14785_v59, %v2770_v31  ;;  %v3961_v61 = vadd.f32 %v12975_v49, %v14786_v17  ;;  %v3995_v5 = vmax.f32 %v3963_v13, 0.0  ;;  %v3546_v9 = vadd.f32 %v14787_v14, %v3159_v47  ;;  %v14791_v45 = vld [vmem:[#allocation82_spill] sm:$0xff] }
 0x239   : > { %9729 = vmatpush3.msra.mxu0 %v3998_v41  ;;  %9809 = vmatpush3.msra.mxu1 %v3998_v41  ;;  %v3935_v37 = vadd.f32 %v14788_v4, %v3548_v40  ;;  %v3976_v57 = vadd.f32 %v12975_v49, %v3937_v15  ;;  %v4010_v26 = vmax.f32 %v3978_v56, 0.0  ;;  %v3530_v32 = vadd.f32 %v14789_v50, %v3143_v60  ;;  %v14801_v15 = vld [vmem:[#allocation75_spill] sm:$0xff]  ;;  %v14805_v3 = vld [vmem:[#allocation98_spill] sm:$0xff]  ;;  %v14807_v60 = vld [vmem:[#allocation101_spill] sm:$0xff] }
 0x23a   : > { %9730 = vmatprep.subr.mxu0 %v4013_v23  ;;  %9810 = vmatprep.subr.mxu1 %v4013_v23  ;;  %v3919_v44 = vadd.f32 %v14790_v0, %v3532_v54  ;;  %v3960_v43 = vadd.f32 %v12975_v49, %v3921_v33  ;;  %v3994_v46 = vmax.f32 %v3962_v29, 0.0  ;;  %v3545_v19 = vadd.f32 %v14792_v11, %v14791_v45  ;;  %v14810_v0 = vld [vmem:[#allocation76_spill] sm:$0xff] }
 0x23b   : > { %9731 = vmatpush3.msra.mxu0 %v3997_v6  ;;  %9811 = vmatpush3.msra.mxu1 %v3997_v6  ;;  %v3934_v53 = vadd.f32 %v14793_v39, %v3547_v16  ;;  %v3975_v34 = vadd.f32 %v12975_v49, %v3936_v38  ;;  %v4009_v35 = vmax.f32 %v3977_v21, 0.0  ;;  %v3141_v8 = vadd.f32 %v14794_v18, %v12937_v30  ;;  %v14800_v6 = vld [vmem:[#allocation117_spill] sm:$0xff] }
 0x23c   : > { %9732 = vmatprep.subr.mxu0 %v4012_v51  ;;  %9812 = vmatprep.subr.mxu1 %v4012_v51  ;;  %v3959_v41 = vadd.f32 %v12975_v49, %v14795_v48  ;;  %v3993_v42 = vmax.f32 %v3961_v61, 0.0  ;;  %v3544_v1 = vadd.f32 %v14796_v24, %v3157_v10  ;;  %v3933_v12 = vadd.f32 %v14797_v52, %v3546_v9  ;;  %v14803_v51 = vld [vmem:[#allocation104_spill] sm:$0xff] }
 0x23d   : > { %9733 = vmatpush3.msra.mxu0 %v3996_v55  ;;  %9813 = vmatpush3.msra.mxu1 %v3996_v55  ;;  %v3974_v27 = vadd.f32 %v12975_v49, %v3935_v37  ;;  %v4008_v23 = vmax.f32 %v3976_v57, 0.0  ;;  %v3528_v31 = vadd.f32 %v14798_v63, %v3141_v8  ;;  %v3917_v47 = vadd.f32 %v14799_v62, %v3530_v32  ;;  %v14809_v32 = vld [vmem:[#allocation80_spill] sm:$0xff] }
 0x23e   : > { %9734 = vmatprep.subr.mxu0 %v4011_v2  ;;  %9814 = vmatprep.subr.mxu1 %v4011_v2  ;;  %v3958_v30 = vadd.f32 %v12975_v49, %v3919_v44  ;;  %v3992_v13 = vmax.f32 %v3960_v43, 0.0  ;;  %v3932_v22 = vadd.f32 %v14800_v6, %v3545_v19  ;;  %v3973_v40 = vadd.f32 %v12975_v49, %v3934_v53  ;;  %v14811_v44 = vld [vmem:[#allocation77_spill] sm:$0xff]  ;;  %v14812_v43 = vld [vmem:[#allocation79_spill] sm:$0xff] }
 0x23f   : > { %9735 = vmatpush3.msra.mxu0 %v3995_v5  ;;  %9815 = vmatpush3.msra.mxu1 %v3995_v5  ;;  %v4007_v20 = vmax.f32 %v3975_v34, 0.0  ;;  %v13064_v56 = vadd.s32 8, %v14801_v15  ;;  %v3957_v25 = vadd.f32 %v12975_v49, %v14803_v51  ;;  %v3991_v54 = vmax.f32 %v3959_v41, 0.0 }
 0x240   : > { %9736 = vmatprep.subr.mxu0 %v4010_v26  ;;  %9816 = vmatprep.subr.mxu1 %v4010_v26  ;;  %v3931_v33 = vadd.f32 %v14804_v36, %v3544_v1  ;;  %v3972_v29 = vadd.f32 %v12975_v49, %v3933_v12  ;;  %v4006_v55 = vmax.f32 %v3974_v27, 0.0  ;;  %v3915_v7 = vadd.f32 %v14805_v3, %v3528_v31 }
 0x241   : > { %9737 = vmatpush3.msra.mxu0 %v3994_v46  ;;  %9817 = vmatpush3.msra.mxu1 %v3994_v46  ;;  %14802 = vst [vmem:[#allocation42_spill] sm:$0xff] %v13064_v56  ;;  %v3956_v16 = vadd.f32 %v12975_v49, %v3917_v47  ;;  %v3990_v58 = vmax.f32 %v3958_v30, 0.0  ;;  %v3971_v38 = vadd.f32 %v12975_v49, %v3932_v22  ;;  %v4005_v21 = vmax.f32 %v3973_v40, 0.0 }
 0x242   : > { %9738 = vmatprep.subr.mxu0 %v4009_v35  ;;  %9818 = vmatprep.subr.mxu1 %v4009_v35  ;;  %v13074_v2 = vmul.u32 2, %v13064_v56  ;;  %v13077_v28 = vadd.s32 16, %v14801_v15  ;;  %v3955_v59 = vadd.f32 %v12975_v49, %v14807_v60  ;;  %v3989_v10 = vmax.f32 %v3957_v25, 0.0  ;;  %v4698_v60 = vld [vmem:[%s11711_s25] sm:$0xff] }
 0x243   : > { %9739 = vmatpush3.msra.mxu0 %v3993_v42  ;;  %9819 = vmatpush3.msra.mxu1 %v3993_v42  ;;  %v3970_v17 = vadd.f32 %v12975_v49, %v3931_v33  ;;  %v4004_v61 = vmax.f32 %v3972_v29, 0.0  ;;  %v3954_v5 = vadd.f32 %v12975_v49, %v3915_v7  ;;  %v3988_v14 = vmax.f32 %v3956_v16, 0.0 }
 0x244   : > { %9740 = vmatprep.subr.mxu0 %v4008_v23  ;;  %9820 = vmatprep.subr.mxu1 %v4008_v23  ;;  %14806 = vst [vmem:[#allocation34_spill] sm:$0xff] %v13077_v28  ;;  %v4003_v9 = vmax.f32 %v3971_v38, 0.0  ;;  %v13084_v4 = vadd.s32 1, %v13074_v2  ;;  %v13087_v37 = vmul.u32 2, %v13077_v28  ;;  %v13090_v57 = vadd.s32 24, %v14801_v15 }
 0x245   : > { %9741 = vmatpush3.msra.mxu0 %v3992_v13  ;;  %9821 = vmatpush3.msra.mxu1 %v3992_v13  ;;  %v3987_v26 = vmax.f32 %v3955_v59, 0.0  ;;  %v4002_v49 = vmax.f32 %v3970_v17, 0.0  ;;  %v3986_v50 = vmax.f32 %v3954_v5, 0.0  ;;  %vm4134_vm3 = vcmp.eq.s32.totalorder %v14810_v0, %v14809_v32  ;;  %v13340_v59 = vld [vmem:[%s11741_s24 + $0x8] sm:$0xff] }
 0x246   : > { %9742 = vmatprep.subr.mxu0 %v4007_v20  ;;  %9822 = vmatprep.subr.mxu1 %v4007_v20  ;;  %14808 = vst [vmem:[#allocation45_spill] sm:$0xff] %v13090_v57  ;;  %vm4054_vm4 = vcmp.eq.s32.totalorder %v14810_v0, %v14811_v44  ;;  %vm4057_vm5 = vcmp.eq.s32.totalorder %v14812_v43, %v13074_v2  ;;  %v13101_v46 = vadd.s32 1, %v13087_v37  ;;  %v13104_v45 = vmul.u32 2, %v13090_v57 }
 0x247   : > { %9743 = vmatpush3.msra.mxu0 %v3991_v54  ;;  %9823 = vmatpush3.msra.mxu1 %v3991_v54  ;;  %vm4137_vm6 = vcmp.eq.s32.totalorder %v14812_v43, %v13084_v4  ;;  %v4023_v11 = vadd.s32 32, %v14801_v15  ;;  %v14813_v19 = vmov 1.0   ;;  %vm4056_vm7 = vcmp.eq.s32.totalorder %v14810_v0, %v13074_v2  ;;  %v14837_v2 = vld [vmem:[#allocation75_spill] sm:$0xff] }
 0x248   : > { %9744 = vmatprep.subr.mxu0 %v4006_v55  ;;  %9824 = vmatprep.subr.mxu1 %v4006_v55  ;;  %vm4136_vm8 = vcmp.eq.s32.totalorder %v14810_v0, %v13084_v4  ;;  %vm4059_vm9 = vcmp.eq.s32.totalorder %v14812_v43, %v13087_v37  ;;  %vm4139_vm10 = vcmp.eq.s32.totalorder %v14812_v43, %v13101_v46  ;;  %v13126_v39 = vadd.s32 1, %v13104_v45 }
 0x249   : > { %9745 = vmatpush3.msra.mxu0 %v3990_v58  ;;  %9825 = vmatpush3.msra.mxu1 %v3990_v58  ;;  %v13128_v53 = vmul.u32 2, %v4023_v11  ;;  %v4024_v34 = vadd.s32 40, %v14801_v15  ;;  %vm4058_vm11 = vcmp.eq.s32.totalorder %v14810_v0, %v13087_v37  ;;  %vm4138_vm12 = vcmp.eq.s32.totalorder %v14810_v0, %v13101_v46 }
 0x24a   : > { %9746 = vmatprep.subr.mxu0 %v4005_v21  ;;  %9826 = vmatprep.subr.mxu1 %v4005_v21  ;;  %vm4061_vm13 = vcmp.eq.s32.totalorder %v14812_v43, %v13104_v45  ;;  %vm4141_vm14 = vcmp.eq.s32.totalorder %v14812_v43, %v13126_v39  ;;  %v4025_v8 = vadd.s32 48, %v14801_v15  ;;  %vm4060_vm15 = vcmp.eq.s32.totalorder %v14810_v0, %v13104_v45  ;;  %v4699_v21 = vld [vmem:[%s11711_s25 + $0x8] sm:$0xff] }
 0x24b   : > { %9747 = vmatpush3.msra.mxu0 %v3989_v10  ;;  %9827 = vmatpush3.msra.mxu1 %v3989_v10  ;;  %v13150_v35 = vadd.s32 1, %v13128_v53  ;;  %v13152_v18 = vmul.u32 2, %v4024_v34  ;;  %vm4140_vm0 = vcmp.eq.s32.totalorder %v14810_v0, %v13126_v39  ;;  %vm4063_vm1 = vcmp.eq.s32.totalorder %v14812_v43, %v13128_v53 }
 0x24c   : > { %9748 = vmatprep.subr.mxu0 %v4004_v61  ;;  %9828 = vmatprep.subr.mxu1 %v4004_v61  ;;  %v13176_v41 = vmul.u32 2, %v4025_v8  ;;  %v4026_v42 = vadd.s32 56, %v14801_v15  ;;  %v4027_v52 = vadd.s32 64, %v14801_v15  ;;  %v4028_v23 = vadd.s32 72, %v14801_v15 }
 0x24d   : > { %9749 = vmatpush3.msra.mxu0 %v3988_v14  ;;  %9829 = vmatpush3.msra.mxu1 %v3988_v14  ;;  %vm4143_vm2 = vcmp.eq.s32.totalorder %v14812_v43, %v13150_v35  ;;  %v13174_v48 = vadd.s32 1, %v13152_v18  ;;  %v4029_v62 = vadd.s32 80, %v14801_v15  ;;  %v4030_v13 = vadd.s32 88, %v14801_v15 }
 0x24e   : > { %9750 = vmatprep.subr.mxu0 %v4003_v9  ;;  %9830 = vmatprep.subr.mxu1 %v4003_v9  ;;  %v13198_v24 = vadd.s32 1, %v13176_v41  ;;  %v13200_v1 = vmul.u32 2, %v4026_v42  ;;  %v4046_v27 = vmul.u32 2, %v4027_v52  ;;  %v4031_v40 = vadd.s32 96, %v14801_v15 }
 0x24f   : > { %9751 = vmatpush3.msra.mxu0 %v3987_v26  ;;  %9831 = vmatpush3.msra.mxu1 %v3987_v26  ;;  %v4047_v31 = vmul.u32 2, %v4028_v23  ;;  %v4048_v30 = vmul.u32 2, %v4029_v62  ;;  %v4032_v25 = vadd.s32 104, %v14801_v15  ;;  %v4033_v33 = vadd.s32 112, %v14801_v15 }
 0x250   : > { %9752 = vmatprep.subr.mxu0 %v4002_v49  ;;  %9832 = vmatprep.subr.mxu1 %v4002_v49  ;;  %v13222_v12 = vadd.s32 1, %v13200_v1  ;;  %v4126_v63 = vadd.s32 1, %v4046_v27  ;;  %v4049_v22 = vmul.u32 2, %v4030_v13  ;;  %v4050_v51 = vmul.u32 2, %v4031_v40  ;;  %v13352_v13 = vld [vmem:[%s11701_s17] ss:$0 sm:$0xff] }
 0x251   : > { %9753 = vmatpush3.msra.mxu0 %v3986_v50  ;;  %9833 = vmatpush3.msra.mxu1 %v3986_v50  ;;  %v4127_v47 = vadd.s32 1, %v4047_v31  ;;  %v4128_v6 = vadd.s32 1, %v4048_v30  ;;  %v4051_v36 = vmul.u32 2, %v4032_v25  ;;  %v4052_v55 = vmul.u32 2, %v4033_v33 }
 0x252   : > { %9204 = vmatmul.mubr.msk.f32.vlgmr.msra.gmra.mxu0 %vm4054_vm4, %v14813_v19  ;;  %9236 = vmatmul.mubr.msk.f32.vlgmr.msra.gmra.mxu1 %vm4134_vm3, %v14813_v19  ;;  %v4129_v20 = vadd.s32 1, %v4049_v22  ;;  %v4130_v54 = vadd.s32 1, %v4050_v51  ;;  %v4034_v3 = vadd.s32 120, %v14801_v15  ;;  %v14572_v38 = vmov 0.0  }
 0x253   : > { %9205 = vmatprep.mubr.msk.f32.mxu0 %vm4057_vm5, %v14813_v19  ;;  %9237 = vmatprep.mubr.msk.f32.mxu1 %vm4137_vm6, %v14813_v19  ;;  %vm14567_vm5 = vcmp.eq.s32.totalorder %v14810_v0, %v13128_v53  ;;  %vm14564_vm6 = vcmp.eq.s32.totalorder %v14810_v0, %v13150_v35  ;;  %v4131_v29 = vadd.s32 1, %v4051_v36  ;;  %v4132_v7 = vadd.s32 1, %v4052_v55 }
 0x254   : > { %v4053_v16 = vmul.u32 2, %v4034_v3  ;;  %10691 = vmatprep.subr.mxu0 %v4699_v21  ;;  %v13365_v3 = vld [vmem:[%s11701_s17 + $0x2] ss:$0 sm:$0xff]  ;;  %v6654_v4 = vadd.s32 1, %v14837_v2 }
 0x255   : > { %10692 = vmatpush3.msra.mxu0 %v4699_v21 }
 0x256   : > { %9206 = vmatmul.mubr.msk.f32.gmra.mxu0 %vm4056_vm7, %v14813_v19  ;;  %9238 = vmatmul.mubr.msk.f32.gmra.mxu1 %vm4136_vm8, %v14813_v19  ;;  %v4133_v58 = vadd.s32 1, %v4053_v16 }
 0x257   : > { %9207 = vmatprep.mubr.msk.f32.mxu0 %vm4059_vm9, %v14813_v19  ;;  %9239 = vmatprep.mubr.msk.f32.mxu1 %vm4139_vm10, %v14813_v19  ;;  %vm4065_vm9 = vcmp.eq.s32.totalorder %v14812_v43, %v13152_v18  ;;  %vm4145_vm10 = vcmp.eq.s32.totalorder %v14812_v43, %v13174_v48 }
 0x258   : > { %10693 = vmatprep.subr.mxu0 %v4698_v60 }
 0x259   : > { %10694 = vmatpush3.msra.mxu0 %v4698_v60 }
 0x25a   : > { %9208 = vmatmul.mubr.msk.f32.gmra.mxu0 %vm4058_vm11, %v14813_v19  ;;  %9240 = vmatmul.mubr.msk.f32.gmra.mxu1 %vm4138_vm12, %v14813_v19 }
 0x25b   : > { %9209 = vmatprep.mubr.msk.f32.mxu0 %vm4061_vm13, %v14813_v19  ;;  %9241 = vmatprep.mubr.msk.f32.mxu1 %vm4141_vm14, %v14813_v19  ;;  %vm14565_vm13 = vcmp.eq.s32.totalorder %v14810_v0, %v13152_v18  ;;  %vm14566_vm14 = vcmp.eq.s32.totalorder %v14810_v0, %v13174_v48 }
 0x25c   : > { %10751 = vmatprep.subr.mxu0 %v13340_v59 }
 0x25e   : > { %9210 = vmatmul.mubr.msk.f32.gmra.mxu0 %vm4060_vm15, %v14813_v19  ;;  %9242 = vmatmul.mubr.msk.f32.gmra.mxu1 %vm4140_vm0, %v14813_v19 }
 0x25f   : > { %9211 = vmatprep.mubr.msk.f32.mxu0 %vm4063_vm1, %v14813_v19  ;;  %9243 = vmatprep.mubr.msk.f32.mxu1 %vm4143_vm2, %v14813_v19  ;;  %vm4067_vm1 = vcmp.eq.s32.totalorder %v14812_v43, %v13176_v41  ;;  %vm4147_vm2 = vcmp.eq.s32.totalorder %v14812_v43, %v13198_v24 }
 0x262   : > { %9212 = vmatmul.mubr.msk.f32.gmra.mxu0 %vm14567_vm5, %v14813_v19  ;;  %9244 = vmatmul.mubr.msk.f32.gmra.mxu1 %vm14564_vm6, %v14813_v19  ;;  %vm4069_vm6 = vcmp.eq.s32.totalorder %v14812_v43, %v13200_v1  ;;  %vm4151_vm5 = vcmp.eq.s32.totalorder %v14812_v43, %v4126_v63 }
 0x263   : > { %9213 = vmatprep.mubr.msk.f32.mxu0 %vm4065_vm9, %v14813_v19  ;;  %9245 = vmatprep.mubr.msk.f32.mxu1 %vm4145_vm10, %v14813_v19  ;;  %vm14569_vm9 = vcmp.eq.s32.totalorder %v14810_v0, %v13176_v41  ;;  %vm14568_vm10 = vcmp.eq.s32.totalorder %v14810_v0, %v13198_v24 }
 0x266   : > { %9214 = vmatmul.mubr.msk.f32.gmra.mxu0 %vm14565_vm13, %v14813_v19  ;;  %9246 = vmatmul.mubr.msk.f32.gmra.mxu1 %vm14566_vm14, %v14813_v19  ;;  %vm4149_vm13 = vcmp.eq.s32.totalorder %v14812_v43, %v13222_v12  ;;  %vm4071_vm14 = vcmp.eq.s32.totalorder %v14812_v43, %v4046_v27 }
 0x267   : > { %9215 = vmatprep.mubr.msk.f32.mxu0 %vm4067_vm1, %v14813_v19  ;;  %9247 = vmatprep.mubr.msk.f32.mxu1 %vm4147_vm2, %v14813_v19  ;;  %vm14571_vm1 = vcmp.eq.s32.totalorder %v14810_v0, %v13200_v1  ;;  %vm14570_vm2 = vcmp.eq.s32.totalorder %v14810_v0, %v13222_v12 }
 0x26a   : > { %9216 = vmatmul.mubr.msk.f32.gmra.mxu0 %vm14569_vm9, %v14813_v19  ;;  %9248 = vmatmul.mubr.msk.f32.gmra.mxu1 %vm14568_vm10, %v14813_v19  ;;  %vm4073_vm10 = vcmp.eq.s32.totalorder %v14812_v43, %v4047_v31  ;;  %vm4153_vm9 = vcmp.eq.s32.totalorder %v14812_v43, %v4127_v47 }
 0x26b   : > { %9217 = vmatprep.mubr.msk.f32.mxu0 %vm4069_vm6, %v14813_v19  ;;  %9249 = vmatprep.mubr.msk.f32.mxu1 %vm4149_vm13, %v14813_v19  ;;  %vm4070_vm6 = vcmp.eq.s32.totalorder %v14810_v0, %v4046_v27  ;;  %vm4150_vm13 = vcmp.eq.s32.totalorder %v14810_v0, %v4126_v63 }
 0x26e   : > { %9218 = vmatmul.mubr.msk.f32.gmra.mxu0 %vm14571_vm1, %v14813_v19  ;;  %9250 = vmatmul.mubr.msk.f32.gmra.mxu1 %vm14570_vm2, %v14813_v19  ;;  %vm4075_vm2 = vcmp.eq.s32.totalorder %v14812_v43, %v4048_v30  ;;  %vm4155_vm1 = vcmp.eq.s32.totalorder %v14812_v43, %v4128_v6 }
 0x26f   : > { %9219 = vmatprep.mubr.msk.f32.mxu0 %vm4071_vm14, %v14813_v19  ;;  %9251 = vmatprep.mubr.msk.f32.mxu1 %vm4151_vm5, %v14813_v19  ;;  %vm4072_vm5 = vcmp.eq.s32.totalorder %v14810_v0, %v4047_v31  ;;  %vm4152_vm14 = vcmp.eq.s32.totalorder %v14810_v0, %v4127_v47 }
 0x272   : > { %9220 = vmatmul.mubr.msk.f32.gmra.mxu0 %vm4070_vm6, %v14813_v19  ;;  %9252 = vmatmul.mubr.msk.f32.gmra.mxu1 %vm4150_vm13, %v14813_v19  ;;  %vm4077_vm6 = vcmp.eq.s32.totalorder %v14812_v43, %v4049_v22  ;;  %vm4157_vm13 = vcmp.eq.s32.totalorder %v14812_v43, %v4129_v20 }
 0x273   : > { %9221 = vmatprep.mubr.msk.f32.mxu0 %vm4073_vm10, %v14813_v19  ;;  %9253 = vmatprep.mubr.msk.f32.mxu1 %vm4153_vm9, %v14813_v19  ;;  %vm4074_vm9 = vcmp.eq.s32.totalorder %v14810_v0, %v4048_v30  ;;  %vm4154_vm10 = vcmp.eq.s32.totalorder %v14810_v0, %v4128_v6 }
 0x276   : > { %9222 = vmatmul.mubr.msk.f32.gmra.mxu0 %vm4072_vm5, %v14813_v19  ;;  %9254 = vmatmul.mubr.msk.f32.gmra.mxu1 %vm4152_vm14, %v14813_v19  ;;  %vm4079_vm5 = vcmp.eq.s32.totalorder %v14812_v43, %v4050_v51  ;;  %vm4159_vm14 = vcmp.eq.s32.totalorder %v14812_v43, %v4130_v54 }
 0x277   : > { %9223 = vmatprep.mubr.msk.f32.mxu0 %vm4075_vm2, %v14813_v19  ;;  %9255 = vmatprep.mubr.msk.f32.mxu1 %vm4155_vm1, %v14813_v19  ;;  %vm4076_vm1 = vcmp.eq.s32.totalorder %v14810_v0, %v4049_v22  ;;  %vm4156_vm2 = vcmp.eq.s32.totalorder %v14810_v0, %v4129_v20 }
 0x27a   : > { %9224 = vmatmul.mubr.msk.f32.gmra.mxu0 %vm4074_vm9, %v14813_v19  ;;  %9256 = vmatmul.mubr.msk.f32.gmra.mxu1 %vm4154_vm10, %v14813_v19  ;;  %vm4078_vm9 = vcmp.eq.s32.totalorder %v14810_v0, %v4050_v51  ;;  %vm4158_vm10 = vcmp.eq.s32.totalorder %v14810_v0, %v4130_v54  ;;  %v13357_v51 = vld [vmem:[%s11701_s17 + $0x1] ss:$0 sm:$0xff] }
 0x27b   : > { %9225 = vmatprep.mubr.msk.f32.mxu0 %vm4077_vm6, %v14813_v19  ;;  %9257 = vmatprep.mubr.msk.f32.mxu1 %vm4157_vm13, %v14813_v19  ;;  %vm4081_vm6 = vcmp.eq.s32.totalorder %v14812_v43, %v4051_v36  ;;  %vm4161_vm13 = vcmp.eq.s32.totalorder %v14812_v43, %v4131_v29 }
 0x27e   : > { %9226 = vmatmul.mubr.msk.f32.gmra.mxu0 %vm4076_vm1, %v14813_v19  ;;  %9258 = vmatmul.mubr.msk.f32.gmra.mxu1 %vm4156_vm2, %v14813_v19  ;;  %vm4080_vm1 = vcmp.eq.s32.totalorder %v14810_v0, %v4051_v36  ;;  %vm4160_vm2 = vcmp.eq.s32.totalorder %v14810_v0, %v4131_v29 }
 0x27f   : > { %9227 = vmatprep.mubr.msk.f32.mxu0 %vm4079_vm5, %v14813_v19  ;;  %9259 = vmatprep.mubr.msk.f32.mxu1 %vm4159_vm14, %v14813_v19  ;;  %vm4083_vm5 = vcmp.eq.s32.totalorder %v14812_v43, %v4052_v55  ;;  %vm4163_vm14 = vcmp.eq.s32.totalorder %v14812_v43, %v4132_v7 }
 0x282   : > { %9228 = vmatmul.mubr.msk.f32.gmra.mxu0 %vm4078_vm9, %v14813_v19  ;;  %9260 = vmatmul.mubr.msk.f32.gmra.mxu1 %vm4158_vm10, %v14813_v19  ;;  %vm4082_vm9 = vcmp.eq.s32.totalorder %v14810_v0, %v4052_v55  ;;  %vm4162_vm10 = vcmp.eq.s32.totalorder %v14810_v0, %v4132_v7 }
 0x283   : > { %9229 = vmatprep.mubr.msk.f32.mxu0 %vm4081_vm6, %v14813_v19  ;;  %9261 = vmatprep.mubr.msk.f32.mxu1 %vm4161_vm13, %v14813_v19  ;;  %vm4085_vm6 = vcmp.eq.s32.totalorder %v14812_v43, %v4053_v16  ;;  %vm4165_vm13 = vcmp.eq.s32.totalorder %v14812_v43, %v4133_v58 }
 0x286   : > { %9230 = vmatmul.mubr.msk.f32.gmra.mxu0 %vm4080_vm1, %v14813_v19  ;;  %9262 = vmatmul.mubr.msk.f32.gmra.mxu1 %vm4160_vm2, %v14813_v19  ;;  %vm4084_vm1 = vcmp.eq.s32.totalorder %v14810_v0, %v4053_v16  ;;  %vm4164_vm2 = vcmp.eq.s32.totalorder %v14810_v0, %v4133_v58 }
 0x287   : > { %9231 = vmatprep.mubr.msk.f32.mxu0 %vm4083_vm5, %v14813_v19  ;;  %9263 = vmatprep.mubr.msk.f32.mxu1 %vm4163_vm14, %v14813_v19  ;;  %vm4504_vm5 = vcmask 122880   ;;  %vm4507_vm14 = vcmask 130048  }
 0x288   : > { %4505 = vst.msk [vmem:[#allocation2] sm:$0x1] %vm4504_vm5, %v14572_v38  ;;  %4506 = vst.msk [vmem:[#allocation2 + $0x81] sm:$0x1] %vm4504_vm5, %v14572_v38  ;;  %vm14821_vm5 = vcmp.eq.s32.totalorder %v14810_v0, %v13176_v41  ;;  %v6299_v41 = vld [vmem:[%s14816_s18 + $0x18] sm:$0xff] }
 0x28a   : > { %9232 = vmatmul.mubr.msk.f32.gmra.mxu0 %vm4082_vm9, %v14813_v19  ;;  %9264 = vmatmul.mubr.msk.f32.gmra.mxu1 %vm4162_vm10, %v14813_v19  ;;  %vm4916_vm9 = vcmask 253952   ;;  %vm4919_vm10 = vcmask 261120  }
 0x28b   : > { %9233 = vmatprep.mubr.msk.f32.mxu0 %vm4085_vm6, %v14813_v19  ;;  %9265 = vmatprep.mubr.msk.f32.mxu1 %vm4165_vm13, %v14813_v19  ;;  %4917 = vst.msk [vmem:[#allocation3] sm:$0x1] %vm4916_vm9, %v14572_v38  ;;  %4918 = vst.msk [vmem:[#allocation3 + $0x81] sm:$0x1] %vm4916_vm9, %v14572_v38  ;;  %vm14817_vm6 = vcmp.eq.s32.totalorder %v14810_v0, %v13128_v53  ;;  %vm14818_vm13 = vcmp.eq.s32.totalorder %v14810_v0, %v13150_v35  ;;  %v6303_v53 = vld [vmem:[%s14815_s11 + $0x38] sm:$0xff]  ;;  %v6302_v35 = vld [vmem:[%s14816_s18 + $0x30] sm:$0xff] }
 0x28c   : > { %vm14823_vm9 = vcmp.eq.s32.totalorder %v14810_v0, %v13200_v1  ;;  %v14826_v1 = vmov 0.0   ;;  %s14831_s11 = sld [smem:[#allocation21_spill]] }
 0x28d   : > { %v4092_v37 = vsel %vm4060_vm15, 1.0, %v14826_v1  ;;  %v4172_v46 = vsel %vm4140_vm0, 1.0, %v14826_v1 }
 0x28e   : > { %9234 = vmatmul.mubr.msk.f32.gmra.mxu0 %vm4084_vm1, %v14813_v19  ;;  %9266 = vmatmul.mubr.msk.f32.gmra.mxu1 %vm4164_vm2, %v14813_v19  ;;  %vm14819_vm1 = vcmp.eq.s32.totalorder %v14810_v0, %v13152_v18  ;;  %vm14820_vm2 = vcmp.eq.s32.totalorder %v14810_v0, %v13174_v48  ;;  %v6301_v18 = vld [vmem:[%s14816_s18 + $0x28] sm:$0xff]  ;;  %v6300_v48 = vld [vmem:[%s14816_s18 + $0x20] sm:$0xff] }
 0x312   : > { %v9754_v10 = vpop.f32.mrf.mxu0  ;;  %v9834_v17 = vpop.f32.mrf.mxu1 }
 0x314   : > { %v9755_v61 = vpop.f32.mrf.mxu0  ;;  %v9835_v5 = vpop.f32.mrf.mxu1 }
 0x315   : > { %v9756_v14 = vadd.f32 %v9755_v61, %v9754_v10  ;;  %v9836_v9 = vadd.f32 %v9835_v5, %v9834_v17 }
 0x316   : > { %v9757_v26 = vpop.f32.mrf.mxu0  ;;  %v9837_v49 = vpop.f32.mrf.mxu1 }
 0x317   : > { %v13343_v50 = vmax.f32 %v9756_v14, %v9836_v9 }
 0x318   : > { %v9758_v43 = vpop.f32.mrf.mxu0  ;;  %v9838_v11 = vpop.f32.mrf.mxu1 }
 0x319   : > { %4508 = vst.msk [vmem:[#allocation2 + $0x1] sm:$0xff] %vm4507_vm14, %v13343_v50  ;;  %v9759_v34 = vadd.f32 %v9758_v43, %v9757_v26  ;;  %v9839_v8 = vadd.f32 %v9838_v11, %v9837_v49  ;;  %v4587_v7 = vmul.f32 %v13357_v51, %v13343_v50  ;;  %v13376_v43 = vld [vmem:[%s11706_s21] ss:$0 sm:$0xff] }
 0x31a   : > { %v9760_v42 = vpop.f32.mrf.mxu0  ;;  %v9840_v52 = vpop.f32.mrf.mxu1 }
 0x31b   : > { %v13347_v27 = vmax.f32 %v9759_v34, %v9839_v8 }
 0x31c   : > { %v9761_v23 = vpop.f32.mrf.mxu0  ;;  %v9841_v63 = vpop.f32.mrf.mxu1 }
 0x31d   : > { %4509 = vst.msk [vmem:[#allocation2 + $0x9] sm:$0xff] %vm4507_vm14, %v13347_v27  ;;  %v9762_v31 = vadd.f32 %v9761_v23, %v9760_v42  ;;  %v9842_v62 = vadd.f32 %v9841_v63, %v9840_v52  ;;  %v4588_v11 = vmul.f32 %v13357_v51, %v13347_v27 }
 0x31e   : > { %v9763_v47 = vpop.f32.mrf.mxu0  ;;  %v9843_v30 = vpop.f32.mrf.mxu1 }
 0x31f   : > { %v13354_v6 = vmax.f32 %v9762_v31, %v9842_v62 }
 0x320   : > { %v4524_v22 = vld [vmem:[#allocation2] sm:$0xff]  ;;  %v9764_v40 = vpop.f32.mrf.mxu0  ;;  %v9844_v20 = vpop.f32.mrf.mxu1 }
 0x321   : > { %4510 = vst.msk [vmem:[#allocation2 + $0x11] sm:$0xff] %vm4507_vm14, %v13354_v6  ;;  %v9765_v25 = vadd.f32 %v9764_v40, %v9763_v47  ;;  %v9845_v54 = vadd.f32 %v9844_v20, %v9843_v30  ;;  %v4563_v36 = vmul.f32 %v13352_v13, %v4524_v22 }
 0x322   : > { %v9766_v33 = vpop.f32.mrf.mxu0  ;;  %v9846_v29 = vpop.f32.mrf.mxu1 }
 0x323   : > { %v13362_v55 = vmax.f32 %v9765_v25, %v9845_v54  ;;  %v4603_v61 = vadd.f32 %v4587_v7, %v4563_v36  ;;  %v4589_v54 = vmul.f32 %v13357_v51, %v13354_v6 }
 0x324   : > { %v4525_v16 = vld [vmem:[#allocation2 + $0x8] sm:$0xff]  ;;  %v9767_v58 = vpop.f32.mrf.mxu0  ;;  %v9847_v21 = vpop.f32.mrf.mxu1 }
 0x325   : > { %v4540_v60 = vld [vmem:[#allocation2 + $0x2] sm:$0xff]  ;;  %4511 = vst.msk [vmem:[#allocation2 + $0x19] sm:$0xff] %vm4507_vm14, %v13362_v55  ;;  %v9768_v10 = vadd.f32 %v9767_v58, %v9766_v33  ;;  %v9848_v17 = vadd.f32 %v9847_v21, %v9846_v29  ;;  %v4564_v5 = vmul.f32 %v13352_v13, %v4525_v16 }
 0x326   : > { %v9769_v14 = vpop.f32.mrf.mxu0  ;;  %v9849_v9 = vpop.f32.mrf.mxu1  ;;  %v4627_v26 = vmul.f32 %v13365_v3, %v4540_v60 }
 0x327   : > { %v13373_v49 = vmax.f32 %v9768_v10, %v9848_v17  ;;  %v4604_v62 = vadd.f32 %v4588_v11, %v4564_v5  ;;  %v4590_v11 = vmul.f32 %v13357_v51, %v13362_v55 }
 0x328   : > { %v4526_v34 = vld [vmem:[#allocation2 + $0x10] sm:$0xff]  ;;  %v9770_v8 = vpop.f32.mrf.mxu0  ;;  %v9850_v42 = vpop.f32.mrf.mxu1  ;;  %v4643_v52 = vadd.f32 %v4627_v26, %v4603_v61 }
 0x329   : > { %v4541_v23 = vld [vmem:[#allocation2 + $0xa] sm:$0xff]  ;;  %4512 = vst.msk [vmem:[#allocation2 + $0x21] sm:$0xff] %vm4507_vm14, %v13373_v49  ;;  %v9771_v63 = vadd.f32 %v9770_v8, %v9769_v14  ;;  %v9851_v31 = vadd.f32 %v9850_v42, %v9849_v9  ;;  %v4565_v47 = vmul.f32 %v13352_v13, %v4526_v34 }
 0x32a   : > { %v9772_v30 = vpop.f32.mrf.mxu0  ;;  %v9852_v22 = vpop.f32.mrf.mxu1  ;;  %v4666_v40 = vadd.f32 %v13376_v43, %v4643_v52  ;;  %v4628_v20 = vmul.f32 %v13365_v3, %v4541_v23 }
 0x32b   : > { %v13385_v25 = vmax.f32 %v9771_v63, %v9851_v31  ;;  %v4605_v10 = vadd.f32 %v4589_v54, %v4565_v47  ;;  %v5330_v47 = vld [vmem:[%s11741_s24] sm:$0xff] }
 0x32c   : > { %v4527_v36 = vld [vmem:[#allocation2 + $0x18] sm:$0xff]  ;;  %v9773_v33 = vpop.f32.mrf.mxu0  ;;  %v9853_v29 = vpop.f32.mrf.mxu1  ;;  %v4682_v7 = vmax.f32 %v4666_v40, 0.0  ;;  %v4644_v16 = vadd.f32 %v4628_v20, %v4604_v62 }
 0x32d   : > { %v4542_v58 = vld [vmem:[#allocation2 + $0x12] sm:$0xff]  ;;  %4513 = vst.msk [vmem:[#allocation2 + $0x29] sm:$0xff] %vm4507_vm14, %v13385_v25  ;;  %v9774_v21 = vadd.f32 %v9773_v33, %v9772_v30  ;;  %v9854_v60 = vadd.f32 %v9853_v29, %v9852_v22  ;;  %v4566_v17 = vmul.f32 %v13352_v13, %v4527_v36  ;;  %v4591_v29 = vmul.f32 %v13357_v51, %v13373_v49 }
 0x32e   : > { %v9775_v61 = vpop.f32.mrf.mxu0  ;;  %v9855_v5 = vpop.f32.mrf.mxu1  ;;  %10695 = vmatprep.mubr.msk.f32.mxu0 %vm4507_vm14, %v4682_v7  ;;  %v4667_v14 = vadd.f32 %v13376_v43, %v4644_v16  ;;  %v4629_v9 = vmul.f32 %v13365_v3, %v4542_v58 }
 0x32f   : > { %v13395_v26 = vmax.f32 %v9774_v21, %v9854_v60  ;;  %v4606_v30 = vadd.f32 %v4590_v11, %v4566_v17 }
 0x330   : > { %v4528_v34 = vld [vmem:[#allocation2 + $0x20] sm:$0xff]  ;;  %v9776_v8 = vpop.f32.mrf.mxu0  ;;  %v9856_v42 = vpop.f32.mrf.mxu1  ;;  %v4683_v52 = vmax.f32 %v4667_v14, 0.0  ;;  %v4645_v23 = vadd.f32 %v4629_v9, %v4605_v10 }
 0x331   : > { %v4543_v63 = vld [vmem:[#allocation2 + $0x1a] sm:$0xff]  ;;  %4514 = vst.msk [vmem:[#allocation2 + $0x31] sm:$0xff] %vm4507_vm14, %v13395_v26  ;;  %v9777_v31 = vadd.f32 %v9776_v8, %v9775_v61  ;;  %v9857_v62 = vadd.f32 %v9856_v42, %v9855_v5  ;;  %v4567_v22 = vmul.f32 %v13352_v13, %v4528_v34  ;;  %v4592_v42 = vmul.f32 %v13357_v51, %v13385_v25 }
 0x332   : > { %v9778_v40 = vpop.f32.mrf.mxu0  ;;  %v9858_v20 = vpop.f32.mrf.mxu1  ;;  %10696 = vmatmul.mubr.msk.f32.vlgmr.msra.gmra.mxu0 %vm4507_vm14, %v4683_v52  ;;  %v4668_v54 = vadd.f32 %v13376_v43, %v4645_v23  ;;  %v4630_v36 = vmul.f32 %v13365_v3, %v4543_v63 }
 0x333   : > { %v13406_v33 = vmax.f32 %v9777_v31, %v9857_v62  ;;  %10752 = vmatpush3.msra.mxu0 %v13340_v59  ;;  %v4607_v5 = vadd.f32 %v4591_v29, %v4567_v22 }
 0x334   : > { %v4529_v7 = vld [vmem:[#allocation2 + $0x28] sm:$0xff]  ;;  %v9779_v16 = vpop.f32.mrf.mxu0  ;;  %v9859_v58 = vpop.f32.mrf.mxu1  ;;  %v4684_v21 = vmax.f32 %v4668_v54, 0.0  ;;  %v4646_v60 = vadd.f32 %v4630_v36, %v4606_v30  ;;  %10753 = vmatprep.subr.mxu0 %v5330_v47 }
 0x335   : > { %v4544_v10 = vld [vmem:[#allocation2 + $0x22] sm:$0xff]  ;;  %4515 = vst.msk [vmem:[#allocation2 + $0x39] sm:$0xff] %vm4507_vm14, %v13406_v33  ;;  %v9780_v17 = vadd.f32 %v9779_v16, %v9778_v40  ;;  %v9860_v61 = vadd.f32 %v9859_v58, %v9858_v20  ;;  %10754 = vmatpush3.msra.mxu0 %v5330_v47  ;;  %v4568_v14 = vmul.f32 %v13352_v13, %v4529_v7 }
 0x336   : > { %v9781_v59 = vpop.f32.mrf.mxu0  ;;  %v9861_v9 = vpop.f32.mrf.mxu1  ;;  %10698 = vmatprep.mubr.msk.f32.mxu0 %vm4507_vm14, %v4684_v21  ;;  %v4669_v11 = vadd.f32 %v13376_v43, %v4646_v60  ;;  %v4631_v34 = vmul.f32 %v13365_v3, %v4544_v10  ;;  %v4593_v58 = vmul.f32 %v13357_v51, %v13395_v26 }
 0x337   : > { %v13417_v8 = vmax.f32 %v9780_v17, %v9860_v61  ;;  %v4608_v40 = vadd.f32 %v4592_v42, %v4568_v14 }
 0x338   : > { %v4530_v52 = vld [vmem:[#allocation2 + $0x30] sm:$0xff]  ;;  %v9782_v23 = vpop.f32.mrf.mxu0  ;;  %v9862_v63 = vpop.f32.mrf.mxu1  ;;  %v4685_v31 = vmax.f32 %v4669_v11, 0.0  ;;  %v4647_v62 = vadd.f32 %v4631_v34, %v4607_v5 }
 0x339   : > { %v4545_v47 = vld [vmem:[#allocation2 + $0x2a] sm:$0xff]  ;;  %4516 = vst.msk [vmem:[#allocation2 + $0x41] sm:$0xff] %vm4507_vm14, %v13417_v8  ;;  %v9783_v30 = vadd.f32 %v9782_v23, %v9781_v59  ;;  %v9863_v22 = vadd.f32 %v9862_v63, %v9861_v9  ;;  %v4569_v20 = vmul.f32 %v13352_v13, %v4530_v52 }
 0x33a   : > { %10699 = vmatmul.mubr.msk.f32.gmra.mxu0 %vm4507_vm14, %v4685_v31  ;;  %v9784_v54 = vpop.f32.mrf.mxu0  ;;  %v9864_v36 = vpop.f32.mrf.mxu1  ;;  %v4670_v29 = vadd.f32 %v13376_v43, %v4647_v62  ;;  %v4632_v7 = vmul.f32 %v13365_v3, %v4545_v47  ;;  %v4594_v31 = vmul.f32 %v13357_v51, %v13406_v33 }
 0x33b   : > { %v13427_v16 = vmax.f32 %v9783_v30, %v9863_v22  ;;  %v4609_v9 = vadd.f32 %v4593_v58, %v4569_v20 }
 0x33c   : > { %v4531_v21 = vld [vmem:[#allocation2 + $0x38] sm:$0xff]  ;;  %v9785_v60 = vpop.f32.mrf.mxu0  ;;  %v9865_v10 = vpop.f32.mrf.mxu1  ;;  %v4686_v17 = vmax.f32 %v4670_v29, 0.0  ;;  %v4648_v61 = vadd.f32 %v4632_v7, %v4608_v40 }
 0x33d   : > { %v4546_v5 = vld [vmem:[#allocation2 + $0x32] sm:$0xff]  ;;  %4517 = vst.msk [vmem:[#allocation2 + $0x49] sm:$0xff] %vm4507_vm14, %v13427_v16  ;;  %v9786_v14 = vadd.f32 %v9785_v60, %v9784_v54  ;;  %v9866_v59 = vadd.f32 %v9865_v10, %v9864_v36  ;;  %v4570_v11 = vmul.f32 %v13352_v13, %v4531_v21 }
 0x33e   : > { %v9787_v34 = vpop.f32.mrf.mxu0  ;;  %v9867_v42 = vpop.f32.mrf.mxu1  ;;  %10701 = vmatprep.mubr.msk.f32.mxu0 %vm4507_vm14, %v4686_v17  ;;  %v4671_v52 = vadd.f32 %v13376_v43, %v4648_v61  ;;  %v4633_v23 = vmul.f32 %v13365_v3, %v4546_v5  ;;  %v4595_v61 = vmul.f32 %v13357_v51, %v13417_v8 }
 0x33f   : > { %v13437_v63 = vmax.f32 %v9786_v14, %v9866_v59  ;;  %v4610_v29 = vadd.f32 %v4594_v31, %v4570_v11 }
 0x340   : > { %v4532_v62 = vld [vmem:[#allocation2 + $0x40] sm:$0xff]  ;;  %v9788_v47 = vpop.f32.mrf.mxu0  ;;  %v9868_v30 = vpop.f32.mrf.mxu1  ;;  %v4687_v22 = vmax.f32 %v4671_v52, 0.0  ;;  %v4649_v40 = vadd.f32 %v4633_v23, %v4609_v9 }
 0x341   : > { %v4547_v20 = vld [vmem:[#allocation2 + $0x3a] sm:$0xff]  ;;  %4518 = vst.msk [vmem:[#allocation2 + $0x51] sm:$0xff] %vm4507_vm14, %v13437_v63  ;;  %v9789_v54 = vadd.f32 %v9788_v47, %v9787_v34  ;;  %v9869_v36 = vadd.f32 %v9868_v30, %v9867_v42  ;;  %v4571_v7 = vmul.f32 %v13352_v13, %v4532_v62 }
 0x342   : > { %10702 = vmatmul.mubr.msk.f32.gmra.mxu0 %vm4507_vm14, %v4687_v22  ;;  %v9790_v58 = vpop.f32.mrf.mxu0  ;;  %v9870_v21 = vpop.f32.mrf.mxu1  ;;  %v4672_v60 = vadd.f32 %v13376_v43, %v4649_v40  ;;  %v4634_v10 = vmul.f32 %v13365_v3, %v4547_v20  ;;  %v4596_v20 = vmul.f32 %v13357_v51, %v13427_v16 }
 0x343   : > { %v13447_v17 = vmax.f32 %v9789_v54, %v9869_v36  ;;  %v4611_v23 = vadd.f32 %v4595_v61, %v4571_v7 }
 0x344   : > { %v4533_v5 = vld [vmem:[#allocation2 + $0x48] sm:$0xff]  ;;  %v9791_v14 = vpop.f32.mrf.mxu0  ;;  %v9871_v59 = vpop.f32.mrf.mxu1  ;;  %v4688_v9 = vmax.f32 %v4672_v60, 0.0  ;;  %v4650_v11 = vadd.f32 %v4634_v10, %v4610_v29 }
 0x345   : > { %v4548_v34 = vld [vmem:[#allocation2 + $0x42] sm:$0xff]  ;;  %4519 = vst.msk [vmem:[#allocation2 + $0x59] sm:$0xff] %vm4507_vm14, %v13447_v17  ;;  %v9792_v42 = vadd.f32 %v9791_v14, %v9790_v58  ;;  %v9872_v52 = vadd.f32 %v9871_v59, %v9870_v21  ;;  %v4572_v31 = vmul.f32 %v13352_v13, %v4533_v5 }
 0x346   : > { %v9793_v62 = vpop.f32.mrf.mxu0  ;;  %v9873_v47 = vpop.f32.mrf.mxu1  ;;  %10704 = vmatprep.mubr.msk.f32.mxu0 %vm4507_vm14, %v4688_v9  ;;  %v4673_v30 = vadd.f32 %v13376_v43, %v4650_v11  ;;  %v4635_v22 = vmul.f32 %v13365_v3, %v4548_v34 }
 0x347   : > { %v13457_v40 = vmax.f32 %v9792_v42, %v9872_v52  ;;  %v4612_v61 = vadd.f32 %v4596_v20, %v4572_v31  ;;  %v4597_v42 = vmul.f32 %v13357_v51, %v13437_v63 }
 0x348   : > { %v4534_v54 = vld [vmem:[#allocation2 + $0x50] sm:$0xff]  ;;  %v9794_v36 = vpop.f32.mrf.mxu0  ;;  %v9874_v29 = vpop.f32.mrf.mxu1  ;;  %v4689_v58 = vmax.f32 %v4673_v30, 0.0  ;;  %v4651_v7 = vadd.f32 %v4635_v22, %v4611_v23 }
 0x349   : > { %v4549_v21 = vld [vmem:[#allocation2 + $0x4a] sm:$0xff]  ;;  %4520 = vst.msk [vmem:[#allocation2 + $0x61] sm:$0xff] %vm4507_vm14, %v13457_v40  ;;  %v9795_v60 = vadd.f32 %v9794_v36, %v9793_v62  ;;  %v9875_v10 = vadd.f32 %v9874_v29, %v9873_v47  ;;  %v4573_v5 = vmul.f32 %v13352_v13, %v4534_v54 }
 0x34a   : > { %10705 = vmatmul.mubr.msk.f32.gmra.mxu0 %vm4507_vm14, %v4689_v58  ;;  %v9796_v14 = vpop.f32.mrf.mxu0  ;;  %v9876_v59 = vpop.f32.mrf.mxu1  ;;  %v4674_v9 = vadd.f32 %v13376_v43, %v4651_v7  ;;  %v4636_v11 = vmul.f32 %v13365_v3, %v4549_v21 }
 0x34b   : > { %v13467_v34 = vmax.f32 %v9795_v60, %v9875_v10  ;;  %v4613_v54 = vadd.f32 %v4597_v42, %v4573_v5  ;;  %v4598_v10 = vmul.f32 %v13357_v51, %v13447_v17 }
 0x34c   : > { %v4535_v52 = vld [vmem:[#allocation2 + $0x58] sm:$0xff]  ;;  %v9797_v23 = vpop.f32.mrf.mxu0  ;;  %v9877_v62 = vpop.f32.mrf.mxu1  ;;  %v4690_v47 = vmax.f32 %v4674_v9, 0.0  ;;  %v4652_v31 = vadd.f32 %v4636_v11, %v4612_v61 }
 0x34d   : > { %v4550_v30 = vld [vmem:[#allocation2 + $0x52] sm:$0xff]  ;;  %4521 = vst.msk [vmem:[#allocation2 + $0x69] sm:$0xff] %vm4507_vm14, %v13467_v34  ;;  %v9798_v22 = vadd.f32 %v9797_v23, %v9796_v14  ;;  %v9878_v20 = vadd.f32 %v9877_v62, %v9876_v59  ;;  %v4574_v36 = vmul.f32 %v13352_v13, %v4535_v52 }
 0x34e   : > { %v9799_v29 = vpop.f32.mrf.mxu0  ;;  %v9879_v58 = vpop.f32.mrf.mxu1  ;;  %10707 = vmatprep.mubr.msk.f32.mxu0 %vm4507_vm14, %v4690_v47  ;;  %v4675_v7 = vadd.f32 %v13376_v43, %v4652_v31  ;;  %v4637_v21 = vmul.f32 %v13365_v3, %v4550_v30  ;;  %v4599_v30 = vmul.f32 %v13357_v51, %v13457_v40 }
 0x34f   : > { %v13477_v60 = vmax.f32 %v9798_v22, %v9878_v20  ;;  %v4614_v62 = vadd.f32 %v4598_v10, %v4574_v36  ;;  %v4600_v10 = vmul.f32 %v13357_v51, %v13467_v34 }
 0x350   : > { %v4536_v61 = vld [vmem:[#allocation2 + $0x60] sm:$0xff]  ;;  %v9800_v9 = vpop.f32.mrf.mxu0  ;;  %v9880_v14 = vpop.f32.mrf.mxu1  ;;  %v4691_v59 = vmax.f32 %v4675_v7, 0.0  ;;  %v4653_v5 = vadd.f32 %v4637_v21, %v4613_v54 }
 0x351   : > { %v4551_v11 = vld [vmem:[#allocation2 + $0x5a] sm:$0xff]  ;;  %v4575_v42 = vmul.f32 %v13352_v13, %v4536_v61  ;;  %4522 = vst.msk [vmem:[#allocation2 + $0x71] sm:$0xff] %vm4507_vm14, %v13477_v60  ;;  %v9801_v52 = vadd.f32 %v9800_v9, %v9799_v29  ;;  %v9881_v23 = vadd.f32 %v9880_v14, %v9879_v58 }
 0x352   : > { %10708 = vmatmul.mubr.msk.f32.gmra.mxu0 %vm4507_vm14, %v4691_v59  ;;  %v4676_v47 = vadd.f32 %v13376_v43, %v4653_v5  ;;  %v4638_v31 = vmul.f32 %v13365_v3, %v4551_v11 }
 0x353   : > { %v13489_v22 = vmax.f32 %v9801_v52, %v9881_v23  ;;  %v4615_v61 = vadd.f32 %v4599_v30, %v4575_v42 }
 0x354   : > { %v4537_v20 = vld [vmem:[#allocation2 + $0x68] sm:$0xff]  ;;  %v4692_v54 = vmax.f32 %v4676_v47, 0.0  ;;  %v4654_v7 = vadd.f32 %v4638_v31, %v4614_v62  ;;  %v4601_v62 = vmul.f32 %v13357_v51, %v13477_v60 }
 0x355   : > { %v4552_v21 = vld [vmem:[#allocation2 + $0x62] sm:$0xff]  ;;  %v4576_v29 = vmul.f32 %v13352_v13, %v4537_v20  ;;  %4523 = vst.msk [vmem:[#allocation2 + $0x79] sm:$0xff] %vm4507_vm14, %v13489_v22 }
 0x356   : > { %v4639_v36 = vmul.f32 %v13365_v3, %v4552_v21  ;;  %10710 = vmatprep.mubr.msk.f32.mxu0 %vm4507_vm14, %v4692_v54  ;;  %v4677_v58 = vadd.f32 %v13376_v43, %v4654_v7  ;;  %v4602_v54 = vmul.f32 %v13357_v51, %v13489_v22 }
 0x357   : > { %v4616_v11 = vadd.f32 %v4600_v10, %v4576_v29 }
 0x358   : > { %v4655_v9 = vadd.f32 %v4639_v36, %v4615_v61  ;;  %v4538_v14 = vld [vmem:[#allocation2 + $0x70] sm:$0xff]  ;;  %v4693_v59 = vmax.f32 %v4677_v58, 0.0 }
 0x359   : > { %v4553_v5 = vld [vmem:[#allocation2 + $0x6a] sm:$0xff]  ;;  %v4577_v42 = vmul.f32 %v13352_v13, %v4538_v14 }
 0x35a   : > { %v4678_v52 = vadd.f32 %v13376_v43, %v4655_v9  ;;  %v4640_v23 = vmul.f32 %v13365_v3, %v4553_v5  ;;  %10711 = vmatmul.mubr.msk.f32.gmra.mxu0 %vm4507_vm14, %v4693_v59 }
 0x35b   : > { %v4617_v21 = vadd.f32 %v4601_v62, %v4577_v42  ;;  %v13576_v62 = vld [vmem:[%s14607_s3 + $0x2] ss:$0 sm:$0xff] }
 0x35c   : > { %v4694_v47 = vmax.f32 %v4678_v52, 0.0  ;;  %v4656_v31 = vadd.f32 %v4640_v23, %v4616_v11  ;;  %v4539_v30 = vld [vmem:[#allocation2 + $0x78] sm:$0xff] }
 0x35d   : > { %v4555_v20 = vld [vmem:[#allocation2 + $0x7a] sm:$0xff]  ;;  %v4554_v7 = vld [vmem:[#allocation2 + $0x72] sm:$0xff]  ;;  %v4578_v61 = vmul.f32 %v13352_v13, %v4539_v30 }
 0x35e   : > { %10713 = vmatprep.mubr.msk.f32.mxu0 %vm4507_vm14, %v4694_v47  ;;  %v4679_v29 = vadd.f32 %v13376_v43, %v4656_v31  ;;  %v4641_v36 = vmul.f32 %v13365_v3, %v4554_v7  ;;  %v4642_v10 = vmul.f32 %v13365_v3, %v4555_v20  ;;  %v13560_v3 = vld [vmem:[%s11716_s29] ss:$0 sm:$0xff] }
 0x35f   : > { %v4618_v58 = vadd.f32 %v4602_v54, %v4578_v61 }
 0x360   : > { %v4695_v9 = vmax.f32 %v4679_v29, 0.0  ;;  %v4657_v14 = vadd.f32 %v4641_v36, %v4617_v21  ;;  %v13586_v29 = vld [vmem:[%s14814_s8] ss:$0 sm:$0xff] }
 0x361   : > { %v4658_v59 = vadd.f32 %v4642_v10, %v4618_v58 }
 0x362   : > { %10714 = vmatmul.mubr.msk.f32.gmra.mxu0 %vm4507_vm14, %v4695_v9  ;;  %v4680_v51 = vadd.f32 %v13376_v43, %v4657_v14 }
 0x363   : > { %v4681_v11 = vadd.f32 %v13376_v43, %v4658_v59 }
 0x364   : > { %v4696_v5 = vmax.f32 %v4680_v51, 0.0 }
 0x365   : > { %v4697_v13 = vmax.f32 %v4681_v11, 0.0 }
 0x366   : > { %10716 = vmatprep.mubr.msk.f32.mxu0 %vm4507_vm14, %v4696_v5 }
 0x367   : > { %10717 = vmatmul.mubr.msk.f32.gmra.mxu0 %vm4507_vm14, %v4697_v13 }
 0x368   : > { %10755 = vmatprep.mubr.msk.f32.mxu0 %vm4507_vm14, %v13343_v50  ;;  %v5113_v50 = vld [vmem:[%s11731_s14 + $0x18] sm:$0xff] }
 0x369   : > { %10719 = vmatprep.subr.mxu1 %v5113_v50 }
 0x36a   : > { %10720 = vmatpush3.msra.mxu1 %v5113_v50 }
 0x36b   : > { %10756 = vmatmul.mubr.msk.f32.vlgmr.msra.gmra.mxu0 %vm4507_vm14, %v13347_v27  ;;  %v5112_v27 = vld [vmem:[%s11731_s14 + $0x10] sm:$0xff] }
 0x36c   : > { %10758 = vmatprep.mubr.msk.f32.mxu0 %vm4507_vm14, %v13354_v6  ;;  %10721 = vmatprep.subr.mxu1 %v5112_v27  ;;  %v5111_v6 = vld [vmem:[%s11731_s14 + $0x8] sm:$0xff] }
 0x36d   : > { %10722 = vmatpush3.msra.mxu1 %v5112_v27 }
 0x36e   : > { %10723 = vmatprep.subr.mxu1 %v5111_v6 }
 0x36f   : > { %10759 = vmatmul.mubr.msk.f32.gmra.mxu0 %vm4507_vm14, %v13362_v55  ;;  %10724 = vmatpush3.msra.mxu1 %v5111_v6  ;;  %v5110_v55 = vld [vmem:[%s11731_s14] sm:$0xff] }
 0x370   : > { %10761 = vmatprep.mubr.msk.f32.mxu0 %vm4507_vm14, %v13373_v49  ;;  %10725 = vmatprep.subr.mxu1 %v5110_v55 }
 0x371   : > { %10726 = vmatpush3.msra.mxu1 %v5110_v55 }
 0x373   : > { %10762 = vmatmul.mubr.msk.f32.gmra.mxu0 %vm4507_vm14, %v13385_v25 }
 0x374   : > { %10764 = vmatprep.mubr.msk.f32.mxu0 %vm4507_vm14, %v13395_v26 }
 0x377   : > { %10765 = vmatmul.mubr.msk.f32.gmra.mxu0 %vm4507_vm14, %v13406_v33 }
 0x378   : > { %10767 = vmatprep.mubr.msk.f32.mxu0 %vm4507_vm14, %v13417_v8 }
 0x37b   : > { %10768 = vmatmul.mubr.msk.f32.gmra.mxu0 %vm4507_vm14, %v13427_v16 }
 0x37c   : > { %10770 = vmatprep.mubr.msk.f32.mxu0 %vm4507_vm14, %v13437_v63 }
 0x37f   : > { %10771 = vmatmul.mubr.msk.f32.gmra.mxu0 %vm4507_vm14, %v13447_v17 }
 0x380   : > { %10773 = vmatprep.mubr.msk.f32.mxu0 %vm4507_vm14, %v13457_v40 }
 0x383   : > { %10774 = vmatmul.mubr.msk.f32.gmra.mxu0 %vm4507_vm14, %v13467_v34 }
 0x384   : > { %10776 = vmatprep.mubr.msk.f32.mxu0 %vm4507_vm14, %v13477_v60  ;;  %v13569_v60 = vld [vmem:[%s14607_s3] ss:$0 sm:$0xff] }
 0x387   : > { %10777 = vmatmul.mubr.msk.f32.gmra.mxu0 %vm4507_vm14, %v13489_v22  ;;  %v13572_v22 = vld [vmem:[%s14607_s3 + $0x1] ss:$0 sm:$0xff]  ;;  %vm14822_vm14 = vcmp.eq.s32.totalorder %v14810_v0, %v13198_v24  ;;  %v6297_v24 = vld [vmem:[%s14816_s18 + $0x8] sm:$0xff] }
 0x388   : > { %10855 = vmatprep.mubr.msk.f32.mxu0 %vm4134_vm3, %v14813_v19 }
 0x3f2   : > { %v10697_v49 = vpop.f32.mrf.mxu0 }
 0x3f3   : > { %v4827_v43 = vadd.f32 %v10697_v49, %v13560_v3 }
 0x3f4   : > { %v4821_v25 = vpop.f32.mrf.mxu0 }
 0x3f5   : > { %v4901_v26 = vmax.f32 %v4827_v43, 0.0  ;;  %v4822_v33 = vadd.f32 %v13560_v3, %v4821_v25 }
 0x3f7   : > { %4921 = vst.msk [vmem:[#allocation3 + $0x9] sm:$0xff] %vm4919_vm10, %v4901_v26  ;;  %v4900_v8 = vmax.f32 %v4822_v33, 0.0  ;;  %v5000_v51 = vmul.f32 %v13572_v22, %v4901_v26 }
 0x3f9   : > { %4920 = vst.msk [vmem:[#allocation3 + $0x1] sm:$0xff] %vm4919_vm10, %v4900_v8  ;;  %v4999_v31 = vmul.f32 %v13572_v22, %v4900_v8 }
 0x3fa   : > { %v10700_v16 = vpop.f32.mrf.mxu0 }
 0x3fb   : > { %v4837_v63 = vadd.f32 %v10700_v16, %v13560_v3 }
 0x3fc   : > { %v4831_v17 = vpop.f32.mrf.mxu0 }
 0x3fd   : > { %v4903_v40 = vmax.f32 %v4837_v63, 0.0  ;;  %v4832_v34 = vadd.f32 %v13560_v3, %v4831_v17 }
 0x3ff   : > { %4923 = vst.msk [vmem:[#allocation3 + $0x19] sm:$0xff] %vm4919_vm10, %v4903_v40  ;;  %v4902_v42 = vmax.f32 %v4832_v34, 0.0 }
 0x400   : > { %v4936_v52 = vld [vmem:[#allocation3] sm:$0xff]  ;;  %v4937_v21 = vld [vmem:[#allocation3 + $0x8] sm:$0xff] }
 0x401   : > { %v4952_v23 = vld [vmem:[#allocation3 + $0x2] sm:$0xff]  ;;  %v4975_v47 = vmul.f32 %v13569_v60, %v4936_v52  ;;  %4922 = vst.msk [vmem:[#allocation3 + $0x11] sm:$0xff] %vm4919_vm10, %v4902_v42  ;;  %v4976_v9 = vmul.f32 %v13569_v60, %v4937_v21  ;;  %v5001_v27 = vmul.f32 %v13572_v22, %v4902_v42 }
 0x402   : > { %v10703_v30 = vpop.f32.mrf.mxu0  ;;  %v5039_v54 = vmul.f32 %v13576_v62, %v4952_v23 }
 0x403   : > { %v5015_v20 = vadd.f32 %v4999_v31, %v4975_v47  ;;  %v13583_v7 = vadd.f32 %v10703_v30, %v13560_v3  ;;  %v5016_v49 = vadd.f32 %v5000_v51, %v4976_v9  ;;  %v5002_v30 = vmul.f32 %v13572_v22, %v4903_v40 }
 0x404   : > { %v4841_v61 = vpop.f32.mrf.mxu0 }
 0x405   : > { %v5055_v36 = vadd.f32 %v5039_v54, %v5015_v20  ;;  %v4905_v58 = vmax.f32 %v13583_v7, 0.0  ;;  %v4842_v10 = vadd.f32 %v13560_v3, %v4841_v61 }
 0x407   : > { %4925 = vst.msk [vmem:[#allocation3 + $0x29] sm:$0xff] %vm4919_vm10, %v4905_v58  ;;  %v4904_v14 = vmax.f32 %v4842_v10, 0.0  ;;  %v5078_v59 = vadd.f32 %v13586_v29, %v5055_v36 }
 0x408   : > { %v4938_v5 = vld [vmem:[#allocation3 + $0x10] sm:$0xff]  ;;  %v4939_v26 = vld [vmem:[#allocation3 + $0x18] sm:$0xff] }
 0x409   : > { %v4954_v11 = vld [vmem:[#allocation3 + $0x12] sm:$0xff]  ;;  %v4953_v13 = vld [vmem:[#allocation3 + $0xa] sm:$0xff]  ;;  %v4977_v50 = vmul.f32 %v13569_v60, %v4938_v5  ;;  %4924 = vst.msk [vmem:[#allocation3 + $0x21] sm:$0xff] %vm4919_vm10, %v4904_v14  ;;  %v5094_v6 = vmax.f32 %v5078_v59, 0.0  ;;  %v4978_v23 = vmul.f32 %v13569_v60, %v4939_v26  ;;  %v5003_v36 = vmul.f32 %v13572_v22, %v4904_v14 }
 0x40a   : > { %v10706_v55 = vpop.f32.mrf.mxu0  ;;  %v5040_v43 = vmul.f32 %v13576_v62, %v4953_v13  ;;  %v5041_v33 = vmul.f32 %v13576_v62, %v4954_v11  ;;  %v5004_v26 = vmul.f32 %v13572_v22, %v4905_v58 }
 0x40b   : > { %v5017_v25 = vadd.f32 %v5001_v27, %v4977_v50  ;;  %v13600_v8 = vadd.f32 %v10706_v55, %v13560_v3  ;;  %10727 = vmatprep.mubr.msk.f32.mxu1 %vm4919_vm10, %v5094_v6  ;;  %v5018_v59 = vadd.f32 %v5002_v30, %v4978_v23 }
 0x40c   : > { %v4851_v16 = vpop.f32.mrf.mxu0  ;;  %v5056_v63 = vadd.f32 %v5040_v43, %v5016_v49 }
 0x40d   : > { %v5057_v17 = vadd.f32 %v5041_v33, %v5017_v25  ;;  %v4907_v34 = vmax.f32 %v13600_v8, 0.0  ;;  %v4852_v42 = vadd.f32 %v13560_v3, %v4851_v16 }
 0x40e   : > { %v5079_v52 = vadd.f32 %v13586_v29, %v5056_v63 }
 0x40f   : > { %4927 = vst.msk [vmem:[#allocation3 + $0x39] sm:$0xff] %vm4919_vm10, %v4907_v34  ;;  %v4906_v47 = vmax.f32 %v4852_v42, 0.0  ;;  %v5080_v31 = vadd.f32 %v13586_v29, %v5057_v17 }
 0x410   : > { %v4940_v20 = vld [vmem:[#allocation3 + $0x20] sm:$0xff]  ;;  %v5095_v7 = vmax.f32 %v5079_v52, 0.0  ;;  %v4941_v13 = vld [vmem:[#allocation3 + $0x28] sm:$0xff] }
 0x411   : > { %v4956_v54 = vld [vmem:[#allocation3 + $0x22] sm:$0xff]  ;;  %v4955_v21 = vld [vmem:[#allocation3 + $0x1a] sm:$0xff]  ;;  %v4979_v61 = vmul.f32 %v13569_v60, %v4940_v20  ;;  %4926 = vst.msk [vmem:[#allocation3 + $0x31] sm:$0xff] %vm4919_vm10, %v4906_v47  ;;  %v5096_v10 = vmax.f32 %v5080_v31, 0.0  ;;  %v4980_v43 = vmul.f32 %v13569_v60, %v4941_v13  ;;  %v5005_v23 = vmul.f32 %v13572_v22, %v4906_v47 }
 0x412   : > { %10728 = vmatmul.mubr.msk.f32.vlgmr.msra.gmra.mxu1 %vm4919_vm10, %v5095_v7  ;;  %v10709_v9 = vpop.f32.mrf.mxu0  ;;  %v5042_v51 = vmul.f32 %v13576_v62, %v4955_v21  ;;  %v5043_v40 = vmul.f32 %v13576_v62, %v4956_v54  ;;  %v5006_v13 = vmul.f32 %v13572_v22, %v4907_v34 }
 0x413   : > { %v5019_v5 = vadd.f32 %v5003_v36, %v4979_v61  ;;  %v13619_v11 = vadd.f32 %v10709_v9, %v13560_v3  ;;  %10730 = vmatprep.mubr.msk.f32.mxu1 %vm4919_vm10, %v5096_v10  ;;  %v5020_v20 = vadd.f32 %v5004_v26, %v4980_v43 }
 0x414   : > { %v4861_v50 = vpop.f32.mrf.mxu0  ;;  %v5058_v14 = vadd.f32 %v5042_v51, %v5018_v59 }
 0x415   : > { %v5059_v27 = vadd.f32 %v5043_v40, %v5019_v5  ;;  %v4909_v6 = vmax.f32 %v13619_v11, 0.0  ;;  %v4862_v55 = vadd.f32 %v13560_v3, %v4861_v50 }
 0x416   : > { %v5081_v49 = vadd.f32 %v13586_v29, %v5058_v14 }
 0x417   : > { %4929 = vst.msk [vmem:[#allocation3 + $0x49] sm:$0xff] %vm4919_vm10, %v4909_v6  ;;  %v4908_v25 = vmax.f32 %v4862_v55, 0.0  ;;  %v5082_v33 = vadd.f32 %v13586_v29, %v5059_v27 }
 0x418   : > { %v4942_v16 = vld [vmem:[#allocation3 + $0x30] sm:$0xff]  ;;  %v5097_v17 = vmax.f32 %v5081_v49, 0.0  ;;  %v4943_v61 = vld [vmem:[#allocation3 + $0x38] sm:$0xff] }
 0x419   : > { %v4958_v63 = vld [vmem:[#allocation3 + $0x32] sm:$0xff]  ;;  %v4957_v42 = vld [vmem:[#allocation3 + $0x2a] sm:$0xff]  ;;  %v4981_v52 = vmul.f32 %v13569_v60, %v4942_v16  ;;  %4928 = vst.msk [vmem:[#allocation3 + $0x41] sm:$0xff] %vm4919_vm10, %v4908_v25  ;;  %v5098_v31 = vmax.f32 %v5082_v33, 0.0  ;;  %v4982_v5 = vmul.f32 %v13569_v60, %v4943_v61  ;;  %v5007_v43 = vmul.f32 %v13572_v22, %v4908_v25 }
 0x41a   : > { %10731 = vmatmul.mubr.msk.f32.gmra.mxu1 %vm4919_vm10, %v5097_v17  ;;  %v10712_v30 = vpop.f32.mrf.mxu0  ;;  %v5044_v54 = vmul.f32 %v13576_v62, %v4957_v42  ;;  %v5045_v58 = vmul.f32 %v13576_v62, %v4958_v63 }
 0x41b   : > { %v5021_v7 = vadd.f32 %v5005_v23, %v4981_v52  ;;  %v13636_v21 = vadd.f32 %v10712_v30, %v13560_v3  ;;  %10733 = vmatprep.mubr.msk.f32.mxu1 %vm4919_vm10, %v5098_v31  ;;  %v5022_v8 = vadd.f32 %v5006_v13, %v4982_v5 }
 0x41c   : > { %v4871_v36 = vpop.f32.mrf.mxu0  ;;  %v5060_v47 = vadd.f32 %v5044_v54, %v5020_v20 }
 0x41d   : > { %v5061_v10 = vadd.f32 %v5045_v58, %v5021_v7  ;;  %v4911_v9 = vmax.f32 %v13636_v21, 0.0  ;;  %v4872_v59 = vadd.f32 %v13560_v3, %v4871_v36  ;;  %v5008_v58 = vmul.f32 %v13572_v22, %v4909_v6 }
 0x41e   : > { %v5083_v51 = vadd.f32 %v13586_v29, %v5060_v47 }
 0x41f   : > { %4931 = vst.msk [vmem:[#allocation3 + $0x59] sm:$0xff] %vm4919_vm10, %v4911_v9  ;;  %v4910_v40 = vmax.f32 %v4872_v59, 0.0  ;;  %v5084_v11 = vadd.f32 %v13586_v29, %v5061_v10 }
 0x420   : > { %v4944_v50 = vld [vmem:[#allocation3 + $0x40] sm:$0xff]  ;;  %v5099_v27 = vmax.f32 %v5083_v51, 0.0  ;;  %v4945_v63 = vld [vmem:[#allocation3 + $0x48] sm:$0xff] }
 0x421   : > { %v4960_v14 = vld [vmem:[#allocation3 + $0x42] sm:$0xff]  ;;  %v4959_v55 = vld [vmem:[#allocation3 + $0x3a] sm:$0xff]  ;;  %v4983_v49 = vmul.f32 %v13569_v60, %v4944_v50  ;;  %4930 = vst.msk [vmem:[#allocation3 + $0x51] sm:$0xff] %vm4919_vm10, %v4910_v40  ;;  %v5100_v26 = vmax.f32 %v5084_v11, 0.0  ;;  %v4984_v20 = vmul.f32 %v13569_v60, %v4945_v63  ;;  %v5009_v10 = vmul.f32 %v13572_v22, %v4910_v40 }
 0x422   : > { %v10715_v33 = vpop.f32.mrf.mxu0  ;;  %10734 = vmatmul.mubr.msk.f32.gmra.mxu1 %vm4919_vm10, %v5099_v27  ;;  %v5046_v34 = vmul.f32 %v13576_v62, %v4959_v55  ;;  %v5047_v42 = vmul.f32 %v13576_v62, %v4960_v14  ;;  %v5010_v63 = vmul.f32 %v13572_v22, %v4911_v9 }
 0x423   : > { %v13653_v16 = vadd.f32 %v10715_v33, %v13560_v3  ;;  %v5023_v17 = vadd.f32 %v5007_v43, %v4983_v49  ;;  %10736 = vmatprep.mubr.msk.f32.mxu1 %vm4919_vm10, %v5100_v26  ;;  %v5024_v14 = vadd.f32 %v5008_v58, %v4984_v20 }
 0x424   : > { %v4881_v52 = vpop.f32.mrf.mxu0  ;;  %v5062_v31 = vadd.f32 %v5046_v34, %v5022_v8 }
 0x425   : > { %v4913_v25 = vmax.f32 %v13653_v16, 0.0  ;;  %v4882_v23 = vadd.f32 %v13560_v3, %v4881_v52  ;;  %v5063_v30 = vadd.f32 %v5047_v42, %v5023_v17 }
 0x426   : > { %v5085_v7 = vadd.f32 %v13586_v29, %v5062_v31 }
 0x427   : > { %4933 = vst.msk [vmem:[#allocation3 + $0x69] sm:$0xff] %vm4919_vm10, %v4913_v25  ;;  %v4912_v54 = vmax.f32 %v4882_v23, 0.0  ;;  %v10718_v21 = vpop.f32.mrf.mxu0  ;;  %v5086_v61 = vadd.f32 %v13586_v29, %v5063_v30 }
 0x428   : > { %v4946_v36 = vld [vmem:[#allocation3 + $0x50] sm:$0xff]  ;;  %v4897_v59 = vadd.f32 %v10718_v21, %v13560_v3  ;;  %v5101_v51 = vmax.f32 %v5085_v7, 0.0  ;;  %v4947_v27 = vld [vmem:[#allocation3 + $0x58] sm:$0xff] }
 0x429   : > { %v4962_v47 = vld [vmem:[#allocation3 + $0x52] sm:$0xff]  ;;  %4932 = vst.msk [vmem:[#allocation3 + $0x61] sm:$0xff] %vm4919_vm10, %v4912_v54  ;;  %v4961_v5 = vld [vmem:[#allocation3 + $0x4a] sm:$0xff]  ;;  %v4985_v11 = vmul.f32 %v13569_v60, %v4946_v36  ;;  %v4891_v13 = vpop.f32.mrf.mxu0  ;;  %v5102_v50 = vmax.f32 %v5086_v61, 0.0  ;;  %v4986_v16 = vmul.f32 %v13569_v60, %v4947_v27  ;;  %v5011_v30 = vmul.f32 %v13572_v22, %v4912_v54 }
 0x42a   : > { %v5048_v6 = vmul.f32 %v13576_v62, %v4961_v5  ;;  %v4915_v55 = vmax.f32 %v4897_v59, 0.0  ;;  %10737 = vmatmul.mubr.msk.f32.gmra.mxu1 %vm4919_vm10, %v5101_v51  ;;  %v4892_v49 = vadd.f32 %v13560_v3, %v4891_v13  ;;  %v5049_v43 = vmul.f32 %v13576_v62, %v4962_v47 }
 0x42b   : > { %v5025_v40 = vadd.f32 %v5009_v10, %v4985_v11  ;;  %10739 = vmatprep.mubr.msk.f32.mxu1 %vm4919_vm10, %v5102_v50  ;;  %v5026_v20 = vadd.f32 %v5010_v63, %v4986_v16  ;;  %v5012_v54 = vmul.f32 %v13572_v22, %v4913_v25 }
 0x42c   : > { %v5064_v33 = vadd.f32 %v5048_v6, %v5024_v14  ;;  %4935 = vst.msk [vmem:[#allocation3 + $0x79] sm:$0xff] %vm4919_vm10, %v4915_v55  ;;  %v4914_v26 = vmax.f32 %v4892_v49, 0.0  ;;  %v5014_v13 = vmul.f32 %v13572_v22, %v4915_v55 }
 0x42d   : > { %v5065_v8 = vadd.f32 %v5049_v43, %v5025_v40 }
 0x42e   : > { %v5087_v34 = vadd.f32 %v13586_v29, %v5064_v33  ;;  %4934 = vst.msk [vmem:[#allocation3 + $0x71] sm:$0xff] %vm4919_vm10, %v4914_v26  ;;  %v5013_v14 = vmul.f32 %v13572_v22, %v4914_v26 }
 0x42f   : > { %v5088_v52 = vadd.f32 %v13586_v29, %v5065_v8 }
 0x430   : > { %v4948_v17 = vld [vmem:[#allocation3 + $0x60] sm:$0xff]  ;;  %v5103_v42 = vmax.f32 %v5087_v34, 0.0  ;;  %v4949_v58 = vld [vmem:[#allocation3 + $0x68] sm:$0xff] }
 0x431   : > { %v4964_v3 = vld [vmem:[#allocation3 + $0x62] sm:$0xff]  ;;  %v4963_v23 = vld [vmem:[#allocation3 + $0x5a] sm:$0xff]  ;;  %v4987_v31 = vmul.f32 %v13569_v60, %v4948_v17  ;;  %v5104_v21 = vmax.f32 %v5088_v52, 0.0  ;;  %v4988_v47 = vmul.f32 %v13569_v60, %v4949_v58 }
 0x432   : > { %v5050_v7 = vmul.f32 %v13576_v62, %v4963_v23  ;;  %10740 = vmatmul.mubr.msk.f32.gmra.mxu1 %vm4919_vm10, %v5103_v42  ;;  %v5051_v61 = vmul.f32 %v13576_v62, %v4964_v3 }
 0x433   : > { %v5027_v9 = vadd.f32 %v5011_v30, %v4987_v31  ;;  %10742 = vmatprep.mubr.msk.f32.mxu1 %vm4919_vm10, %v5104_v21  ;;  %v4967_v49 = vld [vmem:[#allocation3 + $0x7a] sm:$0xff]  ;;  %v5028_v43 = vadd.f32 %v5012_v54, %v4988_v47 }
 0x434   : > { %v5066_v36 = vadd.f32 %v5050_v7, %v5026_v20  ;;  %v5054_v22 = vmul.f32 %v13576_v62, %v4967_v49 }
 0x435   : > { %v5067_v10 = vadd.f32 %v5051_v61, %v5027_v9  ;;  %v4950_v51 = vld [vmem:[#allocation3 + $0x70] sm:$0xff]  ;;  %v4951_v27 = vld [vmem:[#allocation3 + $0x78] sm:$0xff] }
 0x436   : > { %v5089_v59 = vadd.f32 %v13586_v29, %v5066_v36  ;;  %v4966_v5 = vld [vmem:[#allocation3 + $0x72] sm:$0xff]  ;;  %v4965_v11 = vld [vmem:[#allocation3 + $0x6a] sm:$0xff]  ;;  %v4989_v50 = vmul.f32 %v13569_v60, %v4950_v51  ;;  %v4990_v16 = vmul.f32 %v13569_v60, %v4951_v27 }
 0x437   : > { %v5090_v40 = vadd.f32 %v13586_v29, %v5067_v10  ;;  %v5052_v33 = vmul.f32 %v13576_v62, %v4965_v11  ;;  %v5053_v8 = vmul.f32 %v13576_v62, %v4966_v5  ;;  %v13709_v62 = vpop.f32.mrf.mxu0 }
 0x438   : > { %v5105_v6 = vmax.f32 %v5089_v59, 0.0  ;;  %v5029_v25 = vadd.f32 %v5013_v14, %v4989_v50  ;;  %v5030_v63 = vadd.f32 %v5014_v13, %v4990_v16 }
 0x439   : > { %v5106_v55 = vmax.f32 %v5090_v40, 0.0  ;;  %v5068_v34 = vadd.f32 %v5052_v33, %v5028_v43  ;;  %v13711_v30 = vpop.f32.mrf.mxu0 }
 0x43a   : > { %10743 = vmatmul.mubr.msk.f32.gmra.mxu1 %vm4919_vm10, %v5105_v6  ;;  %v5069_v26 = vadd.f32 %v5053_v8, %v5029_v25  ;;  %v5070_v3 = vadd.f32 %v5054_v22, %v5030_v63 }
 0x43b   : > { %10745 = vmatprep.mubr.msk.f32.mxu1 %vm4919_vm10, %v5106_v55  ;;  %v5091_v17 = vadd.f32 %v13586_v29, %v5068_v34  ;;  %v13713_v20 = vpop.f32.mrf.mxu0  ;;  %v13742_v55 = vld [vmem:[%s11736_s19] ss:$0 sm:$0xff] }
 0x43c   : > { %v5092_v42 = vadd.f32 %v13586_v29, %v5069_v26  ;;  %v5093_v60 = vadd.f32 %v13586_v29, %v5070_v3 }
 0x43d   : > { %v5107_v52 = vmax.f32 %v5091_v17, 0.0  ;;  %v13715_v29 = vpop.f32.mrf.mxu0  ;;  %v13747_v17 = vld [vmem:[%s11746_s30] ss:$0 sm:$0xff] }
 0x43e   : > { %v5108_v23 = vmax.f32 %v5092_v42, 0.0  ;;  %v5109_v31 = vmax.f32 %v5093_v60, 0.0 }
 0x43f   : > { %10746 = vmatmul.mubr.msk.f32.gmra.mxu1 %vm4919_vm10, %v5107_v52  ;;  %v13717_v7 = vpop.f32.mrf.mxu0 }
 0x440   : > { %10748 = vmatprep.mubr.msk.f32.mxu1 %vm4919_vm10, %v5108_v23 }
 0x441   : > { %v13721_v21 = vpop.f32.mrf.mxu0 }
 0x443   : > { %10749 = vmatmul.mubr.msk.f32.gmra.mxu1 %vm4919_vm10, %v5109_v31  ;;  %v13725_v61 = vpop.f32.mrf.mxu0  ;;  %vm14824_vm10 = vcmp.eq.s32.totalorder %v14810_v0, %v13222_v12  ;;  %v6296_v12 = vld [vmem:[%s14816_s18] sm:$0xff] }
 0x444   : > { %10811 = vmatprep.mubr.msk.f32.mxu1 %vm4054_vm4, %v14813_v19 }
 0x445   : > { %v13729_v47 = vpop.f32.mrf.mxu0 }
 0x447   : > { %v13735_v54 = vpop.f32.mrf.mxu0 }
 0x449   : > { %v13739_v5 = vpop.f32.mrf.mxu0 }
 0x44b   : > { %v10772_v13 = vpop.f32.mrf.mxu0 }
 0x44d   : > { %v5503_v6 = vpop.f32.mrf.mxu0 }
 0x44f   : > { %v10775_v49 = vpop.f32.mrf.mxu0 }
 0x451   : > { %v5513_v43 = vpop.f32.mrf.mxu0 }
 0x453   : > { %v10778_v25 = vpop.f32.mrf.mxu0 }
 0x454   : > { %v5529_v42 = vadd.f32 %v10778_v25, %v13747_v17  ;;  %v5514_v25 = vadd.f32 %v13747_v17, %v5513_v43 }
 0x455   : > { %v5523_v63 = vpop.f32.mrf.mxu0 }
 0x456   : > { %v5524_v31 = vadd.f32 %v13747_v17, %v5523_v63 }
 0x4d2   : > { %v13719_v58 = vpop.f32.mrf.mxu1 }
 0x4d4   : > { %v13723_v9 = vpop.f32.mrf.mxu1 }
 0x4da   : > { %v13727_v36 = vpop.f32.mrf.mxu1 }
 0x4dc   : > { %v13731_v10 = vpop.f32.mrf.mxu1 }
 0x4e2   : > { %v13733_v59 = vpop.f32.mrf.mxu1 }
 0x4e4   : > { %v13737_v51 = vpop.f32.mrf.mxu1 }
 0x4ea   : > { %v10738_v11 = vpop.f32.mrf.mxu1 }
 0x4ec   : > { %v5265_v50 = vpop.f32.mrf.mxu1 }
 0x4f2   : > { %v10741_v14 = vpop.f32.mrf.mxu1 }
 0x4f4   : > { %v5275_v27 = vpop.f32.mrf.mxu1 }
 0x4fa   : > { %v10744_v40 = vpop.f32.mrf.mxu1 }
 0x4fb   : > { %v5291_v38 = vadd.f32 %v10744_v40, %v13742_v55  ;;  %v5276_v40 = vadd.f32 %v13742_v55, %v5275_v27 }
 0x4fc   : > { %v5285_v33 = vpop.f32.mrf.mxu1 }
 0x4fd   : > { %v5325_v63 = vmax.f32 %v5291_v38, 0.0 }
 0x4ff   : > { %v10747_v16 = vpop.f32.mrf.mxu1 }
 0x500   : > { %v5301_v22 = vadd.f32 %v10747_v16, %v13742_v55  ;;  %v5519_v16 = vadd.f32 %v10775_v49, %v13747_v17  ;;  %v5509_v49 = vadd.f32 %v10772_v13, %v13747_v17  ;;  %v5266_v13 = vadd.f32 %v13742_v55, %v5265_v50 }
 0x501   : > { %v5295_v8 = vpop.f32.mrf.mxu1  ;;  %v5256_v50 = vadd.f32 %v13742_v55, %v13737_v51  ;;  %v5246_v51 = vadd.f32 %v13742_v55, %v13731_v10  ;;  %v5236_v10 = vadd.f32 %v13742_v55, %v13723_v9 }
 0x502   : > { %v5296_v52 = vadd.f32 %v13742_v55, %v5295_v8  ;;  %v5327_v57 = vmax.f32 %v5301_v22, 0.0  ;;  %v5281_v8 = vadd.f32 %v10741_v14, %v13742_v55  ;;  %v5271_v14 = vadd.f32 %v10738_v11, %v13742_v55 }
 0x503   : > { %v10750_v34 = vpop.f32.mrf.mxu1  ;;  %v5494_v11 = vadd.f32 %v13747_v17, %v13739_v5  ;;  %v5251_v5 = vadd.f32 %v13727_v36, %v13742_v55  ;;  %v5474_v36 = vadd.f32 %v13747_v17, %v13721_v21 }
 0x504   : > { %v5311_v26 = vadd.f32 %v10750_v34, %v13742_v55  ;;  %v5286_v34 = vadd.f32 %v13742_v55, %v5285_v33  ;;  %v5326_v15 = vmax.f32 %v5296_v52, 0.0  ;;  %v5323_v38 = vmax.f32 %v5281_v8, 0.0 }
 0x505   : > { %v5305_v3 = vpop.f32.mrf.mxu1  ;;  %v5321_v43 = vmax.f32 %v5271_v14, 0.0  ;;  %v5880_v14 = vld [vmem:[%s14825_s26] sm:$0xff] }
 0x506   : > { %v5329_v60 = vmax.f32 %v5311_v26, 0.0  ;;  %v5306_v23 = vadd.f32 %v13742_v55, %v5305_v3  ;;  %v5545_v26 = vadd.f32 %v5519_v16, %v5327_v57  ;;  %v5324_v33 = vmax.f32 %v5286_v34, 0.0 }
 0x507   : > { %v5543_v57 = vadd.f32 %v5509_v49, %v5325_v63  ;;  %v5320_v3 = vmax.f32 %v5266_v13, 0.0  ;;  %v5317_v16 = vmax.f32 %v5251_v5, 0.0  ;;  %v13881_v5 = vld [vmem:[%s14827_s2] ss:$0 sm:$0xff] }
 0x508   : > { %v5547_v28 = vadd.f32 %v5529_v42, %v5329_v60  ;;  %v5328_v56 = vmax.f32 %v5306_v23, 0.0  ;;  %v5318_v23 = vmax.f32 %v5256_v50, 0.0 }
 0x50a   : > { %v5546_v32 = vadd.f32 %v5524_v31, %v5328_v56  ;;  %10779 = vmatprep.subr.mxu1 %v5547_v28  ;;  %10823 = vmatprep.subr.mxu0 %v5547_v28  ;;  %v5544_v56 = vadd.f32 %v5514_v25, %v5326_v15  ;;  %v5322_v15 = vmax.f32 %v5276_v40, 0.0  ;;  %v5316_v25 = vmax.f32 %v5246_v51, 0.0  ;;  %v5884_v40 = vld [vmem:[%s14825_s26 + $0x20] sm:$0xff] }
 0x50b   : > { %10780 = vmatpush3.msra.mxu1 %v5547_v28  ;;  %10824 = vmatpush3.msra.mxu0 %v5547_v28  ;;  %v5504_v28 = vadd.f32 %v13747_v17, %v5503_v6  ;;  %v5261_v6 = vadd.f32 %v13733_v59, %v13742_v55  ;;  %v5484_v59 = vadd.f32 %v13747_v17, %v13729_v47  ;;  %v13888_v51 = vld [vmem:[%s14827_s2 + $0x2] ss:$0 sm:$0xff] }
 0x50c   : > { %10781 = vmatprep.subr.mxu1 %v5546_v32  ;;  %10825 = vmatprep.subr.mxu0 %v5546_v32  ;;  %v5540_v42 = vadd.f32 %v5494_v11, %v5322_v15  ;;  %v5241_v47 = vadd.f32 %v13719_v58, %v13742_v55  ;;  %v5536_v8 = vadd.f32 %v5474_v36, %v5318_v23 }
 0x50d   : > { %10782 = vmatpush3.msra.mxu1 %v5546_v32  ;;  %10826 = vmatpush3.msra.mxu0 %v5546_v32  ;;  %v5499_v32 = vadd.f32 %v13735_v54, %v13747_v17  ;;  %v5542_v27 = vadd.f32 %v5504_v28, %v5324_v33  ;;  %v5489_v54 = vadd.f32 %v13725_v61, %v13747_v17  ;;  %v5319_v52 = vmax.f32 %v5261_v6, 0.0  ;;  %v5883_v33 = vld [vmem:[%s14825_s26 + $0x18] sm:$0xff]  ;;  %v5881_v28 = vld [vmem:[%s14825_s26 + $0x8] sm:$0xff] }
 0x50e   : > { %10783 = vmatprep.subr.mxu1 %v5545_v26  ;;  %10827 = vmatprep.subr.mxu0 %v5545_v26  ;;  %v5479_v61 = vadd.f32 %v13717_v7, %v13747_v17  ;;  %v5538_v31 = vadd.f32 %v5484_v59, %v5320_v3  ;;  %v5469_v7 = vadd.f32 %v13713_v20, %v13747_v17  ;;  %v5315_v21 = vmax.f32 %v5241_v47, 0.0 }
 0x50f   : > { %10784 = vmatpush3.msra.mxu1 %v5545_v26  ;;  %10828 = vmatpush3.msra.mxu0 %v5545_v26  ;;  %v5541_v22 = vadd.f32 %v5499_v32, %v5323_v38  ;;  %v5539_v60 = vadd.f32 %v5489_v54, %v5321_v43  ;;  %v5464_v58 = vadd.f32 %v13747_v17, %v13715_v29  ;;  %v5314_v26 = vmax.f32 %v5236_v10, 0.0 }
 0x510   : > { %10785 = vmatprep.subr.mxu1 %v5544_v56  ;;  %10829 = vmatprep.subr.mxu0 %v5544_v56  ;;  %v5537_v34 = vadd.f32 %v5479_v61, %v5319_v52  ;;  %v5535_v63 = vadd.f32 %v5469_v7, %v5317_v16  ;;  %v5459_v20 = vadd.f32 %v13709_v62, %v13747_v17  ;;  %v5887_v62 = vld [vmem:[%s14825_s26 + $0x38] sm:$0xff]  ;;  %v13885_v61 = vld [vmem:[%s14827_s2 + $0x1] ss:$0 sm:$0xff]  ;;  %s9455_s2 = sshll.u32 %s11854_s0, 4 }
 0x511   : > { %10786 = vmatpush3.msra.mxu1 %v5544_v56  ;;  %10830 = vmatpush3.msra.mxu0 %v5544_v56  ;;  %v5534_v9 = vadd.f32 %v5464_v58, %v5316_v25  ;;  %v5454_v55 = vadd.f32 %v13747_v17, %v13711_v30  ;;  %v5886_v30 = vld [vmem:[%s14825_s26 + $0x30] sm:$0xff]  ;;  %v5885_v17 = vld [vmem:[%s14825_s26 + $0x28] sm:$0xff] }
 0x512   : > { %10787 = vmatprep.subr.mxu1 %v5543_v57  ;;  %10831 = vmatprep.subr.mxu0 %v5543_v57  ;;  %v5533_v49 = vadd.f32 %v5459_v20, %v5315_v21  ;;  %v5882_v56 = vld [vmem:[%s14825_s26 + $0x10] sm:$0xff] }
 0x513   : > { %10788 = vmatpush3.msra.mxu1 %v5543_v57  ;;  %10832 = vmatpush3.msra.mxu0 %v5543_v57  ;;  %v5532_v29 = vadd.f32 %v5454_v55, %v5314_v26 }
 0x514   : > { %10789 = vmatprep.subr.mxu1 %v5542_v27  ;;  %10833 = vmatprep.subr.mxu0 %v5542_v27 }
 0x515   : > { %10790 = vmatpush3.msra.mxu1 %v5542_v27  ;;  %10834 = vmatpush3.msra.mxu0 %v5542_v27 }
 0x516   : > { %10791 = vmatprep.subr.mxu1 %v5541_v22  ;;  %10835 = vmatprep.subr.mxu0 %v5541_v22 }
 0x517   : > { %10792 = vmatpush3.msra.mxu1 %v5541_v22  ;;  %10836 = vmatpush3.msra.mxu0 %v5541_v22 }
 0x518   : > { %10793 = vmatprep.subr.mxu1 %v5540_v42  ;;  %10837 = vmatprep.subr.mxu0 %v5540_v42 }
 0x519   : > { %10794 = vmatpush3.msra.mxu1 %v5540_v42  ;;  %10838 = vmatpush3.msra.mxu0 %v5540_v42 }
 0x51a   : > { %10795 = vmatprep.subr.mxu1 %v5539_v60  ;;  %10839 = vmatprep.subr.mxu0 %v5539_v60 }
 0x51b   : > { %10796 = vmatpush3.msra.mxu1 %v5539_v60  ;;  %10840 = vmatpush3.msra.mxu0 %v5539_v60 }
 0x51c   : > { %10797 = vmatprep.subr.mxu1 %v5538_v31  ;;  %10841 = vmatprep.subr.mxu0 %v5538_v31 }
 0x51d   : > { %10798 = vmatpush3.msra.mxu1 %v5538_v31  ;;  %10842 = vmatpush3.msra.mxu0 %v5538_v31 }
 0x51e   : > { %10799 = vmatprep.subr.mxu1 %v5537_v34  ;;  %10843 = vmatprep.subr.mxu0 %v5537_v34 }
 0x51f   : > { %10800 = vmatpush3.msra.mxu1 %v5537_v34  ;;  %10844 = vmatpush3.msra.mxu0 %v5537_v34 }
 0x520   : > { %10801 = vmatprep.subr.mxu1 %v5536_v8  ;;  %10845 = vmatprep.subr.mxu0 %v5536_v8 }
 0x521   : > { %10802 = vmatpush3.msra.mxu1 %v5536_v8  ;;  %10846 = vmatpush3.msra.mxu0 %v5536_v8 }
 0x522   : > { %10803 = vmatprep.subr.mxu1 %v5535_v63  ;;  %10847 = vmatprep.subr.mxu0 %v5535_v63 }
 0x523   : > { %10804 = vmatpush3.msra.mxu1 %v5535_v63  ;;  %10848 = vmatpush3.msra.mxu0 %v5535_v63 }
 0x524   : > { %10805 = vmatprep.subr.mxu1 %v5534_v9  ;;  %10849 = vmatprep.subr.mxu0 %v5534_v9 }
 0x525   : > { %10806 = vmatpush3.msra.mxu1 %v5534_v9  ;;  %10850 = vmatpush3.msra.mxu0 %v5534_v9  ;;  %v13904_v9 = vld [vmem:[%s14828_s16] ss:$0 sm:$0xff]  ;;  %s14832_s16 = smov %s14831_s11 }
 0x526   : > { %10807 = vmatprep.subr.mxu1 %v5533_v49  ;;  %10851 = vmatprep.subr.mxu0 %v5533_v49 }
 0x527   : > { %10808 = vmatpush3.msra.mxu1 %v5533_v49  ;;  %10852 = vmatpush3.msra.mxu0 %v5533_v49 }
 0x528   : > { %10809 = vmatprep.subr.mxu1 %v5532_v29  ;;  %10853 = vmatprep.subr.mxu0 %v5532_v29 }
 0x529   : > { %10810 = vmatpush3.msra.mxu1 %v5532_v29  ;;  %10854 = vmatpush3.msra.mxu0 %v5532_v29 }
 0x52a   : > { %10812 = vmatmul.mubr.msk.f32.vlgmr.msra.gmra.mxu1 %vm4056_vm7, %v14813_v19  ;;  %10856 = vmatmul.mubr.msk.f32.vlgmr.msra.gmra.mxu0 %vm4136_vm8, %v14813_v19 }
 0x52b   : > { %10814 = vmatprep.mubr.msk.f32.mxu1 %vm4058_vm11, %v14813_v19  ;;  %10858 = vmatprep.mubr.msk.f32.mxu0 %vm4138_vm12, %v14813_v19 }
 0x52c   : > { %10923 = vmatprep.subr.mxu0 %v6303_v53  ;;  %10867 = vmatprep.subr.mxu1 %v5887_v62 }
 0x52d   : > { %10924 = vmatpush3.msra.mxu0 %v6303_v53  ;;  %10868 = vmatpush3.msra.mxu1 %v5887_v62 }
 0x52e   : > { %10815 = vmatmul.mubr.msk.f32.gmra.mxu1 %vm4060_vm15, %v14813_v19  ;;  %10859 = vmatmul.mubr.msk.f32.gmra.mxu0 %vm4140_vm0, %v14813_v19 }
 0x52f   : > { %10817 = vmatprep.mubr.msk.f32.mxu1 %vm14817_vm6, %v14813_v19  ;;  %10861 = vmatprep.mubr.msk.f32.mxu0 %vm14818_vm13, %v14813_v19  ;;  %vm5766_vm6 = vcmask 516096   ;;  %vm5769_vm13 = vcmask 523264  }
 0x530   : > { %10925 = vmatprep.subr.mxu0 %v6302_v35  ;;  %5767 = vst.msk [vmem:[#allocation4] sm:$0x1] %vm5766_vm6, %v14826_v1  ;;  %5768 = vst.msk [vmem:[#allocation4 + $0x41] sm:$0x1] %vm5766_vm6, %v14826_v1  ;;  %10869 = vmatprep.subr.mxu1 %v5886_v30 }
 0x531   : > { %10926 = vmatpush3.msra.mxu0 %v6302_v35  ;;  %10870 = vmatpush3.msra.mxu1 %v5886_v30 }
 0x532   : > { %10818 = vmatmul.mubr.msk.f32.gmra.mxu1 %vm14819_vm1, %v14813_v19  ;;  %10862 = vmatmul.mubr.msk.f32.gmra.mxu0 %vm14820_vm2, %v14813_v19 }
 0x533   : > { %10820 = vmatprep.mubr.msk.f32.mxu1 %vm14821_vm5, %v14813_v19  ;;  %10864 = vmatprep.mubr.msk.f32.mxu0 %vm14822_vm14, %v14813_v19 }
 0x534   : > { %10927 = vmatprep.subr.mxu0 %v6301_v18  ;;  %10871 = vmatprep.subr.mxu1 %v5885_v17 }
 0x535   : > { %10928 = vmatpush3.msra.mxu0 %v6301_v18  ;;  %10872 = vmatpush3.msra.mxu1 %v5885_v17 }
 0x536   : > { %10821 = vmatmul.mubr.msk.f32.gmra.mxu1 %vm14823_vm9, %v14813_v19  ;;  %10865 = vmatmul.mubr.msk.f32.gmra.mxu0 %vm14824_vm10, %v14813_v19  ;;  %v6298_v19 = vld [vmem:[%s14816_s18 + $0x10] sm:$0xff] }
 0x537   : > { %10929 = vmatprep.subr.mxu0 %v6300_v48  ;;  %10873 = vmatprep.subr.mxu1 %v5884_v40 }
 0x538   : > { %10930 = vmatpush3.msra.mxu0 %v6300_v48  ;;  %10874 = vmatpush3.msra.mxu1 %v5884_v40 }
 0x539   : > { %10931 = vmatprep.subr.mxu0 %v6299_v41  ;;  %10875 = vmatprep.subr.mxu1 %v5883_v33 }
 0x53a   : > { %10932 = vmatpush3.msra.mxu0 %v6299_v41  ;;  %10876 = vmatpush3.msra.mxu1 %v5883_v33 }
 0x53b   : > { %10933 = vmatprep.subr.mxu0 %v6298_v19  ;;  %10877 = vmatprep.subr.mxu1 %v5882_v56 }
 0x53c   : > { %10934 = vmatpush3.msra.mxu0 %v6298_v19  ;;  %10878 = vmatpush3.msra.mxu1 %v5882_v56 }
 0x53d   : > { %10935 = vmatprep.subr.mxu0 %v6297_v24  ;;  %10879 = vmatprep.subr.mxu1 %v5881_v28 }
 0x53e   : > { %10936 = vmatpush3.msra.mxu0 %v6297_v24  ;;  %10880 = vmatpush3.msra.mxu1 %v5881_v28 }
 0x53f   : > { %10937 = vmatprep.subr.mxu0 %v6296_v12  ;;  %10881 = vmatprep.subr.mxu1 %v5880_v14 }
 0x540   : > { %10938 = vmatpush3.msra.mxu0 %v6296_v12  ;;  %10882 = vmatpush3.msra.mxu1 %v5880_v14 }
 0x5ea   : > { %v10813_v38 = vpop.f32.mrf.mxu1  ;;  %v10857_v57 = vpop.f32.mrf.mxu0 }
 0x5eb   : > { %v5759_v32 = vmax.f32 %v10813_v38, %v10857_v57 }
 0x5ec   : > { %v5614_v13 = vpop.f32.mrf.mxu1  ;;  %v5719_v15 = vpop.f32.mrf.mxu0 }
 0x5ed   : > { %5771 = vst.msk [vmem:[#allocation4 + $0x9] sm:$0xff] %vm5769_vm13, %v5759_v32  ;;  %v5758_v27 = vmax.f32 %v5614_v13, %v5719_v15  ;;  %v5818_v55 = vmul.f32 %v13885_v61, %v5759_v32 }
 0x5ee   : > { %v10816_v11 = vpop.f32.mrf.mxu1  ;;  %v10860_v6 = vpop.f32.mrf.mxu0 }
 0x5ef   : > { %5770 = vst.msk [vmem:[#allocation4 + $0x1] sm:$0xff] %vm5769_vm13, %v5758_v27  ;;  %v5761_v43 = vmax.f32 %v10816_v11, %v10860_v6  ;;  %10939 = vmatprep.mubr.msk.f32.mxu0 %vm5769_vm13, %v5758_v27  ;;  %v5817_v10 = vmul.f32 %v13885_v61, %v5758_v27 }
 0x5f0   : > { %v5624_v22 = vpop.f32.mrf.mxu1  ;;  %v5729_v54 = vpop.f32.mrf.mxu0  ;;  %10940 = vmatmul.mubr.msk.f32.vlgmr.msra.gmra.mxu0 %vm5769_vm13, %v5759_v32 }
 0x5f1   : > { %5773 = vst.msk [vmem:[#allocation4 + $0x19] sm:$0xff] %vm5769_vm13, %v5761_v43  ;;  %v5760_v50 = vmax.f32 %v5624_v22, %v5729_v54  ;;  %v5820_v40 = vmul.f32 %v13885_v61, %v5761_v43 }
 0x5f2   : > { %v10819_v3 = vpop.f32.mrf.mxu1  ;;  %v10863_v42 = vpop.f32.mrf.mxu0 }
 0x5f3   : > { %5772 = vst.msk [vmem:[#allocation4 + $0x11] sm:$0xff] %vm5769_vm13, %v5760_v50  ;;  %v13877_v59 = vmax.f32 %v10819_v3, %v10863_v42  ;;  %10942 = vmatprep.mubr.msk.f32.mxu0 %vm5769_vm13, %v5760_v50  ;;  %v5819_v48 = vmul.f32 %v13885_v61, %v5760_v50 }
 0x5f4   : > { %v5634_v52 = vpop.f32.mrf.mxu1  ;;  %v5739_v60 = vpop.f32.mrf.mxu0  ;;  %10943 = vmatmul.mubr.msk.f32.gmra.mxu0 %vm5769_vm13, %v5761_v43 }
 0x5f5   : > { %5775 = vst.msk [vmem:[#allocation4 + $0x29] sm:$0xff] %vm5769_vm13, %v13877_v59  ;;  %v5762_v23 = vmax.f32 %v5634_v52, %v5739_v60  ;;  %v5822_v42 = vmul.f32 %v13885_v61, %v13877_v59 }
 0x5f6   : > { %v5778_v31 = vld [vmem:[#allocation4] sm:$0xff]  ;;  %v10822_v47 = vpop.f32.mrf.mxu1  ;;  %v10866_v16 = vpop.f32.mrf.mxu0  ;;  %v5779_v34 = vld [vmem:[#allocation4 + $0x8] sm:$0xff] }
 0x5f7   : > { %v5786_v36 = vld [vmem:[#allocation4 + $0x2] sm:$0xff]  ;;  %v5801_v7 = vmul.f32 %v13881_v5, %v5778_v31  ;;  %6032 = vst.msk [vmem:[#allocation4] sm:$0x1] %vm5766_vm6, %v14826_v1  ;;  %v5765_v25 = vmax.f32 %v10822_v47, %v10866_v16  ;;  %10945 = vmatprep.mubr.msk.f32.mxu0 %vm5769_vm13, %v5762_v23  ;;  %v5802_v21 = vmul.f32 %v13881_v5, %v5779_v34 }
 0x5f8   : > { %5774 = vst.msk [vmem:[#allocation4 + $0x21] sm:$0xff] %vm5769_vm13, %v5762_v23  ;;  %v5644_v8 = vpop.f32.mrf.mxu1  ;;  %v5749_v58 = vpop.f32.mrf.mxu0  ;;  %10946 = vmatmul.mubr.msk.f32.gmra.mxu0 %vm5769_vm13, %v13877_v59  ;;  %v5841_v20 = vmul.f32 %v13888_v51, %v5786_v36  ;;  %v5821_v32 = vmul.f32 %v13885_v61, %v5762_v23 }
 0x5f9   : > { %v5825_v63 = vadd.f32 %v5817_v10, %v5801_v7  ;;  %5777 = vst.msk [vmem:[#allocation4 + $0x39] sm:$0xff] %vm5769_vm13, %v5765_v25  ;;  %v5764_v26 = vmax.f32 %v5644_v8, %v5749_v58  ;;  %v5826_v19 = vadd.f32 %v5818_v55, %v5802_v21  ;;  %v5824_v52 = vmul.f32 %v13885_v61, %v5765_v25 }
 0x5fa   : > { %v5780_v49 = vld [vmem:[#allocation4 + $0x10] sm:$0xff]  ;;  %v5781_v41 = vld [vmem:[#allocation4 + $0x18] sm:$0xff] }
 0x5fb   : > { %v5788_v29 = vld [vmem:[#allocation4 + $0x12] sm:$0xff]  ;;  %v5787_v53 = vld [vmem:[#allocation4 + $0xa] sm:$0xff]  ;;  %v5849_v35 = vadd.f32 %v5841_v20, %v5825_v63  ;;  %v5803_v18 = vmul.f32 %v13881_v5, %v5780_v49  ;;  %5776 = vst.msk [vmem:[#allocation4 + $0x31] sm:$0xff] %vm5769_vm13, %v5764_v26  ;;  %10948 = vmatprep.mubr.msk.f32.mxu0 %vm5769_vm13, %v5764_v26  ;;  %v5804_v12 = vmul.f32 %v13881_v5, %v5781_v41 }
 0x5fc   : > { %v5842_v24 = vmul.f32 %v13888_v51, %v5787_v53  ;;  %10949 = vmatmul.mubr.msk.f32.gmra.mxu0 %vm5769_vm13, %v5765_v25  ;;  %v5843_v30 = vmul.f32 %v13888_v51, %v5788_v29  ;;  %v5823_v7 = vmul.f32 %v13885_v61, %v5764_v26 }
 0x5fd   : > { %v5827_v62 = vadd.f32 %v5819_v48, %v5803_v18  ;;  %v5864_v17 = vadd.f32 %v13904_v9, %v5849_v35  ;;  %v5828_v11 = vadd.f32 %v5820_v40, %v5804_v12  ;;  %v6151_v12 = vld [vmem:[%s14829_s23 + $0x38] sm:$0xff]  ;;  %v6146_v40 = vld [vmem:[%s14829_s23 + $0x10] sm:$0xff] }
 0x5fe   : > { %v5850_v28 = vadd.f32 %v5842_v24, %v5826_v19  ;;  %10895 = vmatprep.subr.mxu1 %v6151_v12 }
 0x5ff   : > { %v5782_v33 = vld [vmem:[#allocation4 + $0x20] sm:$0xff]  ;;  %v5851_v38 = vadd.f32 %v5843_v30, %v5827_v62  ;;  %v5872_v13 = vmax.f32 %v5864_v17, 0.0  ;;  %v5783_v15 = vld [vmem:[#allocation4 + $0x28] sm:$0xff]  ;;  %v6149_v30 = vld [vmem:[%s14829_s23 + $0x28] sm:$0xff] }
 0x600   : > { %v5790_v56 = vld [vmem:[#allocation4 + $0x22] sm:$0xff]  ;;  %v5789_v14 = vld [vmem:[#allocation4 + $0x1a] sm:$0xff]  ;;  %v5805_v57 = vmul.f32 %v13881_v5, %v5782_v33  ;;  %v5865_v27 = vadd.f32 %v13904_v9, %v5850_v28  ;;  %v5806_v22 = vmul.f32 %v13881_v5, %v5783_v15  ;;  %v9352_v28 = vld [vmem:[%s14830_s22] ss:$0 sm:$0xff]  ;;  %s14833_s22 = sld [smem:[#allocation22_spill]] }
 0x601   : > { %v5844_v6 = vmul.f32 %v13888_v51, %v5789_v14  ;;  %v5793_v54 = vld [vmem:[#allocation4 + $0x3a] sm:$0xff]  ;;  %v5845_v50 = vmul.f32 %v13888_v51, %v5790_v56  ;;  %10883 = vmatprep.mubr.msk.f32.mxu1 %vm5769_vm13, %v5872_v13  ;;  %v5866_v3 = vadd.f32 %v13904_v9, %v5851_v38  ;;  %v6147_v17 = vld [vmem:[%s14829_s23 + $0x18] sm:$0xff]  ;;  %v6144_v56 = vld [vmem:[%s14829_s23] sm:$0xff] }
 0x602   : > { %v5829_v43 = vadd.f32 %v5821_v32, %v5805_v57  ;;  %6033 = vst.msk [vmem:[#allocation4 + $0x41] sm:$0x1] %vm5766_vm6, %v14826_v1  ;;  %v5784_v60 = vld [vmem:[#allocation4 + $0x30] sm:$0xff]  ;;  %v5873_v31 = vmax.f32 %v5865_v27, 0.0  ;;  %v5785_v8 = vld [vmem:[#allocation4 + $0x38] sm:$0xff]  ;;  %v5830_v21 = vadd.f32 %v5822_v42, %v5806_v22  ;;  %v5848_v29 = vmul.f32 %v13888_v51, %v5793_v54  ;;  %v6150_v62 = vld [vmem:[%s14829_s23 + $0x30] sm:$0xff] }
 0x603   : > { %v5792_v23 = vld [vmem:[#allocation4 + $0x32] sm:$0xff]  ;;  %v5852_v36 = vadd.f32 %v5844_v6, %v5828_v11  ;;  %v5791_v47 = vld [vmem:[#allocation4 + $0x2a] sm:$0xff]  ;;  %v5807_v34 = vmul.f32 %v13881_v5, %v5784_v60  ;;  %v5874_v10 = vmax.f32 %v5866_v3, 0.0  ;;  %v5808_v25 = vmul.f32 %v13881_v5, %v5785_v8 }
 0x604   : > { %v5853_v16 = vadd.f32 %v5845_v50, %v5829_v43  ;;  %10884 = vmatmul.mubr.msk.f32.vlgmr.msra.gmra.mxu1 %vm5769_vm13, %v5873_v31  ;;  %v5846_v59 = vmul.f32 %v13888_v51, %v5791_v47  ;;  %v5847_v20 = vmul.f32 %v13888_v51, %v5792_v23  ;;  %v6145_v33 = vld [vmem:[%s14829_s23 + $0x8] sm:$0xff]  ;;  %v13962_v23 = vld [vmem:[%s14831_s11] ss:$0 sm:$0xff]  ;;  %v13968_v47 = vld [vmem:[%s14832_s16 + $0x2] ss:$0 sm:$0xff]  ;;  %s14835_s11 = sld [smem:[#allocation24_spill]] }
 0x605   : > { %v5867_v58 = vadd.f32 %v13904_v9, %v5852_v36  ;;  %v5831_v63 = vadd.f32 %v5823_v7, %v5807_v34  ;;  %10886 = vmatprep.mubr.msk.f32.mxu1 %vm5769_vm13, %v5874_v10  ;;  %v5832_v26 = vadd.f32 %v5824_v52, %v5808_v25  ;;  %10896 = vmatpush3.msra.mxu1 %v6151_v12  ;;  %v13965_v36 = vld [vmem:[%s14832_s16 + $0x1] ss:$0 sm:$0xff] }
 0x606   : > { %v5868_v55 = vadd.f32 %v13904_v9, %v5853_v16  ;;  %v5854_v61 = vadd.f32 %v5846_v59, %v5830_v21  ;;  %10897 = vmatprep.subr.mxu1 %v6150_v62 }
 0x607   : > { %v5875_v49 = vmax.f32 %v5867_v58, 0.0  ;;  %v5855_v53 = vadd.f32 %v5847_v20, %v5831_v63  ;;  %v5856_v18 = vadd.f32 %v5848_v29, %v5832_v26  ;;  %10898 = vmatpush3.msra.mxu1 %v6150_v62  ;;  %v13982_v26 = vld [vmem:[%s14833_s22] ss:$0 sm:$0xff]  ;;  %s14836_s22 = sld [smem:[#allocation26_spill]] }
 0x608   : > { %v5876_v35 = vmax.f32 %v5868_v55, 0.0  ;;  %v5869_v5 = vadd.f32 %v13904_v9, %v5854_v61  ;;  %10899 = vmatprep.subr.mxu1 %v6149_v30 }
 0x609   : > { %10887 = vmatmul.mubr.msk.f32.gmra.mxu1 %vm5769_vm13, %v5875_v49  ;;  %v5870_v48 = vadd.f32 %v13904_v9, %v5855_v53  ;;  %v5871_v19 = vadd.f32 %v13904_v9, %v5856_v18  ;;  %v6148_v9 = vld [vmem:[%s14829_s23 + $0x20] sm:$0xff] }
 0x60a   : > { %10889 = vmatprep.mubr.msk.f32.mxu1 %vm5769_vm13, %v5876_v35  ;;  %v5877_v41 = vmax.f32 %v5869_v5, 0.0  ;;  %10900 = vmatpush3.msra.mxu1 %v6149_v30 }
 0x60b   : > { %v5878_v24 = vmax.f32 %v5870_v48, 0.0  ;;  %v5879_v51 = vmax.f32 %v5871_v19, 0.0  ;;  %10901 = vmatprep.subr.mxu1 %v6148_v9 }
 0x60c   : > { %10902 = vmatpush3.msra.mxu1 %v6148_v9 }
 0x60d   : > { %10890 = vmatmul.mubr.msk.f32.gmra.mxu1 %vm5769_vm13, %v5877_v41  ;;  %10903 = vmatprep.subr.mxu1 %v6147_v17 }
 0x60e   : > { %10892 = vmatprep.mubr.msk.f32.mxu1 %vm5769_vm13, %v5878_v24  ;;  %10904 = vmatpush3.msra.mxu1 %v6147_v17 }
 0x60f   : > { %10905 = vmatprep.subr.mxu1 %v6146_v40 }
 0x610   : > { %10906 = vmatpush3.msra.mxu1 %v6146_v40 }
 0x611   : > { %10893 = vmatmul.mubr.msk.f32.gmra.mxu1 %vm5769_vm13, %v5879_v51  ;;  %10907 = vmatprep.subr.mxu1 %v6145_v33 }
 0x612   : > { %10908 = vmatpush3.msra.mxu1 %v6145_v33 }
 0x613   : > { %10909 = vmatprep.subr.mxu1 %v6144_v56 }
 0x614   : > { %10910 = vmatpush3.msra.mxu1 %v6144_v56 }
 0x6c4   : > { %v10885_v14 = vpop.f32.mrf.mxu1 }
 0x6c5   : > { %v5991_v38 = vadd.f32 %v10885_v14, %v9352_v28 }
 0x6c6   : > { %v5985_v57 = vpop.f32.mrf.mxu1 }
 0x6c7   : > { %v6025_v32 = vmax.f32 %v5991_v38, 0.0  ;;  %v5986_v13 = vadd.f32 %v9352_v28, %v5985_v57 }
 0x6c9   : > { %v10888_v15 = vpop.f32.mrf.mxu1  ;;  %6035 = vst.msk [vmem:[#allocation4 + $0x9] sm:$0xff] %vm5769_vm13, %v6025_v32  ;;  %v6024_v27 = vmax.f32 %v5986_v13, 0.0  ;;  %v6082_v55 = vmul.f32 %v13965_v36, %v6025_v32 }
 0x6ca   : > { %v6001_v11 = vadd.f32 %v10888_v15, %v9352_v28 }
 0x6cb   : > { %v5995_v6 = vpop.f32.mrf.mxu1  ;;  %6034 = vst.msk [vmem:[#allocation4 + $0x1] sm:$0xff] %vm5769_vm13, %v6024_v27  ;;  %v6081_v59 = vmul.f32 %v13965_v36, %v6024_v27 }
 0x6cc   : > { %v6027_v22 = vmax.f32 %v6001_v11, 0.0  ;;  %v5996_v54 = vadd.f32 %v9352_v28, %v5995_v6 }
 0x6cd   : > { %v10891_v43 = vpop.f32.mrf.mxu1 }
 0x6ce   : > { %6037 = vst.msk [vmem:[#allocation4 + $0x19] sm:$0xff] %vm5769_vm13, %v6027_v22  ;;  %v6026_v50 = vmax.f32 %v5996_v54, 0.0  ;;  %v6011_v3 = vadd.f32 %v10891_v43, %v9352_v28  ;;  %v6084_v40 = vmul.f32 %v13965_v36, %v6027_v22 }
 0x6cf   : > { %v6005_v42 = vpop.f32.mrf.mxu1 }
 0x6d0   : > { %6036 = vst.msk [vmem:[#allocation4 + $0x11] sm:$0xff] %vm5769_vm13, %v6026_v50  ;;  %v6029_v52 = vmax.f32 %v6011_v3, 0.0  ;;  %v6006_v60 = vadd.f32 %v9352_v28, %v6005_v42  ;;  %v6083_v35 = vmul.f32 %v13965_v36, %v6026_v50 }
 0x6d1   : > { %v10894_v31 = vpop.f32.mrf.mxu1 }
 0x6d2   : > { %6039 = vst.msk [vmem:[#allocation4 + $0x29] sm:$0xff] %vm5769_vm13, %v6029_v52  ;;  %v6028_v16 = vmax.f32 %v6006_v60, 0.0  ;;  %v13971_v34 = vadd.f32 %v10894_v31, %v9352_v28  ;;  %v6042_v7 = vld [vmem:[#allocation4] sm:$0xff]  ;;  %v6043_v58 = vld [vmem:[#allocation4 + $0x8] sm:$0xff]  ;;  %v6086_v50 = vmul.f32 %v13965_v36, %v6029_v52 }
 0x6d3   : > { %v6050_v10 = vld [vmem:[#allocation4 + $0x2] sm:$0xff]  ;;  %v6015_v8 = vpop.f32.mrf.mxu1  ;;  %v6065_v21 = vmul.f32 %v13962_v23, %v6042_v7  ;;  %v6066_v20 = vmul.f32 %v13962_v23, %v6043_v58 }
 0x6d4   : > { %6038 = vst.msk [vmem:[#allocation4 + $0x21] sm:$0xff] %vm5769_vm13, %v6028_v16  ;;  %v6031_v25 = vmax.f32 %v13971_v34, 0.0  ;;  %v6016_v63 = vadd.f32 %v9352_v28, %v6015_v8  ;;  %v6105_v61 = vmul.f32 %v13968_v47, %v6050_v10  ;;  %v6085_v57 = vmul.f32 %v13965_v36, %v6028_v16 }
 0x6d5   : > { %v6089_v49 = vadd.f32 %v6081_v59, %v6065_v21  ;;  %v6090_v19 = vadd.f32 %v6082_v55, %v6066_v20 }
 0x6d6   : > { %6041 = vst.msk [vmem:[#allocation4 + $0x39] sm:$0xff] %vm5769_vm13, %v6031_v25  ;;  %v6030_v5 = vmax.f32 %v6016_v63, 0.0  ;;  %v6088_v20 = vmul.f32 %v13965_v36, %v6031_v25 }
 0x6d7   : > { %v6044_v29 = vld [vmem:[#allocation4 + $0x10] sm:$0xff]  ;;  %v6113_v48 = vadd.f32 %v6105_v61, %v6089_v49  ;;  %v6045_v51 = vld [vmem:[#allocation4 + $0x18] sm:$0xff] }
 0x6d8   : > { %v6052_v53 = vld [vmem:[#allocation4 + $0x12] sm:$0xff]  ;;  %v6051_v18 = vld [vmem:[#allocation4 + $0xa] sm:$0xff]  ;;  %v6067_v41 = vmul.f32 %v13962_v23, %v6044_v29  ;;  %6040 = vst.msk [vmem:[#allocation4 + $0x31] sm:$0xff] %vm5769_vm13, %v6030_v5  ;;  %v6068_v12 = vmul.f32 %v13962_v23, %v6045_v51  ;;  %v6087_v34 = vmul.f32 %v13965_v36, %v6030_v5 }
 0x6d9   : > { %v6106_v24 = vmul.f32 %v13968_v47, %v6051_v18  ;;  %v6107_v30 = vmul.f32 %v13968_v47, %v6052_v53  ;;  %v6128_v9 = vadd.f32 %v13982_v26, %v6113_v48 }
 0x6da   : > { %v6091_v62 = vadd.f32 %v6083_v35, %v6067_v41  ;;  %v6092_v27 = vadd.f32 %v6084_v40, %v6068_v12 }
 0x6db   : > { %v6114_v17 = vadd.f32 %v6106_v24, %v6090_v19  ;;  %v6046_v33 = vld [vmem:[#allocation4 + $0x20] sm:$0xff]  ;;  %v6136_v32 = vmax.f32 %v6128_v9, 0.0  ;;  %v6047_v13 = vld [vmem:[#allocation4 + $0x28] sm:$0xff] }
 0x6dc   : > { %v6054_v56 = vld [vmem:[#allocation4 + $0x22] sm:$0xff]  ;;  %v6053_v28 = vld [vmem:[#allocation4 + $0x1a] sm:$0xff]  ;;  %v6115_v14 = vadd.f32 %v6107_v30, %v6091_v62  ;;  %v6069_v38 = vmul.f32 %v13962_v23, %v6046_v33  ;;  %v6070_v6 = vmul.f32 %v13962_v23, %v6047_v13  ;;  %v4166_v30 = vsel %vm4134_vm3, 1.0, %v14826_v1 }
 0x6dd   : > { %v6129_v15 = vadd.f32 %v13982_v26, %v6114_v17  ;;  %v6108_v11 = vmul.f32 %v13968_v47, %v6053_v28  ;;  %v6109_v22 = vmul.f32 %v13968_v47, %v6054_v56  ;;  %10911 = vmatprep.mubr.msk.f32.mxu1 %vm5769_vm13, %v6136_v32  ;;  %v6057_v52 = vld [vmem:[#allocation4 + $0x3a] sm:$0xff]  ;;  %10989 = vmatprep.mubr.msk.f32.mxu0 %vm5769_vm13, %v4166_v30  ;;  %v6658_v62 = vmul.u32 2, %v6654_v4 }
 0x6de   : > { %v6093_v54 = vadd.f32 %v6085_v57, %v6069_v38  ;;  %v6130_v43 = vadd.f32 %v13982_v26, %v6115_v14  ;;  %v6094_v21 = vadd.f32 %v6086_v50, %v6070_v6  ;;  %v6112_v48 = vmul.f32 %v13968_v47, %v6057_v52 }
 0x6df   : > { %v6137_v3 = vmax.f32 %v6129_v15, 0.0  ;;  %v6116_v42 = vadd.f32 %v6108_v11, %v6092_v27  ;;  %v6048_v31 = vld [vmem:[#allocation4 + $0x30] sm:$0xff]  ;;  %v6049_v63 = vld [vmem:[#allocation4 + $0x38] sm:$0xff]  ;;  %vm6662_vm3 = vcmp.eq.s32.totalorder %v14810_v0, %v6658_v62 }
 0x6e0   : > { %v6117_v60 = vadd.f32 %v6109_v22, %v6093_v54  ;;  %v6056_v16 = vld [vmem:[#allocation4 + $0x32] sm:$0xff]  ;;  %v6138_v7 = vmax.f32 %v6130_v43, 0.0  ;;  %v6055_v10 = vld [vmem:[#allocation4 + $0x2a] sm:$0xff]  ;;  %v6071_v8 = vmul.f32 %v13962_v23, %v6048_v31  ;;  %v6072_v49 = vmul.f32 %v13962_v23, %v6049_v63 }
 0x6e1   : > { %10912 = vmatmul.mubr.msk.f32.vlgmr.msra.gmra.mxu1 %vm5769_vm13, %v6137_v3  ;;  %v6131_v58 = vadd.f32 %v13982_v26, %v6116_v42  ;;  %v6110_v59 = vmul.f32 %v13968_v47, %v6055_v10  ;;  %v6111_v29 = vmul.f32 %v13968_v47, %v6056_v16  ;;  %v4086_v47 = vsel %vm4054_vm4, 1.0, %v14826_v1  ;;  %v9367_v15 = vld [vmem:[%s14835_s11] ss:$0 sm:$0xff]  ;;  %s14840_s11 = sld [smem:[#allocation27_spill]] }
 0x6e2   : > { %10914 = vmatprep.mubr.msk.f32.mxu1 %vm5769_vm13, %v6138_v7  ;;  %v6132_v55 = vadd.f32 %v13982_v26, %v6117_v60  ;;  %v6095_v61 = vadd.f32 %v6087_v34, %v6071_v8  ;;  %v6096_v18 = vadd.f32 %v6088_v20, %v6072_v49  ;;  %v9376_v22 = vld [vmem:[%s14836_s22] ss:$0 sm:$0xff]  ;;  %v6666_v39 = vsel %vm6662_vm3, 1.0, %v14826_v1 }
 0x6e3   : > { %v6139_v53 = vmax.f32 %v6131_v58, 0.0  ;;  %v6118_v35 = vadd.f32 %v6110_v59, %v6094_v21 }
 0x6e4   : > { %v6140_v5 = vmax.f32 %v6132_v55, 0.0  ;;  %v6119_v41 = vadd.f32 %v6111_v29, %v6095_v61  ;;  %v6120_v25 = vadd.f32 %v6112_v48, %v6096_v18 }
 0x6e5   : > { %10915 = vmatmul.mubr.msk.f32.gmra.mxu1 %vm5769_vm13, %v6139_v53  ;;  %v6133_v36 = vadd.f32 %v13982_v26, %v6118_v35 }
 0x6e6   : > { %10917 = vmatprep.mubr.msk.f32.mxu1 %vm5769_vm13, %v6140_v5  ;;  %v6134_v23 = vadd.f32 %v13982_v26, %v6119_v41  ;;  %v6135_v24 = vadd.f32 %v13982_v26, %v6120_v25  ;;  %v10941_v26 = vpop.f32.mrf.mxu0 }
 0x6e7   : > { %v6141_v19 = vmax.f32 %v6133_v36, 0.0  ;;  %v6407_v48 = vadd.f32 %v10941_v26, %v9376_v22  ;;  %v4090_v26 = vsel %vm4058_vm11, 1.0, %v14826_v1  ;;  %s14841_s22 = smov %s14840_s11 }
 0x6e8   : > { %v6142_v51 = vmax.f32 %v6134_v23, 0.0  ;;  %v6143_v12 = vmax.f32 %v6135_v24, 0.0  ;;  %v14030_v9 = vpop.f32.mrf.mxu0  ;;  %v4088_v24 = vsel %vm4056_vm7, 1.0, %v14826_v1 }
 0x6e9   : > { %10918 = vmatmul.mubr.msk.f32.gmra.mxu1 %vm5769_vm13, %v6141_v19  ;;  %v6402_v25 = vadd.f32 %v9376_v22, %v14030_v9  ;;  %v4170_v9 = vsel %vm4138_vm12, 1.0, %v14826_v1 }
 0x6ea   : > { %10920 = vmatprep.mubr.msk.f32.mxu1 %vm5769_vm13, %v6142_v51  ;;  %v10944_v17 = vpop.f32.mrf.mxu0  ;;  %v4168_v51 = vsel %vm4136_vm8, 1.0, %v14826_v1 }
 0x6eb   : > { %v6417_v49 = vadd.f32 %v10944_v17, %v9376_v22  ;;  %v6670_v17 = vadd.s32 1, %v6658_v62 }
 0x6ec   : > { %v6411_v40 = vpop.f32.mrf.mxu0 }
 0x6ed   : > { %10921 = vmatmul.mubr.msk.f32.gmra.mxu1 %vm5769_vm13, %v6143_v12  ;;  %v6412_v35 = vadd.f32 %v9376_v22, %v6411_v40  ;;  %v14838_v12 = vld [vmem:[#allocation42_spill] sm:$0xff]  ;;  %vm6674_vm4 = vcmp.eq.s32.totalorder %v14810_v0, %v6670_v17 }
 0x6ee   : > { %10967 = vmatprep.mubr.msk.f32.mxu1 %vm5769_vm13, %v4086_v47  ;;  %v10947_v56 = vpop.f32.mrf.mxu0  ;;  %v6655_v47 = vadd.s32 1, %v14838_v12 }
 0x6ef   : > { %v6427_v8 = vadd.f32 %v10947_v56, %v9376_v22  ;;  %v14842_v56 = vld [vmem:[#allocation45_spill] sm:$0xff] }
 0x6f0   : > { %v6421_v14 = vpop.f32.mrf.mxu0  ;;  %v6659_v30 = vmul.u32 2, %v6655_v47  ;;  %v14209_v4 = vadd.s32 2, %v14842_v56 }
 0x6f1   : > { %v6422_v63 = vadd.f32 %v9376_v22, %v6421_v14 }
 0x6f2   : > { %v10950_v32 = vpop.f32.mrf.mxu0  ;;  %v6671_v40 = vadd.s32 1, %v6659_v30  ;;  %vm6663_vm7 = vcmp.eq.s32.totalorder %v14810_v0, %v6659_v30 }
 0x6f3   : > { %v6437_v50 = vadd.f32 %v10950_v32, %v9376_v22  ;;  %v6667_v14 = vsel %vm6663_vm7, 1.0, %v14826_v1  ;;  %v9408_v32 = vld [vmem:[%s14840_s11 + $0x78] sm:$0xff]  ;;  %s14843_s11 = sld [smem:[#allocation28_spill]]  ;;  %vm7437_vm7 = vcmask 521216  }
 0x6f4   : > { %v6431_v11 = vpop.f32.mrf.mxu0  ;;  %vm6675_vm8 = vcmp.eq.s32.totalorder %v14810_v0, %v6671_v40 }
 0x6f5   : > { %v6432_v31 = vadd.f32 %v9376_v22, %v6431_v11  ;;  %v6652_v11 = vld [vmem:[%s14841_s22 + $0x30] sm:$0xff]  ;;  %v6651_v22 = vld [vmem:[%s14841_s22 + $0x28] sm:$0xff] }
 0x7a1   : > { %v10913_v33 = vpop.f32.mrf.mxu1 }
 0x7a2   : > { %v6255_v52 = vadd.f32 %v10913_v33, %v9367_v15  ;;  %v14839_v33 = vld [vmem:[#allocation34_spill] sm:$0xff] }
 0x7a3   : > { %v6249_v44 = vpop.f32.mrf.mxu1  ;;  %v6656_v45 = vadd.s32 1, %v14839_v33 }
 0x7a4   : > { %v6250_v61 = vadd.f32 %v9367_v15, %v6249_v44  ;;  %v6289_v5 = vmax.f32 %v6255_v52, 0.0  ;;  %v6657_v44 = vadd.s32 1, %v14842_v56  ;;  %v9401_v52 = vld [vmem:[%s14841_s22 + $0x40] sm:$0xff] }
 0x7a5   : > { %v10916_v28 = vpop.f32.mrf.mxu1 }
 0x7a6   : > { %v6265_v16 = vadd.f32 %v10916_v28, %v9367_v15  ;;  %v6288_v41 = vmax.f32 %v6250_v61, 0.0  ;;  %v14067_v19 = vadd.f32 %v6407_v48, %v6289_v5  ;;  %v6678_v28 = vsel %vm6674_vm4, 1.0, %v14826_v1 }
 0x7a7   : > { %v6259_v38 = vpop.f32.mrf.mxu1  ;;  %v14192_v48 = vadd.s32 2, %v14837_v2  ;;  %vm11676_vm4 = vmmov 0  }
 0x7a8   : > { %v6260_v58 = vadd.f32 %v9367_v15, %v6259_v38  ;;  %v6291_v20 = vmax.f32 %v6265_v16, 0.0  ;;  %v14073_v23 = vadd.f32 %v6402_v25, %v6288_v41  ;;  %v6679_v38 = vsel %vm6675_vm8, 1.0, %v14826_v1 }
 0x7a9   : > { %v10919_v57 = vpop.f32.mrf.mxu1  ;;  %v14197_v25 = vadd.s32 2, %v14838_v12  ;;  %vm8747_vm8 = vcmask 1043456  }
 0x7aa   : > { %v6275_v6 = vadd.f32 %v10919_v57, %v9367_v15  ;;  %v6290_v29 = vmax.f32 %v6260_v58, 0.0  ;;  %v14054_v18 = vadd.f32 %v6417_v49, %v6291_v20  ;;  %v6660_v57 = vmul.u32 2, %v6656_v45  ;;  %v6646_v20 = vld [vmem:[%s14841_s22] sm:$0xff] }
 0x7ab   : > { %v6269_v13 = vpop.f32.mrf.mxu1  ;;  %v7088_v2 = vmul.u32 2, %v14197_v25 }
 0x7ac   : > { %v6270_v3 = vadd.f32 %v9367_v15, %v6269_v13  ;;  %v6293_v34 = vmax.f32 %v6275_v6, 0.0  ;;  %v14060_v36 = vadd.f32 %v6412_v35, %v6290_v29  ;;  %v6653_v13 = vld [vmem:[%s14841_s22 + $0x38] sm:$0xff]  ;;  %v6672_v6 = vadd.s32 1, %v6660_v57 }
 0x7ad   : > { %v10922_v27 = vpop.f32.mrf.mxu1  ;;  %vm6664_vm11 = vcmp.eq.s32.totalorder %v14810_v0, %v6660_v57  ;;  %vm7092_vm10 = vcmp.eq.s32.totalorder %v14810_v0, %v7088_v2 }
 0x7ae   : > { %v6285_v54 = vadd.f32 %v10922_v27, %v9367_v15  ;;  %v6292_v21 = vmax.f32 %v6270_v3, 0.0  ;;  %v14042_v55 = vadd.f32 %v6427_v8, %v6293_v34  ;;  %v9407_v27 = vld [vmem:[%s14841_s22 + $0x70] sm:$0xff]  ;;  %v6650_v3 = vld [vmem:[%s14841_s22 + $0x20] sm:$0xff]  ;;  %vm6676_vm12 = vcmp.eq.s32.totalorder %v14810_v0, %v6672_v6 }
 0x7af   : > { %v6279_v43 = vpop.f32.mrf.mxu1  ;;  %v6680_v16 = vsel %vm6676_vm12, 1.0, %v14826_v1  ;;  %v9403_v34 = vld [vmem:[%s14841_s22 + $0x50] sm:$0xff] }
 0x7b0   : > { %v6295_v42 = vmax.f32 %v6285_v54, 0.0  ;;  %v6280_v60 = vadd.f32 %v9367_v15, %v6279_v43  ;;  %v14048_v53 = vadd.f32 %v6422_v63, %v6292_v21  ;;  %v6661_v15 = vmul.u32 2, %v6657_v44  ;;  %v9406_v54 = vld [vmem:[%s14841_s22 + $0x68] sm:$0xff] }
 0x7b1   : > { %v9402_v21 = vld [vmem:[%s14841_s22 + $0x48] sm:$0xff] }
 0x7b2   : > { %v14034_v7 = vadd.f32 %v6437_v50, %v6295_v42  ;;  %v6294_v10 = vmax.f32 %v6280_v60, 0.0  ;;  %v6673_v43 = vadd.s32 1, %v6661_v15  ;;  %v9405_v50 = vld [vmem:[%s14841_s22 + $0x60] sm:$0xff]  ;;  %v9404_v42 = vld [vmem:[%s14841_s22 + $0x58] sm:$0xff]  ;;  %vm6665_vm15 = vcmp.eq.s32.totalorder %v14810_v0, %v6661_v15  ;;  %v6647_v63 = vld [vmem:[%s14841_s22 + $0x8] sm:$0xff] }
 0x7b3   : > { %v6649_v60 = vld [vmem:[%s14841_s22 + $0x18] sm:$0xff]  ;;  %v6669_v8 = vsel %vm6665_vm15, 1.0, %v14826_v1 }
 0x7b4   : > { %v14036_v59 = vadd.f32 %v6432_v31, %v6294_v10  ;;  %10951 = vmatprep.subr.mxu1 %v14034_v7  ;;  %10973 = vmatprep.subr.mxu0 %v14034_v7  ;;  %vm6677_vm0 = vcmp.eq.s32.totalorder %v14810_v0, %v6673_v43  ;;  %v6668_v31 = vsel %vm6664_vm11, 1.0, %v14826_v1  ;;  %v6648_v10 = vld [vmem:[%s14841_s22 + $0x10] sm:$0xff]  ;;  %v9428_v43 = vld [vmem:[%s14841_s22 + $0x98] sm:$0xff]  ;;  %vm8821_vm11 = vcmask 73728  }
 0x7b5   : > { %10952 = vmatpush3.msra.mxu1 %v14034_v7  ;;  %10974 = vmatpush3.msra.mxu0 %v14034_v7  ;;  %v6681_v58 = vsel %vm6677_vm0, 1.0, %v14826_v1 }
 0x7b6   : > { %10953 = vmatprep.subr.mxu1 %v14036_v59  ;;  %10975 = vmatprep.subr.mxu0 %v14036_v59 }
 0x7b7   : > { %10954 = vmatpush3.msra.mxu1 %v14036_v59  ;;  %10976 = vmatpush3.msra.mxu0 %v14036_v59 }
 0x7b8   : > { %10955 = vmatprep.subr.mxu1 %v14042_v55  ;;  %10977 = vmatprep.subr.mxu0 %v14042_v55 }
 0x7b9   : > { %10956 = vmatpush3.msra.mxu1 %v14042_v55  ;;  %10978 = vmatpush3.msra.mxu0 %v14042_v55 }
 0x7ba   : > { %10957 = vmatprep.subr.mxu1 %v14048_v53  ;;  %10979 = vmatprep.subr.mxu0 %v14048_v53 }
 0x7bb   : > { %10958 = vmatpush3.msra.mxu1 %v14048_v53  ;;  %10980 = vmatpush3.msra.mxu0 %v14048_v53 }
 0x7bc   : > { %10959 = vmatprep.subr.mxu1 %v14054_v18  ;;  %10981 = vmatprep.subr.mxu0 %v14054_v18 }
 0x7bd   : > { %10960 = vmatpush3.msra.mxu1 %v14054_v18  ;;  %10982 = vmatpush3.msra.mxu0 %v14054_v18 }
 0x7be   : > { %10961 = vmatprep.subr.mxu1 %v14060_v36  ;;  %10983 = vmatprep.subr.mxu0 %v14060_v36 }
 0x7bf   : > { %10962 = vmatpush3.msra.mxu1 %v14060_v36  ;;  %10984 = vmatpush3.msra.mxu0 %v14060_v36 }
 0x7c0   : > { %10963 = vmatprep.subr.mxu1 %v14067_v19  ;;  %10985 = vmatprep.subr.mxu0 %v14067_v19 }
 0x7c1   : > { %10964 = vmatpush3.msra.mxu1 %v14067_v19  ;;  %10986 = vmatpush3.msra.mxu0 %v14067_v19 }
 0x7c2   : > { %10965 = vmatprep.subr.mxu1 %v14073_v23  ;;  %10987 = vmatprep.subr.mxu0 %v14073_v23 }
 0x7c3   : > { %10966 = vmatpush3.msra.mxu1 %v14073_v23  ;;  %10988 = vmatpush3.msra.mxu0 %v14073_v23 }
 0x7c4   : > { %10968 = vmatmul.mubr.msk.f32.vlgmr.msra.gmra.mxu1 %vm5769_vm13, %v4088_v24  ;;  %10990 = vmatmul.mubr.msk.f32.vlgmr.msra.gmra.mxu0 %vm5769_vm13, %v4168_v51  ;;  %v7087_v24 = vmul.u32 2, %v14192_v48  ;;  %v14202_v51 = vadd.s32 2, %v14839_v33 }
 0x7c5   : > { %10995 = vmatprep.subr.mxu1 %v14034_v7  ;;  %11017 = vmatprep.subr.mxu0 %v14034_v7 }
 0x7c6   : > { %10996 = vmatpush3.msra.mxu1 %v14034_v7  ;;  %11018 = vmatpush3.msra.mxu0 %v14034_v7  ;;  %v7099_v12 = vadd.s32 1, %v7087_v24  ;;  %v7089_v47 = vmul.u32 2, %v14202_v51  ;;  %vm7091_vm9 = vcmp.eq.s32.totalorder %v14810_v0, %v7087_v24 }
 0x7c7   : > { %10997 = vmatprep.subr.mxu1 %v14036_v59  ;;  %11019 = vmatprep.subr.mxu0 %v14036_v59 }
 0x7c8   : > { %10998 = vmatpush3.msra.mxu1 %v14036_v59  ;;  %11020 = vmatpush3.msra.mxu0 %v14036_v59  ;;  %vm7103_vm1 = vcmp.eq.s32.totalorder %v14810_v0, %v7099_v12  ;;  %v7101_v17 = vadd.s32 1, %v7089_v47  ;;  %vm7093_vm6 = vcmp.eq.s32.totalorder %v14810_v0, %v7089_v47  ;;  %v7461_v47 = vld [vmem:[#allocation6 + $0x78] sm:$0xff] }
 0x7c9   : > { %10999 = vmatprep.subr.mxu1 %v14042_v55  ;;  %11021 = vmatprep.subr.mxu0 %v14042_v55  ;;  %v7107_v45 = vsel %vm7103_vm1, 1.0, %v14826_v1 }
 0x7ca   : > { %11000 = vmatpush3.msra.mxu1 %v14042_v55  ;;  %11022 = vmatpush3.msra.mxu0 %v14042_v55  ;;  %vm7105_vm5 = vcmp.eq.s32.totalorder %v14810_v0, %v7101_v17  ;;  %v7447_v17 = vld [vmem:[#allocation6 + $0x28] sm:$0xff] }
 0x7cb   : > { %11001 = vmatprep.subr.mxu1 %v14048_v53  ;;  %11023 = vmatprep.subr.mxu0 %v14048_v53  ;;  %v7109_v57 = vsel %vm7105_vm5, 1.0, %v14826_v1 }
 0x7cc   : > { %11002 = vmatpush3.msra.mxu1 %v14048_v53  ;;  %11024 = vmatpush3.msra.mxu0 %v14048_v53 }
 0x7cd   : > { %11003 = vmatprep.subr.mxu1 %v14054_v18  ;;  %11025 = vmatprep.subr.mxu0 %v14054_v18 }
 0x7ce   : > { %11004 = vmatpush3.msra.mxu1 %v14054_v18  ;;  %11026 = vmatpush3.msra.mxu0 %v14054_v18 }
 0x7cf   : > { %11005 = vmatprep.subr.mxu1 %v14060_v36  ;;  %11027 = vmatprep.subr.mxu0 %v14060_v36 }
 0x7d0   : > { %10970 = vmatprep.mubr.msk.f32.mxu1 %vm5769_vm13, %v4090_v26  ;;  %10992 = vmatprep.mubr.msk.f32.mxu0 %vm5769_vm13, %v4170_v9  ;;  %v7100_v26 = vadd.s32 1, %v7088_v2  ;;  %v7090_v9 = vmul.u32 2, %v14209_v4 }
 0x7d1   : > { %11006 = vmatpush3.msra.mxu1 %v14060_v36  ;;  %11028 = vmatpush3.msra.mxu0 %v14060_v36 }
 0x7d2   : > { %10971 = vmatmul.mubr.msk.f32.gmra.mxu1 %vm5769_vm13, %v4092_v37  ;;  %10993 = vmatmul.mubr.msk.f32.gmra.mxu0 %vm5769_vm13, %v4172_v46  ;;  %vm7104_vm2 = vcmp.eq.s32.totalorder %v14810_v0, %v7100_v26  ;;  %vm7094_vm3 = vcmp.eq.s32.totalorder %v14810_v0, %v7090_v9  ;;  %v7448_v26 = vld [vmem:[#allocation6 + $0x30] sm:$0xff] }
 0x7d3   : > { %11007 = vmatprep.subr.mxu1 %v14067_v19  ;;  %11029 = vmatprep.subr.mxu0 %v14067_v19 }
 0x7d4   : > { %11008 = vmatpush3.msra.mxu1 %v14067_v19  ;;  %11030 = vmatpush3.msra.mxu0 %v14067_v19 }
 0x7d5   : > { %11009 = vmatprep.subr.mxu1 %v14073_v23  ;;  %11031 = vmatprep.subr.mxu0 %v14073_v23 }
 0x7d6   : > { %11010 = vmatpush3.msra.mxu1 %v14073_v23  ;;  %11011 = vmatprep.mubr.msk.f32.mxu1 %vm5769_vm13, %v6666_v39  ;;  %v7102_v39 = vadd.s32 1, %v7090_v9  ;;  %v7459_v9 = vld [vmem:[#allocation6 + $0x68] sm:$0xff] }
 0x7d7   : > { %11032 = vmatpush3.msra.mxu0 %v14073_v23  ;;  %11033 = vmatprep.mubr.msk.f32.mxu0 %vm5769_vm13, %v6678_v28  ;;  %v7108_v28 = vsel %vm7104_vm2, 1.0, %v14826_v1 }
 0x7d8   : > { %11012 = vmatmul.mubr.msk.f32.vlgmr.msra.gmra.mxu1 %vm5769_vm13, %v6667_v14  ;;  %11034 = vmatmul.mubr.msk.f32.vlgmr.msra.gmra.mxu0 %vm5769_vm13, %v6679_v38  ;;  %vm7106_vm14 = vcmp.eq.s32.totalorder %v14810_v0, %v7102_v39  ;;  %v9430_v0 = vld [vmem:[%s14841_s22 + $0xa8] sm:$0xff] }
 0x7d9   : > { %11039 = vmatprep.subr.mxu1 %v9408_v32  ;;  %11061 = vmatprep.subr.mxu0 %v6653_v13  ;;  %v7110_v15 = vsel %vm7106_vm14, 1.0, %v14826_v1  ;;  %v7444_v39 = vld [vmem:[#allocation6 + $0x10] sm:$0xff] }
 0x7da   : > { %11040 = vmatpush3.msra.mxu1 %v9408_v32  ;;  %11062 = vmatpush3.msra.mxu0 %v6653_v13 }
 0x7db   : > { %11041 = vmatprep.subr.mxu1 %v9407_v27  ;;  %11063 = vmatprep.subr.mxu0 %v6652_v11 }
 0x7dc   : > { %11042 = vmatpush3.msra.mxu1 %v9407_v27  ;;  %11064 = vmatpush3.msra.mxu0 %v6652_v11 }
 0x7dd   : > { %11043 = vmatprep.subr.mxu1 %v9406_v54  ;;  %11065 = vmatprep.subr.mxu0 %v6651_v22 }
 0x7de   : > { %11044 = vmatpush3.msra.mxu1 %v9406_v54  ;;  %11066 = vmatpush3.msra.mxu0 %v6651_v22  ;;  %v9431_v22 = vld [vmem:[%s14841_s22 + $0xb0] sm:$0xff] }
 0x7df   : > { %11045 = vmatprep.subr.mxu1 %v9405_v50  ;;  %11067 = vmatprep.subr.mxu0 %v6650_v3 }
 0x7e0   : > { %11046 = vmatpush3.msra.mxu1 %v9405_v50  ;;  %11068 = vmatpush3.msra.mxu0 %v6650_v3  ;;  %v9427_v50 = vld [vmem:[%s14841_s22 + $0x90] sm:$0xff]  ;;  %v9426_v3 = vld [vmem:[%s14841_s22 + $0x88] sm:$0xff] }
 0x7e1   : > { %11047 = vmatprep.subr.mxu1 %v9404_v42  ;;  %11069 = vmatprep.subr.mxu0 %v6649_v60 }
 0x7e2   : > { %11048 = vmatpush3.msra.mxu1 %v9404_v42  ;;  %11070 = vmatpush3.msra.mxu0 %v6649_v60  ;;  %v9425_v42 = vld [vmem:[%s14841_s22 + $0x80] sm:$0xff] }
 0x7e3   : > { %11014 = vmatprep.mubr.msk.f32.mxu1 %vm5769_vm13, %v6668_v31  ;;  %11036 = vmatprep.mubr.msk.f32.mxu0 %vm5769_vm13, %v6680_v16 }
 0x7e4   : > { %11049 = vmatprep.subr.mxu1 %v9403_v34  ;;  %11071 = vmatprep.subr.mxu0 %v6648_v10 }
 0x7e5   : > { %11015 = vmatmul.mubr.msk.f32.gmra.mxu1 %vm5769_vm13, %v6669_v8  ;;  %11037 = vmatmul.mubr.msk.f32.gmra.mxu0 %vm5769_vm13, %v6681_v58 }
 0x7e6   : > { %11050 = vmatpush3.msra.mxu1 %v9403_v34  ;;  %11072 = vmatpush3.msra.mxu0 %v6648_v10 }
 0x7e7   : > { %11051 = vmatprep.subr.mxu1 %v9402_v21  ;;  %11073 = vmatprep.subr.mxu0 %v6647_v63 }
 0x7e8   : > { %11052 = vmatpush3.msra.mxu1 %v9402_v21  ;;  %11074 = vmatpush3.msra.mxu0 %v6647_v63 }
 0x7e9   : > { %11053 = vmatprep.subr.mxu1 %v9401_v52  ;;  %11075 = vmatprep.subr.mxu0 %v6646_v20 }
 0x7ea   : > { %11054 = vmatpush3.msra.mxu1 %v9401_v52  ;;  %11076 = vmatpush3.msra.mxu0 %v6646_v20 }
 0x7eb   : > { %11083 = vmatprep.subr.mxu1 %v14034_v7  ;;  %11105 = vmatprep.subr.mxu0 %v14034_v7 }
 0x884   : > { %v10969_v49 = vpop.f32.mrf.mxu1  ;;  %v10991_v61 = vpop.f32.mrf.mxu0 }
 0x885   : > { %v6643_v41 = vmax.f32 %v10969_v49, %v10991_v61 }
 0x886   : > { %v6526_v29 = vpop.f32.mrf.mxu1  ;;  %v6623_v35 = vpop.f32.mrf.mxu0 }
 0x887   : > { %v6642_v5 = vmax.f32 %v6526_v29, %v6623_v35 }
 0x889   : > { %11077 = vmatprep.mubr.msk.f32.mxu0 %vm5769_vm13, %v6642_v5 }
 0x88a   : > { %11078 = vmatmul.mubr.msk.f32.vlgmr.msra.gmra.mxu0 %vm5769_vm13, %v6643_v41 }
 0x88b   : > { %11106 = vmatpush3.msra.mxu0 %v14034_v7 }
 0x88c   : > { %11107 = vmatprep.subr.mxu0 %v14036_v59 }
 0x88d   : > { %11108 = vmatpush3.msra.mxu0 %v14036_v59 }
 0x88e   : > { %11109 = vmatprep.subr.mxu0 %v14042_v55 }
 0x88f   : > { %11110 = vmatpush3.msra.mxu0 %v14042_v55 }
 0x890   : > { %11111 = vmatprep.subr.mxu0 %v14048_v53 }
 0x891   : > { %11112 = vmatpush3.msra.mxu0 %v14048_v53 }
 0x892   : > { %v10972_v62 = vpop.f32.mrf.mxu1  ;;  %v10994_v30 = vpop.f32.mrf.mxu0  ;;  %11113 = vmatprep.subr.mxu0 %v14054_v18 }
 0x893   : > { %11114 = vmatpush3.msra.mxu0 %v14054_v18  ;;  %v6645_v40 = vmax.f32 %v10972_v62, %v10994_v30  ;;  %v7449_v62 = vld [vmem:[#allocation6 + $0x38] sm:$0xff]  ;;  %v7460_v30 = vld [vmem:[#allocation6 + $0x70] sm:$0xff] }
 0x894   : > { %v6536_v37 = vpop.f32.mrf.mxu1  ;;  %v6633_v46 = vpop.f32.mrf.mxu0  ;;  %11115 = vmatprep.subr.mxu0 %v14060_v36 }
 0x895   : > { %v6644_v33 = vmax.f32 %v6536_v37, %v6633_v46  ;;  %11116 = vmatpush3.msra.mxu0 %v14060_v36  ;;  %v7446_v37 = vld [vmem:[#allocation6 + $0x20] sm:$0xff]  ;;  %v7457_v46 = vld [vmem:[#allocation6 + $0x58] sm:$0xff] }
 0x896   : > { %11117 = vmatprep.subr.mxu0 %v14067_v19 }
 0x897   : > { %11118 = vmatpush3.msra.mxu0 %v14067_v19  ;;  %11080 = vmatprep.mubr.msk.f32.mxu0 %vm5769_vm13, %v6644_v33  ;;  %v7445_v33 = vld [vmem:[#allocation6 + $0x18] sm:$0xff] }
 0x898   : > { %v11013_v56 = vpop.f32.mrf.mxu1  ;;  %v11035_v44 = vpop.f32.mrf.mxu0  ;;  %11119 = vmatprep.subr.mxu0 %v14073_v23  ;;  %11081 = vmatmul.mubr.msk.f32.gmra.mxu0 %vm5769_vm13, %v6645_v40  ;;  %v7458_v40 = vld [vmem:[#allocation6 + $0x60] sm:$0xff] }
 0x899   : > { %11120 = vmatpush3.msra.mxu0 %v14073_v23  ;;  %11121 = vmatprep.mubr.msk.f32.mxu0 %vm5769_vm13, %v7107_v45  ;;  %v6877_v13 = vmax.f32 %v11013_v56, %v11035_v44  ;;  %v7456_v45 = vld [vmem:[#allocation6 + $0x50] sm:$0xff]  ;;  %v7455_v56 = vld [vmem:[#allocation6 + $0x48] sm:$0xff] }
 0x89a   : > { %v6760_v14 = vpop.f32.mrf.mxu1  ;;  %v6857_v38 = vpop.f32.mrf.mxu0  ;;  %11149 = vmatprep.subr.mxu0 %v14826_v1  ;;  %v7443_v44 = vld [vmem:[#allocation6 + $0x8] sm:$0xff] }
 0x89b   : > { %v6876_v32 = vmax.f32 %v6760_v14, %v6857_v38  ;;  %v7442_v14 = vld [vmem:[#allocation6] sm:$0xff] }
 0x89c   : > { %11122 = vmatmul.mubr.msk.f32.vlgmr.msra.gmra.mxu0 %vm5769_vm13, %v7108_v28  ;;  %v7454_v28 = vld [vmem:[#allocation6 + $0x40] sm:$0xff] }
 0x89d   : > { %11055 = vmatprep.mubr.msk.f32.mxu1 %vm5769_vm13, %v6876_v32  ;;  %11124 = vmatprep.mubr.msk.f32.mxu0 %vm5769_vm13, %v7109_v57  ;;  %v9437_v57 = vld [vmem:[%s14843_s11] ss:$0 sm:$0xff]  ;;  %s908_s11 = sand.u32 1, %s11632_s10  }
 0x89e   : > { %11056 = vmatmul.mubr.msk.f32.vlgmr.msra.gmra.mxu1 %vm5769_vm13, %v6877_v13  ;;  %11150 = vmatpush3.msra.mxu0 %v7461_v47  ;;  %v7790_v47 = vld [vmem:[#allocation6 + $0x130] sm:$0xff]  ;;  %s909_s3 = scalar_lea.vmem [#allocation9], %s908_s11  ;;  %s8824_s8 = scalar_lea.sflag [#allocation8], %s908_s11 }
 0x89f   : > { %11084 = vmatpush3.msra.mxu1 %v14034_v7  ;;  %11151 = vmatprep.subr.mxu0 %v14826_v1  ;;  %s8836_s5 = sshll.u32 %s909_s3, 4  ;;  %s8837_s5 = int_to_ptr.vmem [resolvable:$true] %s8836_s5 }
 0x8a0   : > { %11085 = vmatprep.subr.mxu1 %v14036_v59  ;;  %11125 = vmatmul.mubr.msk.f32.gmra.mxu0 %vm5769_vm13, %v7110_v15  ;;  %s11576_s9 = scalar_lea.vmem %s8837_s5, 16 }
 0x8a1   : > { %11086 = vmatpush3.msra.mxu1 %v14036_v59  ;;  %11152 = vmatpush3.msra.mxu0 %v7460_v30  ;;  %v7789_v30 = vld [vmem:[#allocation6 + $0x128] sm:$0xff]  ;;  %p11577_p8 = scmp.ne.s32.totalorder %s8837_s5, %s11576_s9 }
 0x8a2   : > { %11087 = vmatprep.subr.mxu1 %v14042_v55  ;;  %11153 = vmatprep.subr.mxu0 %v14826_v1 }
 0x8a3   : > { %11088 = vmatpush3.msra.mxu1 %v14042_v55  ;;  %v7095_v55 = vsel %vm7091_vm9, 1.0, %v14826_v1  ;;  %11154 = vmatpush3.msra.mxu0 %v7459_v9  ;;  %v7788_v9 = vld [vmem:[#allocation6 + $0x120] sm:$0xff]  ;;  %p11578_p9 = pnand %p11577_p8, %p11871_p5 }
 0x8a4   : > { %11089 = vmatprep.subr.mxu1 %v14048_v53  ;;  %11155 = vmatprep.subr.mxu0 %v14826_v1 }
 0x8a5   : > { %v11016_v27 = vpop.f32.mrf.mxu1  ;;  %v11038_v11 = vpop.f32.mrf.mxu0  ;;  %11090 = vmatpush3.msra.mxu1 %v14048_v53  ;;  %v7096_v53 = vsel %vm7092_vm10, 1.0, %v14826_v1  ;;  %11156 = vmatpush3.msra.mxu0 %v7458_v40  ;;  %v7787_v40 = vld [vmem:[#allocation6 + $0x118] sm:$0xff]  ;;  %p11579_p10 = pneg %p11578_p9 }
 0x8a6   : > { %11091 = vmatprep.subr.mxu1 %v14054_v18  ;;  %v6879_v7 = vmax.f32 %v11016_v27, %v11038_v11  ;;  %11157 = vmatprep.subr.mxu0 %v14826_v1 }
 0x8a7   : > { %v6770_v6 = vpop.f32.mrf.mxu1  ;;  %v6867_v59 = vpop.f32.mrf.mxu0  ;;  %11092 = vmatpush3.msra.mxu1 %v14054_v18  ;;  %v9432_v18 = vld [vmem:[%s14841_s22 + $0xb8] sm:$0xff]  ;;  %11158 = vmatpush3.msra.mxu0 %v7457_v46  ;;  %v7786_v46 = vld [vmem:[#allocation6 + $0x110] sm:$0xff] }
 0x8a8   : > { %v6878_v54 = vmax.f32 %v6770_v6, %v6867_v59  ;;  %11093 = vmatprep.subr.mxu1 %v14060_v36  ;;  %11159 = vmatprep.subr.mxu0 %v14826_v1 }
 0x8a9   : > { %11094 = vmatpush3.msra.mxu1 %v14060_v36  ;;  %v7097_v36 = vsel %vm7093_vm6, 1.0, %v14826_v1  ;;  %11160 = vmatpush3.msra.mxu0 %v7456_v45  ;;  %v7785_v45 = vld [vmem:[#allocation6 + $0x108] sm:$0xff] }
 0x8aa   : > { %11058 = vmatprep.mubr.msk.f32.mxu1 %vm5769_vm13, %v6878_v54  ;;  %11095 = vmatprep.subr.mxu1 %v14067_v19 }
 0x8ab   : > { %11059 = vmatmul.mubr.msk.f32.gmra.mxu1 %vm5769_vm13, %v6879_v7  ;;  %11161 = vmatprep.subr.mxu0 %v14826_v1 }
 0x8ac   : > { %11096 = vmatpush3.msra.mxu1 %v14067_v19  ;;  %11099 = vmatprep.mubr.msk.f32.mxu1 %vm5769_vm13, %v7095_v55  ;;  %v7098_v19 = vsel %vm7094_vm3, 1.0, %v14826_v1 }
 0x8ad   : > { %11097 = vmatprep.subr.mxu1 %v14073_v23  ;;  %11162 = vmatpush3.msra.mxu0 %v7455_v56  ;;  %v7784_v56 = vld [vmem:[#allocation6 + $0x100] sm:$0xff] }
 0x8ae   : > { %11098 = vmatpush3.msra.mxu1 %v14073_v23  ;;  %v9429_v23 = vld [vmem:[%s14841_s22 + $0xa0] sm:$0xff]  ;;  %11163 = vmatprep.subr.mxu0 %v14826_v1 }
 0x8af   : > { %11100 = vmatmul.mubr.msk.f32.vlgmr.msra.gmra.mxu1 %vm5769_vm13, %v7096_v53  ;;  %11127 = vmatprep.subr.mxu1 %v9432_v18 }
 0x8b0   : > { %11102 = vmatprep.mubr.msk.f32.mxu1 %vm5769_vm13, %v7097_v36  ;;  %11128 = vmatpush3.msra.mxu1 %v9432_v18 }
 0x8b1   : > { %11129 = vmatprep.subr.mxu1 %v9431_v22  ;;  %11164 = vmatpush3.msra.mxu0 %v7454_v28 }
 0x8b2   : > { %11130 = vmatpush3.msra.mxu1 %v9431_v22  ;;  %11165 = vmatprep.mubr.msk.f32.mxu0 %vm11676_vm4, %v14826_v1 }
 0x8b3   : > { %11103 = vmatmul.mubr.msk.f32.gmra.mxu1 %vm5769_vm13, %v7098_v19  ;;  %11131 = vmatprep.subr.mxu1 %v9430_v0 }
 0x8b4   : > { %11132 = vmatpush3.msra.mxu1 %v9430_v0  ;;  %11187 = vmatprep.subr.mxu0 %v14826_v1 }
 0x8b5   : > { %11133 = vmatprep.subr.mxu1 %v9429_v23 }
 0x8b6   : > { %11134 = vmatpush3.msra.mxu1 %v9429_v23 }
 0x8b7   : > { %11135 = vmatprep.subr.mxu1 %v9428_v43 }
 0x8b8   : > { %11136 = vmatpush3.msra.mxu1 %v9428_v43 }
 0x8b9   : > { %11137 = vmatprep.subr.mxu1 %v9427_v50 }
 0x8ba   : > { %11138 = vmatpush3.msra.mxu1 %v9427_v50 }
 0x8bb   : > { %11139 = vmatprep.subr.mxu1 %v9426_v3 }
 0x8bc   : > { %11140 = vmatpush3.msra.mxu1 %v9426_v3 }
 0x8bd   : > { %11141 = vmatprep.subr.mxu1 %v9425_v42 }
 0x8be   : > { %11142 = vmatpush3.msra.mxu1 %v9425_v42  ;;  %v7619_v42 = vld [vmem:[#allocation6 + $0xb8] sm:$0xff] }
 0x8bf   : > { %11168 = vmatprep.subr.mxu1 %v14826_v1 }
 0x94a   : > { %v11079_v60 = vpop.f32.mrf.mxu0 }
 0x94c   : > { %v7064_v10 = vpop.f32.mrf.mxu0 }
 0x958   : > { %v11082_v58 = vpop.f32.mrf.mxu0 }
 0x95a   : > { %v7074_v21 = vpop.f32.mrf.mxu0 }
 0x95c   : > { %v11123_v63 = vpop.f32.mrf.mxu0 }
 0x95e   : > { %v11057_v31 = vpop.f32.mrf.mxu1  ;;  %v7286_v61 = vpop.f32.mrf.mxu0 }
 0x95f   : > { %v14295_v16 = vadd.f32 %v11079_v60, %v11057_v31  ;;  %v7705_v31 = vld [vmem:[#allocation6 + $0xf8] sm:$0xff] }
 0x960   : > { %v6967_v34 = vpop.f32.mrf.mxu1  ;;  %v11126_v5 = vpop.f32.mrf.mxu0 }
 0x961   : > { %v14297_v8 = vadd.f32 %v7064_v10, %v6967_v34  ;;  %v7704_v34 = vld [vmem:[#allocation6 + $0xf0] sm:$0xff]  ;;  %v7617_v10 = vld [vmem:[#allocation6 + $0xa8] sm:$0xff] }
 0x962   : > { %v7296_v51 = vpop.f32.mrf.mxu0 }
 0x96b   : > { %v11060_v52 = vpop.f32.mrf.mxu1 }
 0x96c   : > { %v14299_v20 = vadd.f32 %v11082_v58, %v11060_v52  ;;  %v7616_v58 = vld [vmem:[#allocation6 + $0xa0] sm:$0xff]  ;;  %v7701_v52 = vld [vmem:[#allocation6 + $0xd8] sm:$0xff] }
 0x96d   : > { %v6977_v49 = vpop.f32.mrf.mxu1 }
 0x96e   : > { %v14301_v29 = vadd.f32 %v7074_v21, %v6977_v49  ;;  %v7702_v21 = vld [vmem:[#allocation6 + $0xe0] sm:$0xff]  ;;  %v7700_v49 = vld [vmem:[#allocation6 + $0xd0] sm:$0xff] }
 0x96f   : > { %v11101_v35 = vpop.f32.mrf.mxu1 }
 0x970   : > { %v7306_v25 = vmax.f32 %v11101_v35, %v11123_v63  ;;  %v7615_v63 = vld [vmem:[#allocation6 + $0x98] sm:$0xff]  ;;  %v7612_v35 = vld [vmem:[#allocation6 + $0x80] sm:$0xff] }
 0x971   : > { %v7189_v48 = vpop.f32.mrf.mxu1 }
 0x972   : > { %v7305_v41 = vmax.f32 %v7189_v48, %v7286_v61  ;;  %v7613_v61 = vld [vmem:[#allocation6 + $0x88] sm:$0xff] }
 0x973   : > { %v11104_v24 = vpop.f32.mrf.mxu1 }
 0x974   : > { %11143 = vmatprep.mubr.msk.f32.mxu1 %vm5769_vm13, %v7305_v41  ;;  %v7308_v2 = vmax.f32 %v11104_v24, %v11126_v5  ;;  %v7698_v41 = vld [vmem:[#allocation6 + $0xc0] sm:$0xff] }
 0x975   : > { %v7199_v4 = vpop.f32.mrf.mxu1  ;;  %11144 = vmatmul.mubr.msk.f32.vlgmr.msra.gmra.mxu1 %vm5769_vm13, %v7306_v25 }
 0x976   : > { %v7307_v12 = vmax.f32 %v7199_v4, %v7296_v51  ;;  %11169 = vmatpush3.msra.mxu1 %v7449_v62  ;;  %v7791_v4 = vld [vmem:[#allocation6 + $0x138] sm:$0xff]  ;;  %v7876_v62 = vld [vmem:[#allocation6 + $0x170] sm:$0xff] }
 0x977   : > { %11170 = vmatprep.subr.mxu1 %v14826_v1 }
 0x978   : > { %11146 = vmatprep.mubr.msk.f32.mxu1 %vm5769_vm13, %v7307_v12  ;;  %11171 = vmatpush3.msra.mxu1 %v7448_v26  ;;  %v7877_v12 = vld [vmem:[#allocation6 + $0x178] sm:$0xff]  ;;  %v7875_v26 = vld [vmem:[#allocation6 + $0x168] sm:$0xff] }
 0x979   : > { %11147 = vmatmul.mubr.msk.f32.gmra.mxu1 %vm5769_vm13, %v7308_v2  ;;  %11172 = vmatprep.subr.mxu1 %v14826_v1 }
 0x97a   : > { %11173 = vmatpush3.msra.mxu1 %v7447_v17  ;;  %11184 = vmatprep.mubr.msk.f32.mxu1 %vm11676_vm4, %v14826_v1  ;;  %v7874_v17 = vld [vmem:[#allocation6 + $0x160] sm:$0xff] }
 0x97b   : > { %11174 = vmatprep.subr.mxu1 %v14826_v1 }
 0x97c   : > { %11175 = vmatpush3.msra.mxu1 %v7446_v37  ;;  %v7873_v37 = vld [vmem:[#allocation6 + $0x158] sm:$0xff] }
 0x97d   : > { %11176 = vmatprep.subr.mxu1 %v14826_v1 }
 0x97e   : > { %11177 = vmatpush3.msra.mxu1 %v7445_v33  ;;  %v7872_v33 = vld [vmem:[#allocation6 + $0x150] sm:$0xff] }
 0x97f   : > { %11178 = vmatprep.subr.mxu1 %v14826_v1 }
 0x980   : > { %11179 = vmatpush3.msra.mxu1 %v7444_v39  ;;  %v7871_v39 = vld [vmem:[#allocation6 + $0x148] sm:$0xff] }
 0x981   : > { %11180 = vmatprep.subr.mxu1 %v14826_v1 }
 0x982   : > { %11181 = vmatpush3.msra.mxu1 %v7443_v44 }
 0x983   : > { %11182 = vmatprep.subr.mxu1 %v14826_v1 }
 0x984   : > { %11183 = vmatpush3.msra.mxu1 %v7442_v14  ;;  %v7870_v14 = vld [vmem:[#allocation6 + $0x140] sm:$0xff] }
 0x985   : > { %11206 = vmatprep.subr.mxu1 %v14826_v1 }
 0xa35   : > { %v11145_v38 = vpop.f32.mrf.mxu1 }
 0xa36   : > { %v7416_v32 = vadd.f32 %v11145_v38, %v14295_v16  ;;  %v7618_v16 = vld [vmem:[#allocation6 + $0xb0] sm:$0xff] }
 0xa37   : > { %v7396_v13 = vpop.f32.mrf.mxu1 }
 0xa38   : > { %v7427_v15 = vadd.f32 %v9437_v57, %v7416_v32  ;;  %v7415_v27 = vadd.f32 %v7396_v13, %v14297_v8  ;;  %v7703_v8 = vld [vmem:[#allocation6 + $0xe8] sm:$0xff] }
 0xa39   : > { %v11148_v11 = vpop.f32.mrf.mxu1 }
 0xa3a   : > { %v7431_v7 = vmax.f32 %v7427_v15, 0.0  ;;  %v7426_v6 = vadd.f32 %v9437_v57, %v7415_v27  ;;  %v7418_v59 = vadd.f32 %v11148_v11, %v14299_v20  ;;  %v7614_v20 = vld [vmem:[#allocation6 + $0x90] sm:$0xff]  ;;  %v7963_v15 = vld [vmem:[#allocation6 + $0x1b8] sm:$0xff] }
 0xa3b   : > { %v7406_v54 = vpop.f32.mrf.mxu1  ;;  %v8049_v27 = vld [vmem:[#allocation6 + $0x1f8] sm:$0xff]  ;;  %v7962_v11 = vld [vmem:[#allocation6 + $0x1b0] sm:$0xff] }
 0xa3c   : > { %7435 = vst.msk [vmem:[#allocation5 + $0x8] sm:$0xff] %vm5769_vm13, %v7431_v7  ;;  %v7430_v55 = vmax.f32 %v7426_v6, 0.0  ;;  %v7429_v53 = vadd.f32 %v9437_v57, %v7418_v59  ;;  %v7417_v18 = vadd.f32 %v7406_v54, %v14301_v29  ;;  %v7699_v29 = vld [vmem:[#allocation6 + $0xc8] sm:$0xff]  ;;  %v8048_v7 = vld [vmem:[#allocation6 + $0x1f0] sm:$0xff]  ;;  %v7960_v54 = vld [vmem:[#allocation6 + $0x1a0] sm:$0xff] }
 0xa3d   : > { %v7961_v6 = vld [vmem:[#allocation6 + $0x1a8] sm:$0xff] }
 0xa3e   : > { %7434 = vst.msk [vmem:[#allocation5] sm:$0xff] %vm5769_vm13, %v7430_v55  ;;  %v7433_v36 = vmax.f32 %v7429_v53, 0.0  ;;  %v7428_v19 = vadd.f32 %v9437_v57, %v7417_v18  ;;  %v8047_v59 = vld [vmem:[#allocation6 + $0x1e8] sm:$0xff]  ;;  %v8046_v55 = vld [vmem:[#allocation6 + $0x1e0] sm:$0xff]  ;;  %v7959_v53 = vld [vmem:[#allocation6 + $0x198] sm:$0xff] }
 0xa3f   : > { %v8045_v18 = vld [vmem:[#allocation6 + $0x1d8] sm:$0xff] }
 0xa40   : > { %7438 = vst.msk [vmem:[#allocation5 + $0x18] sm:$0x3f] %vm7437_vm7, %v7433_v36  ;;  %v7432_v22 = vmax.f32 %v7428_v19, 0.0  ;;  %v7958_v36 = vld [vmem:[#allocation6 + $0x190] sm:$0xff] }
 0xa41   : > { %v8044_v19 = vld [vmem:[#allocation6 + $0x1d0] sm:$0xff] }
 0xa42   : > { %7436 = vst.msk [vmem:[#allocation5 + $0x10] sm:$0xff] %vm5769_vm13, %v7432_v22  ;;  %v7957_v22 = vld [vmem:[#allocation6 + $0x188] sm:$0xff] }
 0xa43   : > { %v7780_v44 = vld [vmem:[#allocation5 + $0x8] sm:$0x1]  ;;  %v7781_v28 = vld [vmem:[#allocation5 + $0x9] sm:$0x1]  ;;  %v7866_v38 = vld [vmem:[#allocation5 + $0xa] sm:$0x1] }
 0xa44   : > { %v7867_v57 = vld [vmem:[#allocation5 + $0xb] sm:$0x1]  ;;  %v7782_v32 = vmax.f32 %v7780_v44, %v7781_v28 }
 0xa45   : > { %v7450_v0 = vld [vmem:[#allocation5 + $0x2] sm:$0x1]  ;;  %v7451_v23 = vld [vmem:[#allocation5 + $0x3] sm:$0x1]  ;;  %v7439_v43 = vld [vmem:[#allocation5] sm:$0x1]  ;;  %v7868_v13 = vmax.f32 %v7866_v38, %v7867_v57 }
 0xa46   : > { %v7452_v50 = vmax.f32 %v7450_v0, %v7451_v23  ;;  %v7440_v3 = vld [vmem:[#allocation5 + $0x1] sm:$0x1]  ;;  %v7608_v5 = vld [vmem:[#allocation5 + $0x4] sm:$0x1]  ;;  %v7609_v48 = vld [vmem:[#allocation5 + $0x5] sm:$0x1] }
 0xa47   : > { %v7441_v60 = vmax.f32 %v7439_v43, %v7440_v3  ;;  %v7694_v25 = vld [vmem:[#allocation5 + $0x6] sm:$0x1]  ;;  %v7695_v24 = vld [vmem:[#allocation5 + $0x7] sm:$0x1]  ;;  %v7610_v51 = vmax.f32 %v7608_v5, %v7609_v48  ;;  %v8043_v0 = vld [vmem:[#allocation6 + $0x1c8] sm:$0xff] }
 0xa48   : > { %11166 = vmatmul.mubr.msk.f32.vlgmr.msra.gmra.mxu0 %vm5769_vm13, %v7452_v50  ;;  %v7696_v2 = vmax.f32 %v7694_v25, %v7695_v24  ;;  %v7956_v23 = vld [vmem:[#allocation6 + $0x180] sm:$0xff]  ;;  %v7952_v43 = vld [vmem:[#allocation5 + $0xc] sm:$0x1]  ;;  %v7953_v50 = vld [vmem:[#allocation5 + $0xd] sm:$0x1] }
 0xa49   : > { %11185 = vmatmul.mubr.msk.f32.vlgmr.msra.gmra.mxu1 %vm5769_vm13, %v7441_v60  ;;  %11188 = vmatpush3.msra.mxu0 %v7619_v42  ;;  %v8042_v3 = vld [vmem:[#allocation6 + $0x1c0] sm:$0xff]  ;;  %v8038_v42 = vld [vmem:[#allocation5 + $0xe] sm:$0x1]  ;;  %v8039_v60 = vld [vmem:[#allocation5 + $0xf] sm:$0x1] }
 0xa4a   : > { %11207 = vmatpush3.msra.mxu1 %v7705_v31  ;;  %11189 = vmatprep.subr.mxu0 %v14826_v1  ;;  %v7954_v31 = vmax.f32 %v7952_v43, %v7953_v50  ;;  %v8129_v5 = vld [vmem:[#allocation6 + $0x208] sm:$0xff]  ;;  %v8124_v25 = vld [vmem:[#allocation5 + $0x10] sm:$0x1]  ;;  %v8125_v24 = vld [vmem:[#allocation5 + $0x11] sm:$0x1] }
 0xa4b   : > { %11208 = vmatprep.subr.mxu1 %v14826_v1  ;;  %11190 = vmatpush3.msra.mxu0 %v7618_v16  ;;  %v8040_v16 = vmax.f32 %v8038_v42, %v8039_v60  ;;  %v8215_v48 = vld [vmem:[#allocation6 + $0x248] sm:$0xff]  ;;  %v8296_v38 = vld [vmem:[#allocation5 + $0x14] sm:$0x1]  ;;  %v8297_v57 = vld [vmem:[#allocation5 + $0x15] sm:$0x1] }
 0xa4c   : > { %11209 = vmatpush3.msra.mxu1 %v7704_v34  ;;  %11191 = vmatprep.subr.mxu0 %v14826_v1  ;;  %v8135_v34 = vld [vmem:[#allocation6 + $0x238] sm:$0xff]  ;;  %v8301_v44 = vld [vmem:[#allocation6 + $0x288] sm:$0xff] }
 0xa4d   : > { %11210 = vmatprep.subr.mxu1 %v14826_v1  ;;  %11192 = vmatpush3.msra.mxu0 %v7617_v10  ;;  %v8221_v10 = vld [vmem:[#allocation6 + $0x278] sm:$0xff]  ;;  %v8387_v28 = vld [vmem:[#allocation6 + $0x2c8] sm:$0xff] }
 0xa4e   : > { %11211 = vmatpush3.msra.mxu1 %v7703_v8  ;;  %11193 = vmatprep.subr.mxu0 %v14826_v1  ;;  %v8134_v8 = vld [vmem:[#allocation6 + $0x230] sm:$0xff]  ;;  %v8473_v43 = vld [vmem:[#allocation6 + $0x308] sm:$0xff]  ;;  %v8468_v42 = vld [vmem:[#allocation5 + $0x18] sm:$0x1] }
 0xa4f   : > { %11212 = vmatprep.subr.mxu1 %v14826_v1  ;;  %11194 = vmatpush3.msra.mxu0 %v7616_v58  ;;  %v8220_v58 = vld [vmem:[#allocation6 + $0x270] sm:$0xff]  ;;  %v8559_v50 = vld [vmem:[#allocation6 + $0x348] sm:$0xff]  ;;  %v8469_v60 = vld [vmem:[#allocation5 + $0x19] sm:$0x1] }
 0xa50   : > { %11213 = vmatpush3.msra.mxu1 %v7702_v21  ;;  %11195 = vmatprep.subr.mxu0 %v14826_v1  ;;  %v8133_v21 = vld [vmem:[#allocation6 + $0x228] sm:$0xff] }
 0xa51   : > { %11214 = vmatprep.subr.mxu1 %v14826_v1  ;;  %11196 = vmatpush3.msra.mxu0 %v7615_v63  ;;  %v8219_v63 = vld [vmem:[#allocation6 + $0x268] sm:$0xff] }
 0xa52   : > { %11215 = vmatpush3.msra.mxu1 %v7701_v52  ;;  %11197 = vmatprep.subr.mxu0 %v14826_v1  ;;  %v8132_v52 = vld [vmem:[#allocation6 + $0x220] sm:$0xff] }
 0xa53   : > { %11216 = vmatprep.subr.mxu1 %v14826_v1  ;;  %11198 = vmatpush3.msra.mxu0 %v7614_v20  ;;  %v8218_v20 = vld [vmem:[#allocation6 + $0x260] sm:$0xff] }
 0xa54   : > { %11217 = vmatpush3.msra.mxu1 %v7700_v49  ;;  %11199 = vmatprep.subr.mxu0 %v14826_v1  ;;  %v8131_v49 = vld [vmem:[#allocation6 + $0x218] sm:$0xff] }
 0xa55   : > { %11218 = vmatprep.subr.mxu1 %v14826_v1  ;;  %11200 = vmatpush3.msra.mxu0 %v7613_v61  ;;  %v8217_v61 = vld [vmem:[#allocation6 + $0x258] sm:$0xff] }
 0xa56   : > { %11219 = vmatpush3.msra.mxu1 %v7699_v29  ;;  %11201 = vmatprep.subr.mxu0 %v14826_v1  ;;  %v8130_v29 = vld [vmem:[#allocation6 + $0x210] sm:$0xff] }
 0xa57   : > { %11220 = vmatprep.subr.mxu1 %v14826_v1  ;;  %11202 = vmatpush3.msra.mxu0 %v7612_v35  ;;  %v8216_v35 = vld [vmem:[#allocation6 + $0x250] sm:$0xff] }
 0xa58   : > { %11203 = vmatprep.mubr.msk.f32.mxu0 %vm11676_vm4, %v14826_v1  ;;  %11221 = vmatpush3.msra.mxu1 %v7698_v41  ;;  %v8128_v41 = vld [vmem:[#allocation6 + $0x200] sm:$0xff] }
 0xa59   : > { %11222 = vmatprep.mubr.msk.f32.mxu1 %vm11676_vm4, %v14826_v1  ;;  %11204 = vmatmul.mubr.msk.f32.vlgmr.msra.gmra.mxu0 %vm5769_vm13, %v7610_v51  ;;  %v8214_v51 = vld [vmem:[#allocation6 + $0x240] sm:$0xff] }
 0xa5a   : > { %11223 = vmatmul.mubr.msk.f32.vlgmr.msra.gmra.mxu1 %vm5769_vm13, %v7696_v2  ;;  %11225 = vmatprep.subr.mxu0 %v14826_v1  ;;  %v8210_v2 = vld [vmem:[#allocation5 + $0x12] sm:$0x1] }
 0xa5b   : > { %11244 = vmatprep.subr.mxu1 %v14826_v1  ;;  %11226 = vmatpush3.msra.mxu0 %v7791_v4  ;;  %v8211_v4 = vld [vmem:[#allocation5 + $0x13] sm:$0x1] }
 0xa5c   : > { %11245 = vmatpush3.msra.mxu1 %v7877_v12  ;;  %11227 = vmatprep.subr.mxu0 %v14826_v1  ;;  %v8126_v12 = vmax.f32 %v8124_v25, %v8125_v24  ;;  %v8740_v25 = vld [vmem:[%s14606_s6 + $0x58] sm:$0xff]  ;;  %v8739_v24 = vld [vmem:[%s14606_s6 + $0x50] sm:$0xff] }
 0xa5d   : > { %11246 = vmatprep.subr.mxu1 %v14826_v1  ;;  %11228 = vmatpush3.msra.mxu0 %v7790_v47  ;;  %v8212_v47 = vmax.f32 %v8210_v2, %v8211_v4  ;;  %v8737_v2 = vld [vmem:[%s14606_s6 + $0x40] sm:$0xff]  ;;  %v8736_v4 = vld [vmem:[%s14606_s6 + $0x38] sm:$0xff] }
 0xa5e   : > { %11247 = vmatpush3.msra.mxu1 %v7876_v62  ;;  %11229 = vmatprep.subr.mxu0 %v14826_v1  ;;  %v8307_v62 = vld [vmem:[#allocation6 + $0x2b8] sm:$0xff] }
 0xa5f   : > { %11248 = vmatprep.subr.mxu1 %v14826_v1  ;;  %11230 = vmatpush3.msra.mxu0 %v7789_v30  ;;  %v8393_v30 = vld [vmem:[#allocation6 + $0x2f8] sm:$0xff] }
 0xa60   : > { %11249 = vmatpush3.msra.mxu1 %v7875_v26  ;;  %11231 = vmatprep.subr.mxu0 %v14826_v1  ;;  %v8306_v26 = vld [vmem:[#allocation6 + $0x2b0] sm:$0xff] }
 0xa61   : > { %11250 = vmatprep.subr.mxu1 %v14826_v1  ;;  %11232 = vmatpush3.msra.mxu0 %v7788_v9  ;;  %v8392_v9 = vld [vmem:[#allocation6 + $0x2f0] sm:$0xff] }
 0xa62   : > { %11251 = vmatpush3.msra.mxu1 %v7874_v17  ;;  %11233 = vmatprep.subr.mxu0 %v14826_v1  ;;  %v8305_v17 = vld [vmem:[#allocation6 + $0x2a8] sm:$0xff] }
 0xa63   : > { %11252 = vmatprep.subr.mxu1 %v14826_v1  ;;  %11234 = vmatpush3.msra.mxu0 %v7787_v40  ;;  %v8391_v40 = vld [vmem:[#allocation6 + $0x2e8] sm:$0xff] }
 0xa64   : > { %11253 = vmatpush3.msra.mxu1 %v7873_v37  ;;  %11235 = vmatprep.subr.mxu0 %v14826_v1  ;;  %v8304_v37 = vld [vmem:[#allocation6 + $0x2a0] sm:$0xff] }
 0xa65   : > { %11254 = vmatprep.subr.mxu1 %v14826_v1  ;;  %11236 = vmatpush3.msra.mxu0 %v7786_v46  ;;  %v8390_v46 = vld [vmem:[#allocation6 + $0x2e0] sm:$0xff] }
 0xa66   : > { %11255 = vmatpush3.msra.mxu1 %v7872_v33  ;;  %11237 = vmatprep.subr.mxu0 %v14826_v1  ;;  %v8303_v33 = vld [vmem:[#allocation6 + $0x298] sm:$0xff] }
 0xa67   : > { %11256 = vmatprep.subr.mxu1 %v14826_v1  ;;  %11238 = vmatpush3.msra.mxu0 %v7785_v45  ;;  %v8389_v45 = vld [vmem:[#allocation6 + $0x2d8] sm:$0xff] }
 0xa68   : > { %11257 = vmatpush3.msra.mxu1 %v7871_v39  ;;  %11239 = vmatprep.subr.mxu0 %v14826_v1  ;;  %v8302_v39 = vld [vmem:[#allocation6 + $0x290] sm:$0xff] }
 0xa69   : > { %11258 = vmatprep.subr.mxu1 %v14826_v1  ;;  %11240 = vmatpush3.msra.mxu0 %v7784_v56  ;;  %v8388_v56 = vld [vmem:[#allocation6 + $0x2d0] sm:$0xff] }
 0xa6a   : > { %11241 = vmatprep.mubr.msk.f32.mxu0 %vm11676_vm4, %v14826_v1  ;;  %11259 = vmatpush3.msra.mxu1 %v7870_v14  ;;  %v8300_v14 = vld [vmem:[#allocation6 + $0x280] sm:$0xff] }
 0xa6b   : > { %11260 = vmatprep.mubr.msk.f32.mxu1 %vm11676_vm4, %v14826_v1  ;;  %11242 = vmatmul.mubr.msk.f32.vlgmr.msra.gmra.mxu0 %vm5769_vm13, %v7782_v32  ;;  %v8386_v32 = vld [vmem:[#allocation6 + $0x2c0] sm:$0xff] }
 0xa6c   : > { %11261 = vmatmul.mubr.msk.f32.vlgmr.msra.gmra.mxu1 %vm5769_vm13, %v7868_v13  ;;  %11263 = vmatprep.subr.mxu0 %v14826_v1  ;;  %v8382_v13 = vld [vmem:[#allocation5 + $0x16] sm:$0x1] }
 0xa6d   : > { %11282 = vmatprep.subr.mxu1 %v14826_v1  ;;  %11264 = vmatpush3.msra.mxu0 %v7963_v15  ;;  %v8383_v15 = vld [vmem:[#allocation5 + $0x17] sm:$0x1] }
 0xa6e   : > { %11283 = vmatpush3.msra.mxu1 %v8049_v27  ;;  %11265 = vmatprep.subr.mxu0 %v14826_v1  ;;  %v8298_v27 = vmax.f32 %v8296_v38, %v8297_v57 }
 0xa6f   : > { %11284 = vmatprep.subr.mxu1 %v14826_v1  ;;  %11266 = vmatpush3.msra.mxu0 %v7962_v11  ;;  %v8384_v11 = vmax.f32 %v8382_v13, %v8383_v15 }
 0xa70   : > { %11285 = vmatpush3.msra.mxu1 %v8048_v7  ;;  %11267 = vmatprep.subr.mxu0 %v14826_v1  ;;  %v8479_v7 = vld [vmem:[#allocation6 + $0x338] sm:$0xff] }
 0xa71   : > { %11286 = vmatprep.subr.mxu1 %v14826_v1  ;;  %11268 = vmatpush3.msra.mxu0 %v7961_v6  ;;  %v8565_v6 = vld [vmem:[#allocation6 + $0x378] sm:$0xff] }
 0xa72   : > { %11287 = vmatpush3.msra.mxu1 %v8047_v59  ;;  %11269 = vmatprep.subr.mxu0 %v14826_v1  ;;  %v8478_v59 = vld [vmem:[#allocation6 + $0x330] sm:$0xff] }
 0xa73   : > { %11288 = vmatprep.subr.mxu1 %v14826_v1  ;;  %11270 = vmatpush3.msra.mxu0 %v7960_v54  ;;  %v8564_v54 = vld [vmem:[#allocation6 + $0x370] sm:$0xff] }
 0xa74   : > { %11289 = vmatpush3.msra.mxu1 %v8046_v55  ;;  %11271 = vmatprep.subr.mxu0 %v14826_v1  ;;  %v8477_v55 = vld [vmem:[#allocation6 + $0x328] sm:$0xff] }
 0xa75   : > { %11290 = vmatprep.subr.mxu1 %v14826_v1  ;;  %11272 = vmatpush3.msra.mxu0 %v7959_v53  ;;  %v8563_v53 = vld [vmem:[#allocation6 + $0x368] sm:$0xff] }
 0xa76   : > { %11291 = vmatpush3.msra.mxu1 %v8045_v18  ;;  %11273 = vmatprep.subr.mxu0 %v14826_v1  ;;  %v8476_v18 = vld [vmem:[#allocation6 + $0x320] sm:$0xff] }
 0xa77   : > { %11292 = vmatprep.subr.mxu1 %v14826_v1  ;;  %11274 = vmatpush3.msra.mxu0 %v7958_v36  ;;  %v8562_v36 = vld [vmem:[#allocation6 + $0x360] sm:$0xff] }
 0xa78   : > { %11293 = vmatpush3.msra.mxu1 %v8044_v19  ;;  %11275 = vmatprep.subr.mxu0 %v14826_v1  ;;  %v8475_v19 = vld [vmem:[#allocation6 + $0x318] sm:$0xff] }
 0xa79   : > { %11294 = vmatprep.subr.mxu1 %v14826_v1  ;;  %11276 = vmatpush3.msra.mxu0 %v7957_v22  ;;  %v8561_v22 = vld [vmem:[#allocation6 + $0x358] sm:$0xff] }
 0xa7a   : > { %11295 = vmatpush3.msra.mxu1 %v8043_v0  ;;  %11277 = vmatprep.subr.mxu0 %v14826_v1  ;;  %v8474_v0 = vld [vmem:[#allocation6 + $0x310] sm:$0xff] }
 0xa7b   : > { %11296 = vmatprep.subr.mxu1 %v14826_v1  ;;  %11278 = vmatpush3.msra.mxu0 %v7956_v23  ;;  %v8560_v23 = vld [vmem:[#allocation6 + $0x350] sm:$0xff] }
 0xa7c   : > { %11279 = vmatprep.mubr.msk.f32.mxu0 %vm11676_vm4, %v14826_v1  ;;  %11297 = vmatpush3.msra.mxu1 %v8042_v3  ;;  %v8472_v3 = vld [vmem:[#allocation6 + $0x300] sm:$0xff] }
 0xa7d   : > { %11298 = vmatprep.mubr.msk.f32.mxu1 %vm11676_vm4, %v14826_v1  ;;  %11280 = vmatmul.mubr.msk.f32.vlgmr.msra.gmra.mxu0 %vm5769_vm13, %v7954_v31  ;;  %v8558_v31 = vld [vmem:[#allocation6 + $0x340] sm:$0xff] }
 0xa7e   : > { %11299 = vmatmul.mubr.msk.f32.vlgmr.msra.gmra.mxu1 %vm5769_vm13, %v8040_v16  ;;  %11301 = vmatprep.subr.mxu0 %v14826_v1  ;;  %v8554_v16 = vld [vmem:[#allocation5 + $0x1a] sm:$0x1] }
 0xa7f   : > { %11320 = vmatprep.subr.mxu1 %v14826_v1  ;;  %11302 = vmatpush3.msra.mxu0 %v8135_v34  ;;  %v8555_v34 = vld [vmem:[#allocation5 + $0x1b] sm:$0x1] }
 0xa80   : > { %11321 = vmatpush3.msra.mxu1 %v8221_v10  ;;  %11303 = vmatprep.subr.mxu0 %v14826_v1  ;;  %v8470_v10 = vmax.f32 %v8468_v42, %v8469_v60 }
 0xa81   : > { %11322 = vmatprep.subr.mxu1 %v14826_v1  ;;  %11304 = vmatpush3.msra.mxu0 %v8134_v8  ;;  %v8556_v8 = vmax.f32 %v8554_v16, %v8555_v34 }
 0xa82   : > { %11323 = vmatpush3.msra.mxu1 %v8220_v58  ;;  %11305 = vmatprep.subr.mxu0 %v14826_v1  ;;  %v8651_v58 = vld [vmem:[#allocation6 + $0x3b8] sm:$0xff] }
 0xa83   : > { %11324 = vmatprep.subr.mxu1 %v14826_v1  ;;  %11306 = vmatpush3.msra.mxu0 %v8133_v21  ;;  %v8650_v21 = vld [vmem:[#allocation6 + $0x3b0] sm:$0xff] }
 0xa84   : > { %11325 = vmatpush3.msra.mxu1 %v8219_v63  ;;  %11307 = vmatprep.subr.mxu0 %v14826_v1  ;;  %v8649_v63 = vld [vmem:[#allocation6 + $0x3a8] sm:$0xff] }
 0xa85   : > { %11326 = vmatprep.subr.mxu1 %v14826_v1  ;;  %11308 = vmatpush3.msra.mxu0 %v8132_v52  ;;  %v8648_v52 = vld [vmem:[#allocation6 + $0x3a0] sm:$0xff] }
 0xa86   : > { %11327 = vmatpush3.msra.mxu1 %v8218_v20  ;;  %11309 = vmatprep.subr.mxu0 %v14826_v1  ;;  %v8647_v20 = vld [vmem:[#allocation6 + $0x398] sm:$0xff] }
 0xa87   : > { %11328 = vmatprep.subr.mxu1 %v14826_v1  ;;  %11310 = vmatpush3.msra.mxu0 %v8131_v49  ;;  %v8646_v49 = vld [vmem:[#allocation6 + $0x390] sm:$0xff] }
 0xa88   : > { %11329 = vmatpush3.msra.mxu1 %v8217_v61  ;;  %11311 = vmatprep.subr.mxu0 %v14826_v1  ;;  %v8645_v61 = vld [vmem:[#allocation6 + $0x388] sm:$0xff] }
 0xa89   : > { %11330 = vmatprep.subr.mxu1 %v14826_v1  ;;  %11312 = vmatpush3.msra.mxu0 %v8130_v29  ;;  %v8640_v29 = vld [vmem:[#allocation5 + $0x1c] sm:$0x1] }
 0xa8a   : > { %11331 = vmatpush3.msra.mxu1 %v8216_v35  ;;  %11313 = vmatprep.subr.mxu0 %v14826_v1  ;;  %v8641_v35 = vld [vmem:[#allocation5 + $0x1d] sm:$0x1] }
 0xa8b   : > { %11332 = vmatprep.subr.mxu1 %v14826_v1  ;;  %11314 = vmatpush3.msra.mxu0 %v8129_v5  ;;  %v8644_v5 = vld [vmem:[#allocation6 + $0x380] sm:$0xff] }
 0xa8c   : > { %11333 = vmatpush3.msra.mxu1 %v8215_v48  ;;  %11315 = vmatprep.subr.mxu0 %v14826_v1  ;;  %v8642_v48 = vmax.f32 %v8640_v29, %v8641_v35  ;;  %v8742_v29 = vld [vmem:[%s11826_s27] sm:$0x1] }
 0xa8d   : > { %11334 = vmatprep.subr.mxu1 %v14826_v1  ;;  %11316 = vmatpush3.msra.mxu0 %v8128_v41  ;;  %v8741_v41 = vld [vmem:[%s14606_s6 + $0x60] sm:$0xf] }
 0xa8e   : > { %11317 = vmatprep.mubr.msk.f32.mxu0 %vm11676_vm4, %v14826_v1  ;;  %11335 = vmatpush3.msra.mxu1 %v8214_v51  ;;  %v8738_v51 = vld [vmem:[%s14606_s6 + $0x48] sm:$0xff] }
 0xa8f   : > { %11336 = vmatprep.mubr.msk.f32.mxu1 %vm11676_vm4, %v14826_v1  ;;  %11318 = vmatmul.mubr.msk.f32.vlgmr.msra.gmra.mxu0 %vm5769_vm13, %v8126_v12  ;;  %v8735_v12 = vld [vmem:[%s14606_s6 + $0x30] sm:$0xff] }
 0xa90   : > { %11337 = vmatmul.mubr.msk.f32.vlgmr.msra.gmra.mxu1 %vm5769_vm13, %v8212_v47  ;;  %11339 = vmatprep.subr.mxu0 %v14826_v1  ;;  %v8734_v47 = vld [vmem:[%s14606_s6 + $0x28] sm:$0xff] }
 0xa91   : > { %11358 = vmatprep.subr.mxu1 %v14826_v1  ;;  %11340 = vmatpush3.msra.mxu0 %v8307_v62  ;;  %v8733_v62 = vld [vmem:[%s14606_s6 + $0x20] sm:$0xff] }
 0xa92   : > { %11359 = vmatpush3.msra.mxu1 %v8393_v30  ;;  %11341 = vmatprep.subr.mxu0 %v14826_v1  ;;  %v8732_v30 = vld [vmem:[%s14606_s6 + $0x18] sm:$0xff] }
 0xa93   : > { %11360 = vmatprep.subr.mxu1 %v14826_v1  ;;  %11342 = vmatpush3.msra.mxu0 %v8306_v26  ;;  %v8731_v26 = vld [vmem:[%s14606_s6 + $0x10] sm:$0xff] }
 0xa94   : > { %11361 = vmatpush3.msra.mxu1 %v8392_v9  ;;  %11343 = vmatprep.subr.mxu0 %v14826_v1  ;;  %v8730_v9 = vld [vmem:[%s14606_s6 + $0x8] sm:$0xff] }
 0xa95   : > { %11362 = vmatprep.subr.mxu1 %v14826_v1  ;;  %11344 = vmatpush3.msra.mxu0 %v8305_v17 }
 0xa96   : > { %11363 = vmatpush3.msra.mxu1 %v8391_v40  ;;  %11345 = vmatprep.subr.mxu0 %v14826_v1 }
 0xa97   : > { %11364 = vmatprep.subr.mxu1 %v14826_v1  ;;  %11346 = vmatpush3.msra.mxu0 %v8304_v37  ;;  %v8729_v37 = vld [vmem:[%s14606_s6] sm:$0xff]  ;;  %s14511_s6 = scalar_lea.hbm %s11831_s4, %s9455_s2 }
 0xa98   : > { %11365 = vmatpush3.msra.mxu1 %v8390_v46  ;;  %11347 = vmatprep.subr.mxu0 %v14826_v1 }
 0xa99   : > { %11366 = vmatprep.subr.mxu1 %v14826_v1  ;;  %11348 = vmatpush3.msra.mxu0 %v8303_v33 }
 0xa9a   : > { %11367 = vmatpush3.msra.mxu1 %v8389_v45  ;;  %11349 = vmatprep.subr.mxu0 %v14826_v1 }
 0xa9b   : > { %11368 = vmatprep.subr.mxu1 %v14826_v1  ;;  %11350 = vmatpush3.msra.mxu0 %v8302_v39 }
 0xa9c   : > { %11369 = vmatpush3.msra.mxu1 %v8388_v56  ;;  %11351 = vmatprep.subr.mxu0 %v14826_v1 }
 0xa9d   : > { %11370 = vmatprep.subr.mxu1 %v14826_v1  ;;  %11352 = vmatpush3.msra.mxu0 %v8301_v44 }
 0xa9e   : > { %11371 = vmatpush3.msra.mxu1 %v8387_v28  ;;  %11353 = vmatprep.subr.mxu0 %v14826_v1 }
 0xa9f   : > { %11372 = vmatprep.subr.mxu1 %v14826_v1  ;;  %11354 = vmatpush3.msra.mxu0 %v8300_v14 }
 0xaa0   : > { %11355 = vmatprep.mubr.msk.f32.mxu0 %vm11676_vm4, %v14826_v1  ;;  %11373 = vmatpush3.msra.mxu1 %v8386_v32 }
 0xaa1   : > { %11374 = vmatprep.mubr.msk.f32.mxu1 %vm11676_vm4, %v14826_v1  ;;  %11356 = vmatmul.mubr.msk.f32.vlgmr.msra.gmra.mxu0 %vm5769_vm13, %v8298_v27 }
 0xaa2   : > { %11375 = vmatmul.mubr.msk.f32.vlgmr.msra.gmra.mxu1 %vm5769_vm13, %v8384_v11  ;;  %11377 = vmatprep.subr.mxu0 %v14826_v1 }
 0xaa3   : > { %11396 = vmatprep.subr.mxu1 %v14826_v1  ;;  %11378 = vmatpush3.msra.mxu0 %v8479_v7 }
 0xaa4   : > { %11397 = vmatpush3.msra.mxu1 %v8565_v6  ;;  %11379 = vmatprep.subr.mxu0 %v14826_v1 }
 0xaa5   : > { %11398 = vmatprep.subr.mxu1 %v14826_v1  ;;  %11380 = vmatpush3.msra.mxu0 %v8478_v59 }
 0xaa6   : > { %11399 = vmatpush3.msra.mxu1 %v8564_v54  ;;  %11381 = vmatprep.subr.mxu0 %v14826_v1 }
 0xaa7   : > { %11400 = vmatprep.subr.mxu1 %v14826_v1  ;;  %11382 = vmatpush3.msra.mxu0 %v8477_v55 }
 0xaa8   : > { %11401 = vmatpush3.msra.mxu1 %v8563_v53  ;;  %11383 = vmatprep.subr.mxu0 %v14826_v1 }
 0xaa9   : > { %11402 = vmatprep.subr.mxu1 %v14826_v1  ;;  %11384 = vmatpush3.msra.mxu0 %v8476_v18 }
 0xaaa   : > { %11403 = vmatpush3.msra.mxu1 %v8562_v36  ;;  %11385 = vmatprep.subr.mxu0 %v14826_v1 }
 0xaab   : > { %11404 = vmatprep.subr.mxu1 %v14826_v1  ;;  %11386 = vmatpush3.msra.mxu0 %v8475_v19 }
 0xaac   : > { %11405 = vmatpush3.msra.mxu1 %v8561_v22  ;;  %11387 = vmatprep.subr.mxu0 %v14826_v1 }
 0xaad   : > { %11406 = vmatprep.subr.mxu1 %v14826_v1  ;;  %11388 = vmatpush3.msra.mxu0 %v8474_v0 }
 0xaae   : > { %11407 = vmatpush3.msra.mxu1 %v8560_v23  ;;  %11389 = vmatprep.subr.mxu0 %v14826_v1 }
 0xaaf   : > { %11408 = vmatprep.subr.mxu1 %v14826_v1  ;;  %11390 = vmatpush3.msra.mxu0 %v8473_v43 }
 0xab0   : > { %11409 = vmatpush3.msra.mxu1 %v8559_v50  ;;  %11391 = vmatprep.subr.mxu0 %v14826_v1 }
 0xab1   : > { %11410 = vmatprep.subr.mxu1 %v14826_v1  ;;  %11392 = vmatpush3.msra.mxu0 %v8472_v3 }
 0xab2   : > { %11393 = vmatprep.mubr.msk.f32.mxu0 %vm11676_vm4, %v14826_v1  ;;  %11411 = vmatpush3.msra.mxu1 %v8558_v31 }
 0xab3   : > { %11412 = vmatprep.mubr.msk.f32.mxu1 %vm11676_vm4, %v14826_v1  ;;  %11394 = vmatmul.mubr.msk.f32.vlgmr.msra.gmra.mxu0 %vm5769_vm13, %v8470_v10 }
 0xab4   : > { %11413 = vmatmul.mubr.msk.f32.vlgmr.msra.gmra.mxu1 %vm5769_vm13, %v8556_v8  ;;  %11415 = vmatprep.subr.mxu0 %v14826_v1 }
 0xab5   : > { %11416 = vmatpush3.msra.mxu0 %v8651_v58  ;;  %11431 = vmatprep.mubr.msk.f32.mxu0 %vm11676_vm4, %v14826_v1 }
 0xab6   : > { %11417 = vmatprep.subr.mxu0 %v14826_v1  ;;  %11434 = vmatprep.subr.mxu1 %v14826_v1 }
 0xab7   : > { %11418 = vmatpush3.msra.mxu0 %v8650_v21  ;;  %11460 = vmatprep.mubr.msk.f32.mxu1 %vm11676_vm4, %v14826_v1 }
 0xab8   : > { %11419 = vmatprep.subr.mxu0 %v14826_v1  ;;  %11435 = vmatpush3.msk.msra.mxu1 %vm8747_vm8, %v8741_v41 }
 0xab9   : > { %11420 = vmatpush3.msra.mxu0 %v8649_v63  ;;  %11436 = vmatprep.subr.mxu1 %v14826_v1  ;;  %v8726_v63 = vld [vmem:[%s14844_s12] sm:$0x1]  ;;  %s11677_s12 = smov [#allocation9]  }
 0xaba   : > { %11421 = vmatprep.subr.mxu0 %v14826_v1  ;;  %11437 = vmatpush3.msra.mxu1 %v8740_v25  ;;  %s11580_s13 = sshll.u32 %s11677_s12, 4  ;;  %s11581_s13 = int_to_ptr.vmem [resolvable:$false] %s11580_s13 }
 0xabb   : > { %11422 = vmatpush3.msra.mxu0 %v8648_v52  ;;  %11438 = vmatprep.subr.mxu1 %v14826_v1  ;;  %s11582_s0 = scalar_lea.vmem %s11581_s13, 32  ;;  %p11583_p11 = scmp.lt.s32.totalorder %s8837_s5, %s11581_s13 }
 0xabc   : > { %11423 = vmatprep.subr.mxu0 %v14826_v1  ;;  %11439 = vmatpush3.msra.mxu1 %v8739_v24  ;;  %p11584_p12 = scmp.lt.s32.totalorder %s11582_s0, %s11576_s9 }
 0xabd   : > { %11424 = vmatpush3.msra.mxu0 %v8647_v20  ;;  %11440 = vmatprep.subr.mxu1 %v14826_v1 }
 0xabe   : > { %11425 = vmatprep.subr.mxu0 %v14826_v1  ;;  %11441 = vmatpush3.msra.mxu1 %v8738_v51  ;;  %p11585_p13 = por %p11584_p12, %p11583_p11 }
 0xabf   : > { %11426 = vmatpush3.msra.mxu0 %v8646_v49  ;;  %11442 = vmatprep.subr.mxu1 %v14826_v1 }
 0xac0   : > { %11427 = vmatprep.subr.mxu0 %v14826_v1  ;;  %11443 = vmatpush3.msra.mxu1 %v8737_v2  ;;  %p11586_p0 = pnand %p11585_p13, %p11579_p10 }
 0xac1   : > { %11428 = vmatpush3.msra.mxu0 %v8645_v61  ;;  %11444 = vmatprep.subr.mxu1 %v14826_v1 }
 0xac2   : > { %11429 = vmatprep.subr.mxu0 %v14826_v1  ;;  %11445 = vmatpush3.msra.mxu1 %v8736_v4 }
 0xac3   : > { %11430 = vmatpush3.msra.mxu0 %v8644_v5  ;;  %11446 = vmatprep.subr.mxu1 %v14826_v1 }
 0xac4   : > { %11432 = vmatmul.mubr.msk.f32.vlgmr.msra.gmra.mxu0 %vm5769_vm13, %v8642_v48  ;;  %11447 = vmatpush3.msra.mxu1 %v8735_v12  ;;  %vm8743_vm13 = vcmask 818176  }
 0xac5   : > { %11448 = vmatprep.subr.mxu1 %v14826_v1 }
 0xac6   : > { %11449 = vmatpush3.msra.mxu1 %v8734_v47 }
 0xac7   : > { %11450 = vmatprep.subr.mxu1 %v14826_v1 }
 0xac8   : > { %11451 = vmatpush3.msra.mxu1 %v8733_v62 }
 0xac9   : > { %11452 = vmatprep.subr.mxu1 %v14826_v1 }
 0xaca   : > { %11453 = vmatpush3.msra.mxu1 %v8732_v30 }
 0xacb   : > { %11454 = vmatprep.subr.mxu1 %v14826_v1 }
 0xacc   : > { %11455 = vmatpush3.msra.mxu1 %v8731_v26 }
 0xacd   : > { %11456 = vmatprep.subr.mxu1 %v14826_v1 }
 0xace   : > { %11457 = vmatpush3.msra.mxu1 %v8730_v9 }
 0xacf   : > { %11458 = vmatprep.subr.mxu1 %v14826_v1 }
 0xad0   : > { %11459 = vmatpush3.msra.mxu1 %v8729_v37 }
 0xb08   : > { %v7531_v17 = vpop.f32.mrf.mxu0 }
 0xb09   : > { %v7604_v40 = vpop.f32.mrf.mxu1 }
 0xb0a   : > { %v7605_v46 = vadd.f32 %v7604_v40, %v7531_v17  ;;  %v11167_v33 = vpop.f32.mrf.mxu0 }
 0xb0b   : > { %v11186_v45 = vpop.f32.mrf.mxu1 }
 0xb19   : > { %v7689_v39 = vpop.f32.mrf.mxu0 }
 0xb1a   : > { %v7693_v56 = vadd.f32 %v7689_v39, %v7605_v46  ;;  %v7775_v44 = vpop.f32.mrf.mxu1 }
 0xb1b   : > { %v11205_v28 = vpop.f32.mrf.mxu0 }
 0xb1c   : > { %v7779_v14 = vadd.f32 %v7775_v44, %v7693_v56  ;;  %v11224_v38 = vpop.f32.mrf.mxu1 }
 0xb2b   : > { %v7861_v57 = vpop.f32.mrf.mxu0 }
 0xb2c   : > { %v7865_v32 = vadd.f32 %v7861_v57, %v7779_v14  ;;  %v7947_v13 = vpop.f32.mrf.mxu1 }
 0xb2d   : > { %v11243_v15 = vpop.f32.mrf.mxu0 }
 0xb2e   : > { %v7951_v27 = vadd.f32 %v7947_v13, %v7865_v32  ;;  %v11262_v11 = vpop.f32.mrf.mxu1 }
 0xb3d   : > { %v8033_v7 = vpop.f32.mrf.mxu0 }
 0xb3e   : > { %v8119_v6 = vpop.f32.mrf.mxu1  ;;  %v8037_v23 = vadd.f32 %v8033_v7, %v7951_v27 }
 0xb3f   : > { %v11281_v1 = vpop.f32.mrf.mxu0 }
 0xb40   : > { %v11300_v59 = vpop.f32.mrf.mxu1  ;;  %v8123_v43 = vadd.f32 %v8119_v6, %v8037_v23 }
 0xb4f   : > { %v8205_v54 = vpop.f32.mrf.mxu0 }
 0xb50   : > { %v8291_v55 = vpop.f32.mrf.mxu1  ;;  %v8209_v50 = vadd.f32 %v8205_v54, %v8123_v43 }
 0xb51   : > { %v11319_v53 = vpop.f32.mrf.mxu0 }
 0xb52   : > { %v11338_v18 = vpop.f32.mrf.mxu1  ;;  %v8295_v16 = vadd.f32 %v8291_v55, %v8209_v50 }
 0xb61   : > { %v8377_v36 = vpop.f32.mrf.mxu0 }
 0xb62   : > { %v8463_v19 = vpop.f32.mrf.mxu1  ;;  %v8381_v34 = vadd.f32 %v8377_v36, %v8295_v16 }
 0xb63   : > { %v11357_v22 = vpop.f32.mrf.mxu0 }
 0xb64   : > { %v11376_v0 = vpop.f32.mrf.mxu1  ;;  %v8467_v10 = vadd.f32 %v8463_v19, %v8381_v34 }
 0xb73   : > { %v8549_v3 = vpop.f32.mrf.mxu0 }
 0xb74   : > { %v8635_v42 = vpop.f32.mrf.mxu1  ;;  %v8553_v8 = vadd.f32 %v8549_v3, %v8467_v10 }
 0xb75   : > { %v11395_v60 = vpop.f32.mrf.mxu0 }
 0xb76   : > { %v11414_v31 = vpop.f32.mrf.mxu1  ;;  %v8639_v58 = vadd.f32 %v8635_v42, %v8553_v8 }
 0xb84   : > { %v8721_v21 = vpop.f32.mrf.mxu0 }
 0xb85   : > { %v8725_v52 = vadd.f32 %v8721_v21, %v8639_v58 }
 0xb86   : > { %v11433_v20 = vpop.f32.mrf.mxu0 }
 0xb87   : > { %v8727_v49 = vadd.f32 %v8726_v63, %v8725_v52 }
 0xb89   : > { %v8728_v61 = vmax.f32 %v8727_v49, 0.0 }
 0xb8b   : > { %11461 = vmatmul.mubr.msk.f32.vlgmr.msra.gmra.mxu1 %vm8743_vm13, %v8728_v61 }
 0xc4b   : > { %v8817_v35 = vpop.f32.mrf.mxu1 }
 0xc4c   : > { %v8818_v5 = vadd.f32 %v8817_v35, %v8742_v29 }
 0xc4d   : > { %v11462_v48 = vpop.f32.mrf.mxu1 }
 0xc4e   : > { %8822 = vst.msk [vmem:[%s909_s3] sm:$0x1] %vm8821_vm11, %v8818_v5 }
 0xc4f   : > { %11589 = shalt.err (!%p11586_p0)
}
 0xc50   : > { %s11590_s3 = scalar_lea.hbm %s14511_s6, 16  ;;  %s11594_s2 = scalar_lea.hbm %s11831_s4, 32 }
 0xc51   : > { %p11591_p1 = scmp.ne.s32.totalorder %s14511_s6, %s11590_s3  ;;  %p11595_p4 = scmp.lt.s32.totalorder %s14511_s6, %s11831_s4 }
 0xc52   : > { %p11596_p7 = scmp.lt.s32.totalorder %s11594_s2, %s11590_s3 }
 0xc53   : > { %p11592_p2 = pnand %p11591_p1, %p11871_p5 }
 0xc54   : > { %p11597_p6 = por %p11596_p7, %p11595_p4 }
 0xc55   : > { %p11593_p3 = pneg %p11592_p2 }
 0xc57   : > { %p11598_p8 = pnand %p11597_p6, %p11593_p3 }
 0xc59   : > { %11601 = shalt.err (!%p11598_p8)
}
 0xc5a   : > { %11470 = dma.vmem_to_hbm [thread:$0]  (%p11871_p5), %s8837_s5, 16, %s14511_s6, %s8824_s8  }
 0xc5b PF: > { %p11482_p9 = scmp.ge.s32.totalorder %s11640_s15, 2  ;;  %s8848_s9 = sand.u32 1, %s11628_s7  }
 0xc5c   : > { %p14845_p10 = scmp.ne.s32.totalorder %s14612_s1, 0  ;;  %s8849_s13 = scalar_lea.sflag [#allocation8], %s8848_s9 }
 0xc5e   : > { %p11477_p11 = pnand %p11482_p9, %p14845_p10 }
 0xc60   : > { %p11478_p12 = pneg %p11477_p11 }
 0xc62   : > { %11623 = dma.done.wait (%p11478_p12), %s8849_s13, 16  }
 0xc63   : > { %11625 = vsyncadd (%p11478_p12), %s8849_s13, 4294967280  ;;  %s14846_s15 = sld [smem:[#allocation32_spill]]  ;;  %s14849_s7 = smov %s11632_s10 }
 0xc64   : > { %s14847_s12 = sld [smem:[#allocation31_spill]] }
 0xc65   : > { %s14848_s11 = sld [smem:[#allocation33_spill]] }
 0xc69   : > { %p70_p13 = scmp.ge.s32.totalorder %s14846_s15, 4  }
 0xc6a   : > { %s14850_s10 = smov %s14847_s12 }
 0xc6b   :  { %72 = sbr.rel (!%p70_p13) target bundleno = 61 (0x3d), region = 236 }
 0xc70   :  { %8853 = vsyncpa [#allocation7], 1 }
 0xc71   :  { %8855 = vsyncpa [#allocation7 + $0x1], 1 }
 0xc72   :  { %8856 = vsyncpa [#allocation8], 1 }
 0xc73   :  { %8858 = vsyncpa [#allocation8 + $0x1], 1 }

</bundles_post_ra>
